<compile_context>
chip_gen: v7x
topology: tpu7x:2x2x1
jax: 0.10.0
libtpu: 0.0.40
codegen_flags: <defaults>
</compile_context>

<pallas_src>
import functools

import numpy as np
import jax
import jax.numpy as jnp
from jax.experimental import pallas as pl
from jax.experimental.pallas import tpu as pltpu


def _round_up(x, m):
    return (x + m - 1) // m * m


# --------------------------------------------------------------------------
# Eval-mode BatchNorm folding (frozen running stats -> conv scale + bias)
# --------------------------------------------------------------------------

def fold_bn(w, gamma, beta, mean, var, eps=1e-5):
    scale = gamma * jax.lax.rsqrt(var + eps)           # (O,)
    w_f = w * scale[:, None, None, None]               # scale output channels
    b_f = beta - mean * scale
    return w_f, b_f


# --------------------------------------------------------------------------
# Implicit-GEMM 3x3 stride-1 conv (+bias, +optional residual, +optional ReLU)
# --------------------------------------------------------------------------

def _conv3x3_accum(x_ref, w_ref, Wp, Mo):
    """Sum of 9 shifted-slice matmuls on the flat (Lin, C) padded sample."""
    O = w_ref.shape[2]
    xv = x_ref[0]                                      # (Lin, C) bf16, single VMEM load
    acc = jnp.zeros((Mo, O), jnp.float32)
    for t in range(9):                                 # static unroll over taps
        di, dj = divmod(t, 3)
        off = di * Wp + dj                             # static flat shift
        acc = acc + jnp.dot(xv[off:off + Mo, :], w_ref[t],
                            preferred_element_type=jnp.float32)
    return acc


def _conv3x3_kernel(Wp, Mo, relu, x_ref, w_ref, b_ref, o_ref):
    y = _conv3x3_accum(x_ref, w_ref, Wp, Mo) + b_ref[...]
    if relu:
        y = jnp.maximum(y, 0.0)
    o_ref[0] = y.astype(o_ref.dtype)


def _conv3x3_res_kernel(Wp, Mo, relu, x_ref, w_ref, b_ref, r_ref, o_ref):
    y = _conv3x3_accum(x_ref, w_ref, Wp, Mo) + b_ref[...]
    y = y + r_ref[0].astype(jnp.float32)               # fused residual add
    if relu:
        y = jnp.maximum(y, 0.0)
    o_ref[0] = y.astype(o_ref.dtype)


def conv3x3_s1(x, w, bias, relu=True, residual=None):
    """3x3 / stride-1 / pad-1 conv with folded-BN bias (+residual) (+ReLU).

    x: (B,H,W,C) compact NHWC; w: (O,C,3,3) BN-folded f32; bias: (O,) f32;
    residual: (B,H,W,O) or None.  Output: (B,H,W,O) bf16.
    No im2col materialization: only a small spatial zero-pad in HBM.
    """
    B, H, W, C = x.shape
    O = w.shape[0]
    Ho, Wo = H, W
    Wp = W + 2                                         # W-padded grid width
    # pad H by (1, 2): the extra bottom row keeps dj-shifted flat reads in-bounds.
    xp = jnp.pad(x.astype(jnp.bfloat16), ((0, 0), (1, 2), (1, 1), (0, 0)))
    Lin = (H + 3) * Wp
    Mo = Ho * Wp                                       # rows computed (incl. junk cols)
    xf = xp.reshape(B, Lin, C)
    wt = jnp.transpose(w, (2, 3, 1, 0)).reshape(9, C, O).astype(jnp.bfloat16)
    b2 = bias.reshape(1, O).astype(jnp.float32)

    in_specs = [pl.BlockSpec((1, Lin, C), lambda n: (n, 0, 0)),
                pl.BlockSpec((9, C, O), lambda n: (0, 0, 0)),
                pl.BlockSpec((1, O), lambda n: (0, 0))]
    args = [xf, wt, b2]
    if residual is None:
        kern = functools.partial(_conv3x3_kernel, Wp, Mo, relu)
    else:
        rf = jnp.pad(residual.astype(jnp.bfloat16),
                     ((0, 0), (0, 0), (0, 2), (0, 0))).reshape(B, Mo, O)
        args.append(rf)
        in_specs.append(pl.BlockSpec((1, Mo, O), lambda n: (n, 0, 0)))
        kern = functools.partial(_conv3x3_res_kernel, Wp, Mo, relu)

    out = pl.pallas_call(
        kern,
        out_shape=jax.ShapeDtypeStruct((B, Mo, O), jnp.bfloat16),
        grid=(B,),
        in_specs=in_specs,
        out_specs=pl.BlockSpec((1, Mo, O), lambda n: (n, 0, 0)),
        compiler_params=pltpu.CompilerParams(dimension_semantics=("parallel",)),
    )(*args)
    # drop the junk (padded-width) columns; XLA fuses this with the next layer's pad.
    return out.reshape(B, Ho, Wp, O)[:, :, :Wo, :]


# --------------------------------------------------------------------------
# Explicit im2col GEMM (stride-2 convs only: 7x7 stem, 3x3 s2, 1x1 downsample)
# --------------------------------------------------------------------------

def _gemm_bias_kernel(relu, a_ref, b_ref, bias_ref, o_ref):
    y = jnp.dot(a_ref[...], b_ref[...], preferred_element_type=jnp.float32)
    y = y + bias_ref[...]
    if relu:
        y = jnp.maximum(y, 0.0)
    o_ref[...] = y.astype(o_ref.dtype)
    # TODO(synk): 64-output-channel stores remain 64-lane masked vst; the in-kernel
    # (tm,64)->(tm//2,128) lane-fold was skipped to avoid a risky relayout reshape.


def pallas_gemm_bias(a, b, bias, relu):
    """C = A @ B + bias [ReLU], bf16 operands, f32 accumulate, bf16 out."""
    M, K = a.shape
    _, O = b.shape
    if M <= 512:
        tm = _round_up(M, 8)
        Mp = tm
    else:
        tm = 512                                       # larger M tiles per review
        Mp = _round_up(M, tm)
    if Mp != M:
        a = jnp.pad(a, ((0, Mp - M), (0, 0)))
    out = pl.pallas_call(
        functools.partial(_gemm_bias_kernel, relu),
        out_shape=jax.ShapeDtypeStruct((Mp, O), jnp.bfloat16),
        grid=(Mp // tm,),
        in_specs=[pl.BlockSpec((tm, K), lambda i: (i, 0)),
                  pl.BlockSpec((K, O), lambda i: (0, 0)),
                  pl.BlockSpec((1, O), lambda i: (0, 0))],
        out_specs=pl.BlockSpec((tm, O), lambda i: (i, 0)),
        compiler_params=pltpu.CompilerParams(dimension_semantics=("parallel",)),
    )(a, b, bias.reshape(1, O).astype(jnp.float32))
    return out[:M]


def _extract_patches(x, kh, kw, stride, pad):
    N, H, W, C = x.shape
    xp = jnp.pad(x.astype(jnp.bfloat16), ((0, 0), (pad, pad), (pad, pad), (0, 0)))
    Ho = (H + 2 * pad - kh) // stride + 1
    Wo = (W + 2 * pad - kw) // stride + 1
    pieces = [xp[:, di:di + stride * (Ho - 1) + 1:stride,
                 dj:dj + stride * (Wo - 1) + 1:stride, :]
              for di in range(kh) for dj in range(kw)]
    k_raw = kh * kw * C
    k_tot = k_raw
    if k_raw > 128 and k_raw % 128 != 0:               # fold lane padding into concat
        k_tot = _round_up(k_raw, 128)
        pieces.append(jnp.zeros((N, Ho, Wo, k_tot - k_raw), jnp.bfloat16))
    p = jnp.concatenate(pieces, axis=-1) if len(pieces) > 1 else pieces[0]
    return p.reshape(N * Ho * Wo, k_tot), Ho, Wo, k_raw


def conv_im2col(x, w, bias, stride, pad, relu):
    B = x.shape[0]
    O, Cin, kh, kw = w.shape
    patches, Ho, Wo, k_raw = _extract_patches(x, kh, kw, stride, pad)
    k_tot = patches.shape[1]
    wmat = jnp.transpose(w, (2, 3, 1, 0)).reshape(k_raw, O)
    if k_tot > k_raw:
        wmat = jnp.pad(wmat, ((0, k_tot - k_raw), (0, 0)))
    y = pallas_gemm_bias(patches, wmat.astype(jnp.bfloat16), bias, relu)
    return y.reshape(B, Ho, Wo, O)


# --------------------------------------------------------------------------
# L1 loss: per-block (8,128) partial sums on a parallel grid, reduced in JAX
# --------------------------------------------------------------------------

def _l1_partial_kernel(a_ref, b_ref, o_ref):
    d = jnp.abs(a_ref[...].astype(jnp.float32) - b_ref[...].astype(jnp.float32))
    br = d.shape[0]
    o_ref[...] = jnp.sum(d.reshape(br // 8, 8, 128), axis=0)


def pallas_l1(a, b):
    """mean(|a - b|) over all elements (torch.nn.L1Loss default)."""
    n = a.size
    af = a.reshape(-1)
    bf = b.reshape(-1)
    if n % 128 != 0:
        npad = _round_up(n, 128)
        af = jnp.pad(af, (0, npad - n))
        bf = jnp.pad(bf, (0, npad - n))
    a2 = af.reshape(-1, 128)
    b2 = bf.reshape(-1, 128)
    R = a2.shape[0]
    br = 256 if R > 256 else _round_up(R, 8)
    Rp = _round_up(R, br)
    if Rp != R:
        a2 = jnp.pad(a2, ((0, Rp - R), (0, 0)))
        b2 = jnp.pad(b2, ((0, Rp - R), (0, 0)))
    nblk = Rp // br
    partial = pl.pallas_call(
        _l1_partial_kernel,
        out_shape=jax.ShapeDtypeStruct((nblk * 8, 128), jnp.float32),
        grid=(nblk,),
        in_specs=[pl.BlockSpec((br, 128), lambda i: (i, 0)),
                  pl.BlockSpec((br, 128), lambda i: (i, 0))],
        out_specs=pl.BlockSpec((8, 128), lambda i: (i, 0)),
        compiler_params=pltpu.CompilerParams(dimension_semantics=("parallel",)),
    )(a2, b2)
    return jnp.sum(partial) / n


# --------------------------------------------------------------------------
# Network plumbing (maxpool / blocks / features / upsample) on the kernels above
# --------------------------------------------------------------------------

def maxpool_3x3_s2_p1(x):
    """MaxPool2d(3, stride=2, padding=1) on NHWC via pairwise max (XLA-fused)."""
    N, H, W, C = x.shape
    Ho = (H + 2 - 3) // 2 + 1
    Wo = (W + 2 - 3) // 2 + 1
    xp = jnp.pad(x, ((0, 0), (1, 1), (1, 1), (0, 0)),
                 constant_values=float('-inf'))
    out = None
    for di in range(3):
        for dj in range(3):
            tap = xp[:, di:di + 2 * (Ho - 1) + 1:2, dj:dj + 2 * (Wo - 1) + 1:2, :]
            out = tap if out is None else jnp.maximum(out, tap)
    return out


def basic_block(x, bp, stride):
    w1, b1 = fold_bn(bp['conv1_w'], *bp['bn1'])
    w2, b2 = fold_bn(bp['conv2_w'], *bp['bn2'])
    if stride == 1:
        out = conv3x3_s1(x, w1, b1, relu=True)
    else:
        out = conv_im2col(x, w1, b1, stride=stride, pad=1, relu=True)
    if 'ds_w' in bp:
        wd, bd = fold_bn(bp['ds_w'], *bp['ds_bn'])
        identity = conv_im2col(x, wd, bd, stride=stride, pad=0, relu=False)
    else:
        identity = x.astype(jnp.bfloat16)
    # conv2 + residual add + ReLU fused into the implicit-GEMM epilogue.
    return conv3x3_s1(out, w2, b2, relu=True, residual=identity)


def resnet_features(x_nchw, params):
    """(depth-3, depth-6) features of resnet18 children()[:6], eval-mode BN.
    The stem IS the depth-3 output, shared with the depth-6 branch."""
    x = jnp.transpose(x_nchw, (0, 2, 3, 1))            # NCHW -> NHWC
    w0, b0 = fold_bn(params['conv1_w'], *params['bn1'])
    stem = conv_im2col(x, w0, b0, stride=2, pad=3, relu=True)   # depth-3 features
    y = maxpool_3x3_s2_p1(stem)
    y = basic_block(y, params['l1b0'], 1)
    y = basic_block(y, params['l1b1'], 1)
    y = basic_block(y, params['l2b0'], 2)
    y = basic_block(y, params['l2b1'], 1)               # depth-6 features
    return stem, y


def _bilinear_weights(in_size, out_size):
    o = np.arange(out_size, dtype=np.float64)
    s = (o + 0.5) * (in_size / out_size) - 0.5
    s0 = np.floor(s).astype(np.int64)
    w = (s - s0).astype(np.float32)
    i0 = np.clip(s0, 0, in_size - 1)
    i1 = np.clip(s0 + 1, 0, in_size - 1)
    return jnp.asarray(i0), jnp.asarray(i1), jnp.asarray(w)
# TODO(synk): antialiased *down*sampling branch of F.interpolate not implemented
# (this forward only upsamples, where antialias=True is a no-op).


def bilinear_upsample(x, Ho, Wo):
    """x: NCHW -> NCHW bilinear (align_corners=False), 2-tap separable; XLA fuses
    this with the subsequent prediction add."""
    N, C, Hi, Wi = x.shape
    ih0, ih1, wh = _bilinear_weights(Hi, Ho)
    iw0, iw1, ww = _bilinear_weights(Wi, Wo)
    xw = x[..., iw0] * (1.0 - ww) + x[..., iw1] * ww
    return (xw[..., ih0, :] * (1.0 - wh)[:, None]
            + xw[..., ih1, :] * wh[:, None])


def style_reconstruction_loss(prediction, target, down_image, params):
    Ho, Wo = prediction.shape[-2], prediction.shape[-1]
    up_image = bilinear_upsample(down_image, Ho, Wo)
    prediction_image = up_image + prediction            # fused with upsample by XLA
    l1 = pallas_l1(prediction_image, target)

    # One network pass over [target; prediction] (valid because BN is eval-mode).
    both = jnp.concatenate([target, prediction_image], axis=0)
    feat3, feat6 = resnet_features(both, params)
    n = target.shape[0]
    loss6 = pallas_l1(feat6[n:], feat6[:n])
    loss3 = pallas_l1(feat3[n:], feat3[:n])
    return loss6 + loss3 + 0.01 * l1


# --------------------------------------------------------------------------
# Deterministic synthetic parameters (shapes of resnet18 children()[:6])
# --------------------------------------------------------------------------

def init_params(key):
    keys = iter(jax.random.split(key, 64))

    def conv(o, c, k):
        fan_in = c * k * k
        return (jax.random.normal(next(keys), (o, c, k, k), jnp.float32)
                * np.sqrt(2.0 / fan_in))

    def bn(c):
        gamma = 1.0 + 0.1 * jax.random.normal(next(keys), (c,), jnp.float32)
        beta = 0.1 * jax.random.normal(next(keys), (c,), jnp.float32)
        mean = 0.1 * jax.random.normal(next(keys), (c,), jnp.float32)
        var = 0.5 + jax.random.uniform(next(keys), (c,), jnp.float32)
        return gamma, beta, mean, var

    def block(cin, cout, downsample):
        d = {'conv1_w': conv(cout, cin, 3), 'bn1': bn(cout),
             'conv2_w': conv(cout, cout, 3), 'bn2': bn(cout)}
        if downsample:
            d['ds_w'] = conv(cout, cin, 1)
            d['ds_bn'] = bn(cout)
        return d

    return {
        'conv1_w': conv(64, 3, 7), 'bn1': bn(64),
        'l1b0': block(64, 64, False), 'l1b1': block(64, 64, False),
        'l2b0': block(64, 128, True), 'l2b1': block(128, 128, False),
    }


if __name__ == "__main__":
    key = jax.random.PRNGKey(0)
    k1, k2, k3, kp = jax.random.split(key, 4)
    N, H, W = 2, 32, 32
    prediction = jax.random.normal(k1, (N, 3, H, W), jnp.float32)
    target = jax.random.normal(k2, (N, 3, H, W), jnp.float32)
    down_image = jax.random.normal(k3, (N, 3, H // 2, W // 2), jnp.float32)
    params = init_params(kp)

    loss_fn = jax.jit(style_reconstruction_loss)
    loss = loss_fn(prediction, target, down_image, params)
    jax.block_until_ready(loss)
    assert loss.shape == () and jnp.isfinite(loss)
    print("KERNEL_OK")
</pallas_src>

<mosaic_0001>
module attributes {stable_mosaic.version = 11 : i64} {
  func.func @_gemm_bias_kernel(%arg0: i32, %arg1: memref<512x256xbf16, #tpu.memory_space<vmem>>, %arg2: memref<256x64xbf16, #tpu.memory_space<vmem>>, %arg3: memref<1x64xf32, #tpu.memory_space<vmem>>, %arg4: memref<512x64xbf16, #tpu.memory_space<vmem>>) attributes {dimension_semantics = [#tpu.dimension_semantics<parallel>], iteration_bounds = array<i64: 2>, scalar_prefetch = 0 : i64, scratch_operands = 0 : i64, tpu.core_type = #tpu.core_type<tc>, window_params = [{transform_indices = @transform_0, window_bounds = array<i64: 512, 256>}, {pipeline_mode = #tpu.pipeline_mode<synchronous>, transform_indices = @transform_1, window_bounds = array<i64: 256, 64>}, {pipeline_mode = #tpu.pipeline_mode<synchronous>, transform_indices = @transform_2, window_bounds = array<i64: 1, 64>}, {transform_indices = @transform_3, window_bounds = array<i64: 512, 64>}]} {
    %c0 = arith.constant 0 : index
    %c0_0 = arith.constant 0 : index
    %0 = vector.load %arg1[%c0, %c0_0] : memref<512x256xbf16, #tpu.memory_space<vmem>>, vector<512x256xbf16>
    %c0_1 = arith.constant 0 : index
    %c0_2 = arith.constant 0 : index
    %1 = vector.load %arg2[%c0_1, %c0_2] : memref<256x64xbf16, #tpu.memory_space<vmem>>, vector<256x64xbf16>
    %cst = arith.constant dense<0.000000e+00> : vector<512x64xf32>
    %2 = tpu.matmul %0, %1, %cst {dimension_numbers = #tpu.dot_dimension_numbers<[1], [0], [0], [1], [0, 0, 1, 1], [], []>} : vector<512x256xbf16>, vector<256x64xbf16>, vector<512x64xf32> -> vector<512x64xf32>
    %c0_3 = arith.constant 0 : index
    %c0_4 = arith.constant 0 : index
    %3 = vector.load %arg3[%c0_3, %c0_4] : memref<1x64xf32, #tpu.memory_space<vmem>>, vector<1x64xf32>
    %4 = vector.broadcast %3 : vector<1x64xf32> to vector<512x64xf32>
    %5 = arith.addf %2, %4 : vector<512x64xf32>
    %cst_5 = arith.constant 0.000000e+00 : f32
    %6 = vector.broadcast %cst_5 : f32 to vector<512x64xf32>
    %7 = arith.maximumf %5, %6 : vector<512x64xf32>
    %8 = arith.truncf %7 : vector<512x64xf32> to vector<512x64xbf16>
    %c0_6 = arith.constant 0 : index
    %c0_7 = arith.constant 0 : index
    %9 = vector.load %arg4[%c0_6, %c0_7] : memref<512x64xbf16, #tpu.memory_space<vmem>>, vector<512x64xbf16>
    tpu.vector_store %arg4[%c0_6, %c0_7], %8 {strides = array<i32>} : memref<512x64xbf16, #tpu.memory_space<vmem>>, vector<512x64xbf16>,
    return
  }
  func.func @transform_0(%arg0: i32) -> (i32, i32) {
    %c0_i32 = arith.constant 0 : i32
    %c0_i32_0 = arith.constant 0 : i32
    return %arg0, %c0_i32 : i32, i32
  }
  func.func @transform_1(%arg0: i32) -> (i32, i32) {
    %c0_i32 = arith.constant 0 : i32
    %c0_i32_0 = arith.constant 0 : i32
    %c0_i32_1 = arith.constant 0 : i32
    return %c0_i32, %c0_i32_0 : i32, i32
  }
  func.func @transform_2(%arg0: i32) -> (i32, i32) {
    %c0_i32 = arith.constant 0 : i32
    %c0_i32_0 = arith.constant 0 : i32
    %c0_i32_1 = arith.constant 0 : i32
    return %c0_i32, %c0_i32_0 : i32, i32
  }
  func.func @transform_3(%arg0: i32) -> (i32, i32) {
    %c0_i32 = arith.constant 0 : i32
    %c0_i32_0 = arith.constant 0 : i32
    return %arg0, %c0_i32 : i32, i32
  }
}

module attributes {stable_mosaic.version = 11 : i64} {
  func.func @_l1_partial_kernel(%arg0: i32, %arg1: memref<256x128xbf16, #tpu.memory_space<vmem>>, %arg2: memref<256x128xbf16, #tpu.memory_space<vmem>>, %arg3: memref<8x128xf32, #tpu.memory_space<vmem>>) attributes {dimension_semantics = [#tpu.dimension_semantics<parallel>], iteration_bounds = array<i64: 1>, scalar_prefetch = 0 : i64, scratch_operands = 0 : i64, tpu.core_type = #tpu.core_type<tc>, window_params = [{transform_indices = @transform_0, window_bounds = array<i64: 256, 128>}, {transform_indices = @transform_1, window_bounds = array<i64: 256, 128>}, {transform_indices = @transform_2, window_bounds = array<i64: 8, 128>}]} {
    %c0 = arith.constant 0 : index
    %c0_0 = arith.constant 0 : index
    %0 = vector.load %arg1[%c0, %c0_0] : memref<256x128xbf16, #tpu.memory_space<vmem>>, vector<256x128xbf16>
    %1 = arith.extf %0 : vector<256x128xbf16> to vector<256x128xf32>
    %c0_1 = arith.constant 0 : index
    %c0_2 = arith.constant 0 : index
    %2 = vector.load %arg2[%c0_1, %c0_2] : memref<256x128xbf16, #tpu.memory_space<vmem>>, vector<256x128xbf16>
    %3 = arith.extf %2 : vector<256x128xbf16> to vector<256x128xf32>
    %4 = arith.subf %1, %3 : vector<256x128xf32>
    %5 = math.absf %4 : vector<256x128xf32>
    %6 = vector.shape_cast %5 : vector<256x128xf32> to vector<32x8x128xf32>
    %cst = arith.constant dense<0.000000e+00> : vector<8x128xf32>
    %7 = vector.multi_reduction <add>, %6, %cst [0] : vector<32x8x128xf32> to vector<8x128xf32>
    %c0_3 = arith.constant 0 : index
    %c0_4 = arith.constant 0 : index
    %8 = vector.load %arg3[%c0_3, %c0_4] : memref<8x128xf32, #tpu.memory_space<vmem>>, vector<8x128xf32>
    tpu.vector_store %arg3[%c0_3, %c0_4], %7 {strides = array<i32>} : memref<8x128xf32, #tpu.memory_space<vmem>>, vector<8x128xf32>,
    return
  }
  func.func @transform_0(%arg0: i32) -> (i32, i32) {
    %c0_i32 = arith.constant 0 : i32
    %c0_i32_0 = arith.constant 0 : i32
    return %arg0, %c0_i32 : i32, i32
  }
  func.func @transform_1(%arg0: i32) -> (i32, i32) {
    %c0_i32 = arith.constant 0 : i32
    %c0_i32_0 = arith.constant 0 : i32
    return %arg0, %c0_i32 : i32, i32
  }
  func.func @transform_2(%arg0: i32) -> (i32, i32) {
    %c0_i32 = arith.constant 0 : i32
    %c0_i32_0 = arith.constant 0 : i32
    return %arg0, %c0_i32 : i32, i32
  }
}

module attributes {stable_mosaic.version = 11 : i64} {
  func.func @_conv3x3_kernel(%arg0: i32, %arg1: memref<1x110x64xbf16, #tpu.memory_space<vmem>>, %arg2: memref<9x64x64xbf16, #tpu.memory_space<vmem>>, %arg3: memref<1x64xf32, #tpu.memory_space<vmem>>, %arg4: memref<1x80x64xbf16, #tpu.memory_space<vmem>>) attributes {dimension_semantics = [#tpu.dimension_semantics<parallel>], iteration_bounds = array<i64: 4>, scalar_prefetch = 0 : i64, scratch_operands = 0 : i64, tpu.core_type = #tpu.core_type<tc>, window_params = [{transform_indices = @transform_0, window_bounds = array<i64: 1, 110, 64>}, {pipeline_mode = #tpu.pipeline_mode<synchronous>, transform_indices = @transform_1, window_bounds = array<i64: 9, 64, 64>}, {pipeline_mode = #tpu.pipeline_mode<synchronous>, transform_indices = @transform_2, window_bounds = array<i64: 1, 64>}, {transform_indices = @transform_3, window_bounds = array<i64: 1, 80, 64>}]} {
    %c0 = arith.constant 0 : index
    %c0_0 = arith.constant 0 : index
    %c0_1 = arith.constant 0 : index
    %0 = vector.load %arg1[%c0, %c0_0, %c0_1] : memref<1x110x64xbf16, #tpu.memory_space<vmem>>, vector<1x110x64xbf16>
    %1 = vector.shape_cast %0 : vector<1x110x64xbf16> to vector<110x64xbf16>
    %cst = arith.constant 0.000000e+00 : f32
    %2 = vector.broadcast %cst : f32 to vector<80x64xf32>
    %3 = vector.extract_strided_slice %1 {offsets = [0, 0], sizes = [80, 64], strides = [1, 1]} : vector<110x64xbf16> to vector<80x64xbf16>
    %c0_2 = arith.constant 0 : index
    %c0_3 = arith.constant 0 : index
    %c0_4 = arith.constant 0 : index
    %4 = vector.load %arg2[%c0_2, %c0_3, %c0_4] : memref<9x64x64xbf16, #tpu.memory_space<vmem>>, vector<1x64x64xbf16>
    %5 = vector.shape_cast %4 : vector<1x64x64xbf16> to vector<64x64xbf16>
    %cst_5 = arith.constant dense<0.000000e+00> : vector<80x64xf32>
    %6 = tpu.matmul %3, %5, %cst_5 {dimension_numbers = #tpu.dot_dimension_numbers<[1], [0], [0], [1], [0, 0, 1, 1], [], []>} : vector<80x64xbf16>, vector<64x64xbf16>, vector<80x64xf32> -> vector<80x64xf32>
    %7 = arith.addf %2, %6 : vector<80x64xf32>
    %8 = vector.extract_strided_slice %1 {offsets = [1, 0], sizes = [80, 64], strides = [1, 1]} : vector<110x64xbf16> to vector<80x64xbf16>
    %c1 = arith.constant 1 : index
    %c0_6 = arith.constant 0 : index
    %c0_7 = arith.constant 0 : index
    %9 = vector.load %arg2[%c1, %c0_6, %c0_7] : memref<9x64x64xbf16, #tpu.memory_space<vmem>>, vector<1x64x64xbf16>
    %10 = vector.shape_cast %9 : vector<1x64x64xbf16> to vector<64x64xbf16>
    %cst_8 = arith.constant dense<0.000000e+00> : vector<80x64xf32>
    %11 = tpu.matmul %8, %10, %cst_8 {dimension_numbers = #tpu.dot_dimension_numbers<[1], [0], [0], [1], [0, 0, 1, 1], [], []>} : vector<80x64xbf16>, vector<64x64xbf16>, vector<80x64xf32> -> vector<80x64xf32>
    %12 = arith.addf %7, %11 : vector<80x64xf32>
    %13 = vector.extract_strided_slice %1 {offsets = [2, 0], sizes = [80, 64], strides = [1, 1]} : vector<110x64xbf16> to vector<80x64xbf16>
    %c2 = arith.constant 2 : index
    %c0_9 = arith.constant 0 : index
    %c0_10 = arith.constant 0 : index
    %14 = vector.load %arg2[%c2, %c0_9, %c0_10] : memref<9x64x64xbf16, #tpu.memory_space<vmem>>, vector<1x64x64xbf16>
    %15 = vector.shape_cast %14 : vector<1x64x64xbf16> to vector<64x64xbf16>
    %cst_11 = arith.constant dense<0.000000e+00> : vector<80x64xf32>
    %16 = tpu.matmul %13, %15, %cst_11 {dimension_numbers = #tpu.dot_dimension_numbers<[1], [0], [0], [1], [0, 0, 1, 1], [], []>} : vector<80x64xbf16>, vector<64x64xbf16>, vector<80x64xf32> -> vector<80x64xf32>
    %17 = arith.addf %12, %16 : vector<80x64xf32>
    %18 = vector.extract_strided_slice %1 {offsets = [10, 0], sizes = [80, 64], strides = [1, 1]} : vector<110x64xbf16> to vector<80x64xbf16>
    %c3 = arith.constant 3 : index
    %c0_12 = arith.constant 0 : index
    %c0_13 = arith.constant 0 : index
    %19 = vector.load %arg2[%c3, %c0_12, %c0_13] : memref<9x64x64xbf16, #tpu.memory_space<vmem>>, vector<1x64x64xbf16>
    %20 = vector.shape_cast %19 : vector<1x64x64xbf16> to vector<64x64xbf16>
    %cst_14 = arith.constant dense<0.000000e+00> : vector<80x64xf32>
    %21 = tpu.matmul %18, %20, %cst_14 {dimension_numbers = #tpu.dot_dimension_numbers<[1], [0], [0], [1], [0, 0, 1, 1], [], []>} : vector<80x64xbf16>, vector<64x64xbf16>, vector<80x64xf32> -> vector<80x64xf32>
    %22 = arith.addf %17, %21 : vector<80x64xf32>
    %23 = vector.extract_strided_slice %1 {offsets = [11, 0], sizes = [80, 64], strides = [1, 1]} : vector<110x64xbf16> to vector<80x64xbf16>
    %c4 = arith.constant 4 : index
    %c0_15 = arith.constant 0 : index
    %c0_16 = arith.constant 0 : index
    %24 = vector.load %arg2[%c4, %c0_15, %c0_16] : memref<9x64x64xbf16, #tpu.memory_space<vmem>>, vector<1x64x64xbf16>
    %25 = vector.shape_cast %24 : vector<1x64x64xbf16> to vector<64x64xbf16>
    %cst_17 = arith.constant dense<0.000000e+00> : vector<80x64xf32>
    %26 = tpu.matmul %23, %25, %cst_17 {dimension_numbers = #tpu.dot_dimension_numbers<[1], [0], [0], [1], [0, 0, 1, 1], [], []>} : vector<80x64xbf16>, vector<64x64xbf16>, vector<80x64xf32> -> vector<80x64xf32>
    %27 = arith.addf %22, %26 : vector<80x64xf32>
    %28 = vector.extract_strided_slice %1 {offsets = [12, 0], sizes = [80, 64], strides = [1, 1]} : vector<110x64xbf16> to vector<80x64xbf16>
    %c5 = arith.constant 5 : index
    %c0_18 = arith.constant 0 : index
    %c0_19 = arith.constant 0 : index
    %29 = vector.load %arg2[%c5, %c0_18, %c0_19] : memref<9x64x64xbf16, #tpu.memory_space<vmem>>, vector<1x64x64xbf16>
    %30 = vector.shape_cast %29 : vector<1x64x64xbf16> to vector<64x64xbf16>
    %cst_20 = arith.constant dense<0.000000e+00> : vector<80x64xf32>
    %31 = tpu.matmul %28, %30, %cst_20 {dimension_numbers = #tpu.dot_dimension_numbers<[1], [0], [0], [1], [0, 0, 1, 1], [], []>} : vector<80x64xbf16>, vector<64x64xbf16>, vector<80x64xf32> -> vector<80x64xf32>
    %32 = arith.addf %27, %31 : vector<80x64xf32>
    %33 = vector.extract_strided_slice %1 {offsets = [20, 0], sizes = [80, 64], strides = [1, 1]} : vector<110x64xbf16> to vector<80x64xbf16>
    %c6 = arith.constant 6 : index
    %c0_21 = arith.constant 0 : index
    %c0_22 = arith.constant 0 : index
    %34 = vector.load %arg2[%c6, %c0_21, %c0_22] : memref<9x64x64xbf16, #tpu.memory_space<vmem>>, vector<1x64x64xbf16>
    %35 = vector.shape_cast %34 : vector<1x64x64xbf16> to vector<64x64xbf16>
    %cst_23 = arith.constant dense<0.000000e+00> : vector<80x64xf32>
    %36 = tpu.matmul %33, %35, %cst_23 {dimension_numbers = #tpu.dot_dimension_numbers<[1], [0], [0], [1], [0, 0, 1, 1], [], []>} : vector<80x64xbf16>, vector<64x64xbf16>, vector<80x64xf32> -> vector<80x64xf32>
    %37 = arith.addf %32, %36 : vector<80x64xf32>
    %38 = vector.extract_strided_slice %1 {offsets = [21, 0], sizes = [80, 64], strides = [1, 1]} : vector<110x64xbf16> to vector<80x64xbf16>
    %c7 = arith.constant 7 : index
    %c0_24 = arith.constant 0 : index
    %c0_25 = arith.constant 0 : index
    %39 = vector.load %arg2[%c7, %c0_24, %c0_25] : memref<9x64x64xbf16, #tpu.memory_space<vmem>>, vector<1x64x64xbf16>
    %40 = vector.shape_cast %39 : vector<1x64x64xbf16> to vector<64x64xbf16>
    %cst_26 = arith.constant dense<0.000000e+00> : vector<80x64xf32>
    %41 = tpu.matmul %38, %40, %cst_26 {dimension_numbers = #tpu.dot_dimension_numbers<[1], [0], [0], [1], [0, 0, 1, 1], [], []>} : vector<80x64xbf16>, vector<64x64xbf16>, vector<80x64xf32> -> vector<80x64xf32>
    %42 = arith.addf %37, %41 : vector<80x64xf32>
    %43 = vector.extract_strided_slice %1 {offsets = [22, 0], sizes = [80, 64], strides = [1, 1]} : vector<110x64xbf16> to vector<80x64xbf16>
    %c8 = arith.constant 8 : index
    %c0_27 = arith.constant 0 : index
    %c0_28 = arith.constant 0 : index
    %44 = vector.load %arg2[%c8, %c0_27, %c0_28] : memref<9x64x64xbf16, #tpu.memory_space<vmem>>, vector<1x64x64xbf16>
    %45 = vector.shape_cast %44 : vector<1x64x64xbf16> to vector<64x64xbf16>
    %cst_29 = arith.constant dense<0.000000e+00> : vector<80x64xf32>
    %46 = tpu.matmul %43, %45, %cst_29 {dimension_numbers = #tpu.dot_dimension_numbers<[1], [0], [0], [1], [0, 0, 1, 1], [], []>} : vector<80x64xbf16>, vector<64x64xbf16>, vector<80x64xf32> -> vector<80x64xf32>
    %47 = arith.addf %42, %46 : vector<80x64xf32>
    %c0_30 = arith.constant 0 : index
    %c0_31 = arith.constant 0 : index
    %48 = vector.load %arg3[%c0_30, %c0_31] : memref<1x64xf32, #tpu.memory_space<vmem>>, vector<1x64xf32>
    %49 = vector.broadcast %48 : vector<1x64xf32> to vector<80x64xf32>
    %50 = arith.addf %47, %49 : vector<80x64xf32>
    %cst_32 = arith.constant 0.000000e+00 : f32
    %51 = vector.broadcast %cst_32 : f32 to vector<80x64xf32>
    %52 = arith.maximumf %50, %51 : vector<80x64xf32>
    %53 = arith.truncf %52 : vector<80x64xf32> to vector<80x64xbf16>
    %c0_33 = arith.constant 0 : index
    %c0_34 = arith.constant 0 : index
    %c0_35 = arith.constant 0 : index
    %54 = vector.load %arg4[%c0_33, %c0_34, %c0_35] : memref<1x80x64xbf16, #tpu.memory_space<vmem>>, vector<1x80x64xbf16>
    %55 = vector.shape_cast %54 : vector<1x80x64xbf16> to vector<80x64xbf16>
    %56 = vector.shape_cast %53 : vector<80x64xbf16> to vector<1x80x64xbf16>
    tpu.vector_store %arg4[%c0_33, %c0_34, %c0_35], %56 {strides = array<i32>} : memref<1x80x64xbf16, #tpu.memory_space<vmem>>, vector<1x80x64xbf16>,
    return
  }
  func.func @transform_0(%arg0: i32) -> (i32, i32, i32) {
    %c0_i32 = arith.constant 0 : i32
    %c0_i32_0 = arith.constant 0 : i32
    %c0_i32_1 = arith.constant 0 : i32
    return %arg0, %c0_i32, %c0_i32_0 : i32, i32, i32
  }
  func.func @transform_1(%arg0: i32) -> (i32, i32, i32) {
    %c0_i32 = arith.constant 0 : i32
    %c0_i32_0 = arith.constant 0 : i32
    %c0_i32_1 = arith.constant 0 : i32
    %c0_i32_2 = arith.constant 0 : i32
    return %c0_i32, %c0_i32_0, %c0_i32_1 : i32, i32, i32
  }
  func.func @transform_2(%arg0: i32) -> (i32, i32) {
    %c0_i32 = arith.constant 0 : i32
    %c0_i32_0 = arith.constant 0 : i32
    %c0_i32_1 = arith.constant 0 : i32
    return %c0_i32, %c0_i32_0 : i32, i32
  }
  func.func @transform_3(%arg0: i32) -> (i32, i32, i32) {
    %c0_i32 = arith.constant 0 : i32
    %c0_i32_0 = arith.constant 0 : i32
    %c0_i32_1 = arith.constant 0 : i32
    return %arg0, %c0_i32, %c0_i32_0 : i32, i32, i32
  }
}

module attributes {stable_mosaic.version = 11 : i64} {
  func.func @_conv3x3_res_kernel(%arg0: i32, %arg1: memref<1x110x64xbf16, #tpu.memory_space<vmem>>, %arg2: memref<9x64x64xbf16, #tpu.memory_space<vmem>>, %arg3: memref<1x64xf32, #tpu.memory_space<vmem>>, %arg4: memref<1x80x64xbf16, #tpu.memory_space<vmem>>, %arg5: memref<1x80x64xbf16, #tpu.memory_space<vmem>>) attributes {dimension_semantics = [#tpu.dimension_semantics<parallel>], iteration_bounds = array<i64: 4>, scalar_prefetch = 0 : i64, scratch_operands = 0 : i64, tpu.core_type = #tpu.core_type<tc>, window_params = [{transform_indices = @transform_0, window_bounds = array<i64: 1, 110, 64>}, {pipeline_mode = #tpu.pipeline_mode<synchronous>, transform_indices = @transform_1, window_bounds = array<i64: 9, 64, 64>}, {pipeline_mode = #tpu.pipeline_mode<synchronous>, transform_indices = @transform_2, window_bounds = array<i64: 1, 64>}, {transform_indices = @transform_3, window_bounds = array<i64: 1, 80, 64>}, {transform_indices = @transform_4, window_bounds = array<i64: 1, 80, 64>}]} {
    %c0 = arith.constant 0 : index
    %c0_0 = arith.constant 0 : index
    %c0_1 = arith.constant 0 : index
    %0 = vector.load %arg1[%c0, %c0_0, %c0_1] : memref<1x110x64xbf16, #tpu.memory_space<vmem>>, vector<1x110x64xbf16>
    %1 = vector.shape_cast %0 : vector<1x110x64xbf16> to vector<110x64xbf16>
    %cst = arith.constant 0.000000e+00 : f32
    %2 = vector.broadcast %cst : f32 to vector<80x64xf32>
    %3 = vector.extract_strided_slice %1 {offsets = [0, 0], sizes = [80, 64], strides = [1, 1]} : vector<110x64xbf16> to vector<80x64xbf16>
    %c0_2 = arith.constant 0 : index
    %c0_3 = arith.constant 0 : index
    %c0_4 = arith.constant 0 : index
    %4 = vector.load %arg2[%c0_2, %c0_3, %c0_4] : memref<9x64x64xbf16, #tpu.memory_space<vmem>>, vector<1x64x64xbf16>
    %5 = vector.shape_cast %4 : vector<1x64x64xbf16> to vector<64x64xbf16>
    %cst_5 = arith.constant dense<0.000000e+00> : vector<80x64xf32>
    %6 = tpu.matmul %3, %5, %cst_5 {dimension_numbers = #tpu.dot_dimension_numbers<[1], [0], [0], [1], [0, 0, 1, 1], [], []>} : vector<80x64xbf16>, vector<64x64xbf16>, vector<80x64xf32> -> vector<80x64xf32>
    %7 = arith.addf %2, %6 : vector<80x64xf32>
    %8 = vector.extract_strided_slice %1 {offsets = [1, 0], sizes = [80, 64], strides = [1, 1]} : vector<110x64xbf16> to vector<80x64xbf16>
    %c1 = arith.constant 1 : index
    %c0_6 = arith.constant 0 : index
    %c0_7 = arith.constant 0 : index
    %9 = vector.load %arg2[%c1, %c0_6, %c0_7] : memref<9x64x64xbf16, #tpu.memory_space<vmem>>, vector<1x64x64xbf16>
    %10 = vector.shape_cast %9 : vector<1x64x64xbf16> to vector<64x64xbf16>
    %cst_8 = arith.constant dense<0.000000e+00> : vector<80x64xf32>
    %11 = tpu.matmul %8, %10, %cst_8 {dimension_numbers = #tpu.dot_dimension_numbers<[1], [0], [0], [1], [0, 0, 1, 1], [], []>} : vector<80x64xbf16>, vector<64x64xbf16>, vector<80x64xf32> -> vector<80x64xf32>
    %12 = arith.addf %7, %11 : vector<80x64xf32>
    %13 = vector.extract_strided_slice %1 {offsets = [2, 0], sizes = [80, 64], strides = [1, 1]} : vector<110x64xbf16> to vector<80x64xbf16>
    %c2 = arith.constant 2 : index
    %c0_9 = arith.constant 0 : index
    %c0_10 = arith.constant 0 : index
    %14 = vector.load %arg2[%c2, %c0_9, %c0_10] : memref<9x64x64xbf16, #tpu.memory_space<vmem>>, vector<1x64x64xbf16>
    %15 = vector.shape_cast %14 : vector<1x64x64xbf16> to vector<64x64xbf16>
    %cst_11 = arith.constant dense<0.000000e+00> : vector<80x64xf32>
    %16 = tpu.matmul %13, %15, %cst_11 {dimension_numbers = #tpu.dot_dimension_numbers<[1], [0], [0], [1], [0, 0, 1, 1], [], []>} : vector<80x64xbf16>, vector<64x64xbf16>, vector<80x64xf32> -> vector<80x64xf32>
    %17 = arith.addf %12, %16 : vector<80x64xf32>
    %18 = vector.extract_strided_slice %1 {offsets = [10, 0], sizes = [80, 64], strides = [1, 1]} : vector<110x64xbf16> to vector<80x64xbf16>
    %c3 = arith.constant 3 : index
    %c0_12 = arith.constant 0 : index
    %c0_13 = arith.constant 0 : index
    %19 = vector.load %arg2[%c3, %c0_12, %c0_13] : memref<9x64x64xbf16, #tpu.memory_space<vmem>>, vector<1x64x64xbf16>
    %20 = vector.shape_cast %19 : vector<1x64x64xbf16> to vector<64x64xbf16>
    %cst_14 = arith.constant dense<0.000000e+00> : vector<80x64xf32>
    %21 = tpu.matmul %18, %20, %cst_14 {dimension_numbers = #tpu.dot_dimension_numbers<[1], [0], [0], [1], [0, 0, 1, 1], [], []>} : vector<80x64xbf16>, vector<64x64xbf16>, vector<80x64xf32> -> vector<80x64xf32>
    %22 = arith.addf %17, %21 : vector<80x64xf32>
    %23 = vector.extract_strided_slice %1 {offsets = [11, 0], sizes = [80, 64], strides = [1, 1]} : vector<110x64xbf16> to vector<80x64xbf16>
    %c4 = arith.constant 4 : index
    %c0_15 = arith.constant 0 : index
    %c0_16 = arith.constant 0 : index
    %24 = vector.load %arg2[%c4, %c0_15, %c0_16] : memref<9x64x64xbf16, #tpu.memory_space<vmem>>, vector<1x64x64xbf16>
    %25 = vector.shape_cast %24 : vector<1x64x64xbf16> to vector<64x64xbf16>
    %cst_17 = arith.constant dense<0.000000e+00> : vector<80x64xf32>
    %26 = tpu.matmul %23, %25, %cst_17 {dimension_numbers = #tpu.dot_dimension_numbers<[1], [0], [0], [1], [0, 0, 1, 1], [], []>} : vector<80x64xbf16>, vector<64x64xbf16>, vector<80x64xf32> -> vector<80x64xf32>
    %27 = arith.addf %22, %26 : vector<80x64xf32>
    %28 = vector.extract_strided_slice %1 {offsets = [12, 0], sizes = [80, 64], strides = [1, 1]} : vector<110x64xbf16> to vector<80x64xbf16>
    %c5 = arith.constant 5 : index
    %c0_18 = arith.constant 0 : index
    %c0_19 = arith.constant 0 : index
    %29 = vector.load %arg2[%c5, %c0_18, %c0_19] : memref<9x64x64xbf16, #tpu.memory_space<vmem>>, vector<1x64x64xbf16>
    %30 = vector.shape_cast %29 : vector<1x64x64xbf16> to vector<64x64xbf16>
    %cst_20 = arith.constant dense<0.000000e+00> : vector<80x64xf32>
    %31 = tpu.matmul %28, %30, %cst_20 {dimension_numbers = #tpu.dot_dimension_numbers<[1], [0], [0], [1], [0, 0, 1, 1], [], []>} : vector<80x64xbf16>, vector<64x64xbf16>, vector<80x64xf32> -> vector<80x64xf32>
    %32 = arith.addf %27, %31 : vector<80x64xf32>
    %33 = vector.extract_strided_slice %1 {offsets = [20, 0], sizes = [80, 64], strides = [1, 1]} : vector<110x64xbf16> to vector<80x64xbf16>
    %c6 = arith.constant 6 : index
    %c0_21 = arith.constant 0 : index
    %c0_22 = arith.constant 0 : index
    %34 = vector.load %arg2[%c6, %c0_21, %c0_22] : memref<9x64x64xbf16, #tpu.memory_space<vmem>>, vector<1x64x64xbf16>
    %35 = vector.shape_cast %34 : vector<1x64x64xbf16> to vector<64x64xbf16>
    %cst_23 = arith.constant dense<0.000000e+00> : vector<80x64xf32>
    %36 = tpu.matmul %33, %35, %cst_23 {dimension_numbers = #tpu.dot_dimension_numbers<[1], [0], [0], [1], [0, 0, 1, 1], [], []>} : vector<80x64xbf16>, vector<64x64xbf16>, vector<80x64xf32> -> vector<80x64xf32>
    %37 = arith.addf %32, %36 : vector<80x64xf32>
    %38 = vector.extract_strided_slice %1 {offsets = [21, 0], sizes = [80, 64], strides = [1, 1]} : vector<110x64xbf16> to vector<80x64xbf16>
    %c7 = arith.constant 7 : index
    %c0_24 = arith.constant 0 : index
    %c0_25 = arith.constant 0 : index
    %39 = vector.load %arg2[%c7, %c0_24, %c0_25] : memref<9x64x64xbf16, #tpu.memory_space<vmem>>, vector<1x64x64xbf16>
    %40 = vector.shape_cast %39 : vector<1x64x64xbf16> to vector<64x64xbf16>
    %cst_26 = arith.constant dense<0.000000e+00> : vector<80x64xf32>
    %41 = tpu.matmul %38, %40, %cst_26 {dimension_numbers = #tpu.dot_dimension_numbers<[1], [0], [0], [1], [0, 0, 1, 1], [], []>} : vector<80x64xbf16>, vector<64x64xbf16>, vector<80x64xf32> -> vector<80x64xf32>
    %42 = arith.addf %37, %41 : vector<80x64xf32>
    %43 = vector.extract_strided_slice %1 {offsets = [22, 0], sizes = [80, 64], strides = [1, 1]} : vector<110x64xbf16> to vector<80x64xbf16>
    %c8 = arith.constant 8 : index
    %c0_27 = arith.constant 0 : index
    %c0_28 = arith.constant 0 : index
    %44 = vector.load %arg2[%c8, %c0_27, %c0_28] : memref<9x64x64xbf16, #tpu.memory_space<vmem>>, vector<1x64x64xbf16>
    %45 = vector.shape_cast %44 : vector<1x64x64xbf16> to vector<64x64xbf16>
    %cst_29 = arith.constant dense<0.000000e+00> : vector<80x64xf32>
    %46 = tpu.matmul %43, %45, %cst_29 {dimension_numbers = #tpu.dot_dimension_numbers<[1], [0], [0], [1], [0, 0, 1, 1], [], []>} : vector<80x64xbf16>, vector<64x64xbf16>, vector<80x64xf32> -> vector<80x64xf32>
    %47 = arith.addf %42, %46 : vector<80x64xf32>
    %c0_30 = arith.constant 0 : index
    %c0_31 = arith.constant 0 : index
    %48 = vector.load %arg3[%c0_30, %c0_31] : memref<1x64xf32, #tpu.memory_space<vmem>>, vector<1x64xf32>
    %49 = vector.broadcast %48 : vector<1x64xf32> to vector<80x64xf32>
    %50 = arith.addf %47, %49 : vector<80x64xf32>
    %c0_32 = arith.constant 0 : index
    %c0_33 = arith.constant 0 : index
    %c0_34 = arith.constant 0 : index
    %51 = vector.load %arg4[%c0_32, %c0_33, %c0_34] : memref<1x80x64xbf16, #tpu.memory_space<vmem>>, vector<1x80x64xbf16>
    %52 = vector.shape_cast %51 : vector<1x80x64xbf16> to vector<80x64xbf16>
    %53 = arith.extf %52 : vector<80x64xbf16> to vector<80x64xf32>
    %54 = arith.addf %50, %53 : vector<80x64xf32>
    %cst_35 = arith.constant 0.000000e+00 : f32
    %55 = vector.broadcast %cst_35 : f32 to vector<80x64xf32>
    %56 = arith.maximumf %54, %55 : vector<80x64xf32>
    %57 = arith.truncf %56 : vector<80x64xf32> to vector<80x64xbf16>
    %c0_36 = arith.constant 0 : index
    %c0_37 = arith.constant 0 : index
    %c0_38 = arith.constant 0 : index
    %58 = vector.load %arg5[%c0_36, %c0_37, %c0_38] : memref<1x80x64xbf16, #tpu.memory_space<vmem>>, vector<1x80x64xbf16>
    %59 = vector.shape_cast %58 : vector<1x80x64xbf16> to vector<80x64xbf16>
    %60 = vector.shape_cast %57 : vector<80x64xbf16> to vector<1x80x64xbf16>
    tpu.vector_store %arg5[%c0_36, %c0_37, %c0_38], %60 {strides = array<i32>} : memref<1x80x64xbf16, #tpu.memory_space<vmem>>, vector<1x80x64xbf16>,
    return
  }
  func.func @transform_0(%arg0: i32) -> (i32, i32, i32) {
    %c0_i32 = arith.constant 0 : i32
    %c0_i32_0 = arith.constant 0 : i32
    %c0_i32_1 = arith.constant 0 : i32
    return %arg0, %c0_i32, %c0_i32_0 : i32, i32, i32
  }
  func.func @transform_1(%arg0: i32) -> (i32, i32, i32) {
    %c0_i32 = arith.constant 0 : i32
    %c0_i32_0 = arith.constant 0 : i32
    %c0_i32_1 = arith.constant 0 : i32
    %c0_i32_2 = arith.constant 0 : i32
    return %c0_i32, %c0_i32_0, %c0_i32_1 : i32, i32, i32
  }
  func.func @transform_2(%arg0: i32) -> (i32, i32) {
    %c0_i32 = arith.constant 0 : i32
    %c0_i32_0 = arith.constant 0 : i32
    %c0_i32_1 = arith.constant 0 : i32
    return %c0_i32, %c0_i32_0 : i32, i32
  }
  func.func @transform_3(%arg0: i32) -> (i32, i32, i32) {
    %c0_i32 = arith.constant 0 : i32
    %c0_i32_0 = arith.constant 0 : i32
    %c0_i32_1 = arith.constant 0 : i32
    return %arg0, %c0_i32, %c0_i32_0 : i32, i32, i32
  }
  func.func @transform_4(%arg0: i32) -> (i32, i32, i32) {
    %c0_i32 = arith.constant 0 : i32
    %c0_i32_0 = arith.constant 0 : i32
    %c0_i32_1 = arith.constant 0 : i32
    return %arg0, %c0_i32, %c0_i32_0 : i32, i32, i32
  }
}

module attributes {stable_mosaic.version = 11 : i64} {
  func.func @_gemm_bias_kernel(%arg0: i32, %arg1: memref<64x640xbf16, #tpu.memory_space<vmem>>, %arg2: memref<640x128xbf16, #tpu.memory_space<vmem>>, %arg3: memref<1x128xf32, #tpu.memory_space<vmem>>, %arg4: memref<64x128xbf16, #tpu.memory_space<vmem>>) attributes {dimension_semantics = [#tpu.dimension_semantics<parallel>], iteration_bounds = array<i64: 1>, scalar_prefetch = 0 : i64, scratch_operands = 0 : i64, tpu.core_type = #tpu.core_type<tc>, window_params = [{transform_indices = @transform_0, window_bounds = array<i64: 64, 640>}, {pipeline_mode = #tpu.pipeline_mode<synchronous>, transform_indices = @transform_1, window_bounds = array<i64: 640, 128>}, {pipeline_mode = #tpu.pipeline_mode<synchronous>, transform_indices = @transform_2, window_bounds = array<i64: 1, 128>}, {transform_indices = @transform_3, window_bounds = array<i64: 64, 128>}]} {
    %c0 = arith.constant 0 : index
    %c0_0 = arith.constant 0 : index
    %0 = vector.load %arg1[%c0, %c0_0] : memref<64x640xbf16, #tpu.memory_space<vmem>>, vector<64x640xbf16>
    %c0_1 = arith.constant 0 : index
    %c0_2 = arith.constant 0 : index
    %1 = vector.load %arg2[%c0_1, %c0_2] : memref<640x128xbf16, #tpu.memory_space<vmem>>, vector<640x128xbf16>
    %cst = arith.constant dense<0.000000e+00> : vector<64x128xf32>
    %2 = tpu.matmul %0, %1, %cst {dimension_numbers = #tpu.dot_dimension_numbers<[1], [0], [0], [1], [0, 0, 1, 1], [], []>} : vector<64x640xbf16>, vector<640x128xbf16>, vector<64x128xf32> -> vector<64x128xf32>
    %c0_3 = arith.constant 0 : index
    %c0_4 = arith.constant 0 : index
    %3 = vector.load %arg3[%c0_3, %c0_4] : memref<1x128xf32, #tpu.memory_space<vmem>>, vector<1x128xf32>
    %4 = vector.broadcast %3 : vector<1x128xf32> to vector<64x128xf32>
    %5 = arith.addf %2, %4 : vector<64x128xf32>
    %cst_5 = arith.constant 0.000000e+00 : f32
    %6 = vector.broadcast %cst_5 : f32 to vector<64x128xf32>
    %7 = arith.maximumf %5, %6 : vector<64x128xf32>
    %8 = arith.truncf %7 : vector<64x128xf32> to vector<64x128xbf16>
    %c0_6 = arith.constant 0 : index
    %c0_7 = arith.constant 0 : index
    %9 = vector.load %arg4[%c0_6, %c0_7] : memref<64x128xbf16, #tpu.memory_space<vmem>>, vector<64x128xbf16>
    tpu.vector_store %arg4[%c0_6, %c0_7], %8 {strides = array<i32>} : memref<64x128xbf16, #tpu.memory_space<vmem>>, vector<64x128xbf16>,
    return
  }
  func.func @transform_0(%arg0: i32) -> (i32, i32) {
    %c0_i32 = arith.constant 0 : i32
    %c0_i32_0 = arith.constant 0 : i32
    return %arg0, %c0_i32 : i32, i32
  }
  func.func @transform_1(%arg0: i32) -> (i32, i32) {
    %c0_i32 = arith.constant 0 : i32
    %c0_i32_0 = arith.constant 0 : i32
    %c0_i32_1 = arith.constant 0 : i32
    return %c0_i32, %c0_i32_0 : i32, i32
  }
  func.func @transform_2(%arg0: i32) -> (i32, i32) {
    %c0_i32 = arith.constant 0 : i32
    %c0_i32_0 = arith.constant 0 : i32
    %c0_i32_1 = arith.constant 0 : i32
    return %c0_i32, %c0_i32_0 : i32, i32
  }
  func.func @transform_3(%arg0: i32) -> (i32, i32) {
    %c0_i32 = arith.constant 0 : i32
    %c0_i32_0 = arith.constant 0 : i32
    return %arg0, %c0_i32 : i32, i32
  }
}

module attributes {stable_mosaic.version = 11 : i64} {
  func.func @_gemm_bias_kernel(%arg0: i32, %arg1: memref<64x64xbf16, #tpu.memory_space<vmem>>, %arg2: memref<64x128xbf16, #tpu.memory_space<vmem>>, %arg3: memref<1x128xf32, #tpu.memory_space<vmem>>, %arg4: memref<64x128xbf16, #tpu.memory_space<vmem>>) attributes {dimension_semantics = [#tpu.dimension_semantics<parallel>], iteration_bounds = array<i64: 1>, scalar_prefetch = 0 : i64, scratch_operands = 0 : i64, tpu.core_type = #tpu.core_type<tc>, window_params = [{transform_indices = @transform_0, window_bounds = array<i64: 64, 64>}, {pipeline_mode = #tpu.pipeline_mode<synchronous>, transform_indices = @transform_1, window_bounds = array<i64: 64, 128>}, {pipeline_mode = #tpu.pipeline_mode<synchronous>, transform_indices = @transform_2, window_bounds = array<i64: 1, 128>}, {transform_indices = @transform_3, window_bounds = array<i64: 64, 128>}]} {
    %c0 = arith.constant 0 : index
    %c0_0 = arith.constant 0 : index
    %0 = vector.load %arg1[%c0, %c0_0] : memref<64x64xbf16, #tpu.memory_space<vmem>>, vector<64x64xbf16>
    %c0_1 = arith.constant 0 : index
    %c0_2 = arith.constant 0 : index
    %1 = vector.load %arg2[%c0_1, %c0_2] : memref<64x128xbf16, #tpu.memory_space<vmem>>, vector<64x128xbf16>
    %cst = arith.constant dense<0.000000e+00> : vector<64x128xf32>
    %2 = tpu.matmul %0, %1, %cst {dimension_numbers = #tpu.dot_dimension_numbers<[1], [0], [0], [1], [0, 0, 1, 1], [], []>} : vector<64x64xbf16>, vector<64x128xbf16>, vector<64x128xf32> -> vector<64x128xf32>
    %c0_3 = arith.constant 0 : index
    %c0_4 = arith.constant 0 : index
    %3 = vector.load %arg3[%c0_3, %c0_4] : memref<1x128xf32, #tpu.memory_space<vmem>>, vector<1x128xf32>
    %4 = vector.broadcast %3 : vector<1x128xf32> to vector<64x128xf32>
    %5 = arith.addf %2, %4 : vector<64x128xf32>
    %6 = arith.truncf %5 : vector<64x128xf32> to vector<64x128xbf16>
    %c0_5 = arith.constant 0 : index
    %c0_6 = arith.constant 0 : index
    %7 = vector.load %arg4[%c0_5, %c0_6] : memref<64x128xbf16, #tpu.memory_space<vmem>>, vector<64x128xbf16>
    tpu.vector_store %arg4[%c0_5, %c0_6], %6 {strides = array<i32>} : memref<64x128xbf16, #tpu.memory_space<vmem>>, vector<64x128xbf16>,
    return
  }
  func.func @transform_0(%arg0: i32) -> (i32, i32) {
    %c0_i32 = arith.constant 0 : i32
    %c0_i32_0 = arith.constant 0 : i32
    return %arg0, %c0_i32 : i32, i32
  }
  func.func @transform_1(%arg0: i32) -> (i32, i32) {
    %c0_i32 = arith.constant 0 : i32
    %c0_i32_0 = arith.constant 0 : i32
    %c0_i32_1 = arith.constant 0 : i32
    return %c0_i32, %c0_i32_0 : i32, i32
  }
  func.func @transform_2(%arg0: i32) -> (i32, i32) {
    %c0_i32 = arith.constant 0 : i32
    %c0_i32_0 = arith.constant 0 : i32
    %c0_i32_1 = arith.constant 0 : i32
    return %c0_i32, %c0_i32_0 : i32, i32
  }
  func.func @transform_3(%arg0: i32) -> (i32, i32) {
    %c0_i32 = arith.constant 0 : i32
    %c0_i32_0 = arith.constant 0 : i32
    return %arg0, %c0_i32 : i32, i32
  }
}

module attributes {stable_mosaic.version = 11 : i64} {
  func.func @_conv3x3_res_kernel(%arg0: i32, %arg1: memref<1x42x128xbf16, #tpu.memory_space<vmem>>, %arg2: memref<9x128x128xbf16, #tpu.memory_space<vmem>>, %arg3: memref<1x128xf32, #tpu.memory_space<vmem>>, %arg4: memref<1x24x128xbf16, #tpu.memory_space<vmem>>, %arg5: memref<1x24x128xbf16, #tpu.memory_space<vmem>>) attributes {dimension_semantics = [#tpu.dimension_semantics<parallel>], iteration_bounds = array<i64: 4>, scalar_prefetch = 0 : i64, scratch_operands = 0 : i64, tpu.core_type = #tpu.core_type<tc>, window_params = [{transform_indices = @transform_0, window_bounds = array<i64: 1, 42, 128>}, {pipeline_mode = #tpu.pipeline_mode<synchronous>, transform_indices = @transform_1, window_bounds = array<i64: 9, 128, 128>}, {pipeline_mode = #tpu.pipeline_mode<synchronous>, transform_indices = @transform_2, window_bounds = array<i64: 1, 128>}, {transform_indices = @transform_3, window_bounds = array<i64: 1, 24, 128>}, {transform_indices = @transform_4, window_bounds = array<i64: 1, 24, 128>}]} {
    %c0 = arith.constant 0 : index
    %c0_0 = arith.constant 0 : index
    %c0_1 = arith.constant 0 : index
    %0 = vector.load %arg1[%c0, %c0_0, %c0_1] : memref<1x42x128xbf16, #tpu.memory_space<vmem>>, vector<1x42x128xbf16>
    %1 = vector.shape_cast %0 : vector<1x42x128xbf16> to vector<42x128xbf16>
    %cst = arith.constant 0.000000e+00 : f32
    %2 = vector.broadcast %cst : f32 to vector<24x128xf32>
    %3 = vector.extract_strided_slice %1 {offsets = [0, 0], sizes = [24, 128], strides = [1, 1]} : vector<42x128xbf16> to vector<24x128xbf16>
    %c0_2 = arith.constant 0 : index
    %c0_3 = arith.constant 0 : index
    %c0_4 = arith.constant 0 : index
    %4 = vector.load %arg2[%c0_2, %c0_3, %c0_4] : memref<9x128x128xbf16, #tpu.memory_space<vmem>>, vector<1x128x128xbf16>
    %5 = vector.shape_cast %4 : vector<1x128x128xbf16> to vector<128x128xbf16>
    %cst_5 = arith.constant dense<0.000000e+00> : vector<24x128xf32>
    %6 = tpu.matmul %3, %5, %cst_5 {dimension_numbers = #tpu.dot_dimension_numbers<[1], [0], [0], [1], [0, 0, 1, 1], [], []>} : vector<24x128xbf16>, vector<128x128xbf16>, vector<24x128xf32> -> vector<24x128xf32>
    %7 = arith.addf %2, %6 : vector<24x128xf32>
    %8 = vector.extract_strided_slice %1 {offsets = [1, 0], sizes = [24, 128], strides = [1, 1]} : vector<42x128xbf16> to vector<24x128xbf16>
    %c1 = arith.constant 1 : index
    %c0_6 = arith.constant 0 : index
    %c0_7 = arith.constant 0 : index
    %9 = vector.load %arg2[%c1, %c0_6, %c0_7] : memref<9x128x128xbf16, #tpu.memory_space<vmem>>, vector<1x128x128xbf16>
    %10 = vector.shape_cast %9 : vector<1x128x128xbf16> to vector<128x128xbf16>
    %cst_8 = arith.constant dense<0.000000e+00> : vector<24x128xf32>
    %11 = tpu.matmul %8, %10, %cst_8 {dimension_numbers = #tpu.dot_dimension_numbers<[1], [0], [0], [1], [0, 0, 1, 1], [], []>} : vector<24x128xbf16>, vector<128x128xbf16>, vector<24x128xf32> -> vector<24x128xf32>
    %12 = arith.addf %7, %11 : vector<24x128xf32>
    %13 = vector.extract_strided_slice %1 {offsets = [2, 0], sizes = [24, 128], strides = [1, 1]} : vector<42x128xbf16> to vector<24x128xbf16>
    %c2 = arith.constant 2 : index
    %c0_9 = arith.constant 0 : index
    %c0_10 = arith.constant 0 : index
    %14 = vector.load %arg2[%c2, %c0_9, %c0_10] : memref<9x128x128xbf16, #tpu.memory_space<vmem>>, vector<1x128x128xbf16>
    %15 = vector.shape_cast %14 : vector<1x128x128xbf16> to vector<128x128xbf16>
    %cst_11 = arith.constant dense<0.000000e+00> : vector<24x128xf32>
    %16 = tpu.matmul %13, %15, %cst_11 {dimension_numbers = #tpu.dot_dimension_numbers<[1], [0], [0], [1], [0, 0, 1, 1], [], []>} : vector<24x128xbf16>, vector<128x128xbf16>, vector<24x128xf32> -> vector<24x128xf32>
    %17 = arith.addf %12, %16 : vector<24x128xf32>
    %18 = vector.extract_strided_slice %1 {offsets = [6, 0], sizes = [24, 128], strides = [1, 1]} : vector<42x128xbf16> to vector<24x128xbf16>
    %c3 = arith.constant 3 : index
    %c0_12 = arith.constant 0 : index
    %c0_13 = arith.constant 0 : index
    %19 = vector.load %arg2[%c3, %c0_12, %c0_13] : memref<9x128x128xbf16, #tpu.memory_space<vmem>>, vector<1x128x128xbf16>
    %20 = vector.shape_cast %19 : vector<1x128x128xbf16> to vector<128x128xbf16>
    %cst_14 = arith.constant dense<0.000000e+00> : vector<24x128xf32>
    %21 = tpu.matmul %18, %20, %cst_14 {dimension_numbers = #tpu.dot_dimension_numbers<[1], [0], [0], [1], [0, 0, 1, 1], [], []>} : vector<24x128xbf16>, vector<128x128xbf16>, vector<24x128xf32> -> vector<24x128xf32>
    %22 = arith.addf %17, %21 : vector<24x128xf32>
    %23 = vector.extract_strided_slice %1 {offsets = [7, 0], sizes = [24, 128], strides = [1, 1]} : vector<42x128xbf16> to vector<24x128xbf16>
    %c4 = arith.constant 4 : index
    %c0_15 = arith.constant 0 : index
    %c0_16 = arith.constant 0 : index
    %24 = vector.load %arg2[%c4, %c0_15, %c0_16] : memref<9x128x128xbf16, #tpu.memory_space<vmem>>, vector<1x128x128xbf16>
    %25 = vector.shape_cast %24 : vector<1x128x128xbf16> to vector<128x128xbf16>
    %cst_17 = arith.constant dense<0.000000e+00> : vector<24x128xf32>
    %26 = tpu.matmul %23, %25, %cst_17 {dimension_numbers = #tpu.dot_dimension_numbers<[1], [0], [0], [1], [0, 0, 1, 1], [], []>} : vector<24x128xbf16>, vector<128x128xbf16>, vector<24x128xf32> -> vector<24x128xf32>
    %27 = arith.addf %22, %26 : vector<24x128xf32>
    %28 = vector.extract_strided_slice %1 {offsets = [8, 0], sizes = [24, 128], strides = [1, 1]} : vector<42x128xbf16> to vector<24x128xbf16>
    %c5 = arith.constant 5 : index
    %c0_18 = arith.constant 0 : index
    %c0_19 = arith.constant 0 : index
    %29 = vector.load %arg2[%c5, %c0_18, %c0_19] : memref<9x128x128xbf16, #tpu.memory_space<vmem>>, vector<1x128x128xbf16>
    %30 = vector.shape_cast %29 : vector<1x128x128xbf16> to vector<128x128xbf16>
    %cst_20 = arith.constant dense<0.000000e+00> : vector<24x128xf32>
    %31 = tpu.matmul %28, %30, %cst_20 {dimension_numbers = #tpu.dot_dimension_numbers<[1], [0], [0], [1], [0, 0, 1, 1], [], []>} : vector<24x128xbf16>, vector<128x128xbf16>, vector<24x128xf32> -> vector<24x128xf32>
    %32 = arith.addf %27, %31 : vector<24x128xf32>
    %33 = vector.extract_strided_slice %1 {offsets = [12, 0], sizes = [24, 128], strides = [1, 1]} : vector<42x128xbf16> to vector<24x128xbf16>
    %c6 = arith.constant 6 : index
    %c0_21 = arith.constant 0 : index
    %c0_22 = arith.constant 0 : index
    %34 = vector.load %arg2[%c6, %c0_21, %c0_22] : memref<9x128x128xbf16, #tpu.memory_space<vmem>>, vector<1x128x128xbf16>
    %35 = vector.shape_cast %34 : vector<1x128x128xbf16> to vector<128x128xbf16>
    %cst_23 = arith.constant dense<0.000000e+00> : vector<24x128xf32>
    %36 = tpu.matmul %33, %35, %cst_23 {dimension_numbers = #tpu.dot_dimension_numbers<[1], [0], [0], [1], [0, 0, 1, 1], [], []>} : vector<24x128xbf16>, vector<128x128xbf16>, vector<24x128xf32> -> vector<24x128xf32>
    %37 = arith.addf %32, %36 : vector<24x128xf32>
    %38 = vector.extract_strided_slice %1 {offsets = [13, 0], sizes = [24, 128], strides = [1, 1]} : vector<42x128xbf16> to vector<24x128xbf16>
    %c7 = arith.constant 7 : index
    %c0_24 = arith.constant 0 : index
    %c0_25 = arith.constant 0 : index
    %39 = vector.load %arg2[%c7, %c0_24, %c0_25] : memref<9x128x128xbf16, #tpu.memory_space<vmem>>, vector<1x128x128xbf16>
    %40 = vector.shape_cast %39 : vector<1x128x128xbf16> to vector<128x128xbf16>
    %cst_26 = arith.constant dense<0.000000e+00> : vector<24x128xf32>
    %41 = tpu.matmul %38, %40, %cst_26 {dimension_numbers = #tpu.dot_dimension_numbers<[1], [0], [0], [1], [0, 0, 1, 1], [], []>} : vector<24x128xbf16>, vector<128x128xbf16>, vector<24x128xf32> -> vector<24x128xf32>
    %42 = arith.addf %37, %41 : vector<24x128xf32>
    %43 = vector.extract_strided_slice %1 {offsets = [14, 0], sizes = [24, 128], strides = [1, 1]} : vector<42x128xbf16> to vector<24x128xbf16>
    %c8 = arith.constant 8 : index
    %c0_27 = arith.constant 0 : index
    %c0_28 = arith.constant 0 : index
    %44 = vector.load %arg2[%c8, %c0_27, %c0_28] : memref<9x128x128xbf16, #tpu.memory_space<vmem>>, vector<1x128x128xbf16>
    %45 = vector.shape_cast %44 : vector<1x128x128xbf16> to vector<128x128xbf16>
    %cst_29 = arith.constant dense<0.000000e+00> : vector<24x128xf32>
    %46 = tpu.matmul %43, %45, %cst_29 {dimension_numbers = #tpu.dot_dimension_numbers<[1], [0], [0], [1], [0, 0, 1, 1], [], []>} : vector<24x128xbf16>, vector<128x128xbf16>, vector<24x128xf32> -> vector<24x128xf32>
    %47 = arith.addf %42, %46 : vector<24x128xf32>
    %c0_30 = arith.constant 0 : index
    %c0_31 = arith.constant 0 : index
    %48 = vector.load %arg3[%c0_30, %c0_31] : memref<1x128xf32, #tpu.memory_space<vmem>>, vector<1x128xf32>
    %49 = vector.broadcast %48 : vector<1x128xf32> to vector<24x128xf32>
    %50 = arith.addf %47, %49 : vector<24x128xf32>
    %c0_32 = arith.constant 0 : index
    %c0_33 = arith.constant 0 : index
    %c0_34 = arith.constant 0 : index
    %51 = vector.load %arg4[%c0_32, %c0_33, %c0_34] : memref<1x24x128xbf16, #tpu.memory_space<vmem>>, vector<1x24x128xbf16>
    %52 = vector.shape_cast %51 : vector<1x24x128xbf16> to vector<24x128xbf16>
    %53 = arith.extf %52 : vector<24x128xbf16> to vector<24x128xf32>
    %54 = arith.addf %50, %53 : vector<24x128xf32>
    %cst_35 = arith.constant 0.000000e+00 : f32
    %55 = vector.broadcast %cst_35 : f32 to vector<24x128xf32>
    %56 = arith.maximumf %54, %55 : vector<24x128xf32>
    %57 = arith.truncf %56 : vector<24x128xf32> to vector<24x128xbf16>
    %c0_36 = arith.constant 0 : index
    %c0_37 = arith.constant 0 : index
    %c0_38 = arith.constant 0 : index
    %58 = vector.load %arg5[%c0_36, %c0_37, %c0_38] : memref<1x24x128xbf16, #tpu.memory_space<vmem>>, vector<1x24x128xbf16>
    %59 = vector.shape_cast %58 : vector<1x24x128xbf16> to vector<24x128xbf16>
    %60 = vector.shape_cast %57 : vector<24x128xbf16> to vector<1x24x128xbf16>
    tpu.vector_store %arg5[%c0_36, %c0_37, %c0_38], %60 {strides = array<i32>} : memref<1x24x128xbf16, #tpu.memory_space<vmem>>, vector<1x24x128xbf16>,
    return
  }
  func.func @transform_0(%arg0: i32) -> (i32, i32, i32) {
    %c0_i32 = arith.constant 0 : i32
    %c0_i32_0 = arith.constant 0 : i32
    %c0_i32_1 = arith.constant 0 : i32
    return %arg0, %c0_i32, %c0_i32_0 : i32, i32, i32
  }
  func.func @transform_1(%arg0: i32) -> (i32, i32, i32) {
    %c0_i32 = arith.constant 0 : i32
    %c0_i32_0 = arith.constant 0 : i32
    %c0_i32_1 = arith.constant 0 : i32
    %c0_i32_2 = arith.constant 0 : i32
    return %c0_i32, %c0_i32_0, %c0_i32_1 : i32, i32, i32
  }
  func.func @transform_2(%arg0: i32) -> (i32, i32) {
    %c0_i32 = arith.constant 0 : i32
    %c0_i32_0 = arith.constant 0 : i32
    %c0_i32_1 = arith.constant 0 : i32
    return %c0_i32, %c0_i32_0 : i32, i32
  }
  func.func @transform_3(%arg0: i32) -> (i32, i32, i32) {
    %c0_i32 = arith.constant 0 : i32
    %c0_i32_0 = arith.constant 0 : i32
    %c0_i32_1 = arith.constant 0 : i32
    return %arg0, %c0_i32, %c0_i32_0 : i32, i32, i32
  }
  func.func @transform_4(%arg0: i32) -> (i32, i32, i32) {
    %c0_i32 = arith.constant 0 : i32
    %c0_i32_0 = arith.constant 0 : i32
    %c0_i32_1 = arith.constant 0 : i32
    return %arg0, %c0_i32, %c0_i32_0 : i32, i32, i32
  }
}

module attributes {stable_mosaic.version = 11 : i64} {
  func.func @_conv3x3_kernel(%arg0: i32, %arg1: memref<1x42x128xbf16, #tpu.memory_space<vmem>>, %arg2: memref<9x128x128xbf16, #tpu.memory_space<vmem>>, %arg3: memref<1x128xf32, #tpu.memory_space<vmem>>, %arg4: memref<1x24x128xbf16, #tpu.memory_space<vmem>>) attributes {dimension_semantics = [#tpu.dimension_semantics<parallel>], iteration_bounds = array<i64: 4>, scalar_prefetch = 0 : i64, scratch_operands = 0 : i64, tpu.core_type = #tpu.core_type<tc>, window_params = [{transform_indices = @transform_0, window_bounds = array<i64: 1, 42, 128>}, {pipeline_mode = #tpu.pipeline_mode<synchronous>, transform_indices = @transform_1, window_bounds = array<i64: 9, 128, 128>}, {pipeline_mode = #tpu.pipeline_mode<synchronous>, transform_indices = @transform_2, window_bounds = array<i64: 1, 128>}, {transform_indices = @transform_3, window_bounds = array<i64: 1, 24, 128>}]} {
    %c0 = arith.constant 0 : index
    %c0_0 = arith.constant 0 : index
    %c0_1 = arith.constant 0 : index
    %0 = vector.load %arg1[%c0, %c0_0, %c0_1] : memref<1x42x128xbf16, #tpu.memory_space<vmem>>, vector<1x42x128xbf16>
    %1 = vector.shape_cast %0 : vector<1x42x128xbf16> to vector<42x128xbf16>
    %cst = arith.constant 0.000000e+00 : f32
    %2 = vector.broadcast %cst : f32 to vector<24x128xf32>
    %3 = vector.extract_strided_slice %1 {offsets = [0, 0], sizes = [24, 128], strides = [1, 1]} : vector<42x128xbf16> to vector<24x128xbf16>
    %c0_2 = arith.constant 0 : index
    %c0_3 = arith.constant 0 : index
    %c0_4 = arith.constant 0 : index
    %4 = vector.load %arg2[%c0_2, %c0_3, %c0_4] : memref<9x128x128xbf16, #tpu.memory_space<vmem>>, vector<1x128x128xbf16>
    %5 = vector.shape_cast %4 : vector<1x128x128xbf16> to vector<128x128xbf16>
    %cst_5 = arith.constant dense<0.000000e+00> : vector<24x128xf32>
    %6 = tpu.matmul %3, %5, %cst_5 {dimension_numbers = #tpu.dot_dimension_numbers<[1], [0], [0], [1], [0, 0, 1, 1], [], []>} : vector<24x128xbf16>, vector<128x128xbf16>, vector<24x128xf32> -> vector<24x128xf32>
    %7 = arith.addf %2, %6 : vector<24x128xf32>
    %8 = vector.extract_strided_slice %1 {offsets = [1, 0], sizes = [24, 128], strides = [1, 1]} : vector<42x128xbf16> to vector<24x128xbf16>
    %c1 = arith.constant 1 : index
    %c0_6 = arith.constant 0 : index
    %c0_7 = arith.constant 0 : index
    %9 = vector.load %arg2[%c1, %c0_6, %c0_7] : memref<9x128x128xbf16, #tpu.memory_space<vmem>>, vector<1x128x128xbf16>
    %10 = vector.shape_cast %9 : vector<1x128x128xbf16> to vector<128x128xbf16>
    %cst_8 = arith.constant dense<0.000000e+00> : vector<24x128xf32>
    %11 = tpu.matmul %8, %10, %cst_8 {dimension_numbers = #tpu.dot_dimension_numbers<[1], [0], [0], [1], [0, 0, 1, 1], [], []>} : vector<24x128xbf16>, vector<128x128xbf16>, vector<24x128xf32> -> vector<24x128xf32>
    %12 = arith.addf %7, %11 : vector<24x128xf32>
    %13 = vector.extract_strided_slice %1 {offsets = [2, 0], sizes = [24, 128], strides = [1, 1]} : vector<42x128xbf16> to vector<24x128xbf16>
    %c2 = arith.constant 2 : index
    %c0_9 = arith.constant 0 : index
    %c0_10 = arith.constant 0 : index
    %14 = vector.load %arg2[%c2, %c0_9, %c0_10] : memref<9x128x128xbf16, #tpu.memory_space<vmem>>, vector<1x128x128xbf16>
    %15 = vector.shape_cast %14 : vector<1x128x128xbf16> to vector<128x128xbf16>
    %cst_11 = arith.constant dense<0.000000e+00> : vector<24x128xf32>
    %16 = tpu.matmul %13, %15, %cst_11 {dimension_numbers = #tpu.dot_dimension_numbers<[1], [0], [0], [1], [0, 0, 1, 1], [], []>} : vector<24x128xbf16>, vector<128x128xbf16>, vector<24x128xf32> -> vector<24x128xf32>
    %17 = arith.addf %12, %16 : vector<24x128xf32>
    %18 = vector.extract_strided_slice %1 {offsets = [6, 0], sizes = [24, 128], strides = [1, 1]} : vector<42x128xbf16> to vector<24x128xbf16>
    %c3 = arith.constant 3 : index
    %c0_12 = arith.constant 0 : index
    %c0_13 = arith.constant 0 : index
    %19 = vector.load %arg2[%c3, %c0_12, %c0_13] : memref<9x128x128xbf16, #tpu.memory_space<vmem>>, vector<1x128x128xbf16>
    %20 = vector.shape_cast %19 : vector<1x128x128xbf16> to vector<128x128xbf16>
    %cst_14 = arith.constant dense<0.000000e+00> : vector<24x128xf32>
    %21 = tpu.matmul %18, %20, %cst_14 {dimension_numbers = #tpu.dot_dimension_numbers<[1], [0], [0], [1], [0, 0, 1, 1], [], []>} : vector<24x128xbf16>, vector<128x128xbf16>, vector<24x128xf32> -> vector<24x128xf32>
    %22 = arith.addf %17, %21 : vector<24x128xf32>
    %23 = vector.extract_strided_slice %1 {offsets = [7, 0], sizes = [24, 128], strides = [1, 1]} : vector<42x128xbf16> to vector<24x128xbf16>
    %c4 = arith.constant 4 : index
    %c0_15 = arith.constant 0 : index
    %c0_16 = arith.constant 0 : index
    %24 = vector.load %arg2[%c4, %c0_15, %c0_16] : memref<9x128x128xbf16, #tpu.memory_space<vmem>>, vector<1x128x128xbf16>
    %25 = vector.shape_cast %24 : vector<1x128x128xbf16> to vector<128x128xbf16>
    %cst_17 = arith.constant dense<0.000000e+00> : vector<24x128xf32>
    %26 = tpu.matmul %23, %25, %cst_17 {dimension_numbers = #tpu.dot_dimension_numbers<[1], [0], [0], [1], [0, 0, 1, 1], [], []>} : vector<24x128xbf16>, vector<128x128xbf16>, vector<24x128xf32> -> vector<24x128xf32>
    %27 = arith.addf %22, %26 : vector<24x128xf32>
    %28 = vector.extract_strided_slice %1 {offsets = [8, 0], sizes = [24, 128], strides = [1, 1]} : vector<42x128xbf16> to vector<24x128xbf16>
    %c5 = arith.constant 5 : index
    %c0_18 = arith.constant 0 : index
    %c0_19 = arith.constant 0 : index
    %29 = vector.load %arg2[%c5, %c0_18, %c0_19] : memref<9x128x128xbf16, #tpu.memory_space<vmem>>, vector<1x128x128xbf16>
    %30 = vector.shape_cast %29 : vector<1x128x128xbf16> to vector<128x128xbf16>
    %cst_20 = arith.constant dense<0.000000e+00> : vector<24x128xf32>
    %31 = tpu.matmul %28, %30, %cst_20 {dimension_numbers = #tpu.dot_dimension_numbers<[1], [0], [0], [1], [0, 0, 1, 1], [], []>} : vector<24x128xbf16>, vector<128x128xbf16>, vector<24x128xf32> -> vector<24x128xf32>
    %32 = arith.addf %27, %31 : vector<24x128xf32>
    %33 = vector.extract_strided_slice %1 {offsets = [12, 0], sizes = [24, 128], strides = [1, 1]} : vector<42x128xbf16> to vector<24x128xbf16>
    %c6 = arith.constant 6 : index
    %c0_21 = arith.constant 0 : index
    %c0_22 = arith.constant 0 : index
    %34 = vector.load %arg2[%c6, %c0_21, %c0_22] : memref<9x128x128xbf16, #tpu.memory_space<vmem>>, vector<1x128x128xbf16>
    %35 = vector.shape_cast %34 : vector<1x128x128xbf16> to vector<128x128xbf16>
    %cst_23 = arith.constant dense<0.000000e+00> : vector<24x128xf32>
    %36 = tpu.matmul %33, %35, %cst_23 {dimension_numbers = #tpu.dot_dimension_numbers<[1], [0], [0], [1], [0, 0, 1, 1], [], []>} : vector<24x128xbf16>, vector<128x128xbf16>, vector<24x128xf32> -> vector<24x128xf32>
    %37 = arith.addf %32, %36 : vector<24x128xf32>
    %38 = vector.extract_strided_slice %1 {offsets = [13, 0], sizes = [24, 128], strides = [1, 1]} : vector<42x128xbf16> to vector<24x128xbf16>
    %c7 = arith.constant 7 : index
    %c0_24 = arith.constant 0 : index
    %c0_25 = arith.constant 0 : index
    %39 = vector.load %arg2[%c7, %c0_24, %c0_25] : memref<9x128x128xbf16, #tpu.memory_space<vmem>>, vector<1x128x128xbf16>
    %40 = vector.shape_cast %39 : vector<1x128x128xbf16> to vector<128x128xbf16>
    %cst_26 = arith.constant dense<0.000000e+00> : vector<24x128xf32>
    %41 = tpu.matmul %38, %40, %cst_26 {dimension_numbers = #tpu.dot_dimension_numbers<[1], [0], [0], [1], [0, 0, 1, 1], [], []>} : vector<24x128xbf16>, vector<128x128xbf16>, vector<24x128xf32> -> vector<24x128xf32>
    %42 = arith.addf %37, %41 : vector<24x128xf32>
    %43 = vector.extract_strided_slice %1 {offsets = [14, 0], sizes = [24, 128], strides = [1, 1]} : vector<42x128xbf16> to vector<24x128xbf16>
    %c8 = arith.constant 8 : index
    %c0_27 = arith.constant 0 : index
    %c0_28 = arith.constant 0 : index
    %44 = vector.load %arg2[%c8, %c0_27, %c0_28] : memref<9x128x128xbf16, #tpu.memory_space<vmem>>, vector<1x128x128xbf16>
    %45 = vector.shape_cast %44 : vector<1x128x128xbf16> to vector<128x128xbf16>
    %cst_29 = arith.constant dense<0.000000e+00> : vector<24x128xf32>
    %46 = tpu.matmul %43, %45, %cst_29 {dimension_numbers = #tpu.dot_dimension_numbers<[1], [0], [0], [1], [0, 0, 1, 1], [], []>} : vector<24x128xbf16>, vector<128x128xbf16>, vector<24x128xf32> -> vector<24x128xf32>
    %47 = arith.addf %42, %46 : vector<24x128xf32>
    %c0_30 = arith.constant 0 : index
    %c0_31 = arith.constant 0 : index
    %48 = vector.load %arg3[%c0_30, %c0_31] : memref<1x128xf32, #tpu.memory_space<vmem>>, vector<1x128xf32>
    %49 = vector.broadcast %48 : vector<1x128xf32> to vector<24x128xf32>
    %50 = arith.addf %47, %49 : vector<24x128xf32>
    %cst_32 = arith.constant 0.000000e+00 : f32
    %51 = vector.broadcast %cst_32 : f32 to vector<24x128xf32>
    %52 = arith.maximumf %50, %51 : vector<24x128xf32>
    %53 = arith.truncf %52 : vector<24x128xf32> to vector<24x128xbf16>
    %c0_33 = arith.constant 0 : index
    %c0_34 = arith.constant 0 : index
    %c0_35 = arith.constant 0 : index
    %54 = vector.load %arg4[%c0_33, %c0_34, %c0_35] : memref<1x24x128xbf16, #tpu.memory_space<vmem>>, vector<1x24x128xbf16>
    %55 = vector.shape_cast %54 : vector<1x24x128xbf16> to vector<24x128xbf16>
    %56 = vector.shape_cast %53 : vector<24x128xbf16> to vector<1x24x128xbf16>
    tpu.vector_store %arg4[%c0_33, %c0_34, %c0_35], %56 {strides = array<i32>} : memref<1x24x128xbf16, #tpu.memory_space<vmem>>, vector<1x24x128xbf16>,
    return
  }
  func.func @transform_0(%arg0: i32) -> (i32, i32, i32) {
    %c0_i32 = arith.constant 0 : i32
    %c0_i32_0 = arith.constant 0 : i32
    %c0_i32_1 = arith.constant 0 : i32
    return %arg0, %c0_i32, %c0_i32_0 : i32, i32, i32
  }
  func.func @transform_1(%arg0: i32) -> (i32, i32, i32) {
    %c0_i32 = arith.constant 0 : i32
    %c0_i32_0 = arith.constant 0 : i32
    %c0_i32_1 = arith.constant 0 : i32
    %c0_i32_2 = arith.constant 0 : i32
    return %c0_i32, %c0_i32_0, %c0_i32_1 : i32, i32, i32
  }
  func.func @transform_2(%arg0: i32) -> (i32, i32) {
    %c0_i32 = arith.constant 0 : i32
    %c0_i32_0 = arith.constant 0 : i32
    %c0_i32_1 = arith.constant 0 : i32
    return %c0_i32, %c0_i32_0 : i32, i32
  }
  func.func @transform_3(%arg0: i32) -> (i32, i32, i32) {
    %c0_i32 = arith.constant 0 : i32
    %c0_i32_0 = arith.constant 0 : i32
    %c0_i32_1 = arith.constant 0 : i32
    return %arg0, %c0_i32, %c0_i32_0 : i32, i32, i32
  }
}

module attributes {stable_mosaic.version = 11 : i64} {
  func.func @_l1_partial_kernel(%arg0: i32, %arg1: memref<32x128xbf16, #tpu.memory_space<vmem>>, %arg2: memref<32x128xbf16, #tpu.memory_space<vmem>>, %arg3: memref<8x128xf32, #tpu.memory_space<vmem>>) attributes {dimension_semantics = [#tpu.dimension_semantics<parallel>], iteration_bounds = array<i64: 1>, scalar_prefetch = 0 : i64, scratch_operands = 0 : i64, tpu.core_type = #tpu.core_type<tc>, window_params = [{transform_indices = @transform_0, window_bounds = array<i64: 32, 128>}, {transform_indices = @transform_1, window_bounds = array<i64: 32, 128>}, {transform_indices = @transform_2, window_bounds = array<i64: 8, 128>}]} {
    %c0 = arith.constant 0 : index
    %c0_0 = arith.constant 0 : index
    %0 = vector.load %arg1[%c0, %c0_0] : memref<32x128xbf16, #tpu.memory_space<vmem>>, vector<32x128xbf16>
    %1 = arith.extf %0 : vector<32x128xbf16> to vector<32x128xf32>
    %c0_1 = arith.constant 0 : index
    %c0_2 = arith.constant 0 : index
    %2 = vector.load %arg2[%c0_1, %c0_2] : memref<32x128xbf16, #tpu.memory_space<vmem>>, vector<32x128xbf16>
    %3 = arith.extf %2 : vector<32x128xbf16> to vector<32x128xf32>
    %4 = arith.subf %1, %3 : vector<32x128xf32>
    %5 = math.absf %4 : vector<32x128xf32>
    %6 = vector.shape_cast %5 : vector<32x128xf32> to vector<4x8x128xf32>
    %cst = arith.constant dense<0.000000e+00> : vector<8x128xf32>
    %7 = vector.multi_reduction <add>, %6, %cst [0] : vector<4x8x128xf32> to vector<8x128xf32>
    %c0_3 = arith.constant 0 : index
    %c0_4 = arith.constant 0 : index
    %8 = vector.load %arg3[%c0_3, %c0_4] : memref<8x128xf32, #tpu.memory_space<vmem>>, vector<8x128xf32>
    tpu.vector_store %arg3[%c0_3, %c0_4], %7 {strides = array<i32>} : memref<8x128xf32, #tpu.memory_space<vmem>>, vector<8x128xf32>,
    return
  }
  func.func @transform_0(%arg0: i32) -> (i32, i32) {
    %c0_i32 = arith.constant 0 : i32
    %c0_i32_0 = arith.constant 0 : i32
    return %arg0, %c0_i32 : i32, i32
  }
  func.func @transform_1(%arg0: i32) -> (i32, i32) {
    %c0_i32 = arith.constant 0 : i32
    %c0_i32_0 = arith.constant 0 : i32
    return %arg0, %c0_i32 : i32, i32
  }
  func.func @transform_2(%arg0: i32) -> (i32, i32) {
    %c0_i32 = arith.constant 0 : i32
    %c0_i32_0 = arith.constant 0 : i32
    return %arg0, %c0_i32 : i32, i32
  }
}

module attributes {stable_mosaic.version = 11 : i64} {
  func.func @_l1_partial_kernel(%arg0: i32, %arg1: memref<48x128xf32, #tpu.memory_space<vmem>>, %arg2: memref<48x128xf32, #tpu.memory_space<vmem>>, %arg3: memref<8x128xf32, #tpu.memory_space<vmem>>) attributes {dimension_semantics = [#tpu.dimension_semantics<parallel>], iteration_bounds = array<i64: 1>, scalar_prefetch = 0 : i64, scratch_operands = 0 : i64, tpu.core_type = #tpu.core_type<tc>, window_params = [{transform_indices = @transform_0, window_bounds = array<i64: 48, 128>}, {transform_indices = @transform_1, window_bounds = array<i64: 48, 128>}, {transform_indices = @transform_2, window_bounds = array<i64: 8, 128>}]} {
    %c0 = arith.constant 0 : index
    %c0_0 = arith.constant 0 : index
    %0 = vector.load %arg1[%c0, %c0_0] : memref<48x128xf32, #tpu.memory_space<vmem>>, vector<48x128xf32>
    %c0_1 = arith.constant 0 : index
    %c0_2 = arith.constant 0 : index
    %1 = vector.load %arg2[%c0_1, %c0_2] : memref<48x128xf32, #tpu.memory_space<vmem>>, vector<48x128xf32>
    %2 = arith.subf %0, %1 : vector<48x128xf32>
    %3 = math.absf %2 : vector<48x128xf32>
    %4 = vector.shape_cast %3 : vector<48x128xf32> to vector<6x8x128xf32>
    %cst = arith.constant dense<0.000000e+00> : vector<8x128xf32>
    %5 = vector.multi_reduction <add>, %4, %cst [0] : vector<6x8x128xf32> to vector<8x128xf32>
    %c0_3 = arith.constant 0 : index
    %c0_4 = arith.constant 0 : index
    %6 = vector.load %arg3[%c0_3, %c0_4] : memref<8x128xf32, #tpu.memory_space<vmem>>, vector<8x128xf32>
    tpu.vector_store %arg3[%c0_3, %c0_4], %5 {strides = array<i32>} : memref<8x128xf32, #tpu.memory_space<vmem>>, vector<8x128xf32>,
    return
  }
  func.func @transform_0(%arg0: i32) -> (i32, i32) {
    %c0_i32 = arith.constant 0 : i32
    %c0_i32_0 = arith.constant 0 : i32
    return %arg0, %c0_i32 : i32, i32
  }
  func.func @transform_1(%arg0: i32) -> (i32, i32) {
    %c0_i32 = arith.constant 0 : i32
    %c0_i32_0 = arith.constant 0 : i32
    return %arg0, %c0_i32 : i32, i32
  }
  func.func @transform_2(%arg0: i32) -> (i32, i32) {
    %c0_i32 = arith.constant 0 : i32
    %c0_i32_0 = arith.constant 0 : i32
    return %arg0, %c0_i32 : i32, i32
  }
}

</mosaic_0001>

<bundles_post_ra>
// kernel: style_reconstruction_loss.25
= control target key start
LH: loop header
LB: loop body
LE: loop exit
PB: predicated region body
PF: predicated region fallthrough
CT: control target
= control target key end

     0   :  { %s511_s0 = inlined_call_operand.vmem [shape: bf16[256,128], index: 0, kind: input, shape index: {}]   ;;  %s512_s1 = inlined_call_operand.vmem [shape: bf16[256,128], index: 1, kind: input, shape index: {}]   ;;  %s513_s2 = inlined_call_operand.vmem [shape: f32[8,128], index: 2, kind: output, shape index: {}]  }
   0x1   :  { %v240_v0 = vld [vmem:[%s511_s0] sm:$0xff]   ;;  %v367_v1 = vld [vmem:[%s511_s0 + $0x8] sm:$0xff]   ;;  %v368_v7 = vld [vmem:[%s511_s0 + $0x10] sm:$0xff]  }
   0x2   :  { %v304_v2 = vld [vmem:[%s512_s1] sm:$0xff]   ;;  %v382_v3 = vld [vmem:[%s512_s1 + $0x8] sm:$0xff]   ;;  %v241_v4 = vunpack.c.l.bf16 %v240_v0  ;;  %v242_v5 = vunpack.c.h.bf16 %v240_v0  ;;  %v245_v6 = vunpack.c.l.bf16 %v367_v1  ;;  %v383_v11 = vld [vmem:[%s512_s1 + $0x10] sm:$0xff]   ;;  %v246_v12 = vunpack.c.h.bf16 %v367_v1 }
   0x3   :  { %v305_v8 = vunpack.c.l.bf16 %v304_v2  ;;  %v306_v9 = vunpack.c.h.bf16 %v304_v2  ;;  %v309_v10 = vunpack.c.l.bf16 %v382_v3  ;;  %v310_v13 = vunpack.c.h.bf16 %v382_v3  ;;  %v369_v15 = vld [vmem:[%s511_s0 + $0x18] sm:$0xff]   ;;  %v370_v25 = vld [vmem:[%s511_s0 + $0x20] sm:$0xff]   ;;  %v371_v38 = vld [vmem:[%s511_s0 + $0x28] sm:$0xff]  }
   0x4   :  { %v249_v14 = vunpack.c.l.bf16 %v368_v7  ;;  %v313_v16 = vunpack.c.l.bf16 %v383_v11  ;;  %v384_v17 = vld [vmem:[%s512_s1 + $0x18] sm:$0xff]   ;;  %v250_v21 = vunpack.c.h.bf16 %v368_v7  ;;  %v314_v22 = vunpack.c.h.bf16 %v383_v11  ;;  %v385_v32 = vld [vmem:[%s512_s1 + $0x20] sm:$0xff]   ;;  %v386_v44 = vld [vmem:[%s512_s1 + $0x28] sm:$0xff]  }
   0x5   :  { %v139_v18 = vsub.f32 %v241_v4, %v305_v8  ;;  %v140_v19 = vsub.f32 %v242_v5, %v306_v9  ;;  %v141_v20 = vsub.f32 %v245_v6, %v309_v10  ;;  %v142_v23 = vsub.f32 %v246_v12, %v310_v13  ;;  %v372_v50 = vld [vmem:[%s511_s0 + $0x30] sm:$0xff]   ;;  %v373_v62 = vld [vmem:[%s511_s0 + $0x38] sm:$0xff]   ;;  %v374_v10 = vld [vmem:[%s511_s0 + $0x40] sm:$0xff]  }
   0x6   :  { %v253_v24 = vunpack.c.l.bf16 %v369_v15  ;;  %v317_v26 = vunpack.c.l.bf16 %v384_v17  ;;  %v143_v27 = vsub.f32 %v249_v14, %v313_v16  ;;  %v254_v31 = vunpack.c.h.bf16 %v369_v15  ;;  %v387_v56 = vld [vmem:[%s512_s1 + $0x30] sm:$0xff]   ;;  %v388_v4 = vld [vmem:[%s512_s1 + $0x38] sm:$0xff]   ;;  %v389_v16 = vld [vmem:[%s512_s1 + $0x40] sm:$0xff]  }
   0x7   :  { %v171_v28 = vand.u32 2147483647, %v139_v18  ;;  %v172_v29 = vand.u32 2147483647, %v140_v19  ;;  %v173_v30 = vand.u32 2147483647, %v141_v20  ;;  %v318_v33 = vunpack.c.h.bf16 %v384_v17 }
   0x8   :  { %v144_v34 = vsub.f32 %v250_v21, %v314_v22  ;;  %v174_v35 = vand.u32 2147483647, %v142_v23  ;;  %v257_v37 = vunpack.c.l.bf16 %v370_v25  ;;  %v321_v39 = vunpack.c.l.bf16 %v385_v32  ;;  %v375_v22 = vld [vmem:[%s511_s0 + $0x48] sm:$0xff]  }
   0x9   :  { %v203_v36 = vadd.f32 %v172_v29, %v171_v28  ;;  %v145_v40 = vsub.f32 %v253_v24, %v317_v26  ;;  %v175_v41 = vand.u32 2147483647, %v143_v27  ;;  %v258_v43 = vunpack.c.h.bf16 %v370_v25  ;;  %v390_v28 = vld [vmem:[%s512_s1 + $0x48] sm:$0xff]  }
   0xa   :  { %v322_v45 = vunpack.c.h.bf16 %v385_v32  ;;  %v146_v46 = vsub.f32 %v254_v31, %v318_v33  ;;  %v176_v47 = vand.u32 2147483647, %v144_v34  ;;  %v261_v49 = vunpack.c.l.bf16 %v371_v38  ;;  %v376_v34 = vld [vmem:[%s511_s0 + $0x50] sm:$0xff]  }
   0xb   :  { %v204_v42 = vadd.f32 %v203_v36, %v173_v30  ;;  %v325_v51 = vunpack.c.l.bf16 %v386_v44  ;;  %v147_v52 = vsub.f32 %v257_v37, %v321_v39  ;;  %v177_v53 = vand.u32 2147483647, %v145_v40  ;;  %v391_v40 = vld [vmem:[%s512_s1 + $0x50] sm:$0xff]  }
   0xc   :  { %v262_v55 = vunpack.c.h.bf16 %v371_v38  ;;  %v326_v57 = vunpack.c.h.bf16 %v386_v44  ;;  %v148_v58 = vsub.f32 %v258_v43, %v322_v45  ;;  %v178_v59 = vand.u32 2147483647, %v146_v46  ;;  %v377_v46 = vld [vmem:[%s511_s0 + $0x58] sm:$0xff]  }
   0xd   :  { %v205_v48 = vadd.f32 %v204_v42, %v174_v35  ;;  %v265_v61 = vunpack.c.l.bf16 %v372_v50  ;;  %v329_v63 = vunpack.c.l.bf16 %v387_v56  ;;  %v149_v0 = vsub.f32 %v261_v49, %v325_v51 }
   0xe   :  { %v179_v1 = vand.u32 2147483647, %v147_v52  ;;  %v266_v3 = vunpack.c.h.bf16 %v372_v50  ;;  %v330_v5 = vunpack.c.h.bf16 %v387_v56  ;;  %v150_v6 = vsub.f32 %v262_v55, %v326_v57  ;;  %v392_v52 = vld [vmem:[%s512_s1 + $0x58] sm:$0xff]  }
   0xf   :  { %v206_v54 = vadd.f32 %v205_v48, %v175_v41  ;;  %v180_v7 = vand.u32 2147483647, %v148_v58  ;;  %v269_v9 = vunpack.c.l.bf16 %v373_v62  ;;  %v333_v11 = vunpack.c.l.bf16 %v388_v4  ;;  %v378_v58 = vld [vmem:[%s511_s0 + $0x60] sm:$0xff]  }
  0x10   :  { %v151_v12 = vsub.f32 %v265_v61, %v329_v63  ;;  %v181_v13 = vand.u32 2147483647, %v149_v0  ;;  %v270_v15 = vunpack.c.h.bf16 %v373_v62  ;;  %v334_v17 = vunpack.c.h.bf16 %v388_v4  ;;  %v393_v0 = vld [vmem:[%s512_s1 + $0x60] sm:$0xff]  }
  0x11   :  { %v207_v60 = vadd.f32 %v206_v54, %v176_v47  ;;  %v152_v18 = vsub.f32 %v266_v3, %v330_v5  ;;  %v182_v19 = vand.u32 2147483647, %v150_v6  ;;  %v273_v21 = vunpack.c.l.bf16 %v374_v10  ;;  %v379_v6 = vld [vmem:[%s511_s0 + $0x68] sm:$0xff]  }
  0x12   :  { %v337_v23 = vunpack.c.l.bf16 %v389_v16  ;;  %v153_v24 = vsub.f32 %v269_v9, %v333_v11  ;;  %v183_v25 = vand.u32 2147483647, %v151_v12  ;;  %v274_v27 = vunpack.c.h.bf16 %v374_v10  ;;  %v394_v12 = vld [vmem:[%s512_s1 + $0x68] sm:$0xff]  }
  0x13   :  { %v208_v2 = vadd.f32 %v207_v60, %v177_v53  ;;  %v338_v29 = vunpack.c.h.bf16 %v389_v16  ;;  %v154_v30 = vsub.f32 %v270_v15, %v334_v17  ;;  %v184_v31 = vand.u32 2147483647, %v152_v18  ;;  %v380_v18 = vld [vmem:[%s511_s0 + $0x70] sm:$0xff]  }
  0x14   :  { %v277_v33 = vunpack.c.l.bf16 %v375_v22  ;;  %v341_v35 = vunpack.c.l.bf16 %v390_v28  ;;  %v155_v36 = vsub.f32 %v273_v21, %v337_v23  ;;  %v185_v37 = vand.u32 2147483647, %v153_v24  ;;  %v395_v24 = vld [vmem:[%s512_s1 + $0x70] sm:$0xff]  }
  0x15   :  { %v209_v8 = vadd.f32 %v208_v2, %v178_v59  ;;  %v278_v39 = vunpack.c.h.bf16 %v375_v22  ;;  %v342_v41 = vunpack.c.h.bf16 %v390_v28  ;;  %v156_v42 = vsub.f32 %v274_v27, %v338_v29 }
  0x16   :  { %v186_v43 = vand.u32 2147483647, %v154_v30  ;;  %v281_v45 = vunpack.c.l.bf16 %v376_v34  ;;  %v345_v47 = vunpack.c.l.bf16 %v391_v40  ;;  %v157_v48 = vsub.f32 %v277_v33, %v341_v35  ;;  %v381_v30 = vld [vmem:[%s511_s0 + $0x78] sm:$0xff]  }
  0x17   :  { %v210_v14 = vadd.f32 %v209_v8, %v179_v1  ;;  %v187_v49 = vand.u32 2147483647, %v155_v36  ;;  %v282_v51 = vunpack.c.h.bf16 %v376_v34  ;;  %v346_v53 = vunpack.c.h.bf16 %v391_v40  ;;  %v396_v36 = vld [vmem:[%s512_s1 + $0x78] sm:$0xff]  }
  0x18   :  { %v158_v54 = vsub.f32 %v278_v39, %v342_v41  ;;  %v188_v55 = vand.u32 2147483647, %v156_v42  ;;  %v285_v57 = vunpack.c.l.bf16 %v377_v46  ;;  %v349_v59 = vunpack.c.l.bf16 %v392_v52 }
  0x19   :  { %v211_v20 = vadd.f32 %v210_v14, %v180_v7  ;;  %v159_v60 = vsub.f32 %v281_v45, %v345_v47  ;;  %v189_v61 = vand.u32 2147483647, %v157_v48  ;;  %v286_v63 = vunpack.c.h.bf16 %v377_v46 }
  0x1a   :  { %v350_v1 = vunpack.c.h.bf16 %v392_v52  ;;  %v160_v2 = vsub.f32 %v282_v51, %v346_v53  ;;  %v190_v3 = vand.u32 2147483647, %v158_v54  ;;  %v289_v5 = vunpack.c.l.bf16 %v378_v58 }
  0x1b   :  { %v212_v26 = vadd.f32 %v211_v20, %v181_v13  ;;  %v353_v7 = vunpack.c.l.bf16 %v393_v0  ;;  %v161_v8 = vsub.f32 %v285_v57, %v349_v59  ;;  %v191_v9 = vand.u32 2147483647, %v159_v60 }
  0x1c   :  { %v290_v11 = vunpack.c.h.bf16 %v378_v58  ;;  %v354_v13 = vunpack.c.h.bf16 %v393_v0  ;;  %v162_v14 = vsub.f32 %v286_v63, %v350_v1  ;;  %v192_v15 = vand.u32 2147483647, %v160_v2 }
  0x1d   :  { %v213_v32 = vadd.f32 %v212_v26, %v182_v19  ;;  %v293_v17 = vunpack.c.l.bf16 %v379_v6  ;;  %v357_v19 = vunpack.c.l.bf16 %v394_v12  ;;  %v163_v20 = vsub.f32 %v289_v5, %v353_v7 }
  0x1e   :  { %v193_v21 = vand.u32 2147483647, %v161_v8  ;;  %v294_v23 = vunpack.c.h.bf16 %v379_v6  ;;  %v164_v26 = vsub.f32 %v290_v11, %v354_v13  ;;  %v194_v27 = vand.u32 2147483647, %v162_v14 }
  0x1f   :  { %v214_v38 = vadd.f32 %v213_v32, %v183_v25  ;;  %v358_v25 = vunpack.c.h.bf16 %v394_v12  ;;  %v297_v29 = vunpack.c.l.bf16 %v380_v18  ;;  %v165_v32 = vsub.f32 %v293_v17, %v357_v19 }
  0x20   :  { %v195_v33 = vand.u32 2147483647, %v163_v20  ;;  %v298_v35 = vunpack.c.h.bf16 %v380_v18  ;;  %v196_v39 = vand.u32 2147483647, %v164_v26  ;;  %v301_v41 = vunpack.c.l.bf16 %v381_v30 }
  0x21   :  { %v215_v44 = vadd.f32 %v214_v38, %v184_v31  ;;  %v361_v31 = vunpack.c.l.bf16 %v395_v24  ;;  %v166_v38 = vsub.f32 %v294_v23, %v358_v25  ;;  %v365_v42 = vunpack.c.l.bf16 %v396_v36 }
  0x22   :  { %v302_v46 = vunpack.c.h.bf16 %v381_v30  ;;  %v366_v47 = vunpack.c.h.bf16 %v396_v36 }
  0x23   :  { %v216_v50 = vadd.f32 %v215_v44, %v185_v37  ;;  %v362_v37 = vunpack.c.h.bf16 %v395_v24  ;;  %v197_v44 = vand.u32 2147483647, %v165_v32  ;;  %v169_v51 = vsub.f32 %v301_v41, %v365_v42 }
  0x24   :  { %v170_v54 = vsub.f32 %v302_v46, %v366_v47 }
  0x25   :  { %v217_v56 = vadd.f32 %v216_v50, %v186_v43  ;;  %v167_v43 = vsub.f32 %v297_v29, %v361_v31  ;;  %v168_v48 = vsub.f32 %v298_v35, %v362_v37  ;;  %v201_v57 = vand.u32 2147483647, %v169_v51 }
  0x26   :  { %v202_v59 = vand.u32 2147483647, %v170_v54 }
  0x27   :  { %v218_v62 = vadd.f32 %v217_v56, %v187_v49  ;;  %v198_v49 = vand.u32 2147483647, %v166_v38  ;;  %v199_v52 = vand.u32 2147483647, %v167_v43 }
  0x29   :  { %v219_v4 = vadd.f32 %v218_v62, %v188_v55  ;;  %v200_v55 = vand.u32 2147483647, %v168_v48 }
  0x2b   :  { %v220_v10 = vadd.f32 %v219_v4, %v189_v61 }
  0x2d   :  { %v221_v16 = vadd.f32 %v220_v10, %v190_v3 }
  0x2f   :  { %v222_v22 = vadd.f32 %v221_v16, %v191_v9 }
  0x31   :  { %v223_v28 = vadd.f32 %v222_v22, %v192_v15 }
  0x33   :  { %v224_v34 = vadd.f32 %v223_v28, %v193_v21 }
  0x35   :  { %v225_v40 = vadd.f32 %v224_v34, %v194_v27 }
  0x37   :  { %v226_v45 = vadd.f32 %v225_v40, %v195_v33 }
  0x39   :  { %v227_v50 = vadd.f32 %v226_v45, %v196_v39 }
  0x3b   :  { %v228_v53 = vadd.f32 %v227_v50, %v197_v44 }
  0x3d   :  { %v229_v56 = vadd.f32 %v228_v53, %v198_v49 }
  0x3f   :  { %v230_v58 = vadd.f32 %v229_v56, %v199_v52 }
  0x41   :  { %v231_v60 = vadd.f32 %v230_v58, %v200_v55 }
  0x43   :  { %v232_v61 = vadd.f32 %v231_v60, %v201_v57 }
  0x45   :  { %v233_v62 = vadd.f32 %v232_v61, %v202_v59 }
  0x47   :  { %234 = vst [vmem:[%s513_s2] sm:$0xff] %v233_v62 }

// kernel: style_reconstruction_loss.14
= control target key start
LH: loop header
LB: loop body
LE: loop exit
PB: predicated region body
PF: predicated region fallthrough
CT: control target
= control target key end

     0   :  { %s1831_s12 = smov 0   ;;  %s2197_s0 = inlined_call_operand.vmem [shape: bf16[1024,256], index: 0, kind: input, shape index: {}]   ;;  %s2198_s1 = inlined_call_operand.vmem [shape: bf16[256,64], index: 1, kind: input, shape index: {}]   ;;  %s2199_s2 = inlined_call_operand.vmem [shape: f32[1,64], index: 2, kind: input, shape index: {}]   ;;  %s2200_s3 = inlined_call_operand.vmem [shape: bf16[1024,64], index: 3, kind: output, shape index: {}]  }
   0x1 LB: > { %s1427_s13 = sadd.s32 4294967295, %s1808_s12   ;;  %p1431_p0 = scmp.ge.s32.totalorder %s1808_s12, 1  ;;  %s1808_s12 = sphi %s1831_s12, %s13_s12  }
   0x2   : > { %p139_p1 = scmp.lt.s32.totalorder %s1808_s12, 3 }
   0x4   : > { %p140_p2 = pnand %p1431_p0, %p139_p1 }
   0x5   : > { %v1690_v0 = vld [vmem:[%s2198_s1] sm:$0xff] (!%p140_p2)   ;;  %v1810_v1 = vmov (!%p140_p2), 0   ;;  %s1432_s16 = sshll.u32 (!%p140_p2), %s1427_s13, 6  ;;  %v1691_v2 = vld [vmem:[%s2198_s1 + $0x8] sm:$0xff] (!%p140_p2)   ;;  %v1692_v3 = vld [vmem:[%s2198_s1 + $0x10] sm:$0xff] (!%p140_p2)   ;;  %vm1306_vm0 = vcmask (!%p140_p2), 519168  }
   0x6   : > { %143 = sbr.rel (%p140_p2) target bundleno = 411 (0x19b), region = 32  ;;  %697 = vmatprep.subr.bf16.mxu0 (!%p140_p2), %v1810_v1  ;;  %1649 = vmatprep.subr.bf16.mxu1 (!%p140_p2), %v1810_v1  ;;  %p165_p3 = scmp.lt.s32.totalorder (!%p140_p2), %s1432_s16, 127  ;;  %v1693_v4 = vld [vmem:[%s2198_s1 + $0x18] sm:$0xff] (!%p140_p2)   ;;  %v1694_v5 = vld [vmem:[%s2198_s1 + $0x20] sm:$0xff] (!%p140_p2)   ;;  %v1695_v7 = vld [vmem:[%s2198_s1 + $0x28] sm:$0xff] (!%p140_p2)  }
   0x7   : > { %698 = vmatpush1.bf16.msra.mxu0 (!%p140_p2), %v1690_v0  ;;  %1665 = vmatpush1.bf16.msra.mxu1 (!%p140_p2), %v1690_v0  ;;  %v1696_v9 = vld [vmem:[%s2198_s1 + $0x30] sm:$0xff] (!%p140_p2)   ;;  %v1697_v10 = vld [vmem:[%s2198_s1 + $0x38] sm:$0xff] (!%p140_p2)   ;;  %v1698_v11 = vld [vmem:[%s2198_s1 + $0x40] sm:$0xff] (!%p140_p2)  }
   0x8   : > { %699 = vmatprep.subr.bf16.mxu0 (!%p140_p2), %v1810_v1  ;;  %1650 = vmatprep.subr.bf16.mxu1 (!%p140_p2), %v1810_v1  ;;  %v1699_v12 = vld [vmem:[%s2198_s1 + $0x48] sm:$0xff] (!%p140_p2)   ;;  %v1700_v13 = vld [vmem:[%s2198_s1 + $0x50] sm:$0xff] (!%p140_p2)   ;;  %v1701_v14 = vld [vmem:[%s2198_s1 + $0x58] sm:$0xff] (!%p140_p2)  }
   0x9   : > { %v1702_v15 = vld [vmem:[%s2198_s1 + $0x60] sm:$0xff] (!%p140_p2)   ;;  %v1703_v16 = vld [vmem:[%s2198_s1 + $0x68] sm:$0xff] (!%p140_p2)   ;;  %v1704_v17 = vld [vmem:[%s2198_s1 + $0x70] sm:$0xff] (!%p140_p2)  }
   0xa   : > { %v1705_v18 = vld [vmem:[%s2198_s1 + $0x78] sm:$0xff] (!%p140_p2)  }
   0xb   : > { %700 = vmatpush1.bf16.msra.mxu0 (!%p140_p2), %v1691_v2  ;;  %1666 = vmatpush1.bf16.msra.mxu1 (!%p140_p2), %v1691_v2 }
   0xc   : > { %701 = vmatprep.subr.bf16.mxu0 (!%p140_p2), %v1810_v1  ;;  %1651 = vmatprep.subr.bf16.mxu1 (!%p140_p2), %v1810_v1 }
   0xd   : > { %s2202_s16 = smov (!%p165_p3, %s1432_s16), 127 }
   0xe   : > { %s1584_s23 = sshll.u32 %s2202_s16, 3  ;;  %s1436_s29 = sshll.u32 %s2202_s16, 2 }
   0xf   : > { %702 = vmatpush1.bf16.msra.mxu0 %v1692_v3  ;;  %1667 = vmatpush1.bf16.msra.mxu1 %v1692_v3  ;;  %s1868_s28 = scalar_lea.vmem %s2197_s0, %s1584_s23  ;;  %s2004_s16 = scalar_lea.vmem %s2200_s3, %s1436_s29 }
  0x10   : > { %703 = vmatprep.subr.bf16.mxu0 %v1810_v1  ;;  %1652 = vmatprep.subr.bf16.mxu1 %v1810_v1  ;;  %v1708_v6 = vld [vmem:[%s1868_s28 + $0x4] ss:$8 sps:$4 sm:$0xff]   ;;  %v1706_v19 = vld [vmem:[%s1868_s28] ss:$8 sps:$4 sm:$0xff]   ;;  %v1712_v21 = vld [vmem:[%s1868_s28 + $0x14] ss:$8 sps:$4 sm:$0xff]  }
  0x11   : > { %v1711_v8 = vld [vmem:[%s1868_s28 + $0x104] ss:$8 sps:$4 sm:$0xff]   ;;  %729 = vmatprep.mubr.bf16.mxu0 %v1708_v6  ;;  %v1709_v20 = vld [vmem:[%s1868_s28 + $0x100] ss:$8 sps:$4 sm:$0xff]   ;;  %v1714_v22 = vld [vmem:[%s1868_s28 + $0x114] ss:$8 sps:$4 sm:$0xff]  }
  0x12   : > { %857 = vmatprep.mubr.bf16.mxu1 %v1711_v8  ;;  %v1716_v23 = vld [vmem:[%s1868_s28 + $0x10] ss:$8 sps:$4 sm:$0xff]   ;;  %v1718_v25 = vld [vmem:[%s1868_s28 + $0x24] ss:$8 sps:$4 sm:$0xff]   ;;  %v1722_v27 = vld [vmem:[%s1868_s28 + $0x20] ss:$8 sps:$4 sm:$0xff]  }
  0x13   : > { %704 = vmatpush1.bf16.msra.mxu0 %v1693_v4  ;;  %1668 = vmatpush1.bf16.msra.mxu1 %v1693_v4  ;;  %v1717_v24 = vld [vmem:[%s1868_s28 + $0x110] ss:$8 sps:$4 sm:$0xff]   ;;  %v1720_v26 = vld [vmem:[%s1868_s28 + $0x124] ss:$8 sps:$4 sm:$0xff]   ;;  %v1723_v28 = vld [vmem:[%s1868_s28 + $0x120] ss:$8 sps:$4 sm:$0xff]  }
  0x14   : > { %705 = vmatprep.subr.bf16.mxu0 %v1810_v1  ;;  %1653 = vmatprep.subr.bf16.mxu1 %v1810_v1  ;;  %v1724_v29 = vld [vmem:[%s1868_s28 + $0x34] ss:$8 sps:$4 sm:$0xff]   ;;  %v1728_v31 = vld [vmem:[%s1868_s28 + $0x30] ss:$8 sps:$4 sm:$0xff]   ;;  %v1730_v33 = vld [vmem:[%s1868_s28 + $0x44] ss:$8 sps:$4 sm:$0xff]  }
  0x15   : > { %v1726_v30 = vld [vmem:[%s1868_s28 + $0x134] ss:$8 sps:$4 sm:$0xff]   ;;  %v1729_v32 = vld [vmem:[%s1868_s28 + $0x130] ss:$8 sps:$4 sm:$0xff]   ;;  %v1732_v34 = vld [vmem:[%s1868_s28 + $0x144] ss:$8 sps:$4 sm:$0xff]  }
  0x16   : > { %v1734_v35 = vld [vmem:[%s1868_s28 + $0x40] ss:$8 sps:$4 sm:$0xff]   ;;  %v1736_v37 = vld [vmem:[%s1868_s28 + $0x54] ss:$8 sps:$4 sm:$0xff]   ;;  %v1740_v39 = vld [vmem:[%s1868_s28 + $0x50] ss:$8 sps:$4 sm:$0xff]  }
  0x17   : > { %706 = vmatpush1.bf16.msra.mxu0 %v1694_v5  ;;  %1669 = vmatpush1.bf16.msra.mxu1 %v1694_v5  ;;  %v1735_v36 = vld [vmem:[%s1868_s28 + $0x140] ss:$8 sps:$4 sm:$0xff]   ;;  %v1738_v38 = vld [vmem:[%s1868_s28 + $0x154] ss:$8 sps:$4 sm:$0xff]   ;;  %v1741_v40 = vld [vmem:[%s1868_s28 + $0x150] ss:$8 sps:$4 sm:$0xff]  }
  0x18   : > { %707 = vmatprep.subr.bf16.mxu0 %v1810_v1  ;;  %1654 = vmatprep.subr.bf16.mxu1 %v1810_v1  ;;  %v1742_v41 = vld [vmem:[%s1868_s28 + $0x64] ss:$8 sps:$4 sm:$0xff]   ;;  %v1746_v43 = vld [vmem:[%s1868_s28 + $0x60] ss:$8 sps:$4 sm:$0xff]   ;;  %v1748_v45 = vld [vmem:[%s1868_s28 + $0x74] ss:$8 sps:$4 sm:$0xff]  }
  0x19   : > { %v1744_v42 = vld [vmem:[%s1868_s28 + $0x164] ss:$8 sps:$4 sm:$0xff]   ;;  %v1747_v44 = vld [vmem:[%s1868_s28 + $0x160] ss:$8 sps:$4 sm:$0xff]   ;;  %v1750_v46 = vld [vmem:[%s1868_s28 + $0x174] ss:$8 sps:$4 sm:$0xff]  }
  0x1a   : > { %v1752_v47 = vld [vmem:[%s1868_s28 + $0x70] ss:$8 sps:$4 sm:$0xff]   ;;  %v1754_v49 = vld [vmem:[%s1868_s28 + $0x84] ss:$8 sps:$4 sm:$0xff]   ;;  %v1758_v51 = vld [vmem:[%s1868_s28 + $0x80] ss:$8 sps:$4 sm:$0xff]  }
  0x1b   : > { %708 = vmatpush1.bf16.msra.mxu0 %v1695_v7  ;;  %1670 = vmatpush1.bf16.msra.mxu1 %v1695_v7  ;;  %v1753_v48 = vld [vmem:[%s1868_s28 + $0x170] ss:$8 sps:$4 sm:$0xff]   ;;  %v1756_v50 = vld [vmem:[%s1868_s28 + $0x184] ss:$8 sps:$4 sm:$0xff]   ;;  %v1759_v52 = vld [vmem:[%s1868_s28 + $0x180] ss:$8 sps:$4 sm:$0xff]  }
  0x1c   : > { %709 = vmatprep.subr.bf16.mxu0 %v1810_v1  ;;  %1655 = vmatprep.subr.bf16.mxu1 %v1810_v1  ;;  %v1760_v53 = vld [vmem:[%s1868_s28 + $0x94] ss:$8 sps:$4 sm:$0xff]   ;;  %v1764_v55 = vld [vmem:[%s1868_s28 + $0x90] ss:$8 sps:$4 sm:$0xff]   ;;  %v1766_v57 = vld [vmem:[%s1868_s28 + $0xa4] ss:$8 sps:$4 sm:$0xff]  }
  0x1d   : > { %v1762_v54 = vld [vmem:[%s1868_s28 + $0x194] ss:$8 sps:$4 sm:$0xff]   ;;  %v1765_v56 = vld [vmem:[%s1868_s28 + $0x190] ss:$8 sps:$4 sm:$0xff]   ;;  %v1768_v58 = vld [vmem:[%s1868_s28 + $0x1a4] ss:$8 sps:$4 sm:$0xff]  }
  0x1e   : > { %v1770_v59 = vld [vmem:[%s1868_s28 + $0xa0] ss:$8 sps:$4 sm:$0xff]   ;;  %v1772_v61 = vld [vmem:[%s1868_s28 + $0xb4] ss:$8 sps:$4 sm:$0xff]   ;;  %v1776_v63 = vld [vmem:[%s1868_s28 + $0xb0] ss:$8 sps:$4 sm:$0xff]  }
  0x1f   : > { %710 = vmatpush1.bf16.msra.mxu0 %v1696_v9  ;;  %1671 = vmatpush1.bf16.msra.mxu1 %v1696_v9  ;;  %v1771_v60 = vld [vmem:[%s1868_s28 + $0x1a0] ss:$8 sps:$4 sm:$0xff]   ;;  %v1774_v62 = vld [vmem:[%s1868_s28 + $0x1b4] ss:$8 sps:$4 sm:$0xff]   ;;  %v1777_v0 = vld [vmem:[%s1868_s28 + $0x1b0] ss:$8 sps:$4 sm:$0xff]  }
  0x20   : > { %711 = vmatprep.subr.bf16.mxu0 %v1810_v1  ;;  %1656 = vmatprep.subr.bf16.mxu1 %v1810_v1  ;;  %v1780_v2 = vld [vmem:[%s1868_s28 + $0x1c4] ss:$8 sps:$4 sm:$0xff]   ;;  %v1782_v3 = vld [vmem:[%s1868_s28 + $0xc0] ss:$8 sps:$4 sm:$0xff]   ;;  %v1784_v5 = vld [vmem:[%s1868_s28 + $0xd4] ss:$8 sps:$4 sm:$0xff]  }
  0x21   : > { %v1783_v4 = vld [vmem:[%s1868_s28 + $0x1c0] ss:$8 sps:$4 sm:$0xff]   ;;  %v1786_v6 = vld [vmem:[%s1868_s28 + $0x1d4] ss:$8 sps:$4 sm:$0xff]   ;;  %v1788_v7 = vld [vmem:[%s1868_s28 + $0xd0] ss:$8 sps:$4 sm:$0xff]  }
  0x22   : > { %v1789_v8 = vld [vmem:[%s1868_s28 + $0x1d0] ss:$8 sps:$4 sm:$0xff]   ;;  %v1790_v9 = vld [vmem:[%s1868_s28 + $0xe4] ss:$8 sps:$4 sm:$0xff]  }
  0x23   : > { %712 = vmatpush1.bf16.msra.mxu0 %v1697_v10  ;;  %1672 = vmatpush1.bf16.msra.mxu1 %v1697_v10  ;;  %v1792_v10 = vld [vmem:[%s1868_s28 + $0x1e4] ss:$8 sps:$4 sm:$0xff]  }
  0x24   : > { %713 = vmatprep.subr.bf16.mxu0 %v1810_v1  ;;  %1657 = vmatprep.subr.bf16.mxu1 %v1810_v1 }
  0x27   : > { %714 = vmatpush1.bf16.msra.mxu0 %v1698_v11  ;;  %1673 = vmatpush1.bf16.msra.mxu1 %v1698_v11  ;;  %v1794_v11 = vld [vmem:[%s1868_s28 + $0xe0] ss:$8 sps:$4 sm:$0xff]  }
  0x28   : > { %715 = vmatprep.subr.bf16.mxu0 %v1810_v1  ;;  %1658 = vmatprep.subr.bf16.mxu1 %v1810_v1 }
  0x2b   : > { %716 = vmatpush1.bf16.msra.mxu0 %v1699_v12  ;;  %1674 = vmatpush1.bf16.msra.mxu1 %v1699_v12  ;;  %v1795_v12 = vld [vmem:[%s1868_s28 + $0x1e0] ss:$8 sps:$4 sm:$0xff]  }
  0x2c   : > { %717 = vmatprep.subr.bf16.mxu0 %v1810_v1  ;;  %1659 = vmatprep.subr.bf16.mxu1 %v1810_v1 }
  0x2f   : > { %718 = vmatpush1.bf16.msra.mxu0 %v1700_v13  ;;  %1675 = vmatpush1.bf16.msra.mxu1 %v1700_v13  ;;  %v1796_v13 = vld [vmem:[%s1868_s28 + $0xf4] ss:$8 sps:$4 sm:$0xff]  }
  0x30   : > { %719 = vmatprep.subr.bf16.mxu0 %v1810_v1  ;;  %1660 = vmatprep.subr.bf16.mxu1 %v1810_v1 }
  0x33   : > { %720 = vmatpush1.bf16.msra.mxu0 %v1701_v14  ;;  %1676 = vmatpush1.bf16.msra.mxu1 %v1701_v14  ;;  %v1798_v14 = vld [vmem:[%s1868_s28 + $0x1f4] ss:$8 sps:$4 sm:$0xff]  }
  0x34   : > { %721 = vmatprep.subr.bf16.mxu0 %v1810_v1  ;;  %1661 = vmatprep.subr.bf16.mxu1 %v1810_v1 }
  0x37   : > { %722 = vmatpush1.bf16.msra.mxu0 %v1702_v15  ;;  %1677 = vmatpush1.bf16.msra.mxu1 %v1702_v15  ;;  %v1800_v15 = vld [vmem:[%s1868_s28 + $0xf0] ss:$8 sps:$4 sm:$0xff]  }
  0x38   : > { %723 = vmatprep.subr.bf16.mxu0 %v1810_v1  ;;  %1662 = vmatprep.subr.bf16.mxu1 %v1810_v1 }
  0x3b   : > { %724 = vmatpush1.bf16.msra.mxu0 %v1703_v16  ;;  %1678 = vmatpush1.bf16.msra.mxu1 %v1703_v16  ;;  %v1801_v16 = vld [vmem:[%s1868_s28 + $0x1f0] ss:$8 sps:$4 sm:$0xff]  }
  0x3c   : > { %725 = vmatprep.subr.bf16.mxu0 %v1810_v1  ;;  %1663 = vmatprep.subr.bf16.mxu1 %v1810_v1 }
  0x3f   : > { %726 = vmatpush1.bf16.msra.mxu0 %v1704_v17  ;;  %1679 = vmatpush1.bf16.msra.mxu1 %v1704_v17  ;;  %v1994_v17 = vld [vmem:[%s2199_s2] ss:$0 sm:$0xff] }
  0x40   : > { %727 = vmatprep.subr.bf16.mxu0 %v1810_v1  ;;  %1664 = vmatprep.subr.bf16.mxu1 %v1810_v1  ;;  %v1778_v1 = vld [vmem:[%s1868_s28 + $0xc4] ss:$8 sps:$4 sm:$0xff]  }
  0x43   : > { %728 = vmatpush1.bf16.msra.mxu0 %v1705_v18  ;;  %1680 = vmatpush1.bf16.msra.mxu1 %v1705_v18 }
  0x46   : > { %730 = vmatmul.mubr.bf16.vlgmr.msra.gmra.mrb[0].mxu0 %v1706_v19  ;;  %858 = vmatmul.mubr.bf16.vlgmr.msra.gmra.mrb[0].mxu1 %v1709_v20 }
  0x47   : > { %737 = vmatprep.mubr.bf16.mxu0 %v1712_v21  ;;  %865 = vmatprep.mubr.bf16.mxu1 %v1714_v22 }
  0x4e   : > { %738 = vmatmul.mubr.bf16.gmra.mrb[4].mxu0 %v1716_v23  ;;  %866 = vmatmul.mubr.bf16.gmra.mrb[4].mxu1 %v1717_v24 }
  0x4f   : > { %745 = vmatprep.mubr.bf16.mxu0 %v1718_v25  ;;  %873 = vmatprep.mubr.bf16.mxu1 %v1720_v26 }
  0x56   : > { %746 = vmatmul.mubr.bf16.gmra.mrb[8].mxu0 %v1722_v27  ;;  %874 = vmatmul.mubr.bf16.gmra.mrb[8].mxu1 %v1723_v28 }
  0x57   : > { %753 = vmatprep.mubr.bf16.mxu0 %v1724_v29  ;;  %881 = vmatprep.mubr.bf16.mxu1 %v1726_v30 }
  0x5e   : > { %754 = vmatmul.mubr.bf16.gmra.mrb[12].mxu0 %v1728_v31  ;;  %882 = vmatmul.mubr.bf16.gmra.mrb[12].mxu1 %v1729_v32 }
  0x5f   : > { %761 = vmatprep.mubr.bf16.mxu0 %v1730_v33  ;;  %889 = vmatprep.mubr.bf16.mxu1 %v1732_v34 }
  0x66   : > { %762 = vmatmul.mubr.bf16.gmra.mrb[16].mxu0 %v1734_v35  ;;  %890 = vmatmul.mubr.bf16.gmra.mrb[16].mxu1 %v1735_v36 }
  0x67   : > { %769 = vmatprep.mubr.bf16.mxu0 %v1736_v37  ;;  %897 = vmatprep.mubr.bf16.mxu1 %v1738_v38 }
  0x6e   : > { %770 = vmatmul.mubr.bf16.gmra.mrb[20].mxu0 %v1740_v39  ;;  %898 = vmatmul.mubr.bf16.gmra.mrb[20].mxu1 %v1741_v40 }
  0x6f   : > { %777 = vmatprep.mubr.bf16.mxu0 %v1742_v41  ;;  %905 = vmatprep.mubr.bf16.mxu1 %v1744_v42 }
  0x76   : > { %778 = vmatmul.mubr.bf16.gmra.mrb[24].mxu0 %v1746_v43  ;;  %906 = vmatmul.mubr.bf16.gmra.mrb[24].mxu1 %v1747_v44 }
  0x77   : > { %785 = vmatprep.mubr.bf16.mxu0 %v1748_v45  ;;  %913 = vmatprep.mubr.bf16.mxu1 %v1750_v46 }
  0x7e   : > { %786 = vmatmul.mubr.bf16.gmra.mrb[28].mxu0 %v1752_v47  ;;  %914 = vmatmul.mubr.bf16.gmra.mrb[28].mxu1 %v1753_v48 }
  0x7f   : > { %793 = vmatprep.mubr.bf16.mxu0 %v1754_v49  ;;  %921 = vmatprep.mubr.bf16.mxu1 %v1756_v50 }
  0x86   : > { %794 = vmatmul.mubr.bf16.gmra.mrb[32].mxu0 %v1758_v51  ;;  %922 = vmatmul.mubr.bf16.gmra.mrb[32].mxu1 %v1759_v52 }
  0x87   : > { %801 = vmatprep.mubr.bf16.mxu0 %v1760_v53  ;;  %929 = vmatprep.mubr.bf16.mxu1 %v1762_v54 }
  0x8e   : > { %802 = vmatmul.mubr.bf16.gmra.mrb[36].mxu0 %v1764_v55  ;;  %930 = vmatmul.mubr.bf16.gmra.mrb[36].mxu1 %v1765_v56 }
  0x8f   : > { %809 = vmatprep.mubr.bf16.mxu0 %v1766_v57  ;;  %937 = vmatprep.mubr.bf16.mxu1 %v1768_v58 }
  0x96   : > { %810 = vmatmul.mubr.bf16.gmra.mrb[40].mxu0 %v1770_v59  ;;  %938 = vmatmul.mubr.bf16.gmra.mrb[40].mxu1 %v1771_v60 }
  0x97   : > { %817 = vmatprep.mubr.bf16.mxu0 %v1772_v61  ;;  %945 = vmatprep.mubr.bf16.mxu1 %v1774_v62 }
  0x9e   : > { %818 = vmatmul.mubr.bf16.gmra.mrb[44].mxu0 %v1776_v63  ;;  %946 = vmatmul.mubr.bf16.gmra.mrb[44].mxu1 %v1777_v0 }
  0x9f   : > { %825 = vmatprep.mubr.bf16.mxu0 %v1778_v1  ;;  %953 = vmatprep.mubr.bf16.mxu1 %v1780_v2 }
  0xa6   : > { %826 = vmatmul.mubr.bf16.gmra.mrb[48].mxu0 %v1782_v3  ;;  %954 = vmatmul.mubr.bf16.gmra.mrb[48].mxu1 %v1783_v4 }
  0xa7   : > { %833 = vmatprep.mubr.bf16.mxu0 %v1784_v5  ;;  %961 = vmatprep.mubr.bf16.mxu1 %v1786_v6 }
  0xae   : > { %834 = vmatmul.mubr.bf16.gmra.mrb[52].mxu0 %v1788_v7  ;;  %962 = vmatmul.mubr.bf16.gmra.mrb[52].mxu1 %v1789_v8 }
  0xaf   : > { %841 = vmatprep.mubr.bf16.mxu0 %v1790_v9  ;;  %969 = vmatprep.mubr.bf16.mxu1 %v1792_v10 }
  0xb6   : > { %842 = vmatmul.mubr.bf16.gmra.mrb[56].mxu0 %v1794_v11  ;;  %970 = vmatmul.mubr.bf16.gmra.mrb[56].mxu1 %v1795_v12 }
  0xb7   : > { %849 = vmatprep.mubr.bf16.mxu0 %v1796_v13  ;;  %977 = vmatprep.mubr.bf16.mxu1 %v1798_v14 }
  0xbe   : > { %850 = vmatmul.mubr.bf16.gmra.mrb[60].mxu0 %v1800_v15  ;;  %978 = vmatmul.mubr.bf16.gmra.mrb[60].mxu1 %v1801_v16 }
 0x119   : > { %v731_v18 = vpop.f32.mrb[0].mxu0  ;;  %v859_v19 = vpop.f32.mrb[0].mxu1 }
 0x11a   : > { %v732_v20 = vadd.f32 %v1994_v17, %v731_v18  ;;  %v860_v21 = vadd.f32 %v1994_v17, %v859_v19  ;;  %v733_v22 = vpop.f32.mrb[1].mxu0  ;;  %v861_v23 = vpop.f32.mrb[1].mxu1 }
 0x11b   : > { %v734_v24 = vpop.f32.mrb[2].mxu0  ;;  %v862_v25 = vpop.f32.mrb[2].mxu1 }
 0x11c   : > { %v986_v26 = vmax.f32 %v732_v20, 0.0  ;;  %v1018_v27 = vmax.f32 %v860_v21, 0.0  ;;  %v735_v28 = vadd.f32 %v1994_v17, %v734_v24  ;;  %v863_v29 = vadd.f32 %v1994_v17, %v862_v25  ;;  %v736_v30 = vpop.f32.mrb[3].mxu0  ;;  %v864_v31 = vpop.f32.mrb[3].mxu1 }
 0x11e   : > { %v1585_v32 = vpack.c.bf16 %v986_v26, %v986_v26  ;;  %v1617_v33 = vpack.c.bf16 %v1018_v27, %v1018_v27  ;;  %v987_v34 = vmax.f32 %v735_v28, 0.0  ;;  %v1019_v35 = vmax.f32 %v863_v29, 0.0 }
 0x120   : > { %1307 = vst.msk [vmem:[%s2004_s16] sm:$0xf] %vm1306_vm0, %v1585_v32  ;;  %1339 = vst.msk [vmem:[%s2004_s16 + $0x80] sm:$0xf] %vm1306_vm0, %v1617_v33  ;;  %v1586_v36 = vpack.c.bf16 %v987_v34, %v987_v34  ;;  %v1618_v37 = vpack.c.bf16 %v1019_v35, %v1019_v35 }
 0x121   : > { %v739_v38 = vpop.f32.mrb[4].mxu0  ;;  %v867_v39 = vpop.f32.mrb[4].mxu1 }
 0x122   : > { %1308 = vst.msk [vmem:[%s2004_s16 + $0x4] sm:$0xf] %vm1306_vm0, %v1586_v36  ;;  %1340 = vst.msk [vmem:[%s2004_s16 + $0x84] sm:$0xf] %vm1306_vm0, %v1618_v37  ;;  %v740_v40 = vadd.f32 %v1994_v17, %v739_v38  ;;  %v868_v41 = vadd.f32 %v1994_v17, %v867_v39  ;;  %v741_v42 = vpop.f32.mrb[5].mxu0  ;;  %v869_v43 = vpop.f32.mrb[5].mxu1 }
 0x123   : > { %v742_v44 = vpop.f32.mrb[6].mxu0  ;;  %v870_v45 = vpop.f32.mrb[6].mxu1 }
 0x124   : > { %v988_v46 = vmax.f32 %v740_v40, 0.0  ;;  %v1020_v47 = vmax.f32 %v868_v41, 0.0  ;;  %v743_v48 = vadd.f32 %v1994_v17, %v742_v44  ;;  %v871_v49 = vadd.f32 %v1994_v17, %v870_v45  ;;  %v744_v50 = vpop.f32.mrb[7].mxu0  ;;  %v872_v51 = vpop.f32.mrb[7].mxu1 }
 0x126   : > { %v1587_v52 = vpack.c.bf16 %v988_v46, %v988_v46  ;;  %v1619_v53 = vpack.c.bf16 %v1020_v47, %v1020_v47  ;;  %v989_v54 = vmax.f32 %v743_v48, 0.0  ;;  %v1021_v55 = vmax.f32 %v871_v49, 0.0 }
 0x128   : > { %1309 = vst.msk [vmem:[%s2004_s16 + $0x8] sm:$0xf] %vm1306_vm0, %v1587_v52  ;;  %1341 = vst.msk [vmem:[%s2004_s16 + $0x88] sm:$0xf] %vm1306_vm0, %v1619_v53  ;;  %v1588_v56 = vpack.c.bf16 %v989_v54, %v989_v54  ;;  %v1620_v57 = vpack.c.bf16 %v1021_v55, %v1021_v55 }
 0x129   : > { %v747_v58 = vpop.f32.mrb[8].mxu0  ;;  %v875_v59 = vpop.f32.mrb[8].mxu1 }
 0x12a   : > { %1310 = vst.msk [vmem:[%s2004_s16 + $0xc] sm:$0xf] %vm1306_vm0, %v1588_v56  ;;  %1342 = vst.msk [vmem:[%s2004_s16 + $0x8c] sm:$0xf] %vm1306_vm0, %v1620_v57  ;;  %v748_v60 = vadd.f32 %v1994_v17, %v747_v58  ;;  %v876_v61 = vadd.f32 %v1994_v17, %v875_v59  ;;  %v749_v62 = vpop.f32.mrb[9].mxu0  ;;  %v877_v63 = vpop.f32.mrb[9].mxu1 }
 0x12b   : > { %v750_v0 = vpop.f32.mrb[10].mxu0  ;;  %v878_v1 = vpop.f32.mrb[10].mxu1 }
 0x12c   : > { %v990_v2 = vmax.f32 %v748_v60, 0.0  ;;  %v1022_v3 = vmax.f32 %v876_v61, 0.0  ;;  %v751_v4 = vadd.f32 %v1994_v17, %v750_v0  ;;  %v879_v5 = vadd.f32 %v1994_v17, %v878_v1  ;;  %v752_v6 = vpop.f32.mrb[11].mxu0  ;;  %v880_v7 = vpop.f32.mrb[11].mxu1 }
 0x12e   : > { %v1589_v8 = vpack.c.bf16 %v990_v2, %v990_v2  ;;  %v1621_v9 = vpack.c.bf16 %v1022_v3, %v1022_v3  ;;  %v991_v10 = vmax.f32 %v751_v4, 0.0  ;;  %v1023_v11 = vmax.f32 %v879_v5, 0.0 }
 0x130   : > { %1311 = vst.msk [vmem:[%s2004_s16 + $0x10] sm:$0xf] %vm1306_vm0, %v1589_v8  ;;  %1343 = vst.msk [vmem:[%s2004_s16 + $0x90] sm:$0xf] %vm1306_vm0, %v1621_v9  ;;  %v1590_v12 = vpack.c.bf16 %v991_v10, %v991_v10  ;;  %v1622_v13 = vpack.c.bf16 %v1023_v11, %v1023_v11 }
 0x131   : > { %v755_v14 = vpop.f32.mrb[12].mxu0  ;;  %v883_v15 = vpop.f32.mrb[12].mxu1 }
 0x132   : > { %1312 = vst.msk [vmem:[%s2004_s16 + $0x14] sm:$0xf] %vm1306_vm0, %v1590_v12  ;;  %1344 = vst.msk [vmem:[%s2004_s16 + $0x94] sm:$0xf] %vm1306_vm0, %v1622_v13  ;;  %v756_v16 = vadd.f32 %v1994_v17, %v755_v14  ;;  %v884_v18 = vadd.f32 %v1994_v17, %v883_v15  ;;  %v757_v19 = vpop.f32.mrb[13].mxu0  ;;  %v885_v20 = vpop.f32.mrb[13].mxu1 }
 0x133   : > { %v758_v21 = vpop.f32.mrb[14].mxu0  ;;  %v886_v22 = vpop.f32.mrb[14].mxu1 }
 0x134   : > { %v992_v23 = vmax.f32 %v756_v16, 0.0  ;;  %v1024_v24 = vmax.f32 %v884_v18, 0.0  ;;  %v759_v25 = vadd.f32 %v1994_v17, %v758_v21  ;;  %v887_v26 = vadd.f32 %v1994_v17, %v886_v22  ;;  %v760_v27 = vpop.f32.mrb[15].mxu0  ;;  %v888_v28 = vpop.f32.mrb[15].mxu1 }
 0x136   : > { %v1591_v29 = vpack.c.bf16 %v992_v23, %v992_v23  ;;  %v1623_v30 = vpack.c.bf16 %v1024_v24, %v1024_v24  ;;  %v993_v31 = vmax.f32 %v759_v25, 0.0  ;;  %v1025_v32 = vmax.f32 %v887_v26, 0.0 }
 0x138   : > { %1313 = vst.msk [vmem:[%s2004_s16 + $0x18] sm:$0xf] %vm1306_vm0, %v1591_v29  ;;  %1345 = vst.msk [vmem:[%s2004_s16 + $0x98] sm:$0xf] %vm1306_vm0, %v1623_v30  ;;  %v1592_v33 = vpack.c.bf16 %v993_v31, %v993_v31  ;;  %v1624_v34 = vpack.c.bf16 %v1025_v32, %v1025_v32 }
 0x139   : > { %v763_v35 = vpop.f32.mrb[16].mxu0  ;;  %v891_v36 = vpop.f32.mrb[16].mxu1 }
 0x13a   : > { %1314 = vst.msk [vmem:[%s2004_s16 + $0x1c] sm:$0xf] %vm1306_vm0, %v1592_v33  ;;  %1346 = vst.msk [vmem:[%s2004_s16 + $0x9c] sm:$0xf] %vm1306_vm0, %v1624_v34  ;;  %v764_v37 = vadd.f32 %v1994_v17, %v763_v35  ;;  %v892_v38 = vadd.f32 %v1994_v17, %v891_v36  ;;  %v765_v39 = vpop.f32.mrb[17].mxu0  ;;  %v893_v40 = vpop.f32.mrb[17].mxu1 }
 0x13b   : > { %v766_v41 = vpop.f32.mrb[18].mxu0  ;;  %v894_v42 = vpop.f32.mrb[18].mxu1 }
 0x13c   : > { %v994_v43 = vmax.f32 %v764_v37, 0.0  ;;  %v1026_v44 = vmax.f32 %v892_v38, 0.0  ;;  %v767_v45 = vadd.f32 %v1994_v17, %v766_v41  ;;  %v895_v46 = vadd.f32 %v1994_v17, %v894_v42  ;;  %v768_v47 = vpop.f32.mrb[19].mxu0  ;;  %v896_v48 = vpop.f32.mrb[19].mxu1 }
 0x13e   : > { %v1593_v49 = vpack.c.bf16 %v994_v43, %v994_v43  ;;  %v1625_v50 = vpack.c.bf16 %v1026_v44, %v1026_v44  ;;  %v995_v51 = vmax.f32 %v767_v45, 0.0  ;;  %v1027_v52 = vmax.f32 %v895_v46, 0.0 }
 0x140   : > { %1315 = vst.msk [vmem:[%s2004_s16 + $0x20] sm:$0xf] %vm1306_vm0, %v1593_v49  ;;  %1347 = vst.msk [vmem:[%s2004_s16 + $0xa0] sm:$0xf] %vm1306_vm0, %v1625_v50  ;;  %v1594_v53 = vpack.c.bf16 %v995_v51, %v995_v51  ;;  %v1626_v54 = vpack.c.bf16 %v1027_v52, %v1027_v52 }
 0x141   : > { %v771_v55 = vpop.f32.mrb[20].mxu0  ;;  %v899_v56 = vpop.f32.mrb[20].mxu1 }
 0x142   : > { %1316 = vst.msk [vmem:[%s2004_s16 + $0x24] sm:$0xf] %vm1306_vm0, %v1594_v53  ;;  %1348 = vst.msk [vmem:[%s2004_s16 + $0xa4] sm:$0xf] %vm1306_vm0, %v1626_v54  ;;  %v772_v57 = vadd.f32 %v1994_v17, %v771_v55  ;;  %v900_v58 = vadd.f32 %v1994_v17, %v899_v56  ;;  %v773_v59 = vpop.f32.mrb[21].mxu0  ;;  %v901_v60 = vpop.f32.mrb[21].mxu1 }
 0x143   : > { %v774_v61 = vpop.f32.mrb[22].mxu0  ;;  %v902_v62 = vpop.f32.mrb[22].mxu1 }
 0x144   : > { %v996_v63 = vmax.f32 %v772_v57, 0.0  ;;  %v1028_v0 = vmax.f32 %v900_v58, 0.0  ;;  %v775_v1 = vadd.f32 %v1994_v17, %v774_v61  ;;  %v903_v2 = vadd.f32 %v1994_v17, %v902_v62  ;;  %v776_v3 = vpop.f32.mrb[23].mxu0  ;;  %v904_v4 = vpop.f32.mrb[23].mxu1 }
 0x146   : > { %v1595_v5 = vpack.c.bf16 %v996_v63, %v996_v63  ;;  %v1627_v6 = vpack.c.bf16 %v1028_v0, %v1028_v0  ;;  %v997_v7 = vmax.f32 %v775_v1, 0.0  ;;  %v1029_v8 = vmax.f32 %v903_v2, 0.0 }
 0x148   : > { %1317 = vst.msk [vmem:[%s2004_s16 + $0x28] sm:$0xf] %vm1306_vm0, %v1595_v5  ;;  %1349 = vst.msk [vmem:[%s2004_s16 + $0xa8] sm:$0xf] %vm1306_vm0, %v1627_v6  ;;  %v1596_v9 = vpack.c.bf16 %v997_v7, %v997_v7  ;;  %v1628_v10 = vpack.c.bf16 %v1029_v8, %v1029_v8 }
 0x149   : > { %v779_v11 = vpop.f32.mrb[24].mxu0  ;;  %v907_v12 = vpop.f32.mrb[24].mxu1 }
 0x14a   : > { %1318 = vst.msk [vmem:[%s2004_s16 + $0x2c] sm:$0xf] %vm1306_vm0, %v1596_v9  ;;  %1350 = vst.msk [vmem:[%s2004_s16 + $0xac] sm:$0xf] %vm1306_vm0, %v1628_v10  ;;  %v780_v13 = vadd.f32 %v1994_v17, %v779_v11  ;;  %v908_v14 = vadd.f32 %v1994_v17, %v907_v12  ;;  %v781_v15 = vpop.f32.mrb[25].mxu0  ;;  %v909_v16 = vpop.f32.mrb[25].mxu1 }
 0x14b   : > { %v782_v18 = vpop.f32.mrb[26].mxu0  ;;  %v910_v19 = vpop.f32.mrb[26].mxu1 }
 0x14c   : > { %v998_v20 = vmax.f32 %v780_v13, 0.0  ;;  %v1030_v21 = vmax.f32 %v908_v14, 0.0  ;;  %v783_v22 = vadd.f32 %v1994_v17, %v782_v18  ;;  %v911_v23 = vadd.f32 %v1994_v17, %v910_v19  ;;  %v784_v24 = vpop.f32.mrb[27].mxu0  ;;  %v912_v25 = vpop.f32.mrb[27].mxu1 }
 0x14e   : > { %v1597_v26 = vpack.c.bf16 %v998_v20, %v998_v20  ;;  %v1629_v27 = vpack.c.bf16 %v1030_v21, %v1030_v21  ;;  %v999_v28 = vmax.f32 %v783_v22, 0.0  ;;  %v1031_v29 = vmax.f32 %v911_v23, 0.0 }
 0x150   : > { %1319 = vst.msk [vmem:[%s2004_s16 + $0x30] sm:$0xf] %vm1306_vm0, %v1597_v26  ;;  %1351 = vst.msk [vmem:[%s2004_s16 + $0xb0] sm:$0xf] %vm1306_vm0, %v1629_v27  ;;  %v1598_v30 = vpack.c.bf16 %v999_v28, %v999_v28  ;;  %v1630_v31 = vpack.c.bf16 %v1031_v29, %v1031_v29 }
 0x151   : > { %v787_v32 = vpop.f32.mrb[28].mxu0  ;;  %v915_v33 = vpop.f32.mrb[28].mxu1 }
 0x152   : > { %1320 = vst.msk [vmem:[%s2004_s16 + $0x34] sm:$0xf] %vm1306_vm0, %v1598_v30  ;;  %1352 = vst.msk [vmem:[%s2004_s16 + $0xb4] sm:$0xf] %vm1306_vm0, %v1630_v31  ;;  %v788_v34 = vadd.f32 %v1994_v17, %v787_v32  ;;  %v916_v35 = vadd.f32 %v1994_v17, %v915_v33  ;;  %v789_v36 = vpop.f32.mrb[29].mxu0  ;;  %v917_v37 = vpop.f32.mrb[29].mxu1 }
 0x153   : > { %v790_v38 = vpop.f32.mrb[30].mxu0  ;;  %v918_v39 = vpop.f32.mrb[30].mxu1 }
 0x154   : > { %v1000_v40 = vmax.f32 %v788_v34, 0.0  ;;  %v1032_v41 = vmax.f32 %v916_v35, 0.0  ;;  %v791_v42 = vadd.f32 %v1994_v17, %v790_v38  ;;  %v919_v43 = vadd.f32 %v1994_v17, %v918_v39  ;;  %v792_v44 = vpop.f32.mrb[31].mxu0  ;;  %v920_v45 = vpop.f32.mrb[31].mxu1 }
 0x156   : > { %v1599_v46 = vpack.c.bf16 %v1000_v40, %v1000_v40  ;;  %v1631_v47 = vpack.c.bf16 %v1032_v41, %v1032_v41  ;;  %v1001_v48 = vmax.f32 %v791_v42, 0.0  ;;  %v1033_v49 = vmax.f32 %v919_v43, 0.0 }
 0x158   : > { %1321 = vst.msk [vmem:[%s2004_s16 + $0x38] sm:$0xf] %vm1306_vm0, %v1599_v46  ;;  %1353 = vst.msk [vmem:[%s2004_s16 + $0xb8] sm:$0xf] %vm1306_vm0, %v1631_v47  ;;  %v1600_v50 = vpack.c.bf16 %v1001_v48, %v1001_v48  ;;  %v1632_v51 = vpack.c.bf16 %v1033_v49, %v1033_v49 }
 0x159   : > { %v795_v52 = vpop.f32.mrb[32].mxu0  ;;  %v923_v53 = vpop.f32.mrb[32].mxu1 }
 0x15a   : > { %1322 = vst.msk [vmem:[%s2004_s16 + $0x3c] sm:$0xf] %vm1306_vm0, %v1600_v50  ;;  %1354 = vst.msk [vmem:[%s2004_s16 + $0xbc] sm:$0xf] %vm1306_vm0, %v1632_v51  ;;  %v796_v54 = vadd.f32 %v1994_v17, %v795_v52  ;;  %v924_v55 = vadd.f32 %v1994_v17, %v923_v53  ;;  %v797_v56 = vpop.f32.mrb[33].mxu0  ;;  %v925_v57 = vpop.f32.mrb[33].mxu1 }
 0x15b   : > { %v798_v58 = vpop.f32.mrb[34].mxu0  ;;  %v926_v59 = vpop.f32.mrb[34].mxu1 }
 0x15c   : > { %v1002_v60 = vmax.f32 %v796_v54, 0.0  ;;  %v1034_v61 = vmax.f32 %v924_v55, 0.0  ;;  %v799_v62 = vadd.f32 %v1994_v17, %v798_v58  ;;  %v927_v63 = vadd.f32 %v1994_v17, %v926_v59  ;;  %v800_v0 = vpop.f32.mrb[35].mxu0  ;;  %v928_v1 = vpop.f32.mrb[35].mxu1 }
 0x15e   : > { %v1601_v2 = vpack.c.bf16 %v1002_v60, %v1002_v60  ;;  %v1633_v3 = vpack.c.bf16 %v1034_v61, %v1034_v61  ;;  %v1003_v4 = vmax.f32 %v799_v62, 0.0  ;;  %v1035_v5 = vmax.f32 %v927_v63, 0.0 }
 0x160   : > { %1323 = vst.msk [vmem:[%s2004_s16 + $0x40] sm:$0xf] %vm1306_vm0, %v1601_v2  ;;  %1355 = vst.msk [vmem:[%s2004_s16 + $0xc0] sm:$0xf] %vm1306_vm0, %v1633_v3  ;;  %v1602_v6 = vpack.c.bf16 %v1003_v4, %v1003_v4  ;;  %v1634_v7 = vpack.c.bf16 %v1035_v5, %v1035_v5 }
 0x161   : > { %v803_v8 = vpop.f32.mrb[36].mxu0  ;;  %v931_v9 = vpop.f32.mrb[36].mxu1 }
 0x162   : > { %1324 = vst.msk [vmem:[%s2004_s16 + $0x44] sm:$0xf] %vm1306_vm0, %v1602_v6  ;;  %1356 = vst.msk [vmem:[%s2004_s16 + $0xc4] sm:$0xf] %vm1306_vm0, %v1634_v7  ;;  %v804_v10 = vadd.f32 %v1994_v17, %v803_v8  ;;  %v932_v11 = vadd.f32 %v1994_v17, %v931_v9  ;;  %v805_v12 = vpop.f32.mrb[37].mxu0  ;;  %v933_v13 = vpop.f32.mrb[37].mxu1 }
 0x163   : > { %v806_v14 = vpop.f32.mrb[38].mxu0  ;;  %v934_v15 = vpop.f32.mrb[38].mxu1 }
 0x164   : > { %v1004_v16 = vmax.f32 %v804_v10, 0.0  ;;  %v1036_v18 = vmax.f32 %v932_v11, 0.0  ;;  %v807_v19 = vadd.f32 %v1994_v17, %v806_v14  ;;  %v935_v20 = vadd.f32 %v1994_v17, %v934_v15  ;;  %v808_v21 = vpop.f32.mrb[39].mxu0  ;;  %v936_v22 = vpop.f32.mrb[39].mxu1 }
 0x166   : > { %v1603_v23 = vpack.c.bf16 %v1004_v16, %v1004_v16  ;;  %v1635_v24 = vpack.c.bf16 %v1036_v18, %v1036_v18  ;;  %v1005_v25 = vmax.f32 %v807_v19, 0.0  ;;  %v1037_v26 = vmax.f32 %v935_v20, 0.0 }
 0x168   : > { %1325 = vst.msk [vmem:[%s2004_s16 + $0x48] sm:$0xf] %vm1306_vm0, %v1603_v23  ;;  %1357 = vst.msk [vmem:[%s2004_s16 + $0xc8] sm:$0xf] %vm1306_vm0, %v1635_v24  ;;  %v1604_v27 = vpack.c.bf16 %v1005_v25, %v1005_v25  ;;  %v1636_v28 = vpack.c.bf16 %v1037_v26, %v1037_v26 }
 0x169   : > { %v811_v29 = vpop.f32.mrb[40].mxu0  ;;  %v939_v30 = vpop.f32.mrb[40].mxu1 }
 0x16a   : > { %1326 = vst.msk [vmem:[%s2004_s16 + $0x4c] sm:$0xf] %vm1306_vm0, %v1604_v27  ;;  %1358 = vst.msk [vmem:[%s2004_s16 + $0xcc] sm:$0xf] %vm1306_vm0, %v1636_v28  ;;  %v812_v31 = vadd.f32 %v1994_v17, %v811_v29  ;;  %v940_v32 = vadd.f32 %v1994_v17, %v939_v30  ;;  %v813_v33 = vpop.f32.mrb[41].mxu0  ;;  %v941_v34 = vpop.f32.mrb[41].mxu1 }
 0x16b   : > { %v814_v35 = vpop.f32.mrb[42].mxu0  ;;  %v942_v36 = vpop.f32.mrb[42].mxu1 }
 0x16c   : > { %v1006_v37 = vmax.f32 %v812_v31, 0.0  ;;  %v1038_v38 = vmax.f32 %v940_v32, 0.0  ;;  %v815_v39 = vadd.f32 %v1994_v17, %v814_v35  ;;  %v943_v40 = vadd.f32 %v1994_v17, %v942_v36  ;;  %v816_v41 = vpop.f32.mrb[43].mxu0  ;;  %v944_v42 = vpop.f32.mrb[43].mxu1 }
 0x16e   : > { %v1605_v43 = vpack.c.bf16 %v1006_v37, %v1006_v37  ;;  %v1637_v44 = vpack.c.bf16 %v1038_v38, %v1038_v38  ;;  %v1007_v45 = vmax.f32 %v815_v39, 0.0  ;;  %v1039_v46 = vmax.f32 %v943_v40, 0.0 }
 0x170   : > { %1327 = vst.msk [vmem:[%s2004_s16 + $0x50] sm:$0xf] %vm1306_vm0, %v1605_v43  ;;  %1359 = vst.msk [vmem:[%s2004_s16 + $0xd0] sm:$0xf] %vm1306_vm0, %v1637_v44  ;;  %v1606_v47 = vpack.c.bf16 %v1007_v45, %v1007_v45  ;;  %v1638_v48 = vpack.c.bf16 %v1039_v46, %v1039_v46 }
 0x171   : > { %v819_v49 = vpop.f32.mrb[44].mxu0  ;;  %v947_v50 = vpop.f32.mrb[44].mxu1 }
 0x172   : > { %1328 = vst.msk [vmem:[%s2004_s16 + $0x54] sm:$0xf] %vm1306_vm0, %v1606_v47  ;;  %1360 = vst.msk [vmem:[%s2004_s16 + $0xd4] sm:$0xf] %vm1306_vm0, %v1638_v48  ;;  %v820_v51 = vadd.f32 %v1994_v17, %v819_v49  ;;  %v948_v52 = vadd.f32 %v1994_v17, %v947_v50  ;;  %v821_v53 = vpop.f32.mrb[45].mxu0  ;;  %v949_v54 = vpop.f32.mrb[45].mxu1 }
 0x173   : > { %v822_v55 = vpop.f32.mrb[46].mxu0  ;;  %v950_v56 = vpop.f32.mrb[46].mxu1 }
 0x174   : > { %v1008_v57 = vmax.f32 %v820_v51, 0.0  ;;  %v1040_v58 = vmax.f32 %v948_v52, 0.0  ;;  %v823_v59 = vadd.f32 %v1994_v17, %v822_v55  ;;  %v951_v60 = vadd.f32 %v1994_v17, %v950_v56  ;;  %v824_v61 = vpop.f32.mrb[47].mxu0  ;;  %v952_v62 = vpop.f32.mrb[47].mxu1 }
 0x176   : > { %v1607_v63 = vpack.c.bf16 %v1008_v57, %v1008_v57  ;;  %v1639_v0 = vpack.c.bf16 %v1040_v58, %v1040_v58  ;;  %v1009_v1 = vmax.f32 %v823_v59, 0.0  ;;  %v1041_v2 = vmax.f32 %v951_v60, 0.0 }
 0x178   : > { %1329 = vst.msk [vmem:[%s2004_s16 + $0x58] sm:$0xf] %vm1306_vm0, %v1607_v63  ;;  %1361 = vst.msk [vmem:[%s2004_s16 + $0xd8] sm:$0xf] %vm1306_vm0, %v1639_v0  ;;  %v1608_v3 = vpack.c.bf16 %v1009_v1, %v1009_v1  ;;  %v1640_v4 = vpack.c.bf16 %v1041_v2, %v1041_v2 }
 0x179   : > { %v827_v5 = vpop.f32.mrb[48].mxu0  ;;  %v955_v6 = vpop.f32.mrb[48].mxu1 }
 0x17a   : > { %1330 = vst.msk [vmem:[%s2004_s16 + $0x5c] sm:$0xf] %vm1306_vm0, %v1608_v3  ;;  %1362 = vst.msk [vmem:[%s2004_s16 + $0xdc] sm:$0xf] %vm1306_vm0, %v1640_v4  ;;  %v828_v7 = vadd.f32 %v1994_v17, %v827_v5  ;;  %v956_v8 = vadd.f32 %v1994_v17, %v955_v6  ;;  %v829_v9 = vpop.f32.mrb[49].mxu0  ;;  %v957_v10 = vpop.f32.mrb[49].mxu1 }
 0x17b   : > { %v830_v11 = vpop.f32.mrb[50].mxu0  ;;  %v958_v12 = vpop.f32.mrb[50].mxu1 }
 0x17c   : > { %v1010_v13 = vmax.f32 %v828_v7, 0.0  ;;  %v1042_v14 = vmax.f32 %v956_v8, 0.0  ;;  %v831_v15 = vadd.f32 %v1994_v17, %v830_v11  ;;  %v959_v16 = vadd.f32 %v1994_v17, %v958_v12  ;;  %v832_v18 = vpop.f32.mrb[51].mxu0  ;;  %v960_v19 = vpop.f32.mrb[51].mxu1 }
 0x17e   : > { %v1609_v20 = vpack.c.bf16 %v1010_v13, %v1010_v13  ;;  %v1641_v21 = vpack.c.bf16 %v1042_v14, %v1042_v14  ;;  %v1011_v22 = vmax.f32 %v831_v15, 0.0  ;;  %v1043_v23 = vmax.f32 %v959_v16, 0.0 }
 0x180   : > { %1331 = vst.msk [vmem:[%s2004_s16 + $0x60] sm:$0xf] %vm1306_vm0, %v1609_v20  ;;  %1363 = vst.msk [vmem:[%s2004_s16 + $0xe0] sm:$0xf] %vm1306_vm0, %v1641_v21  ;;  %v1610_v24 = vpack.c.bf16 %v1011_v22, %v1011_v22  ;;  %v1642_v25 = vpack.c.bf16 %v1043_v23, %v1043_v23 }
 0x181   : > { %v835_v26 = vpop.f32.mrb[52].mxu0  ;;  %v963_v27 = vpop.f32.mrb[52].mxu1 }
 0x182   : > { %1332 = vst.msk [vmem:[%s2004_s16 + $0x64] sm:$0xf] %vm1306_vm0, %v1610_v24  ;;  %1364 = vst.msk [vmem:[%s2004_s16 + $0xe4] sm:$0xf] %vm1306_vm0, %v1642_v25  ;;  %v836_v28 = vadd.f32 %v1994_v17, %v835_v26  ;;  %v964_v29 = vadd.f32 %v1994_v17, %v963_v27  ;;  %v837_v30 = vpop.f32.mrb[53].mxu0  ;;  %v965_v31 = vpop.f32.mrb[53].mxu1 }
 0x183   : > { %v838_v32 = vpop.f32.mrb[54].mxu0  ;;  %v966_v33 = vpop.f32.mrb[54].mxu1 }
 0x184   : > { %v1012_v34 = vmax.f32 %v836_v28, 0.0  ;;  %v1044_v35 = vmax.f32 %v964_v29, 0.0  ;;  %v839_v36 = vadd.f32 %v1994_v17, %v838_v32  ;;  %v967_v37 = vadd.f32 %v1994_v17, %v966_v33  ;;  %v840_v38 = vpop.f32.mrb[55].mxu0  ;;  %v968_v39 = vpop.f32.mrb[55].mxu1 }
 0x186   : > { %v1611_v40 = vpack.c.bf16 %v1012_v34, %v1012_v34  ;;  %v1643_v41 = vpack.c.bf16 %v1044_v35, %v1044_v35  ;;  %v1013_v42 = vmax.f32 %v839_v36, 0.0  ;;  %v1045_v43 = vmax.f32 %v967_v37, 0.0 }
 0x188   : > { %1333 = vst.msk [vmem:[%s2004_s16 + $0x68] sm:$0xf] %vm1306_vm0, %v1611_v40  ;;  %1365 = vst.msk [vmem:[%s2004_s16 + $0xe8] sm:$0xf] %vm1306_vm0, %v1643_v41  ;;  %v1612_v44 = vpack.c.bf16 %v1013_v42, %v1013_v42  ;;  %v1644_v45 = vpack.c.bf16 %v1045_v43, %v1045_v43 }
 0x189   : > { %v843_v46 = vpop.f32.mrb[56].mxu0  ;;  %v971_v47 = vpop.f32.mrb[56].mxu1 }
 0x18a   : > { %1334 = vst.msk [vmem:[%s2004_s16 + $0x6c] sm:$0xf] %vm1306_vm0, %v1612_v44  ;;  %1366 = vst.msk [vmem:[%s2004_s16 + $0xec] sm:$0xf] %vm1306_vm0, %v1644_v45  ;;  %v844_v48 = vadd.f32 %v1994_v17, %v843_v46  ;;  %v972_v49 = vadd.f32 %v1994_v17, %v971_v47  ;;  %v845_v50 = vpop.f32.mrb[57].mxu0  ;;  %v973_v51 = vpop.f32.mrb[57].mxu1 }
 0x18b   : > { %v846_v52 = vpop.f32.mrb[58].mxu0  ;;  %v974_v53 = vpop.f32.mrb[58].mxu1 }
 0x18c   : > { %v1014_v54 = vmax.f32 %v844_v48, 0.0  ;;  %v1046_v55 = vmax.f32 %v972_v49, 0.0  ;;  %v847_v56 = vadd.f32 %v1994_v17, %v846_v52  ;;  %v975_v57 = vadd.f32 %v1994_v17, %v974_v53  ;;  %v848_v58 = vpop.f32.mrb[59].mxu0  ;;  %v976_v59 = vpop.f32.mrb[59].mxu1 }
 0x18e   : > { %v1613_v60 = vpack.c.bf16 %v1014_v54, %v1014_v54  ;;  %v1645_v61 = vpack.c.bf16 %v1046_v55, %v1046_v55  ;;  %v1015_v62 = vmax.f32 %v847_v56, 0.0  ;;  %v1047_v63 = vmax.f32 %v975_v57, 0.0 }
 0x190   : > { %1335 = vst.msk [vmem:[%s2004_s16 + $0x70] sm:$0xf] %vm1306_vm0, %v1613_v60  ;;  %1367 = vst.msk [vmem:[%s2004_s16 + $0xf0] sm:$0xf] %vm1306_vm0, %v1645_v61  ;;  %v1614_v0 = vpack.c.bf16 %v1015_v62, %v1015_v62  ;;  %v1646_v1 = vpack.c.bf16 %v1047_v63, %v1047_v63 }
 0x191   : > { %v851_v2 = vpop.f32.mrb[60].mxu0  ;;  %v979_v3 = vpop.f32.mrb[60].mxu1 }
 0x192   : > { %1336 = vst.msk [vmem:[%s2004_s16 + $0x74] sm:$0xf] %vm1306_vm0, %v1614_v0  ;;  %1368 = vst.msk [vmem:[%s2004_s16 + $0xf4] sm:$0xf] %vm1306_vm0, %v1646_v1  ;;  %v852_v4 = vadd.f32 %v1994_v17, %v851_v2  ;;  %v980_v5 = vadd.f32 %v1994_v17, %v979_v3  ;;  %v853_v6 = vpop.f32.mrb[61].mxu0  ;;  %v981_v7 = vpop.f32.mrb[61].mxu1 }
 0x193   : > { %v854_v8 = vpop.f32.mrb[62].mxu0  ;;  %v982_v9 = vpop.f32.mrb[62].mxu1 }
 0x194   : > { %v1016_v10 = vmax.f32 %v852_v4, 0.0  ;;  %v1048_v11 = vmax.f32 %v980_v5, 0.0  ;;  %v855_v12 = vadd.f32 %v1994_v17, %v854_v8  ;;  %v983_v13 = vadd.f32 %v1994_v17, %v982_v9  ;;  %v856_v14 = vpop.f32.mrb[63].mxu0  ;;  %v984_v15 = vpop.f32.mrb[63].mxu1 }
 0x196   : > { %v1615_v16 = vpack.c.bf16 %v1016_v10, %v1016_v10  ;;  %v1647_v18 = vpack.c.bf16 %v1048_v11, %v1048_v11  ;;  %v1017_v19 = vmax.f32 %v855_v12, 0.0  ;;  %v1049_v20 = vmax.f32 %v983_v13, 0.0 }
 0x198   : > { %1337 = vst.msk [vmem:[%s2004_s16 + $0x78] sm:$0xf] %vm1306_vm0, %v1615_v16  ;;  %1369 = vst.msk [vmem:[%s2004_s16 + $0xf8] sm:$0xf] %vm1306_vm0, %v1647_v18  ;;  %v1616_v21 = vpack.c.bf16 %v1017_v19, %v1017_v19  ;;  %v1648_v22 = vpack.c.bf16 %v1049_v20, %v1049_v20 }
 0x19a   : > { %1338 = vst.msk [vmem:[%s2004_s16 + $0x7c] sm:$0xf] %vm1306_vm0, %v1616_v21  ;;  %1370 = vst.msk [vmem:[%s2004_s16 + $0xfc] sm:$0xf] %vm1306_vm0, %v1648_v22 }
 0x19b PF: > { %s13_s12 = sadd.s32 1, %s1808_s12  }
 0x19c   : > { %p10_p4 = scmp.ge.s32.totalorder %s13_s12, 4  }
 0x19e   :  { %12 = sbr.rel (!%p10_p4) target bundleno = 1 (0x1), region = 62 }

// kernel: style_reconstruction_loss.15
= control target key start
LH: loop header
LB: loop body
LE: loop exit
PB: predicated region body
PF: predicated region fallthrough
CT: control target
= control target key end

     0   :  { %s2325_s12 = smov 0   ;;  %s2968_s0 = inlined_call_operand.vmem [shape: bf16[4,110,64], index: 0, kind: input, shape index: {}]   ;;  %s2969_s1 = inlined_call_operand.vmem [shape: bf16[9,64,64], index: 1, kind: input, shape index: {}]   ;;  %s2970_s2 = inlined_call_operand.vmem [shape: f32[1,64], index: 2, kind: input, shape index: {}]   ;;  %s2971_s3 = inlined_call_operand.vmem [shape: bf16[4,80,64], index: 3, kind: output, shape index: {}]  }
   0x1 LB: > { %s1703_s13 = sadd.s32 4294967295, %s2301_s12   ;;  %p1707_p0 = scmp.ge.s32.totalorder %s2301_s12, 1  ;;  %s2301_s12 = sphi %s2325_s12, %s13_s12  }
   0x2   : > { %p137_p1 = scmp.lt.s32.totalorder %s2301_s12, 5 }
   0x4   : > { %p138_p2 = pnand %p1707_p0, %p137_p1 }
   0x5   : > { %v2245_v0 = vld [vmem:[%s2969_s1 + $0x20] sm:$0xff] (!%p138_p2)   ;;  %v2303_v1 = vmov (!%p138_p2), 0.0   ;;  %v2246_v2 = vld [vmem:[%s2969_s1 + $0x28] sm:$0xff] (!%p138_p2)   ;;  %p161_p3 = scmp.lt.s32.totalorder (!%p138_p2), %s1703_s13, 3  ;;  %vm2304_vm0 = vmmov (!%p138_p2), 0   ;;  %v2247_v3 = vld [vmem:[%s2969_s1 + $0x30] sm:$0xff] (!%p138_p2)  }
   0x6   : > { %141 = sbr.rel (%p138_p2) target bundleno = 428 (0x1ac), region = 32  ;;  %2225 = vmatprep.subr.bf16.mxu1 (!%p138_p2), %v2303_v1  ;;  %1973 = vmatprep.subr.bf16.mxu0 (!%p138_p2), %v2303_v1  ;;  %v2248_v4 = vld [vmem:[%s2969_s1 + $0x38] sm:$0xff] (!%p138_p2)   ;;  %vm299_vm1 = vcmask (!%p138_p2), 523264   ;;  %vm230_vm2 = vsmask.f32 (!%p138_p2), 7424  ;;  %v2251_v31 = vld [vmem:[%s2969_s1] sm:$0xff] (!%p138_p2)  }
   0x7   : > { %2229 = vmatpush3.bf16.msra.mxu1 (!%p138_p2), %v2245_v0  ;;  %1974 = vmatpush3.bf16.msra.mxu0 (!%p138_p2), %v2245_v0  ;;  %v2257_v38 = vld [vmem:[%s2969_s1 + $0x40] sm:$0xff] (!%p138_p2)   ;;  %v2252_v43 = vld [vmem:[%s2969_s1 + $0x8] sm:$0xff] (!%p138_p2)   ;;  %v2258_v49 = vld [vmem:[%s2969_s1 + $0x10] sm:$0xff] (!%p138_p2)   ;;  %vm504_vm3 = vcmask (!%p138_p2), 1046528   ;;  %vm797_vm4 = vsmask.f32 (!%p138_p2), 6400 }
   0x8   : > { %2226 = vmatprep.subr.bf16.mxu1 (!%p138_p2), %v2303_v1  ;;  %1975 = vmatprep.subr.bf16.mxu0 (!%p138_p2), %v2303_v1  ;;  %v2259_v48 = vld [vmem:[%s2969_s1 + $0x48] sm:$0xff] (!%p138_p2)   ;;  %v2263_v60 = vld [vmem:[%s2969_s1 + $0x50] sm:$0xff] (!%p138_p2)   ;;  %v2264_v63 = vld [vmem:[%s2969_s1 + $0x18] sm:$0xff] (!%p138_p2)   ;;  %vm982_vm5 = vcmask (!%p138_p2), 1045504   ;;  %vm1271_vm6 = vsmask.f32 (!%p138_p2), 5376 }
   0x9   : > { %1989 = vmatprep.mubr.msk.bf16.mxu1 (!%p138_p2), %vm2304_vm0, %v2303_v1  ;;  %1981 = vmatprep.mubr.msk.bf16.mxu0 (!%p138_p2), %vm2304_vm0, %v2303_v1  ;;  %vm1436_vm7 = vcmask (!%p138_p2), 1044480   ;;  %vm1637_vm8 = vcmask (!%p138_p2), 519168  }
   0xb   : > { %2230 = vmatpush3.bf16.msra.mxu1 (!%p138_p2), %v2246_v2  ;;  %1976 = vmatpush3.bf16.msra.mxu0 (!%p138_p2), %v2246_v2 }
   0xc   : > { %2227 = vmatprep.subr.bf16.mxu1 (!%p138_p2), %v2303_v1  ;;  %1977 = vmatprep.subr.bf16.mxu0 (!%p138_p2), %v2303_v1 }
   0xd   : > { %s2973_s13 = smov (!%p161_p3, %s1703_s13), 3 }
   0xe   : > { %s2233_s20 = smul.u32 56, %s2973_s13 }
   0xf   : > { %2231 = vmatpush3.bf16.msra.mxu1 %v2247_v3  ;;  %1978 = vmatpush3.bf16.msra.mxu0 %v2247_v3  ;;  %v2265_v3 = vld [vmem:[%s2969_s1 + $0x58] sm:$0xff]   ;;  %s2234_s17 = smul.u32 40, %s2973_s13 }
  0x10   : > { %s2361_s25 = scalar_lea.vmem %s2968_s0, %s2233_s20  ;;  %2228 = vmatprep.subr.bf16.mxu1 %v2303_v1  ;;  %1979 = vmatprep.subr.bf16.mxu0 %v2303_v1 }
  0x11   : > { %v2364_v5 = vld [vmem:[%s2361_s25 + $0x10] sm:$0xf]  ;;  %v177_v6 = vld [vmem:[%s2361_s25 + $0x14] sm:$0xf]  ;;  %v178_v7 = vld [vmem:[%s2361_s25 + $0x18] sm:$0xf]  ;;  %s2927_s20 = scalar_lea.vmem %s2971_s3, %s2234_s17 }
  0x12   : > { %v179_v8 = vld [vmem:[%s2361_s25 + $0x1c] sm:$0xf]  ;;  %v2370_v9 = vcombine.low %v2364_v5, %v177_v6  ;;  %v172_v10 = vld [vmem:[%s2361_s25] sm:$0xf]  ;;  %v2374_v11 = vld [vmem:[%s2361_s25 + $0x4] sm:$0xf]  ;;  %v2376_v12 = vcombine.low %v177_v6, %v178_v7 }
  0x13   : > { %v2379_v13 = vcombine.low %v178_v7, %v179_v8  ;;  %v2383_v14 = vld [vmem:[%s2361_s25 + $0x8] sm:$0xf]  ;;  %v2386_v15 = vld [vmem:[%s2361_s25 + $0xc] sm:$0xf]  ;;  %v2389_v16 = vcombine.low %v172_v10, %v2374_v11  ;;  %v180_v17 = vld [vmem:[%s2361_s25 + $0x20] sm:$0xf]  ;;  %2232 = vmatpush3.bf16.msra.mxu1 %v2248_v4  ;;  %1980 = vmatpush3.bf16.msra.mxu0 %v2248_v4 }
  0x14   : > { %v247_v18 = vshll.u32 %v2370_v9, 16  ;;  %v251_v19 = vshrl.u32 %v2370_v9, 16  ;;  %v2396_v20 = vcombine.low %v2383_v14, %v2386_v15  ;;  %v181_v21 = vld [vmem:[%s2361_s25 + $0x24] sm:$0xf]  ;;  %2001 = vmatprep.subr.bf16.mxu1 %v2303_v1  ;;  %2029 = vmatprep.subr.bf16.mxu0 %v2303_v1  ;;  %v182_v36 = vld [vmem:[%s2361_s25 + $0x28] sm:$0xf]  ;;  %v2448_v51 = vcombine.low %v179_v8, %v180_v17 }
  0x15   : > { %v255_v22 = vshll.u32 %v2379_v13, 16  ;;  %v232_v23 = vshrl.u32 %v2389_v16, 16  ;;  %v234_v24 = vshll.u32 %v2389_v16, 16  ;;  %v2402_v25 = vcombine.low %v180_v17, %v181_v21  ;;  %v183_v41 = vld [vmem:[%s2361_s25 + $0x2c] sm:$0xf]  ;;  %v2267_v17 = vld [vmem:[%s2969_s1 + $0x80] sm:$0xff]  }
  0x16   : > { %v249_v26 = vrot.slane %v247_v18, 1  ;;  %v239_v27 = vshll.u32 %v2396_v20, 16  ;;  %v259_v33 = vshrl.u32 %v2379_v13, 16  ;;  %v243_v39 = vshrl.u32 %v2396_v20, 16 }
  0x17   : > { %v257_v28 = vrot.slane %v255_v22, 1  ;;  %v236_v29 = vrot.slane %v234_v24, 1  ;;  %v263_v34 = vshll.u32 %v2402_v25, 16  ;;  %v2423_v42 = vcombine.low %v181_v21, %v182_v36 }
  0x18   : > { %v253_v30 = vor.u32 %v251_v19, %v249_v26  ;;  %v241_v32 = vrot.slane %v239_v27, 1  ;;  %v2434_v46 = vcombine.low %v182_v36, %v182_v36  ;;  %v2436_v47 = vcombine.low %v182_v36, %v183_v41 }
  0x19   : > { %v237_v35 = vor.u32 %v236_v29, %v232_v23  ;;  %v261_v44 = vor.u32 %v259_v33, %v257_v28  ;;  %v265_v45 = vrot.slane %v263_v34, 1  ;;  %v2450_v52 = vrot.slane %v239_v27, 3 }
  0x1a   : > { %v258_v37 = vsel %vm230_vm2, %v253_v30, %v257_v28  ;;  %v245_v50 = vor.u32 %v243_v39, %v241_v32  ;;  %v2453_v53 = vrot.slane %v243_v39, 2  ;;  %v267_v55 = vshrl.u32 %v2402_v25, 16 }
  0x1b   : > { %1990 = vmatmul.mubr.msk.bf16.vlgmr.msra.gmra.mrb[0].mxu1 %vm299_vm1, %v258_v37  ;;  %v242_v40 = vsel %vm230_vm2, %v237_v35, %v241_v32  ;;  %v266_v54 = vsel %vm230_vm2, %v261_v44, %v265_v45  ;;  %v271_v56 = vshll.u32 %v2434_v46, 16  ;;  %v1275_v57 = vrot.slane %v251_v19, 2  ;;  %v2269_v44 = vld [vmem:[%s2969_s1 + $0x88] sm:$0xff]  }
  0x1c   : > { %2002 = vmatpush3.bf16.msra.mxu1 %v2251_v31  ;;  %1993 = vmatprep.mubr.msk.bf16.mxu1 %vm2304_vm0, %v2303_v1  ;;  %v1276_v58 = vrot.slane %v247_v18, 3  ;;  %v250_v59 = vsel %vm230_vm2, %v245_v50, %v249_v26  ;;  %v269_v61 = vor.u32 %v267_v55, %v265_v45  ;;  %v1274_v0 = vor.u32 %v2450_v52, %v2453_v53 }
  0x1d   : > { %2003 = vmatprep.subr.bf16.mxu1 %v2303_v1  ;;  %1982 = vmatmul.mubr.msk.bf16.vlgmr.msra.gmra.mrb[0].mxu0 %vm299_vm1, %v242_v40  ;;  %v273_v62 = vrot.slane %v271_v56, 1  ;;  %v505_v4 = vrot.slane %v2389_v16, 1  ;;  %v506_v6 = vrot.slane %v2396_v20, 1  ;;  %v816_v7 = vshrl.u32 %v2376_v12, 16 }
  0x1e   : > { %2030 = vmatpush3.bf16.msra.mxu0 %v2257_v38  ;;  %1985 = vmatprep.mubr.msk.bf16.mxu0 %vm2304_vm0, %v2303_v1  ;;  %v2476_v2 = vor.u32 %v1276_v58, %v1275_v57  ;;  %v819_v8 = vshll.u32 %v2376_v12, 16  ;;  %v658_v18 = vrot.slane %v2376_v12, 1  ;;  %v660_v19 = vrot.slane %v2448_v51, 1  ;;  %v2266_v58 = vld [vmem:[%s2969_s1 + $0x60] sm:$0xff]  }
  0x1f   : > { %2031 = vmatprep.subr.bf16.mxu0 %v2303_v1  ;;  %v274_v10 = vsel %vm230_vm2, %v269_v61, %v273_v62  ;;  %v2494_v21 = vcombine.low %v183_v41, %v183_v41  ;;  %v818_v23 = vrot.slane %v816_v7, 1  ;;  %v825_v26 = vshrl.u32 %v2448_v51, 16 }
  0x20   : > { %2004 = vmatpush3.bf16.msra.mxu1 %v2252_v43  ;;  %v821_v24 = vrot.slane %v819_v8, 2  ;;  %v828_v27 = vshll.u32 %v2448_v51, 16  ;;  %v507_v28 = vsel %vm504_vm3, %v505_v4, %v506_v6  ;;  %v2503_v29 = vsel %vm504_vm3, %v658_v18, %v660_v19 }
  0x21   : > { %2005 = vmatprep.subr.bf16.mxu1 %v2303_v1  ;;  %v827_v30 = vrot.slane %v825_v26, 1  ;;  %v662_v32 = vrot.slane %v2423_v42, 1  ;;  %v508_v35 = vrot.slane %v2370_v9, 1  ;;  %v834_v36 = vshrl.u32 %v2423_v42, 16 }
  0x22   : > { %2032 = vmatpush3.bf16.msra.mxu0 %v2259_v48  ;;  %v830_v31 = vrot.slane %v828_v27, 2  ;;  %v837_v37 = vshll.u32 %v2423_v42, 16  ;;  %v664_v38 = vrot.slane %v2494_v21, 1  ;;  %v2515_v39 = vor.u32 %v821_v24, %v818_v23 }
  0x23   : > { %1994 = vmatmul.mubr.msk.bf16.gmra.mrb[4].mxu1 %vm299_vm1, %v266_v54  ;;  %2033 = vmatprep.subr.bf16.mxu0 %v2303_v1  ;;  %v2518_v41 = vsel %vm504_vm3, %v660_v19, %v662_v32  ;;  %v843_v43 = vshrl.u32 %v2494_v21, 16  ;;  %v836_v45 = vrot.slane %v834_v36, 1  ;;  %v846_v50 = vshll.u32 %v2494_v21, 16 }
  0x24   : > { %2006 = vmatpush3.bf16.msra.mxu1 %v2258_v49  ;;  %1997 = vmatprep.mubr.msk.bf16.mxu1 %vm2304_vm0, %v2303_v1  ;;  %v831_v40 = vor.u32 %v830_v31, %v827_v30  ;;  %v839_v48 = vrot.slane %v837_v37, 2  ;;  %v2527_v49 = vsel %vm504_vm3, %v662_v32, %v664_v38  ;;  %v510_v54 = vrot.slane %v2379_v13, 1  ;;  %v2273_v30 = vld [vmem:[%s2969_s1 + $0x98] sm:$0xff]   ;;  %v2598_v37 = vld [vmem:[%s2361_s25 + $0x30] ss:$0 sps:$4 sm:$0xff]  }
  0x25   : > { %1986 = vmatmul.mubr.msk.bf16.gmra.mrb[4].mxu0 %vm299_vm1, %v250_v59  ;;  %2007 = vmatprep.subr.bf16.mxu1 %v2303_v1  ;;  %v845_v57 = vrot.slane %v843_v43, 1  ;;  %v1129_v61 = vrot.slane %v2396_v20, 2  ;;  %v1130_v62 = vrot.slane %v2370_v9, 2  ;;  %v509_v4 = vsel %vm504_vm3, %v506_v6, %v508_v35  ;;  %v2270_v38 = vld [vmem:[%s2969_s1 + $0x70] sm:$0xff]  }
  0x26   : > { %2034 = vmatpush3.bf16.msra.mxu0 %v2263_v60  ;;  %2037 = vmatprep.mubr.msk.bf16.mxu0 %vm2304_vm0, %v2303_v1  ;;  %v2534_v56 = vsel %vm797_vm4, %v2515_v39, %v831_v40  ;;  %v840_v59 = vor.u32 %v839_v48, %v836_v45  ;;  %v848_v60 = vrot.slane %v846_v50, 2  ;;  %v986_v19 = vrot.slane %v2376_v12, 2  ;;  %v2292_v12 = vld [vmem:[%s2969_s1 + $0xf8] sm:$0xff]  }
  0x27   : > { %2035 = vmatprep.subr.bf16.mxu0 %v2303_v1  ;;  %v988_v23 = vrot.slane %v2448_v51, 2  ;;  %v1134_v24 = vrot.slane %v2402_v25, 2  ;;  %v990_v27 = vrot.slane %v2423_v42, 2  ;;  %v992_v31 = vrot.slane %v2494_v21, 2 }
  0x28   : > { %2008 = vmatpush3.bf16.msra.mxu1 %v2264_v63  ;;  %v2271_v63 = vld [vmem:[%s2969_s1 + $0x90] sm:$0xff]   ;;  %v2547_v7 = vsel %vm797_vm4, %v831_v40, %v840_v59  ;;  %v849_v8 = vor.u32 %v848_v60, %v845_v57  ;;  %v511_v32 = vsel %vm504_vm3, %v508_v35, %v510_v54  ;;  %v1437_v35 = vrot.slane %v2396_v20, 3 }
  0x29   : > { %2057 = vmatprep.subr.bf16.mxu1 %v2303_v1  ;;  %v2574_v26 = vsel %vm982_vm5, %v986_v19, %v988_v23  ;;  %v2592_v42 = vsel %vm982_vm5, %v988_v23, %v990_v27  ;;  %v2604_v21 = vsel %vm982_vm5, %v990_v27, %v992_v31  ;;  %v1138_v40 = vrot.slane %v2598_v37, 2 }
  0x2a   : > { %2036 = vmatpush3.bf16.msra.mxu0 %v2265_v3  ;;  %v1132_v3 = vrot.slane %v2379_v13, 2  ;;  %v2614_v43 = vsel %vm1271_vm6, %v1274_v0, %v2476_v2  ;;  %v1279_v45 = vrot.slane %v259_v33, 2  ;;  %v1280_v48 = vrot.slane %v255_v22, 3 }
  0x2b   : > { %1998 = vmatmul.mubr.msk.bf16.gmra.mrb[8].mxu1 %vm299_vm1, %v274_v10  ;;  %2085 = vmatprep.subr.bf16.mxu0 %v2303_v1  ;;  %v2550_v10 = vsel %vm982_vm5, %v1129_v61, %v1130_v62  ;;  %v1440_v50 = vrot.slane %v2379_v13, 3  ;;  %v1283_v57 = vrot.slane %v267_v55, 2  ;;  %v1284_v52 = vrot.slane %v263_v34, 3  ;;  %v2272_v34 = vld [vmem:[%s2969_s1 + $0x78] sm:$0xff]  }
  0x2c   : > { %2009 = vmatprep.mubr.msk.bf16.mxu1 %vm2304_vm0, %v2303_v1  ;;  %v2560_v6 = vsel %vm982_vm5, %v1130_v62, %v1132_v3  ;;  %v2577_v51 = vsel %vm982_vm5, %v1132_v3, %v1134_v24  ;;  %v1442_v22 = vrot.slane %v2402_v25, 3  ;;  %v1281_v55 = vor.u32 %v1280_v48, %v1279_v45 }
  0x2d   : > { %2038 = vmatmul.mubr.msk.bf16.vlgmr.msra.gmra.mrb[8].mxu0 %vm299_vm1, %v507_v28  ;;  %v1136_v28 = vrot.slane %v2436_v47, 2  ;;  %v1285_v0 = vor.u32 %v1284_v52, %v1283_v57  ;;  %v1291_v60 = vshll.u32 %v2436_v47, 16  ;;  %v512_v61 = vrot.slane %v2402_v25, 1 }
  0x2e   : > { %2086 = vmatpush3.bf16.msra.mxu0 %v2267_v17  ;;  %2041 = vmatprep.mubr.msk.bf16.mxu0 %vm2304_vm0, %v2303_v1  ;;  %v2268_v17 = vld [vmem:[%s2969_s1 + $0x68] sm:$0xff]   ;;  %v2656_v62 = vsel %vm1271_vm6, %v2476_v2, %v1281_v55  ;;  %v2675_v27 = vcombine.low %v2386_v15, %v2364_v5 }
  0x2f   : > { %2087 = vmatprep.subr.bf16.mxu0 %v2303_v1  ;;  %v2595_v36 = vsel %vm982_vm5, %v1134_v24, %v1136_v28  ;;  %v2630_v53 = vsel %vm982_vm5, %v1136_v28, %v1138_v40  ;;  %v513_v2 = vsel %vm504_vm3, %v510_v54, %v512_v61  ;;  %v514_v54 = vrot.slane %v2434_v46, 1 }
  0x30   : > { %v810_v28 = vshll.u32 %v2675_v27, 16 }
  0x32   : > { %2088 = vmatpush3.bf16.msra.mxu0 %v2269_v44  ;;  %v1438_v44 = vrot.slane %v2370_v9, 3  ;;  %v812_v48 = vrot.slane %v810_v28, 2 }
  0x33   : > { %2010 = vmatmul.mubr.msk.bf16.vlgmr.msra.gmra.mrb[12].mxu1 %vm299_vm1, %v2389_v16  ;;  %2089 = vmatprep.subr.bf16.mxu0 %v2303_v1  ;;  %v2567_v16 = vsel %vm797_vm4, %v840_v59, %v849_v8  ;;  %v2648_v59 = vsel %vm1436_vm7, %v1440_v50, %v1442_v22  ;;  %v1444_v8 = vrot.slane %v2436_v47, 3 }
  0x34   : > { %2058 = vmatpush3.bf16.msra.mxu1 %v2266_v58  ;;  %2013 = vmatprep.mubr.msk.bf16.mxu1 %vm2304_vm0, %v2303_v1  ;;  %v2633_v33 = vsel %vm1436_vm7, %v1437_v35, %v1438_v44  ;;  %v1288_v58 = vshrl.u32 %v2436_v47, 16  ;;  %v1300_v47 = vshll.u32 %v2598_v37, 16  ;;  %v515_v35 = vsel %vm504_vm3, %v512_v61, %v514_v54  ;;  %v2278_v61 = vld [vmem:[%s2969_s1 + $0xa8] sm:$0xff]  }
  0x35   : > { %2042 = vmatmul.mubr.msk.bf16.gmra.mrb[12].mxu0 %vm299_vm1, %v509_v4  ;;  %2059 = vmatprep.subr.bf16.mxu1 %v2303_v1  ;;  %v1293_v4 = vrot.slane %v1291_v60, 3  ;;  %v2668_v24 = vsel %vm1436_vm7, %v1442_v22, %v1444_v8  ;;  %v2276_v22 = vld [vmem:[%s2969_s1 + $0xc0] sm:$0xff]   ;;  %v2282_v60 = vld [vmem:[%s2969_s1 + $0xd0] sm:$0xff]  }
  0x36   : > { %2045 = vmatprep.mubr.msk.bf16.mxu0 %vm2304_vm0, %v2303_v1  ;;  %2090 = vmatpush3.bf16.msra.mxu0 %v2271_v63  ;;  %v2659_v63 = vsel %vm1271_vm6, %v1281_v55, %v1285_v0  ;;  %v1290_v3 = vrot.slane %v1288_v58, 2  ;;  %v1302_v31 = vrot.slane %v1300_v47, 3  ;;  %v2279_v55 = vld [vmem:[%s2969_s1 + $0xc8] sm:$0xff]  }
  0x37   : > { %2091 = vmatprep.subr.bf16.mxu0 %v2303_v1 }
  0x38   : > { %2060 = vmatpush3.bf16.msra.mxu1 %v2268_v17  ;;  %v2664_v17 = vcombine.low %v2374_v11, %v2383_v14  ;;  %v1294_v23 = vor.u32 %v1293_v4, %v1290_v3  ;;  %v1297_v14 = vshrl.u32 %v2598_v37, 16  ;;  %v2281_v4 = vld [vmem:[%s2969_s1 + $0xb0] sm:$0xff]  }
  0x39   : > { %2061 = vmatprep.subr.bf16.mxu1 %v2303_v1 }
  0x3a   : > { %2092 = vmatpush3.bf16.msra.mxu0 %v2273_v30  ;;  %v2680_v11 = vsel %vm1271_vm6, %v1285_v0, %v1294_v23  ;;  %v799_v5 = vshrl.u32 %v2664_v17, 16  ;;  %v802_v15 = vshll.u32 %v2664_v17, 16  ;;  %v1299_v30 = vrot.slane %v1297_v14, 2  ;;  %v2275_v0 = vld [vmem:[%s2969_s1 + $0xa0] sm:$0xff]  }
  0x3b   : > { %2014 = vmatmul.mubr.msk.bf16.gmra.mrb[16].mxu1 %vm299_vm1, %v2396_v20  ;;  %2141 = vmatprep.subr.bf16.mxu0 %v2303_v1  ;;  %v2642_v20 = vsel %vm1436_vm7, %v1438_v44, %v1440_v50 }
  0x3c   : > { %2017 = vmatprep.mubr.msk.bf16.mxu1 %vm2304_vm0, %v2303_v1  ;;  %2062 = vmatpush3.bf16.msra.mxu1 %v2270_v38  ;;  %v1303_v38 = vor.u32 %v1302_v31, %v1299_v30  ;;  %v801_v40 = vrot.slane %v799_v5, 1  ;;  %v804_v44 = vrot.slane %v802_v15, 2 }
  0x3d   : > { %2046 = vmatmul.mubr.msk.bf16.gmra.mrb[16].mxu0 %vm299_vm1, %v511_v32  ;;  %2063 = vmatprep.subr.bf16.mxu1 %v2303_v1  ;;  %v1446_v32 = vrot.slane %v2598_v37, 3 }
  0x3e   : > { %2049 = vmatprep.mubr.msk.bf16.mxu0 %vm2304_vm0, %v2303_v1  ;;  %v2700_v50 = vsel %vm1271_vm6, %v1294_v23, %v1303_v38  ;;  %v805_v37 = vor.u32 %v804_v44, %v801_v40 }
  0x3f   : > { %v2697_v46 = vsel %vm1436_vm7, %v1444_v8, %v1446_v32  ;;  %v2288_v8 = vld [vmem:[%s2969_s1 + $0xe8] sm:$0xff]  }
  0x40   : > { %2064 = vmatpush3.bf16.msra.mxu1 %v2272_v34  ;;  %v656_v34 = vrot.slane %v2675_v27, 1 }
  0x41   : > { %2113 = vmatprep.subr.bf16.mxu1 %v2303_v1 }
  0x42   : > { %v659_v3 = vsel %vm504_vm3, %v656_v34, %v658_v18  ;;  %v2283_v18 = vld [vmem:[%s2969_s1 + $0xb8] sm:$0xff]  }
  0x43   : > { %2018 = vmatmul.mubr.msk.bf16.gmra.mrb[20].mxu1 %vm299_vm1, %v2370_v9  ;;  %v807_v9 = vshrl.u32 %v2675_v27, 16 }
  0x44   : > { %2021 = vmatprep.mubr.msk.bf16.mxu1 %vm2304_vm0, %v2303_v1 }
  0x45   : > { %2050 = vmatmul.mubr.msk.bf16.gmra.mrb[20].mxu0 %vm299_vm1, %v513_v2  ;;  %v809_v45 = vrot.slane %v807_v9, 1 }
  0x46   : > { %2053 = vmatprep.mubr.msk.bf16.mxu0 %vm2304_vm0, %v2303_v1 }
  0x47   : > { %v813_v57 = vor.u32 %v812_v48, %v809_v45 }
  0x49   : > { %v814_v52 = vsel %vm797_vm4, %v805_v37, %v813_v57  ;;  %v823_v58 = vsel %vm797_vm4, %v813_v57, %v2515_v39  ;;  %v2285_v39 = vld [vmem:[%s2969_s1 + $0xd8] sm:$0xff]  }
  0x4b   : > { %2022 = vmatmul.mubr.msk.bf16.gmra.mrb[24].mxu1 %vm299_vm1, %v2379_v13  ;;  %v655_v13 = vrot.slane %v2664_v17, 1 }
  0x4c   : > { %2025 = vmatprep.mubr.msk.bf16.mxu1 %vm2304_vm0, %v2303_v1 }
  0x4d   : > { %2054 = vmatmul.mubr.msk.bf16.gmra.mrb[24].mxu0 %vm299_vm1, %v515_v35 }
  0x4e   : > { %2093 = vmatprep.mubr.msk.bf16.mxu0 %vm2304_vm0, %v2303_v1 }
  0x53   : > { %2026 = vmatmul.mubr.msk.bf16.gmra.mrb[28].mxu1 %vm299_vm1, %v2402_v25  ;;  %v657_v25 = vsel %vm504_vm3, %v655_v13, %v656_v34 }
  0x54   : > { %2065 = vmatprep.mubr.msk.bf16.mxu1 %vm2304_vm0, %v2303_v1 }
  0x55   : > { %2094 = vmatmul.mubr.msk.bf16.vlgmr.msra.gmra.mrb[28].mxu0 %vm299_vm1, %v814_v52 }
  0x56   : > { %2142 = vmatpush3.bf16.msra.mxu0 %v2276_v22  ;;  %2097 = vmatprep.mubr.msk.bf16.mxu0 %vm2304_vm0, %v2303_v1 }
  0x57   : > { %2143 = vmatprep.subr.bf16.mxu0 %v2303_v1 }
  0x5a   : > { %2144 = vmatpush3.bf16.msra.mxu0 %v2279_v55 }
  0x5b   : > { %2066 = vmatmul.mubr.msk.bf16.vlgmr.msra.gmra.mrb[32].mxu1 %vm299_vm1, %v657_v25  ;;  %2145 = vmatprep.subr.bf16.mxu0 %v2303_v1 }
  0x5c   : > { %2114 = vmatpush3.bf16.msra.mxu1 %v2275_v0  ;;  %2069 = vmatprep.mubr.msk.bf16.mxu1 %vm2304_vm0, %v2303_v1 }
  0x5d   : > { %2098 = vmatmul.mubr.msk.bf16.gmra.mrb[32].mxu0 %vm299_vm1, %v823_v58  ;;  %2115 = vmatprep.subr.bf16.mxu1 %v2303_v1 }
  0x5e   : > { %2101 = vmatprep.mubr.msk.bf16.mxu0 %vm2304_vm0, %v2303_v1  ;;  %2146 = vmatpush3.bf16.msra.mxu0 %v2282_v60 }
  0x5f   : > { %2147 = vmatprep.subr.bf16.mxu0 %v2303_v1 }
  0x60   : > { %2116 = vmatpush3.bf16.msra.mxu1 %v2278_v61 }
  0x61   : > { %2117 = vmatprep.subr.bf16.mxu1 %v2303_v1 }
  0x62   : > { %2148 = vmatpush3.bf16.msra.mxu0 %v2285_v39 }
  0x63   : > { %2070 = vmatmul.mubr.msk.bf16.gmra.mrb[36].mxu1 %vm299_vm1, %v659_v3  ;;  %2197 = vmatprep.subr.bf16.mxu0 %v2303_v1 }
  0x64   : > { %2073 = vmatprep.mubr.msk.bf16.mxu1 %vm2304_vm0, %v2303_v1  ;;  %2118 = vmatpush3.bf16.msra.mxu1 %v2281_v4 }
  0x65   : > { %2102 = vmatmul.mubr.msk.bf16.gmra.mrb[36].mxu0 %vm299_vm1, %v2534_v56  ;;  %2119 = vmatprep.subr.bf16.mxu1 %v2303_v1  ;;  %v984_v56 = vrot.slane %v2675_v27, 2 }
  0x66   : > { %2105 = vmatprep.mubr.msk.bf16.mxu0 %vm2304_vm0, %v2303_v1 }
  0x67   : > { %v987_v23 = vsel %vm982_vm5, %v984_v56, %v986_v19 }
  0x68   : > { %2120 = vmatpush3.bf16.msra.mxu1 %v2283_v18 }
  0x69   : > { %2169 = vmatprep.subr.bf16.mxu1 %v2303_v1 }
  0x6b   : > { %2074 = vmatmul.mubr.msk.bf16.gmra.mrb[40].mxu1 %vm299_vm1, %v2503_v29  ;;  %v2287_v29 = vld [vmem:[%s2969_s1 + $0x100] sm:$0xff]  }
  0x6c   : > { %2077 = vmatprep.mubr.msk.bf16.mxu1 %vm2304_vm0, %v2303_v1 }
  0x6d   : > { %2106 = vmatmul.mubr.msk.bf16.gmra.mrb[40].mxu0 %vm299_vm1, %v2547_v7  ;;  %v2289_v7 = vld [vmem:[%s2969_s1 + $0x108] sm:$0xff]  }
  0x6e   : > { %2109 = vmatprep.mubr.msk.bf16.mxu0 %vm2304_vm0, %v2303_v1 }
  0x73   : > { %2078 = vmatmul.mubr.msk.bf16.gmra.mrb[44].mxu1 %vm299_vm1, %v2518_v41  ;;  %v983_v41 = vrot.slane %v2664_v17, 2  ;;  %v2294_v17 = vld [vmem:[%s2969_s1 + $0x118] sm:$0xff]  }
  0x74   : > { %2081 = vmatprep.mubr.msk.bf16.mxu1 %vm2304_vm0, %v2303_v1 }
  0x75   : > { %2110 = vmatmul.mubr.msk.bf16.gmra.mrb[44].mxu0 %vm299_vm1, %v2567_v16  ;;  %v2286_v16 = vld [vmem:[%s2969_s1 + $0xe0] sm:$0xff]  }
  0x76   : > { %2149 = vmatprep.mubr.msk.bf16.mxu0 %vm2304_vm0, %v2303_v1 }
  0x7b   : > { %2082 = vmatmul.mubr.msk.bf16.gmra.mrb[48].mxu1 %vm299_vm1, %v2527_v49  ;;  %v985_v49 = vsel %vm982_vm5, %v983_v41, %v984_v56 }
  0x7c   : > { %2121 = vmatprep.mubr.msk.bf16.mxu1 %vm2304_vm0, %v2303_v1 }
  0x7d   : > { %2150 = vmatmul.mubr.msk.bf16.vlgmr.msra.gmra.mrb[48].mxu0 %vm299_vm1, %v2550_v10  ;;  %v2291_v10 = vld [vmem:[%s2969_s1 + $0x110] sm:$0xff]  }
  0x7e   : > { %2198 = vmatpush3.bf16.msra.mxu0 %v2287_v29  ;;  %2153 = vmatprep.mubr.msk.bf16.mxu0 %vm2304_vm0, %v2303_v1 }
  0x7f   : > { %2199 = vmatprep.subr.bf16.mxu0 %v2303_v1 }
  0x82   : > { %2200 = vmatpush3.bf16.msra.mxu0 %v2289_v7 }
  0x83   : > { %2122 = vmatmul.mubr.msk.bf16.vlgmr.msra.gmra.mrb[52].mxu1 %vm299_vm1, %v985_v49  ;;  %2201 = vmatprep.subr.bf16.mxu0 %v2303_v1 }
  0x84   : > { %2170 = vmatpush3.bf16.msra.mxu1 %v2286_v16  ;;  %2125 = vmatprep.mubr.msk.bf16.mxu1 %vm2304_vm0, %v2303_v1 }
  0x85   : > { %2154 = vmatmul.mubr.msk.bf16.gmra.mrb[52].mxu0 %vm299_vm1, %v2560_v6  ;;  %2171 = vmatprep.subr.bf16.mxu1 %v2303_v1  ;;  %v2290_v6 = vld [vmem:[%s2969_s1 + $0xf0] sm:$0xff]  }
  0x86   : > { %2157 = vmatprep.mubr.msk.bf16.mxu0 %vm2304_vm0, %v2303_v1  ;;  %2202 = vmatpush3.bf16.msra.mxu0 %v2291_v10 }
  0x87   : > { %2203 = vmatprep.subr.bf16.mxu0 %v2303_v1 }
  0x88   : > { %2172 = vmatpush3.bf16.msra.mxu1 %v2288_v8 }
  0x89   : > { %2173 = vmatprep.subr.bf16.mxu1 %v2303_v1 }
  0x8a   : > { %2204 = vmatpush3.bf16.msra.mxu0 %v2294_v17 }
  0x8b   : > { %2126 = vmatmul.mubr.msk.bf16.gmra.mrb[56].mxu1 %vm299_vm1, %v987_v23 }
  0x8c   : > { %2129 = vmatprep.mubr.msk.bf16.mxu1 %vm2304_vm0, %v2303_v1  ;;  %2174 = vmatpush3.bf16.msra.mxu1 %v2290_v6 }
  0x8d   : > { %2158 = vmatmul.mubr.msk.bf16.gmra.mrb[56].mxu0 %vm299_vm1, %v2577_v51  ;;  %2175 = vmatprep.subr.bf16.mxu1 %v2303_v1 }
  0x8e   : > { %2161 = vmatprep.mubr.msk.bf16.mxu0 %vm2304_vm0, %v2303_v1 }
  0x90   : > { %2176 = vmatpush3.bf16.msra.mxu1 %v2292_v12 }
  0x93   : > { %2130 = vmatmul.mubr.msk.bf16.gmra.mrb[60].mxu1 %vm299_vm1, %v2574_v26 }
  0x94   : > { %2133 = vmatprep.mubr.msk.bf16.mxu1 %vm2304_vm0, %v2303_v1 }
  0x95   : > { %2162 = vmatmul.mubr.msk.bf16.gmra.mrb[60].mxu0 %vm299_vm1, %v2595_v36 }
  0x96   : > { %2165 = vmatprep.mubr.msk.bf16.mxu0 %vm2304_vm0, %v2303_v1 }
  0x9b   : > { %2134 = vmatmul.mubr.msk.bf16.gmra.mrb[64].mxu1 %vm299_vm1, %v2592_v42 }
  0x9c   : > { %2137 = vmatprep.mubr.msk.bf16.mxu1 %vm2304_vm0, %v2303_v1 }
  0x9d   : > { %2166 = vmatmul.mubr.msk.bf16.gmra.mrb[64].mxu0 %vm299_vm1, %v2630_v53 }
  0x9e   : > { %2205 = vmatprep.mubr.msk.bf16.mxu0 %vm2304_vm0, %v2303_v1 }
  0xa3   : > { %2138 = vmatmul.mubr.msk.bf16.gmra.mrb[68].mxu1 %vm299_vm1, %v2604_v21 }
  0xa4   : > { %2177 = vmatprep.mubr.msk.bf16.mxu1 %vm2304_vm0, %v2303_v1 }
  0xa5   : > { %2206 = vmatmul.mubr.msk.bf16.vlgmr.msra.gmra.mrb[68].mxu0 %vm299_vm1, %v2633_v33 }
  0xa6   : > { %2209 = vmatprep.mubr.msk.bf16.mxu0 %vm2304_vm0, %v2303_v1 }
  0xab   : > { %2178 = vmatmul.mubr.msk.bf16.vlgmr.msra.gmra.mrb[72].mxu1 %vm299_vm1, %v2614_v43 }
  0xac   : > { %2181 = vmatprep.mubr.msk.bf16.mxu1 %vm2304_vm0, %v2303_v1 }
  0xad   : > { %2210 = vmatmul.mubr.msk.bf16.gmra.mrb[72].mxu0 %vm299_vm1, %v2642_v20 }
  0xae   : > { %2213 = vmatprep.mubr.msk.bf16.mxu0 %vm2304_vm0, %v2303_v1 }
  0xb3   : > { %2182 = vmatmul.mubr.msk.bf16.gmra.mrb[76].mxu1 %vm299_vm1, %v2656_v62 }
  0xb4   : > { %2185 = vmatprep.mubr.msk.bf16.mxu1 %vm2304_vm0, %v2303_v1 }
  0xb5   : > { %2214 = vmatmul.mubr.msk.bf16.gmra.mrb[76].mxu0 %vm299_vm1, %v2648_v59 }
  0xb6   : > { %2217 = vmatprep.mubr.msk.bf16.mxu0 %vm2304_vm0, %v2303_v1 }
  0xbb   : > { %2186 = vmatmul.mubr.msk.bf16.gmra.mrb[80].mxu1 %vm299_vm1, %v2659_v63 }
  0xbc   : > { %2189 = vmatprep.mubr.msk.bf16.mxu1 %vm2304_vm0, %v2303_v1 }
  0xbd   : > { %2218 = vmatmul.mubr.msk.bf16.gmra.mrb[80].mxu0 %vm299_vm1, %v2668_v24 }
  0xbe   : > { %2221 = vmatprep.mubr.msk.bf16.mxu0 %vm2304_vm0, %v2303_v1 }
  0xc3   : > { %2190 = vmatmul.mubr.msk.bf16.gmra.mrb[84].mxu1 %vm299_vm1, %v2680_v11 }
  0xc4   : > { %2193 = vmatprep.mubr.msk.bf16.mxu1 %vm2304_vm0, %v2303_v1 }
  0xc5   : > { %2222 = vmatmul.mubr.msk.bf16.gmra.mrb[84].mxu0 %vm299_vm1, %v2697_v46 }
  0xcb   : > { %2194 = vmatmul.mubr.msk.bf16.gmra.mrb[88].mxu1 %vm299_vm1, %v2700_v50 }
  0xee   : > { %v365_v19 = vpop.f32.mrb[0].mxu1 }
  0xef   : > { %v1991_v26 = vpop.f32.mrb[1].mxu1 }
  0xf0   : > { %v368_v51 = vpop.f32.mrb[2].mxu1  ;;  %v349_v42 = vpop.f32.mrb[0].mxu0 }
  0xf1   : > { %v1992_v36 = vpop.f32.mrb[3].mxu1  ;;  %v1983_v21 = vpop.f32.mrb[1].mxu0 }
  0xf2   : > { %v352_v43 = vpop.f32.mrb[2].mxu0 }
  0xf3   : > { %v1984_v53 = vpop.f32.mrb[3].mxu0 }
  0xf6   : > { %v373_v33 = vpop.f32.mrb[4].mxu1 }
  0xf7   : > { %v1995_v20 = vpop.f32.mrb[5].mxu1 }
  0xf8   : > { %v376_v59 = vpop.f32.mrb[6].mxu1  ;;  %v357_v62 = vpop.f32.mrb[4].mxu0 }
  0xf9   : > { %v1996_v63 = vpop.f32.mrb[7].mxu1  ;;  %v1987_v1 = vpop.f32.mrb[5].mxu0 }
  0xfa   : > { %v360_v24 = vpop.f32.mrb[6].mxu0 }
  0xfb   : > { %v1988_v2 = vpop.f32.mrb[7].mxu0 }
  0xfe   : > { %v381_v27 = vpop.f32.mrb[8].mxu1 }
  0xff   : > { %v1999_v11 = vpop.f32.mrb[9].mxu1 }
 0x100   : > { %v384_v14 = vpop.f32.mrb[10].mxu1  ;;  %v589_v47 = vpop.f32.mrb[8].mxu0 }
 0x101   : > { %v2000_v54 = vpop.f32.mrb[11].mxu1  ;;  %v2039_v5 = vpop.f32.mrb[9].mxu0 }
 0x102   : > { %v592_v15 = vpop.f32.mrb[10].mxu0 }
 0x103   : > { %v2040_v9 = vpop.f32.mrb[11].mxu0 }
 0x106   : > { %v456_v28 = vpop.f32.mrb[12].mxu1 }
 0x107   : > { %v457_v30 = vadd.f32 %v456_v28, %v349_v42  ;;  %v2011_v31 = vpop.f32.mrb[13].mxu1 }
 0x108   : > { %v459_v32 = vpop.f32.mrb[14].mxu1  ;;  %v597_v38 = vpop.f32.mrb[12].mxu0 }
 0x109   : > { %v628_v35 = vadd.f32 %v589_v47, %v457_v30  ;;  %v460_v40 = vadd.f32 %v459_v32, %v352_v43  ;;  %v2012_v46 = vpop.f32.mrb[15].mxu1  ;;  %v2043_v44 = vpop.f32.mrb[13].mxu0 }
 0x10a   : > { %v600_v45 = vpop.f32.mrb[14].mxu0 }
 0x10b   : > { %v629_v48 = vadd.f32 %v592_v15, %v460_v40  ;;  %v2044_v50 = vpop.f32.mrb[15].mxu0 }
 0x10e   : > { %v464_v37 = vpop.f32.mrb[16].mxu1 }
 0x10f   : > { %v465_v57 = vadd.f32 %v464_v37, %v357_v62  ;;  %v2015_v52 = vpop.f32.mrb[17].mxu1 }
 0x110   : > { %v467_v22 = vpop.f32.mrb[18].mxu1  ;;  %v605_v13 = vpop.f32.mrb[16].mxu0 }
 0x111   : > { %v630_v34 = vadd.f32 %v597_v38, %v465_v57  ;;  %v468_v55 = vadd.f32 %v467_v22, %v360_v24  ;;  %v2016_v25 = vpop.f32.mrb[19].mxu1  ;;  %v2047_v0 = vpop.f32.mrb[17].mxu0 }
 0x112   : > { %v608_v58 = vpop.f32.mrb[18].mxu0 }
 0x113   : > { %v631_v60 = vadd.f32 %v600_v45, %v468_v55  ;;  %v2048_v61 = vpop.f32.mrb[19].mxu0 }
 0x116   : > { %v472_v39 = vpop.f32.mrb[20].mxu1 }
 0x117   : > { %v473_v3 = vadd.f32 %v472_v39, %v365_v19  ;;  %v2019_v4 = vpop.f32.mrb[21].mxu1 }
 0x118   : > { %v475_v18 = vpop.f32.mrb[22].mxu1  ;;  %v613_v29 = vpop.f32.mrb[20].mxu0 }
 0x119   : > { %v632_v41 = vadd.f32 %v605_v13, %v473_v3  ;;  %v476_v56 = vadd.f32 %v475_v18, %v368_v51  ;;  %v2020_v7 = vpop.f32.mrb[23].mxu1  ;;  %v2051_v49 = vpop.f32.mrb[21].mxu0 }
 0x11a   : > { %v616_v16 = vpop.f32.mrb[22].mxu0 }
 0x11b   : > { %v633_v10 = vadd.f32 %v608_v58, %v476_v56  ;;  %v2052_v8 = vpop.f32.mrb[23].mxu0 }
 0x11e   : > { %v480_v17 = vpop.f32.mrb[24].mxu1 }
 0x11f   : > { %v481_v23 = vadd.f32 %v480_v17, %v373_v33  ;;  %v2023_v6 = vpop.f32.mrb[25].mxu1 }
 0x120   : > { %v483_v12 = vpop.f32.mrb[26].mxu1  ;;  %v621_v26 = vpop.f32.mrb[24].mxu0 }
 0x121   : > { %v634_v42 = vadd.f32 %v613_v29, %v481_v23  ;;  %v484_v36 = vadd.f32 %v483_v12, %v376_v59  ;;  %v2024_v21 = vpop.f32.mrb[27].mxu1  ;;  %v2055_v43 = vpop.f32.mrb[25].mxu0 }
 0x122   : > { %v624_v19 = vpop.f32.mrb[26].mxu0 }
 0x123   : > { %v635_v53 = vadd.f32 %v616_v16, %v484_v36  ;;  %v2056_v20 = vpop.f32.mrb[27].mxu0 }
 0x126   : > { %v488_v62 = vpop.f32.mrb[28].mxu1 }
 0x127   : > { %v489_v63 = vadd.f32 %v488_v62, %v381_v27  ;;  %v2027_v51 = vpop.f32.mrb[29].mxu1 }
 0x128   : > { %v491_v1 = vpop.f32.mrb[30].mxu1  ;;  %v924_v24 = vpop.f32.mrb[28].mxu0 }
 0x129   : > { %v636_v2 = vadd.f32 %v621_v26, %v489_v63  ;;  %v492_v11 = vadd.f32 %v491_v1, %v384_v14  ;;  %v2028_v47 = vpop.f32.mrb[31].mxu1  ;;  %v2095_v54 = vpop.f32.mrb[29].mxu0 }
 0x12a   : > { %v927_v33 = vpop.f32.mrb[30].mxu0 }
 0x12b   : > { %v637_v5 = vadd.f32 %v624_v19, %v492_v11  ;;  %v2096_v15 = vpop.f32.mrb[31].mxu0 }
 0x12e   : > { %v739_v9 = vpop.f32.mrb[32].mxu1 }
 0x12f   : > { %v778_v28 = vadd.f32 %v739_v9, %v628_v35  ;;  %v2067_v59 = vpop.f32.mrb[33].mxu1 }
 0x130   : > { %v742_v30 = vpop.f32.mrb[34].mxu1  ;;  %v932_v31 = vpop.f32.mrb[32].mxu0 }
 0x131   : > { %v963_v32 = vadd.f32 %v924_v24, %v778_v28  ;;  %v779_v38 = vadd.f32 %v742_v30, %v629_v48  ;;  %v2068_v40 = vpop.f32.mrb[35].mxu1  ;;  %v2099_v46 = vpop.f32.mrb[33].mxu0 }
 0x132   : > { %v935_v27 = vpop.f32.mrb[34].mxu0 }
 0x133   : > { %v964_v44 = vadd.f32 %v927_v33, %v779_v38  ;;  %v2100_v45 = vpop.f32.mrb[35].mxu0 }
 0x136   : > { %v747_v50 = vpop.f32.mrb[36].mxu1 }
 0x137   : > { %v780_v37 = vadd.f32 %v747_v50, %v630_v34  ;;  %v2071_v14 = vpop.f32.mrb[37].mxu1 }
 0x138   : > { %v750_v57 = vpop.f32.mrb[38].mxu1  ;;  %v940_v52 = vpop.f32.mrb[36].mxu0 }
 0x139   : > { %v965_v22 = vadd.f32 %v932_v31, %v780_v37  ;;  %v781_v13 = vadd.f32 %v750_v57, %v631_v60  ;;  %v2072_v55 = vpop.f32.mrb[39].mxu1  ;;  %v2103_v25 = vpop.f32.mrb[37].mxu0 }
 0x13a   : > { %v943_v35 = vpop.f32.mrb[38].mxu0 }
 0x13b   : > { %v966_v0 = vadd.f32 %v935_v27, %v781_v13  ;;  %v2104_v58 = vpop.f32.mrb[39].mxu0 }
 0x13e   : > { %v755_v61 = vpop.f32.mrb[40].mxu1 }
 0x13f   : > { %v782_v39 = vadd.f32 %v755_v61, %v632_v41  ;;  %v2075_v48 = vpop.f32.mrb[41].mxu1 }
 0x140   : > { %v758_v3 = vpop.f32.mrb[42].mxu1  ;;  %v948_v4 = vpop.f32.mrb[40].mxu0 }
 0x141   : > { %v967_v18 = vadd.f32 %v940_v52, %v782_v39  ;;  %v783_v29 = vadd.f32 %v758_v3, %v633_v10  ;;  %v2076_v56 = vpop.f32.mrb[43].mxu1  ;;  %v2107_v7 = vpop.f32.mrb[41].mxu0 }
 0x142   : > { %v951_v34 = vpop.f32.mrb[42].mxu0 }
 0x143   : > { %v968_v49 = vadd.f32 %v943_v35, %v783_v29  ;;  %v2108_v16 = vpop.f32.mrb[43].mxu0 }
 0x146   : > { %v763_v8 = vpop.f32.mrb[44].mxu1 }
 0x147   : > { %v784_v17 = vadd.f32 %v763_v8, %v634_v42  ;;  %v2079_v60 = vpop.f32.mrb[45].mxu1 }
 0x148   : > { %v766_v23 = vpop.f32.mrb[46].mxu1  ;;  %v956_v6 = vpop.f32.mrb[44].mxu0 }
 0x149   : > { %v969_v12 = vadd.f32 %v948_v4, %v784_v17  ;;  %v785_v26 = vadd.f32 %v766_v23, %v635_v53  ;;  %v2080_v36 = vpop.f32.mrb[47].mxu1  ;;  %v2111_v21 = vpop.f32.mrb[45].mxu0 }
 0x14a   : > { %v959_v41 = vpop.f32.mrb[46].mxu0 }
 0x14b   : > { %v970_v43 = vadd.f32 %v951_v34, %v785_v26  ;;  %v2112_v19 = vpop.f32.mrb[47].mxu0 }
 0x14e   : > { %v771_v20 = vpop.f32.mrb[48].mxu1 }
 0x14f   : > { %v786_v62 = vadd.f32 %v771_v20, %v636_v2  ;;  %v2083_v10 = vpop.f32.mrb[49].mxu1 }
 0x150   : > { %v774_v63 = vpop.f32.mrb[50].mxu1  ;;  %v1213_v51 = vpop.f32.mrb[48].mxu0 }
 0x151   : > { %v971_v1 = vadd.f32 %v956_v6, %v786_v62  ;;  %v787_v24 = vadd.f32 %v774_v63, %v637_v5  ;;  %v2084_v11 = vpop.f32.mrb[51].mxu1  ;;  %v2151_v47 = vpop.f32.mrb[49].mxu0 }
 0x152   : > { %v1216_v42 = vpop.f32.mrb[50].mxu0 }
 0x153   : > { %v972_v54 = vadd.f32 %v959_v41, %v787_v24  ;;  %v2152_v33 = vpop.f32.mrb[51].mxu0 }
 0x156   : > { %v1067_v15 = vpop.f32.mrb[52].mxu1 }
 0x157   : > { %v1106_v9 = vadd.f32 %v1067_v15, %v963_v32  ;;  %v2123_v53 = vpop.f32.mrb[53].mxu1 }
 0x158   : > { %v1070_v28 = vpop.f32.mrb[54].mxu1  ;;  %v1221_v59 = vpop.f32.mrb[52].mxu0 }
 0x159   : > { %v1252_v30 = vadd.f32 %v1213_v51, %v1106_v9  ;;  %v1107_v31 = vadd.f32 %v1070_v28, %v964_v44  ;;  %v2124_v38 = vpop.f32.mrb[55].mxu1  ;;  %v2155_v40 = vpop.f32.mrb[53].mxu0 }
 0x15a   : > { %v1224_v2 = vpop.f32.mrb[54].mxu0 }
 0x15b   : > { %v1253_v46 = vadd.f32 %v1216_v42, %v1107_v31  ;;  %v2156_v27 = vpop.f32.mrb[55].mxu0 }
 0x15e   : > { %v1075_v45 = vpop.f32.mrb[56].mxu1 }
 0x15f   : > { %v1108_v50 = vadd.f32 %v1075_v45, %v965_v22  ;;  %v2127_v5 = vpop.f32.mrb[57].mxu1 }
 0x160   : > { %v1078_v37 = vpop.f32.mrb[58].mxu1  ;;  %v1229_v14 = vpop.f32.mrb[56].mxu0 }
 0x161   : > { %v2900_v57 = vadd.f32 %v1221_v59, %v1108_v50  ;;  %v1109_v52 = vadd.f32 %v1078_v37, %v966_v0  ;;  %v2128_v13 = vpop.f32.mrb[59].mxu1  ;;  %v2159_v32 = vpop.f32.mrb[57].mxu0 }
 0x162   : > { %v1232_v55 = vpop.f32.mrb[58].mxu0 }
 0x163   : > { %v2902_v25 = vadd.f32 %v1224_v2, %v1109_v52  ;;  %v2160_v35 = vpop.f32.mrb[59].mxu0 }
 0x166   : > { %v1083_v44 = vpop.f32.mrb[60].mxu1 }
 0x167   : > { %v1110_v58 = vadd.f32 %v1083_v44, %v967_v18  ;;  %v2131_v61 = vpop.f32.mrb[61].mxu1 }
 0x168   : > { %v1086_v39 = vpop.f32.mrb[62].mxu1  ;;  %v1237_v48 = vpop.f32.mrb[60].mxu0 }
 0x169   : > { %v2904_v3 = vadd.f32 %v1229_v14, %v1110_v58  ;;  %v1111_v22 = vadd.f32 %v1086_v39, %v968_v49  ;;  %v2132_v4 = vpop.f32.mrb[63].mxu1  ;;  %v2163_v29 = vpop.f32.mrb[61].mxu0 }
 0x16a   : > { %v1240_v56 = vpop.f32.mrb[62].mxu0 }
 0x16b   : > { %v2906_v7 = vadd.f32 %v1232_v55, %v1111_v22  ;;  %v2164_v0 = vpop.f32.mrb[63].mxu0 }
 0x16e   : > { %v1091_v34 = vpop.f32.mrb[64].mxu1 }
 0x16f   : > { %v1112_v16 = vadd.f32 %v1091_v34, %v969_v12  ;;  %v2135_v8 = vpop.f32.mrb[65].mxu1 }
 0x170   : > { %v1094_v17 = vpop.f32.mrb[66].mxu1  ;;  %v1245_v60 = vpop.f32.mrb[64].mxu0 }
 0x171   : > { %v2908_v23 = vadd.f32 %v1237_v48, %v1112_v16  ;;  %v1113_v18 = vadd.f32 %v1094_v17, %v970_v43  ;;  %v2136_v6 = vpop.f32.mrb[67].mxu1  ;;  %v2167_v26 = vpop.f32.mrb[65].mxu0 }
 0x172   : > { %v1248_v36 = vpop.f32.mrb[66].mxu0 }
 0x173   : > { %v2910_v21 = vadd.f32 %v1240_v56, %v1113_v18  ;;  %v2168_v49 = vpop.f32.mrb[67].mxu0 }
 0x176   : > { %v1099_v41 = vpop.f32.mrb[68].mxu1 }
 0x177   : > { %v1114_v19 = vadd.f32 %v1099_v41, %v971_v1  ;;  %v2139_v20 = vpop.f32.mrb[69].mxu1  ;;  %v2919_v1 = vld [vmem:[%s2970_s2] ss:$0 sm:$0xff] }
 0x178   : > { %v1102_v62 = vpop.f32.mrb[70].mxu1  ;;  %v1521_v10 = vpop.f32.mrb[68].mxu0 }
 0x179   : > { %v2912_v63 = vadd.f32 %v1245_v60, %v1114_v19  ;;  %v1115_v12 = vadd.f32 %v1102_v62, %v972_v54  ;;  %v2140_v51 = vpop.f32.mrb[71].mxu1  ;;  %v2207_v24 = vpop.f32.mrb[69].mxu0 }
 0x17a   : > { %v1524_v11 = vpop.f32.mrb[70].mxu0 }
 0x17b   : > { %v2914_v47 = vadd.f32 %v1248_v36, %v1115_v12  ;;  %v2208_v43 = vpop.f32.mrb[71].mxu0 }
 0x17e   : > { %v1378_v42 = vpop.f32.mrb[72].mxu1 }
 0x17f   : > { %v1417_v33 = vadd.f32 %v1378_v42, %v1252_v30  ;;  %v2179_v15 = vpop.f32.mrb[73].mxu1 }
 0x180   : > { %v1381_v9 = vpop.f32.mrb[74].mxu1  ;;  %v1529_v53 = vpop.f32.mrb[72].mxu0 }
 0x181   : > { %v1560_v28 = vadd.f32 %v1521_v10, %v1417_v33  ;;  %v1418_v59 = vadd.f32 %v1381_v9, %v1253_v46  ;;  %v2180_v54 = vpop.f32.mrb[75].mxu1  ;;  %v2211_v31 = vpop.f32.mrb[73].mxu0 }
 0x182   : > { %v1532_v38 = vpop.f32.mrb[74].mxu0 }
 0x183   : > { %v1577_v40 = vadd.f32 %v2919_v1, %v1560_v28  ;;  %v1561_v2 = vadd.f32 %v1524_v11, %v1418_v59  ;;  %v2212_v27 = vpop.f32.mrb[75].mxu0 }
 0x185   : > { %v1587_v45 = vmax.f32 %v1577_v40, 0.0  ;;  %v1578_v30 = vadd.f32 %v2919_v1, %v1561_v2 }
 0x186   : > { %v1386_v46 = vpop.f32.mrb[76].mxu1 }
 0x187   : > { %v1882_v50 = vpack.c.bf16 %v1587_v45, %v1587_v45  ;;  %v1588_v5 = vmax.f32 %v1578_v30, 0.0  ;;  %v1419_v37 = vadd.f32 %v1386_v46, %v2900_v57  ;;  %v2183_v14 = vpop.f32.mrb[77].mxu1 }
 0x188   : > { %v1389_v52 = vpop.f32.mrb[78].mxu1  ;;  %v1537_v13 = vpop.f32.mrb[76].mxu0 }
 0x189   : > { %1638 = vst.msk [vmem:[%s2927_s20] sm:$0xf] %vm1637_vm8, %v1882_v50  ;;  %v1883_v32 = vpack.c.bf16 %v1588_v5, %v1588_v5  ;;  %v1562_v55 = vadd.f32 %v1529_v53, %v1419_v37  ;;  %v1420_v35 = vadd.f32 %v1389_v52, %v2902_v25  ;;  %v2184_v44 = vpop.f32.mrb[79].mxu1  ;;  %v2215_v58 = vpop.f32.mrb[77].mxu0 }
 0x18a   : > { %v1540_v61 = vpop.f32.mrb[78].mxu0 }
 0x18b   : > { %1639 = vst.msk [vmem:[%s2927_s20 + $0x4] sm:$0xf] %vm1637_vm8, %v1883_v32  ;;  %v1579_v39 = vadd.f32 %v2919_v1, %v1562_v55  ;;  %v1563_v48 = vadd.f32 %v1532_v38, %v1420_v35  ;;  %v2216_v22 = vpop.f32.mrb[79].mxu0 }
 0x18d   : > { %v1589_v57 = vmax.f32 %v1579_v39, 0.0  ;;  %v1580_v4 = vadd.f32 %v2919_v1, %v1563_v48 }
 0x18e   : > { %v1394_v29 = vpop.f32.mrb[80].mxu1 }
 0x18f   : > { %v1884_v56 = vpack.c.bf16 %v1589_v57, %v1589_v57  ;;  %v1590_v0 = vmax.f32 %v1580_v4, 0.0  ;;  %v1421_v34 = vadd.f32 %v1394_v29, %v2904_v3  ;;  %v2187_v25 = vpop.f32.mrb[81].mxu1 }
 0x190   : > { %v1397_v16 = vpop.f32.mrb[82].mxu1  ;;  %v1545_v8 = vpop.f32.mrb[80].mxu0 }
 0x191   : > { %1640 = vst.msk [vmem:[%s2927_s20 + $0x8] sm:$0xf] %vm1637_vm8, %v1884_v56  ;;  %v1885_v17 = vpack.c.bf16 %v1590_v0, %v1590_v0  ;;  %v1564_v60 = vadd.f32 %v1537_v13, %v1421_v34  ;;  %v1422_v18 = vadd.f32 %v1397_v16, %v2906_v7  ;;  %v2188_v6 = vpop.f32.mrb[83].mxu1  ;;  %v2219_v26 = vpop.f32.mrb[81].mxu0 }
 0x192   : > { %v1548_v36 = vpop.f32.mrb[82].mxu0 }
 0x193   : > { %1641 = vst.msk [vmem:[%s2927_s20 + $0xc] sm:$0xf] %vm1637_vm8, %v1885_v17  ;;  %v1581_v49 = vadd.f32 %v2919_v1, %v1564_v60  ;;  %v1565_v41 = vadd.f32 %v1540_v61, %v1422_v18  ;;  %v2220_v19 = vpop.f32.mrb[83].mxu0 }
 0x195   : > { %v1591_v3 = vmax.f32 %v1581_v49, 0.0  ;;  %v1582_v20 = vadd.f32 %v2919_v1, %v1565_v41 }
 0x196   : > { %v1402_v62 = vpop.f32.mrb[84].mxu1 }
 0x197   : > { %v1886_v10 = vpack.c.bf16 %v1591_v3, %v1591_v3  ;;  %v1592_v12 = vmax.f32 %v1582_v20, 0.0  ;;  %v1423_v51 = vadd.f32 %v1402_v62, %v2908_v23  ;;  %v2191_v7 = vpop.f32.mrb[85].mxu1 }
 0x198   : > { %v1405_v24 = vpop.f32.mrb[86].mxu1  ;;  %v1553_v11 = vpop.f32.mrb[84].mxu0 }
 0x199   : > { %1642 = vst.msk [vmem:[%s2927_s20 + $0x10] sm:$0xf] %vm1637_vm8, %v1886_v10  ;;  %v1887_v43 = vpack.c.bf16 %v1592_v12, %v1592_v12  ;;  %v1566_v42 = vadd.f32 %v1545_v8, %v1423_v51  ;;  %v1424_v33 = vadd.f32 %v1405_v24, %v2910_v21  ;;  %v2192_v15 = vpop.f32.mrb[87].mxu1  ;;  %v2223_v9 = vpop.f32.mrb[85].mxu0 }
 0x19a   : > { %v1556_v53 = vpop.f32.mrb[86].mxu0 }
 0x19b   : > { %1643 = vst.msk [vmem:[%s2927_s20 + $0x14] sm:$0xf] %vm1637_vm8, %v1887_v43  ;;  %v1583_v28 = vadd.f32 %v2919_v1, %v1566_v42  ;;  %v1567_v59 = vadd.f32 %v1548_v36, %v1424_v33  ;;  %v2224_v23 = vpop.f32.mrb[87].mxu0 }
 0x19d   : > { %v1593_v54 = vmax.f32 %v1583_v28, 0.0  ;;  %v1584_v31 = vadd.f32 %v2919_v1, %v1567_v59 }
 0x19e   : > { %v1410_v38 = vpop.f32.mrb[88].mxu1 }
 0x19f   : > { %v1888_v40 = vpack.c.bf16 %v1593_v54, %v1593_v54  ;;  %v1594_v2 = vmax.f32 %v1584_v31, 0.0  ;;  %v1425_v21 = vadd.f32 %v1410_v38, %v2912_v63  ;;  %v2195_v27 = vpop.f32.mrb[89].mxu1 }
 0x1a0   : > { %v1413_v45 = vpop.f32.mrb[90].mxu1 }
 0x1a1   : > { %1644 = vst.msk [vmem:[%s2927_s20 + $0x18] sm:$0xf] %vm1637_vm8, %v1888_v40  ;;  %v1889_v30 = vpack.c.bf16 %v1594_v2, %v1594_v2  ;;  %v1568_v46 = vadd.f32 %v1553_v11, %v1425_v21  ;;  %v1426_v50 = vadd.f32 %v1413_v45, %v2914_v47  ;;  %v2196_v5 = vpop.f32.mrb[91].mxu1 }
 0x1a3   : > { %1645 = vst.msk [vmem:[%s2927_s20 + $0x1c] sm:$0xf] %vm1637_vm8, %v1889_v30  ;;  %v1585_v37 = vadd.f32 %v2919_v1, %v1568_v46  ;;  %v1569_v14 = vadd.f32 %v1556_v53, %v1426_v50 }
 0x1a5   : > { %v1595_v52 = vmax.f32 %v1585_v37, 0.0  ;;  %v1586_v13 = vadd.f32 %v2919_v1, %v1569_v14 }
 0x1a7   : > { %v1890_v32 = vpack.c.bf16 %v1595_v52, %v1595_v52  ;;  %v1596_v63 = vmax.f32 %v1586_v13, 0.0 }
 0x1a9   : > { %1646 = vst.msk [vmem:[%s2927_s20 + $0x20] sm:$0xf] %vm1637_vm8, %v1890_v32  ;;  %v1891_v55 = vpack.c.bf16 %v1596_v63, %v1596_v63 }
 0x1ab   : > { %1647 = vst.msk [vmem:[%s2927_s20 + $0x24] sm:$0xf] %vm1637_vm8, %v1891_v55 }
 0x1ac PF: > { %s13_s12 = sadd.s32 1, %s2301_s12  }
 0x1ad   : > { %p10_p4 = scmp.ge.s32.totalorder %s13_s12, 6  }
 0x1af   :  { %12 = sbr.rel (!%p10_p4) target bundleno = 1 (0x1), region = 70 }

// kernel: style_reconstruction_loss.16
= control target key start
LH: loop header
LB: loop body
LE: loop exit
PB: predicated region body
PF: predicated region fallthrough
CT: control target
= control target key end

     0   :  { %s2444_s15 = smov 0   ;;  %s3101_s0 = inlined_call_operand.vmem [shape: bf16[4,110,64], index: 0, kind: input, shape index: {}]   ;;  %s3102_s1 = inlined_call_operand.vmem [shape: bf16[9,64,64], index: 1, kind: input, shape index: {}]   ;;  %s3103_s2 = inlined_call_operand.vmem [shape: f32[1,64], index: 2, kind: input, shape index: {}]   ;;  %s3104_s3 = inlined_call_operand.vmem [shape: bf16[4,80,64], index: 3, kind: input, shape index: {}]   ;;  %s3105_s4 = inlined_call_operand.vmem [shape: bf16[4,80,64], index: 4, kind: output, shape index: {}]  }
   0x1 LB: > { %s1792_s16 = sadd.s32 4294967295, %s2415_s15   ;;  %p1796_p0 = scmp.ge.s32.totalorder %s2415_s15, 1  ;;  %s2415_s15 = sphi %s2444_s15, %s14_s15  }
   0x2   : > { %p172_p1 = scmp.lt.s32.totalorder %s2415_s15, 5 }
   0x4   : > { %p173_p2 = pnand %p1796_p0, %p172_p1 }
   0x5   : > { %v2359_v0 = vld [vmem:[%s3102_s1 + $0x20] sm:$0xff] (!%p173_p2)   ;;  %v2417_v1 = vmov (!%p173_p2), 0.0   ;;  %v2360_v2 = vld [vmem:[%s3102_s1 + $0x28] sm:$0xff] (!%p173_p2)   ;;  %p203_p3 = scmp.lt.s32.totalorder (!%p173_p2), %s1792_s16, 3  ;;  %vm2418_vm0 = vmmov (!%p173_p2), 0   ;;  %v2361_v3 = vld [vmem:[%s3102_s1 + $0x30] sm:$0xff] (!%p173_p2)  }
   0x6   : > { %176 = sbr.rel (%p173_p2) target bundleno = 430 (0x1ae), region = 36  ;;  %2339 = vmatprep.subr.bf16.mxu1 (!%p173_p2), %v2417_v1  ;;  %2087 = vmatprep.subr.bf16.mxu0 (!%p173_p2), %v2417_v1  ;;  %v2362_v4 = vld [vmem:[%s3102_s1 + $0x38] sm:$0xff] (!%p173_p2)   ;;  %vm346_vm1 = vcmask (!%p173_p2), 523264   ;;  %vm277_vm2 = vsmask.f32 (!%p173_p2), 7424  ;;  %v2365_v31 = vld [vmem:[%s3102_s1] sm:$0xff] (!%p173_p2)  }
   0x7   : > { %2343 = vmatpush3.bf16.msra.mxu1 (!%p173_p2), %v2359_v0  ;;  %2088 = vmatpush3.bf16.msra.mxu0 (!%p173_p2), %v2359_v0  ;;  %v2371_v38 = vld [vmem:[%s3102_s1 + $0x40] sm:$0xff] (!%p173_p2)   ;;  %v2366_v43 = vld [vmem:[%s3102_s1 + $0x8] sm:$0xff] (!%p173_p2)   ;;  %v2372_v49 = vld [vmem:[%s3102_s1 + $0x10] sm:$0xff] (!%p173_p2)   ;;  %vm551_vm3 = vcmask (!%p173_p2), 1046528   ;;  %vm844_vm4 = vsmask.f32 (!%p173_p2), 6400 }
   0x8   : > { %2340 = vmatprep.subr.bf16.mxu1 (!%p173_p2), %v2417_v1  ;;  %2089 = vmatprep.subr.bf16.mxu0 (!%p173_p2), %v2417_v1  ;;  %v2373_v48 = vld [vmem:[%s3102_s1 + $0x48] sm:$0xff] (!%p173_p2)   ;;  %v2377_v60 = vld [vmem:[%s3102_s1 + $0x50] sm:$0xff] (!%p173_p2)   ;;  %v2378_v63 = vld [vmem:[%s3102_s1 + $0x18] sm:$0xff] (!%p173_p2)   ;;  %vm1029_vm5 = vcmask (!%p173_p2), 1045504   ;;  %vm1318_vm6 = vsmask.f32 (!%p173_p2), 5376 }
   0x9   : > { %2103 = vmatprep.mubr.msk.bf16.mxu1 (!%p173_p2), %vm2418_vm0, %v2417_v1  ;;  %2095 = vmatprep.mubr.msk.bf16.mxu0 (!%p173_p2), %vm2418_vm0, %v2417_v1  ;;  %vm1483_vm7 = vcmask (!%p173_p2), 1044480   ;;  %vm1714_vm8 = vcmask (!%p173_p2), 519168  }
   0xb   : > { %2344 = vmatpush3.bf16.msra.mxu1 (!%p173_p2), %v2360_v2  ;;  %2090 = vmatpush3.bf16.msra.mxu0 (!%p173_p2), %v2360_v2 }
   0xc   : > { %2341 = vmatprep.subr.bf16.mxu1 (!%p173_p2), %v2417_v1  ;;  %2091 = vmatprep.subr.bf16.mxu0 (!%p173_p2), %v2417_v1 }
   0xd   : > { %s3107_s16 = smov (!%p203_p3, %s1792_s16), 3 }
   0xe   : > { %s2347_s23 = smul.u32 56, %s3107_s16 }
   0xf   : > { %2345 = vmatpush3.bf16.msra.mxu1 %v2361_v3  ;;  %2092 = vmatpush3.bf16.msra.mxu0 %v2361_v3  ;;  %v2379_v3 = vld [vmem:[%s3102_s1 + $0x58] sm:$0xff]   ;;  %s2348_s21 = smul.u32 40, %s3107_s16 }
  0x10   : > { %s2480_s28 = scalar_lea.vmem %s3101_s0, %s2347_s23  ;;  %2342 = vmatprep.subr.bf16.mxu1 %v2417_v1  ;;  %2093 = vmatprep.subr.bf16.mxu0 %v2417_v1 }
  0x11   : > { %v2483_v5 = vld [vmem:[%s2480_s28 + $0x10] sm:$0xf]  ;;  %v224_v6 = vld [vmem:[%s2480_s28 + $0x14] sm:$0xf]  ;;  %v225_v7 = vld [vmem:[%s2480_s28 + $0x18] sm:$0xf]  ;;  %s3041_s24 = scalar_lea.vmem %s3104_s3, %s2348_s21  ;;  %s3058_s30 = scalar_lea.vmem %s3105_s4, %s2348_s21 }
  0x12   : > { %v226_v8 = vld [vmem:[%s2480_s28 + $0x1c] sm:$0xf]  ;;  %v2489_v9 = vcombine.low %v2483_v5, %v224_v6  ;;  %v219_v10 = vld [vmem:[%s2480_s28] sm:$0xf]  ;;  %v2493_v11 = vld [vmem:[%s2480_s28 + $0x4] sm:$0xf]  ;;  %v2495_v12 = vcombine.low %v224_v6, %v225_v7 }
  0x13   : > { %v2498_v13 = vcombine.low %v225_v7, %v226_v8  ;;  %v2502_v14 = vld [vmem:[%s2480_s28 + $0x8] sm:$0xf]  ;;  %v2505_v15 = vld [vmem:[%s2480_s28 + $0xc] sm:$0xf]  ;;  %v2508_v16 = vcombine.low %v219_v10, %v2493_v11  ;;  %v227_v17 = vld [vmem:[%s2480_s28 + $0x20] sm:$0xf]  ;;  %2346 = vmatpush3.bf16.msra.mxu1 %v2362_v4  ;;  %2094 = vmatpush3.bf16.msra.mxu0 %v2362_v4 }
  0x14   : > { %v294_v18 = vshll.u32 %v2489_v9, 16  ;;  %v298_v19 = vshrl.u32 %v2489_v9, 16  ;;  %v2515_v20 = vcombine.low %v2502_v14, %v2505_v15  ;;  %v228_v21 = vld [vmem:[%s2480_s28 + $0x24] sm:$0xf]  ;;  %2115 = vmatprep.subr.bf16.mxu1 %v2417_v1  ;;  %2143 = vmatprep.subr.bf16.mxu0 %v2417_v1  ;;  %v229_v36 = vld [vmem:[%s2480_s28 + $0x28] sm:$0xf]  ;;  %v2567_v51 = vcombine.low %v226_v8, %v227_v17 }
  0x15   : > { %v302_v22 = vshll.u32 %v2498_v13, 16  ;;  %v279_v23 = vshrl.u32 %v2508_v16, 16  ;;  %v281_v24 = vshll.u32 %v2508_v16, 16  ;;  %v2521_v25 = vcombine.low %v227_v17, %v228_v21  ;;  %v230_v41 = vld [vmem:[%s2480_s28 + $0x2c] sm:$0xf]  ;;  %v2381_v17 = vld [vmem:[%s3102_s1 + $0x80] sm:$0xff]  }
  0x16   : > { %v296_v26 = vrot.slane %v294_v18, 1  ;;  %v286_v27 = vshll.u32 %v2515_v20, 16  ;;  %v306_v33 = vshrl.u32 %v2498_v13, 16  ;;  %v290_v39 = vshrl.u32 %v2515_v20, 16 }
  0x17   : > { %v304_v28 = vrot.slane %v302_v22, 1  ;;  %v283_v29 = vrot.slane %v281_v24, 1  ;;  %v310_v34 = vshll.u32 %v2521_v25, 16  ;;  %v2542_v42 = vcombine.low %v228_v21, %v229_v36 }
  0x18   : > { %v300_v30 = vor.u32 %v298_v19, %v296_v26  ;;  %v288_v32 = vrot.slane %v286_v27, 1  ;;  %v2553_v46 = vcombine.low %v229_v36, %v229_v36  ;;  %v2555_v47 = vcombine.low %v229_v36, %v230_v41 }
  0x19   : > { %v284_v35 = vor.u32 %v283_v29, %v279_v23  ;;  %v308_v44 = vor.u32 %v306_v33, %v304_v28  ;;  %v312_v45 = vrot.slane %v310_v34, 1  ;;  %v2569_v52 = vrot.slane %v286_v27, 3 }
  0x1a   : > { %v305_v37 = vsel %vm277_vm2, %v300_v30, %v304_v28  ;;  %v292_v50 = vor.u32 %v290_v39, %v288_v32  ;;  %v2572_v53 = vrot.slane %v290_v39, 2  ;;  %v314_v55 = vshrl.u32 %v2521_v25, 16 }
  0x1b   : > { %2104 = vmatmul.mubr.msk.bf16.vlgmr.msra.gmra.mrb[0].mxu1 %vm346_vm1, %v305_v37  ;;  %v289_v40 = vsel %vm277_vm2, %v284_v35, %v288_v32  ;;  %v313_v54 = vsel %vm277_vm2, %v308_v44, %v312_v45  ;;  %v318_v56 = vshll.u32 %v2553_v46, 16  ;;  %v1322_v57 = vrot.slane %v298_v19, 2  ;;  %v2383_v44 = vld [vmem:[%s3102_s1 + $0x88] sm:$0xff]  }
  0x1c   : > { %2116 = vmatpush3.bf16.msra.mxu1 %v2365_v31  ;;  %2107 = vmatprep.mubr.msk.bf16.mxu1 %vm2418_vm0, %v2417_v1  ;;  %v1323_v58 = vrot.slane %v294_v18, 3  ;;  %v297_v59 = vsel %vm277_vm2, %v292_v50, %v296_v26  ;;  %v316_v61 = vor.u32 %v314_v55, %v312_v45  ;;  %v1321_v0 = vor.u32 %v2569_v52, %v2572_v53 }
  0x1d   : > { %2117 = vmatprep.subr.bf16.mxu1 %v2417_v1  ;;  %2096 = vmatmul.mubr.msk.bf16.vlgmr.msra.gmra.mrb[0].mxu0 %vm346_vm1, %v289_v40  ;;  %v320_v62 = vrot.slane %v318_v56, 1  ;;  %v552_v4 = vrot.slane %v2508_v16, 1  ;;  %v553_v6 = vrot.slane %v2515_v20, 1  ;;  %v863_v7 = vshrl.u32 %v2495_v12, 16 }
  0x1e   : > { %2144 = vmatpush3.bf16.msra.mxu0 %v2371_v38  ;;  %2099 = vmatprep.mubr.msk.bf16.mxu0 %vm2418_vm0, %v2417_v1  ;;  %v2595_v2 = vor.u32 %v1323_v58, %v1322_v57  ;;  %v866_v8 = vshll.u32 %v2495_v12, 16  ;;  %v705_v18 = vrot.slane %v2495_v12, 1  ;;  %v707_v19 = vrot.slane %v2567_v51, 1  ;;  %v2380_v58 = vld [vmem:[%s3102_s1 + $0x60] sm:$0xff]  }
  0x1f   : > { %2145 = vmatprep.subr.bf16.mxu0 %v2417_v1  ;;  %v321_v10 = vsel %vm277_vm2, %v316_v61, %v320_v62  ;;  %v2613_v21 = vcombine.low %v230_v41, %v230_v41  ;;  %v865_v23 = vrot.slane %v863_v7, 1  ;;  %v872_v26 = vshrl.u32 %v2567_v51, 16 }
  0x20   : > { %2118 = vmatpush3.bf16.msra.mxu1 %v2366_v43  ;;  %v868_v24 = vrot.slane %v866_v8, 2  ;;  %v875_v27 = vshll.u32 %v2567_v51, 16  ;;  %v554_v28 = vsel %vm551_vm3, %v552_v4, %v553_v6  ;;  %v2622_v29 = vsel %vm551_vm3, %v705_v18, %v707_v19 }
  0x21   : > { %2119 = vmatprep.subr.bf16.mxu1 %v2417_v1  ;;  %v874_v30 = vrot.slane %v872_v26, 1  ;;  %v709_v32 = vrot.slane %v2542_v42, 1  ;;  %v555_v35 = vrot.slane %v2489_v9, 1  ;;  %v881_v36 = vshrl.u32 %v2542_v42, 16 }
  0x22   : > { %2146 = vmatpush3.bf16.msra.mxu0 %v2373_v48  ;;  %v877_v31 = vrot.slane %v875_v27, 2  ;;  %v884_v37 = vshll.u32 %v2542_v42, 16  ;;  %v711_v38 = vrot.slane %v2613_v21, 1  ;;  %v2634_v39 = vor.u32 %v868_v24, %v865_v23 }
  0x23   : > { %2108 = vmatmul.mubr.msk.bf16.gmra.mrb[4].mxu1 %vm346_vm1, %v313_v54  ;;  %2147 = vmatprep.subr.bf16.mxu0 %v2417_v1  ;;  %v2637_v41 = vsel %vm551_vm3, %v707_v19, %v709_v32  ;;  %v890_v43 = vshrl.u32 %v2613_v21, 16  ;;  %v883_v45 = vrot.slane %v881_v36, 1  ;;  %v893_v50 = vshll.u32 %v2613_v21, 16 }
  0x24   : > { %2120 = vmatpush3.bf16.msra.mxu1 %v2372_v49  ;;  %2111 = vmatprep.mubr.msk.bf16.mxu1 %vm2418_vm0, %v2417_v1  ;;  %v878_v40 = vor.u32 %v877_v31, %v874_v30  ;;  %v886_v48 = vrot.slane %v884_v37, 2  ;;  %v2646_v49 = vsel %vm551_vm3, %v709_v32, %v711_v38  ;;  %v557_v54 = vrot.slane %v2498_v13, 1  ;;  %v2387_v30 = vld [vmem:[%s3102_s1 + $0x98] sm:$0xff]   ;;  %v2717_v37 = vld [vmem:[%s2480_s28 + $0x30] ss:$0 sps:$4 sm:$0xff]  }
  0x25   : > { %2100 = vmatmul.mubr.msk.bf16.gmra.mrb[4].mxu0 %vm346_vm1, %v297_v59  ;;  %2121 = vmatprep.subr.bf16.mxu1 %v2417_v1  ;;  %v892_v57 = vrot.slane %v890_v43, 1  ;;  %v1176_v61 = vrot.slane %v2515_v20, 2  ;;  %v1177_v62 = vrot.slane %v2489_v9, 2  ;;  %v556_v4 = vsel %vm551_vm3, %v553_v6, %v555_v35  ;;  %v2384_v38 = vld [vmem:[%s3102_s1 + $0x70] sm:$0xff]  }
  0x26   : > { %2148 = vmatpush3.bf16.msra.mxu0 %v2377_v60  ;;  %2151 = vmatprep.mubr.msk.bf16.mxu0 %vm2418_vm0, %v2417_v1  ;;  %v2653_v56 = vsel %vm844_vm4, %v2634_v39, %v878_v40  ;;  %v887_v59 = vor.u32 %v886_v48, %v883_v45  ;;  %v895_v60 = vrot.slane %v893_v50, 2  ;;  %v1033_v19 = vrot.slane %v2495_v12, 2  ;;  %v2406_v12 = vld [vmem:[%s3102_s1 + $0xf8] sm:$0xff]  }
  0x27   : > { %2149 = vmatprep.subr.bf16.mxu0 %v2417_v1  ;;  %v1035_v23 = vrot.slane %v2567_v51, 2  ;;  %v1181_v24 = vrot.slane %v2521_v25, 2  ;;  %v1037_v27 = vrot.slane %v2542_v42, 2  ;;  %v1039_v31 = vrot.slane %v2613_v21, 2 }
  0x28   : > { %2122 = vmatpush3.bf16.msra.mxu1 %v2378_v63  ;;  %v2385_v63 = vld [vmem:[%s3102_s1 + $0x90] sm:$0xff]   ;;  %v2666_v7 = vsel %vm844_vm4, %v878_v40, %v887_v59  ;;  %v896_v8 = vor.u32 %v895_v60, %v892_v57  ;;  %v558_v32 = vsel %vm551_vm3, %v555_v35, %v557_v54  ;;  %v1484_v35 = vrot.slane %v2515_v20, 3 }
  0x29   : > { %2171 = vmatprep.subr.bf16.mxu1 %v2417_v1  ;;  %v2693_v26 = vsel %vm1029_vm5, %v1033_v19, %v1035_v23  ;;  %v2711_v42 = vsel %vm1029_vm5, %v1035_v23, %v1037_v27  ;;  %v2723_v21 = vsel %vm1029_vm5, %v1037_v27, %v1039_v31  ;;  %v1185_v40 = vrot.slane %v2717_v37, 2 }
  0x2a   : > { %2150 = vmatpush3.bf16.msra.mxu0 %v2379_v3  ;;  %v1179_v3 = vrot.slane %v2498_v13, 2  ;;  %v2733_v43 = vsel %vm1318_vm6, %v1321_v0, %v2595_v2  ;;  %v1326_v45 = vrot.slane %v306_v33, 2  ;;  %v1327_v48 = vrot.slane %v302_v22, 3 }
  0x2b   : > { %2112 = vmatmul.mubr.msk.bf16.gmra.mrb[8].mxu1 %vm346_vm1, %v321_v10  ;;  %2199 = vmatprep.subr.bf16.mxu0 %v2417_v1  ;;  %v2669_v10 = vsel %vm1029_vm5, %v1176_v61, %v1177_v62  ;;  %v1487_v50 = vrot.slane %v2498_v13, 3  ;;  %v1330_v57 = vrot.slane %v314_v55, 2  ;;  %v1331_v52 = vrot.slane %v310_v34, 3  ;;  %v2386_v34 = vld [vmem:[%s3102_s1 + $0x78] sm:$0xff]  }
  0x2c   : > { %2123 = vmatprep.mubr.msk.bf16.mxu1 %vm2418_vm0, %v2417_v1  ;;  %v2679_v6 = vsel %vm1029_vm5, %v1177_v62, %v1179_v3  ;;  %v2696_v51 = vsel %vm1029_vm5, %v1179_v3, %v1181_v24  ;;  %v1489_v22 = vrot.slane %v2521_v25, 3  ;;  %v1328_v55 = vor.u32 %v1327_v48, %v1326_v45 }
  0x2d   : > { %2152 = vmatmul.mubr.msk.bf16.vlgmr.msra.gmra.mrb[8].mxu0 %vm346_vm1, %v554_v28  ;;  %v1183_v28 = vrot.slane %v2555_v47, 2  ;;  %v1332_v0 = vor.u32 %v1331_v52, %v1330_v57  ;;  %v1338_v60 = vshll.u32 %v2555_v47, 16  ;;  %v559_v61 = vrot.slane %v2521_v25, 1 }
  0x2e   : > { %2200 = vmatpush3.bf16.msra.mxu0 %v2381_v17  ;;  %2155 = vmatprep.mubr.msk.bf16.mxu0 %vm2418_vm0, %v2417_v1  ;;  %v2382_v17 = vld [vmem:[%s3102_s1 + $0x68] sm:$0xff]   ;;  %v2775_v62 = vsel %vm1318_vm6, %v2595_v2, %v1328_v55  ;;  %v2794_v27 = vcombine.low %v2505_v15, %v2483_v5 }
  0x2f   : > { %2201 = vmatprep.subr.bf16.mxu0 %v2417_v1  ;;  %v2714_v36 = vsel %vm1029_vm5, %v1181_v24, %v1183_v28  ;;  %v2749_v53 = vsel %vm1029_vm5, %v1183_v28, %v1185_v40  ;;  %v560_v2 = vsel %vm551_vm3, %v557_v54, %v559_v61  ;;  %v561_v54 = vrot.slane %v2553_v46, 1 }
  0x30   : > { %v857_v28 = vshll.u32 %v2794_v27, 16 }
  0x32   : > { %2202 = vmatpush3.bf16.msra.mxu0 %v2383_v44  ;;  %v1485_v44 = vrot.slane %v2489_v9, 3  ;;  %v859_v48 = vrot.slane %v857_v28, 2 }
  0x33   : > { %2124 = vmatmul.mubr.msk.bf16.vlgmr.msra.gmra.mrb[12].mxu1 %vm346_vm1, %v2508_v16  ;;  %2203 = vmatprep.subr.bf16.mxu0 %v2417_v1  ;;  %v2686_v16 = vsel %vm844_vm4, %v887_v59, %v896_v8  ;;  %v2767_v59 = vsel %vm1483_vm7, %v1487_v50, %v1489_v22  ;;  %v1491_v8 = vrot.slane %v2555_v47, 3 }
  0x34   : > { %2172 = vmatpush3.bf16.msra.mxu1 %v2380_v58  ;;  %2127 = vmatprep.mubr.msk.bf16.mxu1 %vm2418_vm0, %v2417_v1  ;;  %v2752_v33 = vsel %vm1483_vm7, %v1484_v35, %v1485_v44  ;;  %v1335_v58 = vshrl.u32 %v2555_v47, 16  ;;  %v1347_v47 = vshll.u32 %v2717_v37, 16  ;;  %v562_v35 = vsel %vm551_vm3, %v559_v61, %v561_v54  ;;  %v2392_v61 = vld [vmem:[%s3102_s1 + $0xa8] sm:$0xff]  }
  0x35   : > { %2156 = vmatmul.mubr.msk.bf16.gmra.mrb[12].mxu0 %vm346_vm1, %v556_v4  ;;  %2173 = vmatprep.subr.bf16.mxu1 %v2417_v1  ;;  %v1340_v4 = vrot.slane %v1338_v60, 3  ;;  %v2787_v24 = vsel %vm1483_vm7, %v1489_v22, %v1491_v8  ;;  %v2390_v22 = vld [vmem:[%s3102_s1 + $0xc0] sm:$0xff]   ;;  %v2396_v60 = vld [vmem:[%s3102_s1 + $0xd0] sm:$0xff]  }
  0x36   : > { %2159 = vmatprep.mubr.msk.bf16.mxu0 %vm2418_vm0, %v2417_v1  ;;  %2204 = vmatpush3.bf16.msra.mxu0 %v2385_v63  ;;  %v2778_v63 = vsel %vm1318_vm6, %v1328_v55, %v1332_v0  ;;  %v1337_v3 = vrot.slane %v1335_v58, 2  ;;  %v1349_v31 = vrot.slane %v1347_v47, 3  ;;  %v2393_v55 = vld [vmem:[%s3102_s1 + $0xc8] sm:$0xff]  }
  0x37   : > { %2205 = vmatprep.subr.bf16.mxu0 %v2417_v1 }
  0x38   : > { %2174 = vmatpush3.bf16.msra.mxu1 %v2382_v17  ;;  %v2783_v17 = vcombine.low %v2493_v11, %v2502_v14  ;;  %v1341_v23 = vor.u32 %v1340_v4, %v1337_v3  ;;  %v1344_v14 = vshrl.u32 %v2717_v37, 16  ;;  %v2395_v4 = vld [vmem:[%s3102_s1 + $0xb0] sm:$0xff]  }
  0x39   : > { %2175 = vmatprep.subr.bf16.mxu1 %v2417_v1 }
  0x3a   : > { %2206 = vmatpush3.bf16.msra.mxu0 %v2387_v30  ;;  %v2799_v11 = vsel %vm1318_vm6, %v1332_v0, %v1341_v23  ;;  %v846_v5 = vshrl.u32 %v2783_v17, 16  ;;  %v849_v15 = vshll.u32 %v2783_v17, 16  ;;  %v1346_v30 = vrot.slane %v1344_v14, 2  ;;  %v2389_v0 = vld [vmem:[%s3102_s1 + $0xa0] sm:$0xff]  }
  0x3b   : > { %2128 = vmatmul.mubr.msk.bf16.gmra.mrb[16].mxu1 %vm346_vm1, %v2515_v20  ;;  %2255 = vmatprep.subr.bf16.mxu0 %v2417_v1  ;;  %v2761_v20 = vsel %vm1483_vm7, %v1485_v44, %v1487_v50 }
  0x3c   : > { %2131 = vmatprep.mubr.msk.bf16.mxu1 %vm2418_vm0, %v2417_v1  ;;  %2176 = vmatpush3.bf16.msra.mxu1 %v2384_v38  ;;  %v1350_v38 = vor.u32 %v1349_v31, %v1346_v30  ;;  %v848_v40 = vrot.slane %v846_v5, 1  ;;  %v851_v44 = vrot.slane %v849_v15, 2 }
  0x3d   : > { %2160 = vmatmul.mubr.msk.bf16.gmra.mrb[16].mxu0 %vm346_vm1, %v558_v32  ;;  %2177 = vmatprep.subr.bf16.mxu1 %v2417_v1  ;;  %v1493_v32 = vrot.slane %v2717_v37, 3 }
  0x3e   : > { %2163 = vmatprep.mubr.msk.bf16.mxu0 %vm2418_vm0, %v2417_v1  ;;  %v2819_v50 = vsel %vm1318_vm6, %v1341_v23, %v1350_v38  ;;  %v852_v37 = vor.u32 %v851_v44, %v848_v40 }
  0x3f   : > { %v2816_v46 = vsel %vm1483_vm7, %v1491_v8, %v1493_v32  ;;  %v2402_v8 = vld [vmem:[%s3102_s1 + $0xe8] sm:$0xff]  }
  0x40   : > { %2178 = vmatpush3.bf16.msra.mxu1 %v2386_v34  ;;  %v703_v34 = vrot.slane %v2794_v27, 1 }
  0x41   : > { %2227 = vmatprep.subr.bf16.mxu1 %v2417_v1 }
  0x42   : > { %v706_v3 = vsel %vm551_vm3, %v703_v34, %v705_v18  ;;  %v2397_v18 = vld [vmem:[%s3102_s1 + $0xb8] sm:$0xff]  }
  0x43   : > { %2132 = vmatmul.mubr.msk.bf16.gmra.mrb[20].mxu1 %vm346_vm1, %v2489_v9  ;;  %v854_v9 = vshrl.u32 %v2794_v27, 16 }
  0x44   : > { %2135 = vmatprep.mubr.msk.bf16.mxu1 %vm2418_vm0, %v2417_v1 }
  0x45   : > { %2164 = vmatmul.mubr.msk.bf16.gmra.mrb[20].mxu0 %vm346_vm1, %v560_v2  ;;  %v856_v45 = vrot.slane %v854_v9, 1 }
  0x46   : > { %2167 = vmatprep.mubr.msk.bf16.mxu0 %vm2418_vm0, %v2417_v1 }
  0x47   : > { %v860_v57 = vor.u32 %v859_v48, %v856_v45 }
  0x49   : > { %v861_v52 = vsel %vm844_vm4, %v852_v37, %v860_v57  ;;  %v870_v58 = vsel %vm844_vm4, %v860_v57, %v2634_v39  ;;  %v2399_v39 = vld [vmem:[%s3102_s1 + $0xd8] sm:$0xff]  }
  0x4b   : > { %2136 = vmatmul.mubr.msk.bf16.gmra.mrb[24].mxu1 %vm346_vm1, %v2498_v13  ;;  %v702_v13 = vrot.slane %v2783_v17, 1 }
  0x4c   : > { %2139 = vmatprep.mubr.msk.bf16.mxu1 %vm2418_vm0, %v2417_v1 }
  0x4d   : > { %2168 = vmatmul.mubr.msk.bf16.gmra.mrb[24].mxu0 %vm346_vm1, %v562_v35 }
  0x4e   : > { %2207 = vmatprep.mubr.msk.bf16.mxu0 %vm2418_vm0, %v2417_v1 }
  0x53   : > { %2140 = vmatmul.mubr.msk.bf16.gmra.mrb[28].mxu1 %vm346_vm1, %v2521_v25  ;;  %v704_v25 = vsel %vm551_vm3, %v702_v13, %v703_v34 }
  0x54   : > { %2179 = vmatprep.mubr.msk.bf16.mxu1 %vm2418_vm0, %v2417_v1 }
  0x55   : > { %2208 = vmatmul.mubr.msk.bf16.vlgmr.msra.gmra.mrb[28].mxu0 %vm346_vm1, %v861_v52 }
  0x56   : > { %2256 = vmatpush3.bf16.msra.mxu0 %v2390_v22  ;;  %2211 = vmatprep.mubr.msk.bf16.mxu0 %vm2418_vm0, %v2417_v1 }
  0x57   : > { %2257 = vmatprep.subr.bf16.mxu0 %v2417_v1 }
  0x5a   : > { %2258 = vmatpush3.bf16.msra.mxu0 %v2393_v55 }
  0x5b   : > { %2180 = vmatmul.mubr.msk.bf16.vlgmr.msra.gmra.mrb[32].mxu1 %vm346_vm1, %v704_v25  ;;  %2259 = vmatprep.subr.bf16.mxu0 %v2417_v1 }
  0x5c   : > { %2228 = vmatpush3.bf16.msra.mxu1 %v2389_v0  ;;  %2183 = vmatprep.mubr.msk.bf16.mxu1 %vm2418_vm0, %v2417_v1 }
  0x5d   : > { %2212 = vmatmul.mubr.msk.bf16.gmra.mrb[32].mxu0 %vm346_vm1, %v870_v58  ;;  %2229 = vmatprep.subr.bf16.mxu1 %v2417_v1 }
  0x5e   : > { %2215 = vmatprep.mubr.msk.bf16.mxu0 %vm2418_vm0, %v2417_v1  ;;  %2260 = vmatpush3.bf16.msra.mxu0 %v2396_v60 }
  0x5f   : > { %2261 = vmatprep.subr.bf16.mxu0 %v2417_v1 }
  0x60   : > { %2230 = vmatpush3.bf16.msra.mxu1 %v2392_v61 }
  0x61   : > { %2231 = vmatprep.subr.bf16.mxu1 %v2417_v1 }
  0x62   : > { %2262 = vmatpush3.bf16.msra.mxu0 %v2399_v39 }
  0x63   : > { %2184 = vmatmul.mubr.msk.bf16.gmra.mrb[36].mxu1 %vm346_vm1, %v706_v3  ;;  %2311 = vmatprep.subr.bf16.mxu0 %v2417_v1 }
  0x64   : > { %2187 = vmatprep.mubr.msk.bf16.mxu1 %vm2418_vm0, %v2417_v1  ;;  %2232 = vmatpush3.bf16.msra.mxu1 %v2395_v4 }
  0x65   : > { %2216 = vmatmul.mubr.msk.bf16.gmra.mrb[36].mxu0 %vm346_vm1, %v2653_v56  ;;  %2233 = vmatprep.subr.bf16.mxu1 %v2417_v1  ;;  %v1031_v56 = vrot.slane %v2794_v27, 2 }
  0x66   : > { %2219 = vmatprep.mubr.msk.bf16.mxu0 %vm2418_vm0, %v2417_v1 }
  0x67   : > { %v1034_v23 = vsel %vm1029_vm5, %v1031_v56, %v1033_v19 }
  0x68   : > { %2234 = vmatpush3.bf16.msra.mxu1 %v2397_v18 }
  0x69   : > { %2283 = vmatprep.subr.bf16.mxu1 %v2417_v1 }
  0x6b   : > { %2188 = vmatmul.mubr.msk.bf16.gmra.mrb[40].mxu1 %vm346_vm1, %v2622_v29  ;;  %v2401_v29 = vld [vmem:[%s3102_s1 + $0x100] sm:$0xff]  }
  0x6c   : > { %2191 = vmatprep.mubr.msk.bf16.mxu1 %vm2418_vm0, %v2417_v1 }
  0x6d   : > { %2220 = vmatmul.mubr.msk.bf16.gmra.mrb[40].mxu0 %vm346_vm1, %v2666_v7  ;;  %v2403_v7 = vld [vmem:[%s3102_s1 + $0x108] sm:$0xff]  }
  0x6e   : > { %2223 = vmatprep.mubr.msk.bf16.mxu0 %vm2418_vm0, %v2417_v1 }
  0x73   : > { %2192 = vmatmul.mubr.msk.bf16.gmra.mrb[44].mxu1 %vm346_vm1, %v2637_v41  ;;  %v1030_v41 = vrot.slane %v2783_v17, 2  ;;  %v2408_v17 = vld [vmem:[%s3102_s1 + $0x118] sm:$0xff]  }
  0x74   : > { %2195 = vmatprep.mubr.msk.bf16.mxu1 %vm2418_vm0, %v2417_v1 }
  0x75   : > { %2224 = vmatmul.mubr.msk.bf16.gmra.mrb[44].mxu0 %vm346_vm1, %v2686_v16  ;;  %v2400_v16 = vld [vmem:[%s3102_s1 + $0xe0] sm:$0xff]  }
  0x76   : > { %2263 = vmatprep.mubr.msk.bf16.mxu0 %vm2418_vm0, %v2417_v1 }
  0x7b   : > { %2196 = vmatmul.mubr.msk.bf16.gmra.mrb[48].mxu1 %vm346_vm1, %v2646_v49  ;;  %v1032_v49 = vsel %vm1029_vm5, %v1030_v41, %v1031_v56 }
  0x7c   : > { %2235 = vmatprep.mubr.msk.bf16.mxu1 %vm2418_vm0, %v2417_v1 }
  0x7d   : > { %2264 = vmatmul.mubr.msk.bf16.vlgmr.msra.gmra.mrb[48].mxu0 %vm346_vm1, %v2669_v10  ;;  %v2405_v10 = vld [vmem:[%s3102_s1 + $0x110] sm:$0xff]  }
  0x7e   : > { %2312 = vmatpush3.bf16.msra.mxu0 %v2401_v29  ;;  %2267 = vmatprep.mubr.msk.bf16.mxu0 %vm2418_vm0, %v2417_v1 }
  0x7f   : > { %2313 = vmatprep.subr.bf16.mxu0 %v2417_v1 }
  0x82   : > { %2314 = vmatpush3.bf16.msra.mxu0 %v2403_v7 }
  0x83   : > { %2236 = vmatmul.mubr.msk.bf16.vlgmr.msra.gmra.mrb[52].mxu1 %vm346_vm1, %v1032_v49  ;;  %2315 = vmatprep.subr.bf16.mxu0 %v2417_v1 }
  0x84   : > { %2284 = vmatpush3.bf16.msra.mxu1 %v2400_v16  ;;  %2239 = vmatprep.mubr.msk.bf16.mxu1 %vm2418_vm0, %v2417_v1 }
  0x85   : > { %2268 = vmatmul.mubr.msk.bf16.gmra.mrb[52].mxu0 %vm346_vm1, %v2679_v6  ;;  %2285 = vmatprep.subr.bf16.mxu1 %v2417_v1  ;;  %v2404_v6 = vld [vmem:[%s3102_s1 + $0xf0] sm:$0xff]  }
  0x86   : > { %2271 = vmatprep.mubr.msk.bf16.mxu0 %vm2418_vm0, %v2417_v1  ;;  %2316 = vmatpush3.bf16.msra.mxu0 %v2405_v10 }
  0x87   : > { %2317 = vmatprep.subr.bf16.mxu0 %v2417_v1 }
  0x88   : > { %2286 = vmatpush3.bf16.msra.mxu1 %v2402_v8 }
  0x89   : > { %2287 = vmatprep.subr.bf16.mxu1 %v2417_v1 }
  0x8a   : > { %2318 = vmatpush3.bf16.msra.mxu0 %v2408_v17 }
  0x8b   : > { %2240 = vmatmul.mubr.msk.bf16.gmra.mrb[56].mxu1 %vm346_vm1, %v1034_v23 }
  0x8c   : > { %2243 = vmatprep.mubr.msk.bf16.mxu1 %vm2418_vm0, %v2417_v1  ;;  %2288 = vmatpush3.bf16.msra.mxu1 %v2404_v6 }
  0x8d   : > { %2272 = vmatmul.mubr.msk.bf16.gmra.mrb[56].mxu0 %vm346_vm1, %v2696_v51  ;;  %2289 = vmatprep.subr.bf16.mxu1 %v2417_v1 }
  0x8e   : > { %2275 = vmatprep.mubr.msk.bf16.mxu0 %vm2418_vm0, %v2417_v1 }
  0x90   : > { %2290 = vmatpush3.bf16.msra.mxu1 %v2406_v12 }
  0x93   : > { %2244 = vmatmul.mubr.msk.bf16.gmra.mrb[60].mxu1 %vm346_vm1, %v2693_v26 }
  0x94   : > { %2247 = vmatprep.mubr.msk.bf16.mxu1 %vm2418_vm0, %v2417_v1 }
  0x95   : > { %2276 = vmatmul.mubr.msk.bf16.gmra.mrb[60].mxu0 %vm346_vm1, %v2714_v36 }
  0x96   : > { %2279 = vmatprep.mubr.msk.bf16.mxu0 %vm2418_vm0, %v2417_v1 }
  0x9b   : > { %2248 = vmatmul.mubr.msk.bf16.gmra.mrb[64].mxu1 %vm346_vm1, %v2711_v42 }
  0x9c   : > { %2251 = vmatprep.mubr.msk.bf16.mxu1 %vm2418_vm0, %v2417_v1 }
  0x9d   : > { %2280 = vmatmul.mubr.msk.bf16.gmra.mrb[64].mxu0 %vm346_vm1, %v2749_v53 }
  0x9e   : > { %2319 = vmatprep.mubr.msk.bf16.mxu0 %vm2418_vm0, %v2417_v1 }
  0xa3   : > { %2252 = vmatmul.mubr.msk.bf16.gmra.mrb[68].mxu1 %vm346_vm1, %v2723_v21 }
  0xa4   : > { %2291 = vmatprep.mubr.msk.bf16.mxu1 %vm2418_vm0, %v2417_v1 }
  0xa5   : > { %2320 = vmatmul.mubr.msk.bf16.vlgmr.msra.gmra.mrb[68].mxu0 %vm346_vm1, %v2752_v33 }
  0xa6   : > { %2323 = vmatprep.mubr.msk.bf16.mxu0 %vm2418_vm0, %v2417_v1 }
  0xab   : > { %2292 = vmatmul.mubr.msk.bf16.vlgmr.msra.gmra.mrb[72].mxu1 %vm346_vm1, %v2733_v43 }
  0xac   : > { %2295 = vmatprep.mubr.msk.bf16.mxu1 %vm2418_vm0, %v2417_v1 }
  0xad   : > { %2324 = vmatmul.mubr.msk.bf16.gmra.mrb[72].mxu0 %vm346_vm1, %v2761_v20 }
  0xae   : > { %2327 = vmatprep.mubr.msk.bf16.mxu0 %vm2418_vm0, %v2417_v1 }
  0xb3   : > { %2296 = vmatmul.mubr.msk.bf16.gmra.mrb[76].mxu1 %vm346_vm1, %v2775_v62 }
  0xb4   : > { %2299 = vmatprep.mubr.msk.bf16.mxu1 %vm2418_vm0, %v2417_v1 }
  0xb5   : > { %2328 = vmatmul.mubr.msk.bf16.gmra.mrb[76].mxu0 %vm346_vm1, %v2767_v59 }
  0xb6   : > { %2331 = vmatprep.mubr.msk.bf16.mxu0 %vm2418_vm0, %v2417_v1 }
  0xbb   : > { %2300 = vmatmul.mubr.msk.bf16.gmra.mrb[80].mxu1 %vm346_vm1, %v2778_v63 }
  0xbc   : > { %2303 = vmatprep.mubr.msk.bf16.mxu1 %vm2418_vm0, %v2417_v1 }
  0xbd   : > { %2332 = vmatmul.mubr.msk.bf16.gmra.mrb[80].mxu0 %vm346_vm1, %v2787_v24 }
  0xbe   : > { %2335 = vmatprep.mubr.msk.bf16.mxu0 %vm2418_vm0, %v2417_v1 }
  0xc3   : > { %2304 = vmatmul.mubr.msk.bf16.gmra.mrb[84].mxu1 %vm346_vm1, %v2799_v11 }
  0xc4   : > { %2307 = vmatprep.mubr.msk.bf16.mxu1 %vm2418_vm0, %v2417_v1 }
  0xc5   : > { %2336 = vmatmul.mubr.msk.bf16.gmra.mrb[84].mxu0 %vm346_vm1, %v2816_v46 }
  0xcb   : > { %2308 = vmatmul.mubr.msk.bf16.gmra.mrb[88].mxu1 %vm346_vm1, %v2819_v50 }
  0xee   : > { %v412_v19 = vpop.f32.mrb[0].mxu1 }
  0xef   : > { %v2105_v26 = vpop.f32.mrb[1].mxu1 }
  0xf0   : > { %v415_v51 = vpop.f32.mrb[2].mxu1  ;;  %v396_v42 = vpop.f32.mrb[0].mxu0 }
  0xf1   : > { %v2106_v36 = vpop.f32.mrb[3].mxu1  ;;  %v2097_v21 = vpop.f32.mrb[1].mxu0 }
  0xf2   : > { %v399_v43 = vpop.f32.mrb[2].mxu0 }
  0xf3   : > { %v2098_v53 = vpop.f32.mrb[3].mxu0 }
  0xf6   : > { %v420_v33 = vpop.f32.mrb[4].mxu1 }
  0xf7   : > { %v2109_v20 = vpop.f32.mrb[5].mxu1 }
  0xf8   : > { %v423_v59 = vpop.f32.mrb[6].mxu1  ;;  %v404_v62 = vpop.f32.mrb[4].mxu0 }
  0xf9   : > { %v2110_v63 = vpop.f32.mrb[7].mxu1  ;;  %v2101_v1 = vpop.f32.mrb[5].mxu0 }
  0xfa   : > { %v407_v24 = vpop.f32.mrb[6].mxu0 }
  0xfb   : > { %v2102_v2 = vpop.f32.mrb[7].mxu0 }
  0xfe   : > { %v428_v27 = vpop.f32.mrb[8].mxu1 }
  0xff   : > { %v2113_v11 = vpop.f32.mrb[9].mxu1 }
 0x100   : > { %v431_v14 = vpop.f32.mrb[10].mxu1  ;;  %v636_v47 = vpop.f32.mrb[8].mxu0 }
 0x101   : > { %v2114_v54 = vpop.f32.mrb[11].mxu1  ;;  %v2153_v5 = vpop.f32.mrb[9].mxu0 }
 0x102   : > { %v639_v15 = vpop.f32.mrb[10].mxu0 }
 0x103   : > { %v2154_v9 = vpop.f32.mrb[11].mxu0 }
 0x106   : > { %v503_v28 = vpop.f32.mrb[12].mxu1 }
 0x107   : > { %v504_v30 = vadd.f32 %v503_v28, %v396_v42  ;;  %v2125_v31 = vpop.f32.mrb[13].mxu1 }
 0x108   : > { %v506_v32 = vpop.f32.mrb[14].mxu1  ;;  %v644_v38 = vpop.f32.mrb[12].mxu0 }
 0x109   : > { %v675_v35 = vadd.f32 %v636_v47, %v504_v30  ;;  %v507_v40 = vadd.f32 %v506_v32, %v399_v43  ;;  %v2126_v46 = vpop.f32.mrb[15].mxu1  ;;  %v2157_v44 = vpop.f32.mrb[13].mxu0 }
 0x10a   : > { %v647_v45 = vpop.f32.mrb[14].mxu0 }
 0x10b   : > { %v676_v48 = vadd.f32 %v639_v15, %v507_v40  ;;  %v2158_v50 = vpop.f32.mrb[15].mxu0 }
 0x10e   : > { %v511_v37 = vpop.f32.mrb[16].mxu1 }
 0x10f   : > { %v512_v57 = vadd.f32 %v511_v37, %v404_v62  ;;  %v2129_v52 = vpop.f32.mrb[17].mxu1 }
 0x110   : > { %v514_v22 = vpop.f32.mrb[18].mxu1  ;;  %v652_v13 = vpop.f32.mrb[16].mxu0 }
 0x111   : > { %v677_v34 = vadd.f32 %v644_v38, %v512_v57  ;;  %v515_v55 = vadd.f32 %v514_v22, %v407_v24  ;;  %v2130_v25 = vpop.f32.mrb[19].mxu1  ;;  %v2161_v0 = vpop.f32.mrb[17].mxu0 }
 0x112   : > { %v655_v58 = vpop.f32.mrb[18].mxu0 }
 0x113   : > { %v678_v60 = vadd.f32 %v647_v45, %v515_v55  ;;  %v2162_v61 = vpop.f32.mrb[19].mxu0 }
 0x116   : > { %v519_v39 = vpop.f32.mrb[20].mxu1 }
 0x117   : > { %v520_v3 = vadd.f32 %v519_v39, %v412_v19  ;;  %v2133_v4 = vpop.f32.mrb[21].mxu1 }
 0x118   : > { %v522_v18 = vpop.f32.mrb[22].mxu1  ;;  %v660_v29 = vpop.f32.mrb[20].mxu0 }
 0x119   : > { %v679_v41 = vadd.f32 %v652_v13, %v520_v3  ;;  %v523_v56 = vadd.f32 %v522_v18, %v415_v51  ;;  %v2134_v7 = vpop.f32.mrb[23].mxu1  ;;  %v2165_v49 = vpop.f32.mrb[21].mxu0 }
 0x11a   : > { %v663_v16 = vpop.f32.mrb[22].mxu0 }
 0x11b   : > { %v680_v10 = vadd.f32 %v655_v58, %v523_v56  ;;  %v2166_v8 = vpop.f32.mrb[23].mxu0 }
 0x11e   : > { %v527_v17 = vpop.f32.mrb[24].mxu1 }
 0x11f   : > { %v528_v23 = vadd.f32 %v527_v17, %v420_v33  ;;  %v2137_v6 = vpop.f32.mrb[25].mxu1 }
 0x120   : > { %v530_v12 = vpop.f32.mrb[26].mxu1  ;;  %v668_v26 = vpop.f32.mrb[24].mxu0 }
 0x121   : > { %v681_v42 = vadd.f32 %v660_v29, %v528_v23  ;;  %v531_v36 = vadd.f32 %v530_v12, %v423_v59  ;;  %v2138_v21 = vpop.f32.mrb[27].mxu1  ;;  %v2169_v43 = vpop.f32.mrb[25].mxu0 }
 0x122   : > { %v671_v19 = vpop.f32.mrb[26].mxu0 }
 0x123   : > { %v682_v53 = vadd.f32 %v663_v16, %v531_v36  ;;  %v2170_v20 = vpop.f32.mrb[27].mxu0 }
 0x126   : > { %v535_v62 = vpop.f32.mrb[28].mxu1 }
 0x127   : > { %v536_v63 = vadd.f32 %v535_v62, %v428_v27  ;;  %v2141_v51 = vpop.f32.mrb[29].mxu1 }
 0x128   : > { %v538_v1 = vpop.f32.mrb[30].mxu1  ;;  %v971_v24 = vpop.f32.mrb[28].mxu0 }
 0x129   : > { %v683_v2 = vadd.f32 %v668_v26, %v536_v63  ;;  %v539_v11 = vadd.f32 %v538_v1, %v431_v14  ;;  %v2142_v47 = vpop.f32.mrb[31].mxu1  ;;  %v2209_v54 = vpop.f32.mrb[29].mxu0 }
 0x12a   : > { %v974_v33 = vpop.f32.mrb[30].mxu0 }
 0x12b   : > { %v684_v5 = vadd.f32 %v671_v19, %v539_v11  ;;  %v2210_v15 = vpop.f32.mrb[31].mxu0 }
 0x12e   : > { %v786_v9 = vpop.f32.mrb[32].mxu1 }
 0x12f   : > { %v825_v28 = vadd.f32 %v786_v9, %v675_v35  ;;  %v2181_v59 = vpop.f32.mrb[33].mxu1 }
 0x130   : > { %v789_v30 = vpop.f32.mrb[34].mxu1  ;;  %v979_v31 = vpop.f32.mrb[32].mxu0 }
 0x131   : > { %v1010_v32 = vadd.f32 %v971_v24, %v825_v28  ;;  %v826_v38 = vadd.f32 %v789_v30, %v676_v48  ;;  %v2182_v40 = vpop.f32.mrb[35].mxu1  ;;  %v2213_v46 = vpop.f32.mrb[33].mxu0 }
 0x132   : > { %v982_v27 = vpop.f32.mrb[34].mxu0 }
 0x133   : > { %v1011_v44 = vadd.f32 %v974_v33, %v826_v38  ;;  %v2214_v45 = vpop.f32.mrb[35].mxu0 }
 0x136   : > { %v794_v50 = vpop.f32.mrb[36].mxu1 }
 0x137   : > { %v827_v37 = vadd.f32 %v794_v50, %v677_v34  ;;  %v2185_v14 = vpop.f32.mrb[37].mxu1 }
 0x138   : > { %v797_v57 = vpop.f32.mrb[38].mxu1  ;;  %v987_v52 = vpop.f32.mrb[36].mxu0 }
 0x139   : > { %v1012_v22 = vadd.f32 %v979_v31, %v827_v37  ;;  %v828_v13 = vadd.f32 %v797_v57, %v678_v60  ;;  %v2186_v55 = vpop.f32.mrb[39].mxu1  ;;  %v2217_v25 = vpop.f32.mrb[37].mxu0 }
 0x13a   : > { %v990_v35 = vpop.f32.mrb[38].mxu0 }
 0x13b   : > { %v1013_v0 = vadd.f32 %v982_v27, %v828_v13  ;;  %v2218_v58 = vpop.f32.mrb[39].mxu0 }
 0x13e   : > { %v802_v61 = vpop.f32.mrb[40].mxu1 }
 0x13f   : > { %v829_v39 = vadd.f32 %v802_v61, %v679_v41  ;;  %v2189_v48 = vpop.f32.mrb[41].mxu1 }
 0x140   : > { %v805_v3 = vpop.f32.mrb[42].mxu1  ;;  %v995_v4 = vpop.f32.mrb[40].mxu0 }
 0x141   : > { %v1014_v18 = vadd.f32 %v987_v52, %v829_v39  ;;  %v830_v29 = vadd.f32 %v805_v3, %v680_v10  ;;  %v2190_v56 = vpop.f32.mrb[43].mxu1  ;;  %v2221_v7 = vpop.f32.mrb[41].mxu0 }
 0x142   : > { %v998_v34 = vpop.f32.mrb[42].mxu0 }
 0x143   : > { %v1015_v49 = vadd.f32 %v990_v35, %v830_v29  ;;  %v2222_v16 = vpop.f32.mrb[43].mxu0 }
 0x146   : > { %v810_v8 = vpop.f32.mrb[44].mxu1 }
 0x147   : > { %v831_v17 = vadd.f32 %v810_v8, %v681_v42  ;;  %v2193_v60 = vpop.f32.mrb[45].mxu1 }
 0x148   : > { %v813_v23 = vpop.f32.mrb[46].mxu1  ;;  %v1003_v6 = vpop.f32.mrb[44].mxu0 }
 0x149   : > { %v1016_v12 = vadd.f32 %v995_v4, %v831_v17  ;;  %v832_v26 = vadd.f32 %v813_v23, %v682_v53  ;;  %v2194_v36 = vpop.f32.mrb[47].mxu1  ;;  %v2225_v21 = vpop.f32.mrb[45].mxu0 }
 0x14a   : > { %v1006_v41 = vpop.f32.mrb[46].mxu0 }
 0x14b   : > { %v1017_v43 = vadd.f32 %v998_v34, %v832_v26  ;;  %v2226_v19 = vpop.f32.mrb[47].mxu0 }
 0x14e   : > { %v818_v20 = vpop.f32.mrb[48].mxu1 }
 0x14f   : > { %v833_v62 = vadd.f32 %v818_v20, %v683_v2  ;;  %v2197_v10 = vpop.f32.mrb[49].mxu1 }
 0x150   : > { %v821_v63 = vpop.f32.mrb[50].mxu1  ;;  %v1260_v51 = vpop.f32.mrb[48].mxu0 }
 0x151   : > { %v1018_v1 = vadd.f32 %v1003_v6, %v833_v62  ;;  %v834_v24 = vadd.f32 %v821_v63, %v684_v5  ;;  %v2198_v11 = vpop.f32.mrb[51].mxu1  ;;  %v2265_v47 = vpop.f32.mrb[49].mxu0 }
 0x152   : > { %v1263_v42 = vpop.f32.mrb[50].mxu0 }
 0x153   : > { %v1019_v54 = vadd.f32 %v1006_v41, %v834_v24  ;;  %v2266_v33 = vpop.f32.mrb[51].mxu0 }
 0x156   : > { %v1114_v15 = vpop.f32.mrb[52].mxu1 }
 0x157   : > { %v1153_v9 = vadd.f32 %v1114_v15, %v1010_v32  ;;  %v2237_v53 = vpop.f32.mrb[53].mxu1 }
 0x158   : > { %v1117_v28 = vpop.f32.mrb[54].mxu1  ;;  %v1268_v59 = vpop.f32.mrb[52].mxu0 }
 0x159   : > { %v1299_v30 = vadd.f32 %v1260_v51, %v1153_v9  ;;  %v1154_v31 = vadd.f32 %v1117_v28, %v1011_v44  ;;  %v2238_v38 = vpop.f32.mrb[55].mxu1  ;;  %v2269_v40 = vpop.f32.mrb[53].mxu0 }
 0x15a   : > { %v1271_v2 = vpop.f32.mrb[54].mxu0 }
 0x15b   : > { %v1300_v46 = vadd.f32 %v1263_v42, %v1154_v31  ;;  %v2270_v27 = vpop.f32.mrb[55].mxu0  ;;  %v1983_v42 = vld [vmem:[%s3041_s24] sm:$0xff]  }
 0x15e   : > { %v1122_v45 = vpop.f32.mrb[56].mxu1 }
 0x15f   : > { %v1155_v50 = vadd.f32 %v1122_v45, %v1012_v22  ;;  %v2241_v5 = vpop.f32.mrb[57].mxu1 }
 0x160   : > { %v1125_v37 = vpop.f32.mrb[58].mxu1  ;;  %v1276_v14 = vpop.f32.mrb[56].mxu0 }
 0x161   : > { %v3019_v57 = vadd.f32 %v1268_v59, %v1155_v50  ;;  %v1156_v52 = vadd.f32 %v1125_v37, %v1013_v0  ;;  %v2242_v13 = vpop.f32.mrb[59].mxu1  ;;  %v2273_v32 = vpop.f32.mrb[57].mxu0  ;;  %v1984_v59 = vunpack.c.l.bf16 %v1983_v42 }
 0x162   : > { %v1279_v55 = vpop.f32.mrb[58].mxu0 }
 0x163   : > { %v3021_v25 = vadd.f32 %v1271_v2, %v1156_v52  ;;  %v2274_v35 = vpop.f32.mrb[59].mxu0 }
 0x166   : > { %v1130_v44 = vpop.f32.mrb[60].mxu1 }
 0x167   : > { %v1157_v58 = vadd.f32 %v1130_v44, %v1014_v18  ;;  %v2245_v61 = vpop.f32.mrb[61].mxu1 }
 0x168   : > { %v1133_v39 = vpop.f32.mrb[62].mxu1  ;;  %v1284_v48 = vpop.f32.mrb[60].mxu0 }
 0x169   : > { %v3023_v3 = vadd.f32 %v1276_v14, %v1157_v58  ;;  %v1158_v22 = vadd.f32 %v1133_v39, %v1015_v49  ;;  %v2246_v4 = vpop.f32.mrb[63].mxu1  ;;  %v2277_v29 = vpop.f32.mrb[61].mxu0  ;;  %v2002_v14 = vld [vmem:[%s3041_s24 + $0x8] sm:$0xff]  }
 0x16a   : > { %v1287_v56 = vpop.f32.mrb[62].mxu0 }
 0x16b   : > { %v3025_v7 = vadd.f32 %v1279_v55, %v1158_v22  ;;  %v2278_v0 = vpop.f32.mrb[63].mxu0 }
 0x16e   : > { %v1138_v34 = vpop.f32.mrb[64].mxu1 }
 0x16f   : > { %v1159_v16 = vadd.f32 %v1138_v34, %v1016_v12  ;;  %v2249_v8 = vpop.f32.mrb[65].mxu1 }
 0x170   : > { %v1141_v17 = vpop.f32.mrb[66].mxu1  ;;  %v1292_v60 = vpop.f32.mrb[64].mxu0 }
 0x171   : > { %v3027_v23 = vadd.f32 %v1284_v48, %v1159_v16  ;;  %v1160_v18 = vadd.f32 %v1141_v17, %v1017_v43  ;;  %v2250_v6 = vpop.f32.mrb[67].mxu1  ;;  %v2281_v26 = vpop.f32.mrb[65].mxu0  ;;  %v1989_v16 = vunpack.c.h.bf16 %v2002_v14 }
 0x172   : > { %v1295_v36 = vpop.f32.mrb[66].mxu0 }
 0x173   : > { %v3029_v49 = vadd.f32 %v1287_v56, %v1160_v18  ;;  %v2282_v21 = vpop.f32.mrb[67].mxu0  ;;  %v2003_v18 = vld [vmem:[%s3041_s24 + $0x10] sm:$0xff]  }
 0x176   : > { %v1146_v41 = vpop.f32.mrb[68].mxu1 }
 0x177   : > { %v1161_v19 = vadd.f32 %v1146_v41, %v1018_v1  ;;  %v2253_v20 = vpop.f32.mrb[69].mxu1  ;;  %v1992_v41 = vunpack.c.l.bf16 %v2003_v18 }
 0x178   : > { %v1149_v62 = vpop.f32.mrb[70].mxu1  ;;  %v1568_v10 = vpop.f32.mrb[68].mxu0 }
 0x179   : > { %v3032_v12 = vadd.f32 %v1292_v60, %v1161_v19  ;;  %v1162_v63 = vadd.f32 %v1149_v62, %v1019_v54  ;;  %v2254_v51 = vpop.f32.mrb[71].mxu1  ;;  %v2321_v24 = vpop.f32.mrb[69].mxu0  ;;  %v3047_v54 = vld [vmem:[%s3103_s2] ss:$0 sm:$0xff] }
 0x17a   : > { %v1571_v11 = vpop.f32.mrb[70].mxu0 }
 0x17b   : > { %v3034_v43 = vadd.f32 %v1295_v36, %v1162_v63  ;;  %v2322_v1 = vpop.f32.mrb[71].mxu0 }
 0x17e   : > { %v1425_v47 = vpop.f32.mrb[72].mxu1 }
 0x17f   : > { %v1464_v33 = vadd.f32 %v1425_v47, %v1299_v30  ;;  %v2293_v15 = vpop.f32.mrb[73].mxu1  ;;  %v1985_v30 = vunpack.c.h.bf16 %v1983_v42 }
 0x180   : > { %v1428_v9 = vpop.f32.mrb[74].mxu1  ;;  %v1576_v53 = vpop.f32.mrb[72].mxu0 }
 0x181   : > { %v1607_v28 = vadd.f32 %v1568_v10, %v1464_v33  ;;  %v1465_v31 = vadd.f32 %v1428_v9, %v1300_v46  ;;  %v2294_v38 = vpop.f32.mrb[75].mxu1  ;;  %v2325_v40 = vpop.f32.mrb[73].mxu0  ;;  %v1988_v46 = vunpack.c.l.bf16 %v2002_v14  ;;  %v1993_v33 = vunpack.c.h.bf16 %v2003_v18 }
 0x182   : > { %v1579_v2 = vpop.f32.mrb[74].mxu0 }
 0x183   : > { %v1624_v27 = vadd.f32 %v3047_v54, %v1607_v28  ;;  %v1608_v45 = vadd.f32 %v1571_v11, %v1465_v31  ;;  %v2326_v50 = vpop.f32.mrb[75].mxu0  ;;  %v2004_v28 = vld [vmem:[%s3041_s24 + $0x18] sm:$0xff]  }
 0x185   : > { %v1654_v5 = vadd.f32 %v1984_v59, %v1624_v27  ;;  %v1625_v37 = vadd.f32 %v3047_v54, %v1608_v45 }
 0x186   : > { %v1433_v52 = vpop.f32.mrb[76].mxu1 }
 0x187   : > { %v1664_v13 = vmax.f32 %v1654_v5, 0.0  ;;  %v1655_v32 = vadd.f32 %v1985_v30, %v1625_v37  ;;  %v1466_v55 = vadd.f32 %v1433_v52, %v3019_v57  ;;  %v2297_v35 = vpop.f32.mrb[77].mxu1 }
 0x188   : > { %v1436_v44 = vpop.f32.mrb[78].mxu1  ;;  %v1584_v58 = vpop.f32.mrb[76].mxu0  ;;  %v1997_v35 = vunpack.c.h.bf16 %v2004_v28 }
 0x189   : > { %v1972_v61 = vpack.c.bf16 %v1664_v13, %v1664_v13  ;;  %v1665_v39 = vmax.f32 %v1655_v32, 0.0  ;;  %v1609_v48 = vadd.f32 %v1576_v53, %v1466_v55  ;;  %v1467_v22 = vadd.f32 %v1436_v44, %v3021_v25  ;;  %v2298_v57 = vpop.f32.mrb[79].mxu1  ;;  %v2329_v4 = vpop.f32.mrb[77].mxu0 }
 0x18a   : > { %v1587_v29 = vpop.f32.mrb[78].mxu0 }
 0x18b   : > { %1715 = vst.msk [vmem:[%s3058_s30] sm:$0xf] %vm1714_vm8, %v1972_v61  ;;  %v1973_v56 = vpack.c.bf16 %v1665_v39, %v1665_v39  ;;  %v1626_v0 = vadd.f32 %v3047_v54, %v1609_v48  ;;  %v1610_v34 = vadd.f32 %v1579_v2, %v1467_v22  ;;  %v2330_v8 = vpop.f32.mrb[79].mxu0  ;;  %v1996_v2 = vunpack.c.l.bf16 %v2004_v28  ;;  %v2005_v61 = vld [vmem:[%s3041_s24 + $0x20] sm:$0xff]  }
 0x18c   : > { %v2000_v4 = vunpack.c.l.bf16 %v2005_v61 }
 0x18d   : > { %1716 = vst.msk [vmem:[%s3058_s30 + $0x4] sm:$0xf] %vm1714_vm8, %v1973_v56  ;;  %v1656_v17 = vadd.f32 %v1988_v46, %v1626_v0  ;;  %v1627_v60 = vadd.f32 %v3047_v54, %v1610_v34 }
 0x18e   : > { %v1441_v6 = vpop.f32.mrb[80].mxu1 }
 0x18f   : > { %v1666_v25 = vmax.f32 %v1656_v17, 0.0  ;;  %v1657_v26 = vadd.f32 %v1989_v16, %v1627_v60  ;;  %v1468_v36 = vadd.f32 %v1441_v6, %v3023_v3  ;;  %v2301_v21 = vpop.f32.mrb[81].mxu1  ;;  %v2001_v6 = vunpack.c.h.bf16 %v2005_v61 }
 0x190   : > { %v1444_v19 = vpop.f32.mrb[82].mxu1  ;;  %v1592_v20 = vpop.f32.mrb[80].mxu0 }
 0x191   : > { %v1974_v62 = vpack.c.bf16 %v1666_v25, %v1666_v25  ;;  %v1667_v10 = vmax.f32 %v1657_v26, 0.0  ;;  %v1611_v63 = vadd.f32 %v1584_v58, %v1468_v36  ;;  %v1469_v51 = vadd.f32 %v1444_v19, %v3025_v7  ;;  %v2302_v24 = vpop.f32.mrb[83].mxu1  ;;  %v2333_v11 = vpop.f32.mrb[81].mxu0 }
 0x192   : > { %v1595_v1 = vpop.f32.mrb[82].mxu0 }
 0x193   : > { %1717 = vst.msk [vmem:[%s3058_s30 + $0x8] sm:$0xf] %vm1714_vm8, %v1974_v62  ;;  %v1975_v47 = vpack.c.bf16 %v1667_v10, %v1667_v10  ;;  %v1628_v42 = vadd.f32 %v3047_v54, %v1611_v63  ;;  %v1612_v3 = vadd.f32 %v1587_v29, %v1469_v51  ;;  %v2334_v15 = vpop.f32.mrb[83].mxu0 }
 0x195   : > { %1718 = vst.msk [vmem:[%s3058_s30 + $0xc] sm:$0xf] %vm1714_vm8, %v1975_v47  ;;  %v1658_v9 = vadd.f32 %v1992_v41, %v1628_v42  ;;  %v1629_v53 = vadd.f32 %v3047_v54, %v1612_v3 }
 0x196   : > { %v1449_v59 = vpop.f32.mrb[84].mxu1 }
 0x197   : > { %v1668_v7 = vmax.f32 %v1658_v9, 0.0  ;;  %v1659_v31 = vadd.f32 %v1993_v33, %v1629_v53  ;;  %v1470_v38 = vadd.f32 %v1449_v59, %v3027_v23  ;;  %v2305_v40 = vpop.f32.mrb[85].mxu1 }
 0x198   : > { %v1452_v27 = vpop.f32.mrb[86].mxu1  ;;  %v1600_v45 = vpop.f32.mrb[84].mxu0 }
 0x199   : > { %v1976_v30 = vpack.c.bf16 %v1668_v7, %v1668_v7  ;;  %v1669_v50 = vmax.f32 %v1659_v31, 0.0  ;;  %v1613_v5 = vadd.f32 %v1592_v20, %v1470_v38  ;;  %v1471_v37 = vadd.f32 %v1452_v27, %v3029_v49  ;;  %v2306_v14 = vpop.f32.mrb[87].mxu1  ;;  %v2337_v52 = vpop.f32.mrb[85].mxu0 }
 0x19a   : > { %v1603_v13 = vpop.f32.mrb[86].mxu0 }
 0x19b   : > { %1719 = vst.msk [vmem:[%s3058_s30 + $0x10] sm:$0xf] %vm1714_vm8, %v1976_v30  ;;  %v1977_v32 = vpack.c.bf16 %v1669_v50, %v1669_v50  ;;  %v1630_v55 = vadd.f32 %v3047_v54, %v1613_v5  ;;  %v1614_v23 = vadd.f32 %v1595_v1, %v1471_v37  ;;  %v2338_v46 = vpop.f32.mrb[87].mxu0 }
 0x19d   : > { %1720 = vst.msk [vmem:[%s3058_s30 + $0x14] sm:$0xf] %vm1714_vm8, %v1977_v32  ;;  %v1660_v44 = vadd.f32 %v1996_v2, %v1630_v55  ;;  %v1631_v58 = vadd.f32 %v3047_v54, %v1614_v23 }
 0x19e   : > { %v1457_v39 = vpop.f32.mrb[88].mxu1 }
 0x19f   : > { %v1670_v49 = vmax.f32 %v1660_v44, 0.0  ;;  %v1661_v48 = vadd.f32 %v1997_v35, %v1631_v58  ;;  %v1472_v22 = vadd.f32 %v1457_v39, %v3032_v12  ;;  %v2309_v57 = vpop.f32.mrb[89].mxu1 }
 0x1a0   : > { %v1460_v29 = vpop.f32.mrb[90].mxu1 }
 0x1a1   : > { %v1978_v56 = vpack.c.bf16 %v1670_v49, %v1670_v49  ;;  %v1671_v0 = vmax.f32 %v1661_v48, 0.0  ;;  %v1615_v34 = vadd.f32 %v1600_v45, %v1472_v22  ;;  %v1473_v16 = vadd.f32 %v1460_v29, %v3034_v43  ;;  %v2310_v8 = vpop.f32.mrb[91].mxu1 }
 0x1a3   : > { %1721 = vst.msk [vmem:[%s3058_s30 + $0x18] sm:$0xf] %vm1714_vm8, %v1978_v56  ;;  %v1979_v17 = vpack.c.bf16 %v1671_v0, %v1671_v0  ;;  %v1632_v60 = vadd.f32 %v3047_v54, %v1615_v34  ;;  %v1616_v18 = vadd.f32 %v1603_v13, %v1473_v16 }
 0x1a5   : > { %1722 = vst.msk [vmem:[%s3058_s30 + $0x1c] sm:$0xf] %vm1714_vm8, %v1979_v17  ;;  %v1662_v12 = vadd.f32 %v2000_v4, %v1632_v60  ;;  %v1633_v25 = vadd.f32 %v3047_v54, %v1616_v18 }
 0x1a7   : > { %v1672_v26 = vmax.f32 %v1662_v12, 0.0  ;;  %v1663_v36 = vadd.f32 %v2001_v6, %v1633_v25 }
 0x1a9   : > { %v1980_v21 = vpack.c.bf16 %v1672_v26, %v1672_v26  ;;  %v1673_v41 = vmax.f32 %v1663_v36, 0.0 }
 0x1ab   : > { %1723 = vst.msk [vmem:[%s3058_s30 + $0x20] sm:$0xf] %vm1714_vm8, %v1980_v21  ;;  %v1981_v43 = vpack.c.bf16 %v1673_v41, %v1673_v41 }
 0x1ad   : > { %1724 = vst.msk [vmem:[%s3058_s30 + $0x24] sm:$0xf] %vm1714_vm8, %v1981_v43 }
 0x1ae PF: > { %s14_s15 = sadd.s32 1, %s2415_s15  }
 0x1af   : > { %p11_p4 = scmp.ge.s32.totalorder %s14_s15, 6  }
 0x1b1   :  { %13 = sbr.rel (!%p11_p4) target bundleno = 1 (0x1), region = 77 }

// kernel: style_reconstruction_loss.19
= control target key start
LH: loop header
LB: loop body
LE: loop exit
PB: predicated region body
PF: predicated region fallthrough
CT: control target
= control target key end

     0   :  { %s1232_s1 = inlined_call_operand.vmem [shape: bf16[640,128], index: 1, kind: input, shape index: {}]   ;;  %s1233_s0 = inlined_call_operand.vmem [shape: bf16[64,640], index: 0, kind: input, shape index: {}]   ;;  %s1234_s2 = inlined_call_operand.vmem [shape: f32[1,128], index: 2, kind: input, shape index: {}]   ;;  %s1235_s3 = inlined_call_operand.vmem [shape: bf16[64,128], index: 3, kind: output, shape index: {}]  }
   0x1   :  { %v949_v0 = vld [vmem:[%s1232_s1 + $0x40] sm:$0xff]   ;;  %v953_v4 = vld [vmem:[%s1232_s1 + $0x48] sm:$0xff]   ;;  %v957_v8 = vld [vmem:[%s1232_s1 + $0x50] sm:$0xff]  }
   0x2   :  { %v950_v1 = vld [vmem:[%s1232_s1 + $0xc0] sm:$0xff]   ;;  %817 = vmatprep.subr.bf16.mxu0 %v949_v0  ;;  %v954_v5 = vld [vmem:[%s1232_s1 + $0xc8] sm:$0xff]   ;;  %v958_v9 = vld [vmem:[%s1232_s1 + $0xd0] sm:$0xff]  }
   0x3   :  { %v951_v2 = vld [vmem:[%s1232_s1] sm:$0xff]   ;;  %857 = vmatprep.subr.bf16.mxu1 %v950_v1  ;;  %v955_v6 = vld [vmem:[%s1232_s1 + $0x8] sm:$0xff]   ;;  %v959_v10 = vld [vmem:[%s1232_s1 + $0x10] sm:$0xff]  }
   0x4   :  { %v952_v3 = vld [vmem:[%s1232_s1 + $0x80] sm:$0xff]   ;;  %818 = vmatpush3.bf16.msra.mxu0 %v951_v2  ;;  %v956_v7 = vld [vmem:[%s1232_s1 + $0x88] sm:$0xff]   ;;  %v960_v11 = vld [vmem:[%s1232_s1 + $0x90] sm:$0xff]  }
   0x5   :  { %858 = vmatpush3.bf16.msra.mxu1 %v952_v3  ;;  %819 = vmatprep.subr.bf16.mxu0 %v953_v4  ;;  %v961_v12 = vld [vmem:[%s1232_s1 + $0x58] sm:$0xff]   ;;  %v965_v16 = vld [vmem:[%s1232_s1 + $0x60] sm:$0xff]   ;;  %v969_v20 = vld [vmem:[%s1232_s1 + $0x68] sm:$0xff]  }
   0x6   :  { %859 = vmatprep.subr.bf16.mxu1 %v954_v5  ;;  %v962_v13 = vld [vmem:[%s1232_s1 + $0xd8] sm:$0xff]   ;;  %v966_v17 = vld [vmem:[%s1232_s1 + $0xe0] sm:$0xff]   ;;  %v970_v21 = vld [vmem:[%s1232_s1 + $0xe8] sm:$0xff]  }
   0x7   :  { %v963_v14 = vld [vmem:[%s1232_s1 + $0x18] sm:$0xff]   ;;  %v967_v18 = vld [vmem:[%s1232_s1 + $0x20] sm:$0xff]   ;;  %v971_v22 = vld [vmem:[%s1232_s1 + $0x28] sm:$0xff]  }
   0x8   :  { %820 = vmatpush3.bf16.msra.mxu0 %v955_v6  ;;  %v964_v15 = vld [vmem:[%s1232_s1 + $0x98] sm:$0xff]   ;;  %v968_v19 = vld [vmem:[%s1232_s1 + $0xa0] sm:$0xff]   ;;  %v972_v23 = vld [vmem:[%s1232_s1 + $0xa8] sm:$0xff]  }
   0x9   :  { %860 = vmatpush3.bf16.msra.mxu1 %v956_v7  ;;  %821 = vmatprep.subr.bf16.mxu0 %v957_v8  ;;  %v973_v24 = vld [vmem:[%s1232_s1 + $0x70] sm:$0xff]   ;;  %v977_v28 = vld [vmem:[%s1232_s1 + $0x78] sm:$0xff]   ;;  %v986_v35 = vld [vmem:[%s1233_s0 + $0xc] ss:$20 sps:$4 sm:$0xff]  }
   0xa   :  { %861 = vmatprep.subr.bf16.mxu1 %v958_v9  ;;  %v974_v25 = vld [vmem:[%s1232_s1 + $0xf0] sm:$0xff]   ;;  %v978_v29 = vld [vmem:[%s1232_s1 + $0xf8] sm:$0xff]   ;;  %v987_v36 = vld [vmem:[%s1232_s1 + $0x100] sm:$0xff]   ;;  %567 = vmatprep.mubr.bf16.mxu1 %v986_v35 }
   0xb   :  { %v975_v26 = vld [vmem:[%s1232_s1 + $0x30] sm:$0xff]   ;;  %v979_v30 = vld [vmem:[%s1232_s1 + $0x38] sm:$0xff]   ;;  %v988_v37 = vld [vmem:[%s1232_s1 + $0x108] sm:$0xff]  }
   0xc   :  { %822 = vmatpush3.bf16.msra.mxu0 %v959_v10  ;;  %v976_v27 = vld [vmem:[%s1232_s1 + $0xb0] sm:$0xff]   ;;  %v980_v31 = vld [vmem:[%s1232_s1 + $0xb8] sm:$0xff]   ;;  %v989_v38 = vld [vmem:[%s1233_s0 + $0x2c] ss:$20 sps:$4 sm:$0xff]  }
   0xd   :  { %862 = vmatpush3.bf16.msra.mxu1 %v960_v11  ;;  %823 = vmatprep.subr.bf16.mxu0 %v961_v12  ;;  %v981_v32 = vld [vmem:[%s1233_s0] ss:$20 sps:$4 sm:$0xff]   ;;  %v983_v33 = vld [vmem:[%s1233_s0 + $0x4] ss:$20 sps:$4 sm:$0xff]   ;;  %v984_v34 = vld [vmem:[%s1233_s0 + $0x8] ss:$20 sps:$4 sm:$0xff]  }
   0xe   :  { %863 = vmatprep.subr.bf16.mxu1 %v962_v13  ;;  %502 = vmatprep.mubr.bf16.mxu0 %v983_v33  ;;  %v991_v39 = vld [vmem:[%s1233_s0 + $0x34] ss:$20 sps:$4 sm:$0xff]   ;;  %v994_v42 = vld [vmem:[%s1233_s0 + $0x30] ss:$20 sps:$4 sm:$0xff]   ;;  %v996_v44 = vld [vmem:[%s1232_s1 + $0x118] sm:$0xff]  }
   0xf   :  { %v993_v40 = vld [vmem:[%s1233_s0 + $0x28] ss:$20 sps:$4 sm:$0xff]   ;;  %v995_v41 = vld [vmem:[%s1232_s1 + $0x110] sm:$0xff]   ;;  %v1003_v46 = vld [vmem:[%s1232_s1 + $0x120] sm:$0xff]  }
  0x10   :  { %824 = vmatpush3.bf16.msra.mxu0 %v963_v14  ;;  %v997_v43 = vld [vmem:[%s1233_s0 + $0x54] ss:$20 sps:$4 sm:$0xff]   ;;  %v999_v45 = vld [vmem:[%s1233_s0 + $0x5c] ss:$20 sps:$4 sm:$0xff]   ;;  %v1002_v48 = vld [vmem:[%s1233_s0 + $0x58] ss:$20 sps:$4 sm:$0xff]  }
  0x11   :  { %864 = vmatpush3.bf16.msra.mxu1 %v964_v15  ;;  %825 = vmatprep.subr.bf16.mxu0 %v965_v16  ;;  %v1001_v47 = vld [vmem:[%s1233_s0 + $0x50] ss:$20 sps:$4 sm:$0xff]   ;;  %v1004_v51 = vld [vmem:[%s1232_s1 + $0x128] sm:$0xff]   ;;  %v1010_v54 = vld [vmem:[%s1233_s0 + $0x80] ss:$20 sps:$4 sm:$0xff]  }
  0x12   :  { %865 = vmatprep.subr.bf16.mxu1 %v966_v17  ;;  %v1005_v49 = vld [vmem:[%s1233_s0 + $0x7c] ss:$20 sps:$4 sm:$0xff]   ;;  %v1007_v50 = vld [vmem:[%s1233_s0 + $0x84] ss:$20 sps:$4 sm:$0xff]   ;;  %v1014_v56 = vld [vmem:[%s1233_s0 + $0x60] ss:$20 sps:$4 sm:$0xff]  }
  0x13   :  { %v1011_v52 = vld [vmem:[%s1232_s1 + $0x130] sm:$0xff]   ;;  %v1009_v53 = vld [vmem:[%s1233_s0 + $0x78] ss:$20 sps:$4 sm:$0xff]   ;;  %v1016_v59 = vld [vmem:[%s1233_s0 + $0x88] ss:$20 sps:$4 sm:$0xff]  }
  0x14   :  { %826 = vmatpush3.bf16.msra.mxu0 %v967_v18  ;;  %v1013_v55 = vld [vmem:[%s1233_s0 + $0x10] ss:$20 sps:$4 sm:$0xff]   ;;  %v1012_v57 = vld [vmem:[%s1232_s1 + $0x138] sm:$0xff]   ;;  %v717_v62 = vld [vmem:[%s1234_s2] ss:$0 sm:$0xff] }
  0x15   :  { %866 = vmatpush3.bf16.msra.mxu1 %v968_v19  ;;  %827 = vmatprep.subr.bf16.mxu0 %v969_v20  ;;  %v1015_v58 = vld [vmem:[%s1233_s0 + $0x38] ss:$20 sps:$4 sm:$0xff]  }
  0x16   :  { %867 = vmatprep.subr.bf16.mxu1 %v970_v21 }
  0x18   :  { %828 = vmatpush3.bf16.msra.mxu0 %v971_v22 }
  0x19   :  { %868 = vmatpush3.bf16.msra.mxu1 %v972_v23  ;;  %829 = vmatprep.subr.bf16.mxu0 %v973_v24 }
  0x1a   :  { %869 = vmatprep.subr.bf16.mxu1 %v974_v25 }
  0x1c   :  { %830 = vmatpush3.bf16.msra.mxu0 %v975_v26 }
  0x1d   :  { %870 = vmatpush3.bf16.msra.mxu1 %v976_v27  ;;  %831 = vmatprep.subr.bf16.mxu0 %v977_v28 }
  0x1e   :  { %871 = vmatprep.subr.bf16.mxu1 %v978_v29 }
  0x20   :  { %832 = vmatpush3.bf16.msra.mxu0 %v979_v30 }
  0x21   :  { %872 = vmatpush3.bf16.msra.mxu1 %v980_v31  ;;  %909 = vmatprep.subr.bf16.mxu0 %v987_v36 }
  0x22   :  { %933 = vmatprep.subr.bf16.mxu1 %v987_v36 }
  0x23   :  { %503 = vmatmul.mubr.bf16.vlgmr.msra.gmra.mrb[0].mxu0 %v981_v32 }
  0x24   :  { %568 = vmatmul.mubr.bf16.vlgmr.msra.gmra.mrb[0].mxu1 %v984_v34  ;;  %910 = vmatpush3.bf16.msra.mxu0 %v987_v36 }
  0x25   :  { %941 = vmatpush3.bf16.msra.mxu1 %v987_v36  ;;  %911 = vmatprep.subr.bf16.mxu0 %v988_v37 }
  0x26   :  { %934 = vmatprep.subr.bf16.mxu1 %v988_v37  ;;  %510 = vmatprep.mubr.bf16.mxu0 %v989_v38 }
  0x27   :  { %575 = vmatprep.mubr.bf16.mxu1 %v991_v39 }
  0x28   :  { %912 = vmatpush3.bf16.msra.mxu0 %v988_v37 }
  0x29   :  { %942 = vmatpush3.bf16.msra.mxu1 %v988_v37  ;;  %913 = vmatprep.subr.bf16.mxu0 %v995_v41 }
  0x2a   :  { %935 = vmatprep.subr.bf16.mxu1 %v995_v41 }
  0x2b   :  { %511 = vmatmul.mubr.bf16.gmra.mrb[4].mxu0 %v993_v40 }
  0x2c   :  { %576 = vmatmul.mubr.bf16.gmra.mrb[4].mxu1 %v994_v42  ;;  %518 = vmatprep.mubr.bf16.mxu0 %v997_v43 }
  0x2d   :  { %914 = vmatpush3.bf16.msra.mxu0 %v995_v41  ;;  %583 = vmatprep.mubr.bf16.mxu1 %v999_v45 }
  0x2e   :  { %943 = vmatpush3.bf16.msra.mxu1 %v995_v41  ;;  %915 = vmatprep.subr.bf16.mxu0 %v996_v44 }
  0x2f   :  { %936 = vmatprep.subr.bf16.mxu1 %v996_v44 }
  0x31   :  { %916 = vmatpush3.bf16.msra.mxu0 %v996_v44 }
  0x32   :  { %944 = vmatpush3.bf16.msra.mxu1 %v996_v44  ;;  %917 = vmatprep.subr.bf16.mxu0 %v1003_v46 }
  0x33   :  { %519 = vmatmul.mubr.bf16.gmra.mrb[8].mxu0 %v1001_v47  ;;  %937 = vmatprep.subr.bf16.mxu1 %v1003_v46 }
  0x34   :  { %584 = vmatmul.mubr.bf16.gmra.mrb[8].mxu1 %v1002_v48  ;;  %526 = vmatprep.mubr.bf16.mxu0 %v1005_v49 }
  0x35   :  { %918 = vmatpush3.bf16.msra.mxu0 %v1003_v46  ;;  %591 = vmatprep.mubr.bf16.mxu1 %v1007_v50 }
  0x36   :  { %945 = vmatpush3.bf16.msra.mxu1 %v1003_v46  ;;  %919 = vmatprep.subr.bf16.mxu0 %v1004_v51 }
  0x37   :  { %938 = vmatprep.subr.bf16.mxu1 %v1004_v51 }
  0x39   :  { %920 = vmatpush3.bf16.msra.mxu0 %v1004_v51 }
  0x3a   :  { %946 = vmatpush3.bf16.msra.mxu1 %v1004_v51  ;;  %921 = vmatprep.subr.bf16.mxu0 %v1011_v52 }
  0x3b   :  { %527 = vmatmul.mubr.bf16.gmra.mrb[12].mxu0 %v1009_v53  ;;  %939 = vmatprep.subr.bf16.mxu1 %v1011_v52 }
  0x3c   :  { %592 = vmatmul.mubr.bf16.gmra.mrb[12].mxu1 %v1010_v54  ;;  %925 = vmatprep.mubr.bf16.mxu0 %v1013_v55 }
  0x3d   :  { %922 = vmatpush3.bf16.msra.mxu0 %v1011_v52  ;;  %929 = vmatprep.mubr.bf16.mxu1 %v1014_v56 }
  0x3e   :  { %947 = vmatpush3.bf16.msra.mxu1 %v1011_v52  ;;  %923 = vmatprep.subr.bf16.mxu0 %v1012_v57 }
  0x3f   :  { %940 = vmatprep.subr.bf16.mxu1 %v1012_v57 }
  0x41   :  { %924 = vmatpush3.bf16.msra.mxu0 %v1012_v57 }
  0x42   :  { %948 = vmatpush3.bf16.msra.mxu1 %v1012_v57 }
  0x44   :  { %926 = vmatmul.mubr.bf16.vlgmr.msra.gmra.mrb[16].mxu0 %v1015_v58 }
  0x45   :  { %930 = vmatmul.mubr.bf16.vlgmr.msra.gmra.mrb[16].mxu1 %v1016_v59 }
  0xf6   :  { %v833_v60 = vpop.f32.mrb[0].mxu0 }
  0xf7   :  { %v873_v61 = vpop.f32.mrb[0].mxu1  ;;  %v834_v63 = vpop.f32.mrb[1].mxu0 }
  0xf8   :  { %v835_v0 = vadd.f32 %v834_v63, %v833_v60  ;;  %v874_v1 = vpop.f32.mrb[1].mxu1  ;;  %v836_v2 = vpop.f32.mrb[2].mxu0 }
  0xf9   :  { %v875_v3 = vadd.f32 %v874_v1, %v873_v61  ;;  %v876_v4 = vpop.f32.mrb[2].mxu1  ;;  %v837_v5 = vpop.f32.mrb[3].mxu0 }
  0xfa   :  { %v505_v6 = vadd.f32 %v835_v0, %v717_v62  ;;  %v838_v7 = vadd.f32 %v837_v5, %v836_v2  ;;  %v877_v8 = vpop.f32.mrb[3].mxu1 }
  0xfb   :  { %v878_v9 = vadd.f32 %v877_v8, %v876_v4 }
  0xfc   :  { %v508_v10 = vadd.f32 %v838_v7, %v717_v62  ;;  %v570_v11 = vadd.f32 %v875_v3, %v505_v6 }
  0xfe   :  { %v839_v12 = vpop.f32.mrb[4].mxu0  ;;  %v573_v13 = vadd.f32 %v878_v9, %v508_v10 }
  0xff   :  { %v879_v14 = vpop.f32.mrb[4].mxu1  ;;  %v840_v15 = vpop.f32.mrb[5].mxu0 }
 0x100   :  { %v841_v16 = vadd.f32 %v840_v15, %v839_v12  ;;  %v880_v17 = vpop.f32.mrb[5].mxu1  ;;  %v842_v18 = vpop.f32.mrb[6].mxu0 }
 0x101   :  { %v881_v19 = vadd.f32 %v880_v17, %v879_v14  ;;  %v882_v20 = vpop.f32.mrb[6].mxu1  ;;  %v843_v21 = vpop.f32.mrb[7].mxu0 }
 0x102   :  { %v513_v22 = vadd.f32 %v841_v16, %v717_v62  ;;  %v844_v23 = vadd.f32 %v843_v21, %v842_v18  ;;  %v883_v24 = vpop.f32.mrb[7].mxu1 }
 0x103   :  { %v884_v25 = vadd.f32 %v883_v24, %v882_v20 }
 0x104   :  { %v516_v26 = vadd.f32 %v844_v23, %v717_v62  ;;  %v578_v27 = vadd.f32 %v881_v19, %v513_v22 }
 0x106   :  { %v845_v28 = vpop.f32.mrb[8].mxu0  ;;  %v581_v29 = vadd.f32 %v884_v25, %v516_v26 }
 0x107   :  { %v885_v30 = vpop.f32.mrb[8].mxu1  ;;  %v846_v31 = vpop.f32.mrb[9].mxu0 }
 0x108   :  { %v847_v32 = vadd.f32 %v846_v31, %v845_v28  ;;  %v886_v33 = vpop.f32.mrb[9].mxu1  ;;  %v848_v34 = vpop.f32.mrb[10].mxu0 }
 0x109   :  { %v887_v35 = vadd.f32 %v886_v33, %v885_v30  ;;  %v888_v36 = vpop.f32.mrb[10].mxu1  ;;  %v849_v37 = vpop.f32.mrb[11].mxu0 }
 0x10a   :  { %v521_v38 = vadd.f32 %v847_v32, %v717_v62  ;;  %v850_v39 = vadd.f32 %v849_v37, %v848_v34  ;;  %v889_v40 = vpop.f32.mrb[11].mxu1 }
 0x10b   :  { %v890_v41 = vadd.f32 %v889_v40, %v888_v36 }
 0x10c   :  { %v524_v42 = vadd.f32 %v850_v39, %v717_v62  ;;  %v586_v43 = vadd.f32 %v887_v35, %v521_v38 }
 0x10e   :  { %v851_v44 = vpop.f32.mrb[12].mxu0  ;;  %v589_v45 = vadd.f32 %v890_v41, %v524_v42 }
 0x10f   :  { %v891_v46 = vpop.f32.mrb[12].mxu1  ;;  %v852_v47 = vpop.f32.mrb[13].mxu0 }
 0x110   :  { %v853_v48 = vadd.f32 %v852_v47, %v851_v44  ;;  %v892_v49 = vpop.f32.mrb[13].mxu1  ;;  %v854_v50 = vpop.f32.mrb[14].mxu0 }
 0x111   :  { %v893_v51 = vadd.f32 %v892_v49, %v891_v46  ;;  %v894_v52 = vpop.f32.mrb[14].mxu1  ;;  %v855_v53 = vpop.f32.mrb[15].mxu0 }
 0x112   :  { %v529_v54 = vadd.f32 %v853_v48, %v717_v62  ;;  %v856_v55 = vadd.f32 %v855_v53, %v854_v50  ;;  %v895_v56 = vpop.f32.mrb[15].mxu1 }
 0x113   :  { %v896_v57 = vadd.f32 %v895_v56, %v894_v52 }
 0x114   :  { %v532_v58 = vadd.f32 %v856_v55, %v717_v62  ;;  %v594_v59 = vadd.f32 %v893_v51, %v529_v54 }
 0x116   :  { %v597_v60 = vadd.f32 %v896_v57, %v532_v58 }
 0x117   :  { %v927_v61 = vpop.f32.mrb[16].mxu0 }
 0x118   :  { %v643_v63 = vadd.f32 %v927_v61, %v578_v27  ;;  %v931_v0 = vpop.f32.mrb[16].mxu1  ;;  %v634_v1 = vpop.f32.mrb[17].mxu0 }
 0x119   :  { %v659_v2 = vadd.f32 %v931_v0, %v594_v59  ;;  %v635_v3 = vadd.f32 %v634_v1, %v570_v11  ;;  %v650_v4 = vpop.f32.mrb[17].mxu1  ;;  %v928_v5 = vpop.f32.mrb[18].mxu0 }
 0x11a   :  { %v651_v6 = vadd.f32 %v650_v4, %v586_v43  ;;  %v646_v7 = vadd.f32 %v928_v5, %v581_v29  ;;  %v932_v8 = vpop.f32.mrb[18].mxu1  ;;  %v637_v9 = vpop.f32.mrb[19].mxu0  ;;  %v667_v15 = vmax.f32 %v643_v63, 0.0 }
 0x11b   :  { %v662_v10 = vadd.f32 %v932_v8, %v597_v60  ;;  %v638_v12 = vadd.f32 %v637_v9, %v573_v13  ;;  %v653_v14 = vpop.f32.mrb[19].mxu1  ;;  %v671_v17 = vmax.f32 %v659_v2, 0.0  ;;  %v665_v18 = vmax.f32 %v635_v3, 0.0 }
 0x11c   :  { %v668_v16 = vmax.f32 %v646_v7, 0.0  ;;  %v654_v62 = vadd.f32 %v653_v14, %v589_v45  ;;  %v669_v21 = vmax.f32 %v651_v6, 0.0 }
 0x11d   :  { %v672_v19 = vmax.f32 %v662_v10, 0.0  ;;  %v666_v20 = vmax.f32 %v638_v12, 0.0 }
 0x11e   :  { %v802_v22 = vpack.c.bf16 %v668_v16, %v667_v15  ;;  %v670_v23 = vmax.f32 %v654_v62, 0.0 }
 0x11f   :  { %v812_v11 = vpack.c.bf16 %v672_v19, %v671_v17  ;;  %v797_v24 = vpack.c.bf16 %v666_v20, %v665_v18 }
 0x120   :  { %814 = vst [vmem:[%s1235_s3 + $0x8] sm:$0xff] %v802_v22   ;;  %v807_v25 = vpack.c.bf16 %v670_v23, %v669_v21 }
 0x121   :  { %816 = vst [vmem:[%s1235_s3 + $0x18] sm:$0xff] %v812_v11   ;;  %798 = vst [vmem:[%s1235_s3] sm:$0xff] %v797_v24  }
 0x122   :  { %815 = vst [vmem:[%s1235_s3 + $0x10] sm:$0xff] %v807_v25  }

// kernel: style_reconstruction_loss.20
= control target key start
LH: loop header
LB: loop body
LE: loop exit
PB: predicated region body
PF: predicated region fallthrough
CT: control target
= control target key end

     0   :  { %vm82_vm0 = vcmask 523264   ;;  %s359_s1 = inlined_call_operand.vmem [shape: bf16[64,128], index: 1, kind: input, shape index: {}]   ;;  %s360_s0 = inlined_call_operand.vmem [shape: bf16[64,64], index: 0, kind: input, shape index: {}]   ;;  %s361_s2 = inlined_call_operand.vmem [shape: f32[1,128], index: 2, kind: input, shape index: {}]   ;;  %s362_s3 = inlined_call_operand.vmem [shape: bf16[64,128], index: 3, kind: output, shape index: {}]  }
   0x1   :  { %v288_v0 = vld [vmem:[%s359_s1] sm:$0xff]   ;;  %v289_v1 = vld [vmem:[%s359_s1 + $0x8] sm:$0xff]   ;;  %v290_v2 = vld [vmem:[%s359_s1 + $0x10] sm:$0xff]  }
   0x2   :  { %264 = vmatprep.subr.bf16.mxu0 %v288_v0  ;;  %280 = vmatprep.subr.bf16.mxu1 %v288_v0  ;;  %v292_v3 = vld [vmem:[%s360_s0] sm:$0xff]   ;;  %v293_v4 = vld [vmem:[%s360_s0 + $0x10] sm:$0xff]   ;;  %v291_v5 = vld [vmem:[%s359_s1 + $0x18] sm:$0xff]  }
   0x3   :  { %265 = vmatpush3.bf16.msra.mxu0 %v288_v0  ;;  %284 = vmatpush3.bf16.msra.mxu1 %v288_v0  ;;  %v294_v6 = vld [vmem:[%s360_s0 + $0x8] sm:$0xff]   ;;  %v295_v7 = vld [vmem:[%s360_s0 + $0x18] sm:$0xff]   ;;  %v204_v9 = vld [vmem:[%s361_s2] ss:$0 sm:$0xff] }
   0x4   :  { %266 = vmatprep.subr.bf16.mxu0 %v289_v1  ;;  %281 = vmatprep.subr.bf16.mxu1 %v289_v1 }
   0x5   :  { %272 = vmatprep.mubr.msk.bf16.mxu0 %vm82_vm0, %v292_v3  ;;  %276 = vmatprep.mubr.msk.bf16.mxu1 %vm82_vm0, %v293_v4 }
   0x7   :  { %267 = vmatpush3.bf16.msra.mxu0 %v289_v1  ;;  %285 = vmatpush3.bf16.msra.mxu1 %v289_v1 }
   0x8   :  { %268 = vmatprep.subr.bf16.mxu0 %v290_v2  ;;  %282 = vmatprep.subr.bf16.mxu1 %v290_v2 }
   0xb   :  { %269 = vmatpush3.bf16.msra.mxu0 %v290_v2  ;;  %286 = vmatpush3.bf16.msra.mxu1 %v290_v2 }
   0xc   :  { %270 = vmatprep.subr.bf16.mxu0 %v291_v5  ;;  %283 = vmatprep.subr.bf16.mxu1 %v291_v5 }
   0xf   :  { %271 = vmatpush3.bf16.msra.mxu0 %v291_v5  ;;  %287 = vmatpush3.bf16.msra.mxu1 %v291_v5 }
  0x12   :  { %273 = vmatmul.mubr.msk.bf16.vlgmr.msra.gmra.mrb[0].mxu0 %vm82_vm0, %v294_v6  ;;  %277 = vmatmul.mubr.msk.bf16.vlgmr.msra.gmra.mrb[0].mxu1 %vm82_vm0, %v295_v7 }
  0xe5   :  { %v274_v8 = vpop.f32.mrb[0].mxu0  ;;  %v278_v10 = vpop.f32.mrb[0].mxu1 }
  0xe6   :  { %v129_v11 = vpop.f32.mrb[1].mxu0  ;;  %v145_v12 = vpop.f32.mrb[1].mxu1  ;;  %v138_v15 = vadd.f32 %v274_v8, %v204_v9  ;;  %v154_v16 = vadd.f32 %v278_v10, %v204_v9 }
  0xe7   :  { %v275_v13 = vpop.f32.mrb[2].mxu0  ;;  %v279_v14 = vpop.f32.mrb[2].mxu1  ;;  %v130_v21 = vadd.f32 %v204_v9, %v129_v11  ;;  %v146_v22 = vadd.f32 %v204_v9, %v145_v12 }
  0xe8   :  { %v141_v17 = vadd.f32 %v275_v13, %v204_v9  ;;  %v157_v18 = vadd.f32 %v279_v14, %v204_v9  ;;  %v132_v19 = vpop.f32.mrb[3].mxu0  ;;  %v148_v20 = vpop.f32.mrb[3].mxu1 }
  0xe9   :  { %v133_v23 = vadd.f32 %v204_v9, %v132_v19  ;;  %v149_v24 = vadd.f32 %v204_v9, %v148_v20 }
  0xea   :  { %v241_v25 = vpack.c.bf16 %v141_v17, %v138_v15  ;;  %v251_v26 = vpack.c.bf16 %v157_v18, %v154_v16 }
  0xeb   :  { %v236_v27 = vpack.c.bf16 %v133_v23, %v130_v21  ;;  %v246_v28 = vpack.c.bf16 %v149_v24, %v146_v22 }
  0xec   :  { %253 = vst [vmem:[%s362_s3 + $0x8] sm:$0xff] %v241_v25   ;;  %255 = vst [vmem:[%s362_s3 + $0x18] sm:$0xff] %v251_v26  }
  0xed   :  { %237 = vst [vmem:[%s362_s3] sm:$0xff] %v236_v27   ;;  %254 = vst [vmem:[%s362_s3 + $0x10] sm:$0xff] %v246_v28  }

// kernel: style_reconstruction_loss.24
= control target key start
LH: loop header
LB: loop body
LE: loop exit
PB: predicated region body
PF: predicated region fallthrough
CT: control target
= control target key end

     0   :  { %s91_s0 = inlined_call_operand.vmem [shape: bf16[32,128], index: 0, kind: input, shape index: {}]   ;;  %s92_s1 = inlined_call_operand.vmem [shape: bf16[32,128], index: 1, kind: input, shape index: {}]   ;;  %s93_s2 = inlined_call_operand.vmem [shape: f32[8,128], index: 2, kind: output, shape index: {}]  }
   0x1   :  { %v44_v0 = vld [vmem:[%s91_s0] sm:$0xff]   ;;  %v59_v1 = vld [vmem:[%s91_s0 + $0x8] sm:$0xff]  }
   0x2   :  { %v52_v2 = vld [vmem:[%s92_s1] sm:$0xff]   ;;  %v45_v3 = vunpack.c.l.bf16 %v44_v0  ;;  %v46_v4 = vunpack.c.h.bf16 %v44_v0  ;;  %v49_v5 = vunpack.c.l.bf16 %v59_v1  ;;  %v50_v6 = vunpack.c.h.bf16 %v59_v1  ;;  %v60_v7 = vld [vmem:[%s92_s1 + $0x8] sm:$0xff]  }
   0x3   :  { %v53_v8 = vunpack.c.l.bf16 %v52_v2  ;;  %v54_v9 = vunpack.c.h.bf16 %v52_v2  ;;  %v57_v10 = vunpack.c.l.bf16 %v60_v7  ;;  %v58_v11 = vunpack.c.h.bf16 %v60_v7 }
   0x5   :  { %v27_v12 = vsub.f32 %v45_v3, %v53_v8  ;;  %v28_v13 = vsub.f32 %v46_v4, %v54_v9  ;;  %v29_v14 = vsub.f32 %v49_v5, %v57_v10  ;;  %v30_v15 = vsub.f32 %v50_v6, %v58_v11 }
   0x7   :  { %v31_v16 = vand.u32 2147483647, %v27_v12  ;;  %v32_v17 = vand.u32 2147483647, %v28_v13  ;;  %v33_v18 = vand.u32 2147483647, %v29_v14 }
   0x8   :  { %v34_v19 = vand.u32 2147483647, %v30_v15 }
   0x9   :  { %v35_v20 = vadd.f32 %v32_v17, %v31_v16 }
   0xb   :  { %v36_v21 = vadd.f32 %v35_v20, %v33_v18 }
   0xd   :  { %v37_v22 = vadd.f32 %v36_v21, %v34_v19 }
   0xf   :  { %38 = vst [vmem:[%s93_s2] sm:$0xff] %v37_v22 }

// kernel: style_reconstruction_loss.13
= control target key start
LH: loop header
LB: loop body
LE: loop exit
PB: predicated region body
PF: predicated region fallthrough
CT: control target
= control target key end

     0   :  { %s99_s0 = inlined_call_operand.vmem [shape: f32[48,128], index: 0, kind: input, shape index: {}]   ;;  %s100_s1 = inlined_call_operand.vmem [shape: f32[48,128], index: 1, kind: input, shape index: {}]   ;;  %s101_s2 = inlined_call_operand.vmem [shape: f32[8,128], index: 2, kind: output, shape index: {}]  }
   0x1   :  { %v11_v0 = vld [vmem:[%s99_s0] sm:$0xff]  ;;  %v12_v1 = vld [vmem:[%s99_s0 + $0x8] sm:$0xff]  ;;  %v13_v2 = vld [vmem:[%s99_s0 + $0x10] sm:$0xff] }
   0x2   :  { %v14_v3 = vld [vmem:[%s99_s0 + $0x18] sm:$0xff]  ;;  %v15_v4 = vld [vmem:[%s99_s0 + $0x20] sm:$0xff]  ;;  %v18_v6 = vld [vmem:[%s100_s1 + $0x8] sm:$0xff] }
   0x3   :  { %v17_v5 = vld [vmem:[%s100_s1] sm:$0xff]  ;;  %v19_v7 = vld [vmem:[%s100_s1 + $0x10] sm:$0xff]  ;;  %v20_v8 = vld [vmem:[%s100_s1 + $0x18] sm:$0xff]  ;;  %v24_v11 = vsub.f32 %v12_v1, %v18_v6 }
   0x4   :  { %v21_v9 = vld [vmem:[%s100_s1 + $0x20] sm:$0xff]  ;;  %v23_v10 = vsub.f32 %v11_v0, %v17_v5  ;;  %v25_v12 = vsub.f32 %v13_v2, %v19_v7  ;;  %v16_v13 = vld [vmem:[%s99_s0 + $0x28] sm:$0xff]  ;;  %v26_v15 = vsub.f32 %v14_v3, %v20_v8 }
   0x5   :  { %v22_v14 = vld [vmem:[%s100_s1 + $0x28] sm:$0xff]  ;;  %v27_v16 = vsub.f32 %v15_v4, %v21_v9  ;;  %v30_v18 = vand.u32 2147483647, %v24_v11 }
   0x6   :  { %v29_v17 = vand.u32 2147483647, %v23_v10  ;;  %v31_v19 = vand.u32 2147483647, %v25_v12  ;;  %v28_v20 = vsub.f32 %v16_v13, %v22_v14  ;;  %v32_v21 = vand.u32 2147483647, %v26_v15 }
   0x7   :  { %v33_v23 = vand.u32 2147483647, %v27_v16 }
   0x8   :  { %v35_v22 = vadd.f32 %v30_v18, %v29_v17  ;;  %v34_v25 = vand.u32 2147483647, %v28_v20 }
   0xa   :  { %v36_v24 = vadd.f32 %v35_v22, %v31_v19 }
   0xc   :  { %v37_v26 = vadd.f32 %v36_v24, %v32_v21 }
   0xe   :  { %v38_v27 = vadd.f32 %v37_v26, %v33_v23 }
  0x10   :  { %v39_v28 = vadd.f32 %v38_v27, %v34_v25 }
  0x12   :  { %40 = vst [vmem:[%s101_s2] sm:$0xff] %v39_v28 }

// kernel: style_reconstruction_loss.22
= control target key start
LH: loop header
LB: loop body
LE: loop exit
PB: predicated region body
PF: predicated region fallthrough
CT: control target
= control target key end

     0   :  { %s2002_s12 = smov 0   ;;  %s2325_s0 = inlined_call_operand.vmem [shape: bf16[4,42,128], index: 0, kind: input, shape index: {}]   ;;  %s2326_s1 = inlined_call_operand.vmem [shape: bf16[9,128,128], index: 1, kind: input, shape index: {}]   ;;  %s2327_s2 = inlined_call_operand.vmem [shape: f32[1,128], index: 2, kind: input, shape index: {}]   ;;  %s2328_s3 = inlined_call_operand.vmem [shape: bf16[4,24,128], index: 3, kind: output, shape index: {}]  }
   0x1 LB: > { %s1389_s13 = sadd.s32 4294967295, %s1980_s12   ;;  %p1393_p0 = scmp.ge.s32.totalorder %s1980_s12, 1  ;;  %s1980_s12 = sphi %s2002_s12, %s13_s12  }
   0x2   : > { %p137_p1 = scmp.lt.s32.totalorder %s1980_s12, 5 }
   0x4   : > { %p138_p2 = pnand %p1393_p0, %p137_p1 }
   0x5   : > { %v1896_v0 = vld [vmem:[%s2326_s1 + $0x40] sm:$0xff] (!%p138_p2)   ;;  %p161_p3 = scmp.lt.s32.totalorder (!%p138_p2), %s1389_s13, 3  ;;  %v1898_v2 = vld [vmem:[%s2326_s1 + $0x48] sm:$0xff] (!%p138_p2)   ;;  %v1900_v4 = vld [vmem:[%s2326_s1 + $0x50] sm:$0xff] (!%p138_p2)   ;;  %vm220_vm0 = vsmask.f32 (!%p138_p2), 7424 }
   0x6   : > { %141 = sbr.rel (%p138_p2) target bundleno = 390 (0x186), region = 32  ;;  %v1897_v1 = vld [vmem:[%s2326_s1] sm:$0xff] (!%p138_p2)   ;;  %1706 = vmatprep.subr.bf16.mxu0 (!%p138_p2), %v1896_v0  ;;  %v1899_v3 = vld [vmem:[%s2326_s1 + $0x8] sm:$0xff] (!%p138_p2)   ;;  %v1901_v5 = vld [vmem:[%s2326_s1 + $0x10] sm:$0xff] (!%p138_p2)   ;;  %vm450_vm1 = vcmask (!%p138_p2), 1046528   ;;  %vm572_vm2 = vcmask (!%p138_p2), 1044480  }
   0x7   : > { %1726 = vmatprep.subr.bf16.mxu1 (!%p138_p2), %v1897_v1  ;;  %1707 = vmatpush3.bf16.msra.mxu0 (!%p138_p2), %v1896_v0  ;;  %v1902_v6 = vld [vmem:[%s2326_s1 + $0x58] sm:$0xff] (!%p138_p2)   ;;  %v1904_v8 = vld [vmem:[%s2326_s1 + $0x60] sm:$0xff] (!%p138_p2)   ;;  %v1906_v10 = vld [vmem:[%s2326_s1 + $0x68] sm:$0xff] (!%p138_p2)   ;;  %vm694_vm3 = vsmask.f32 (!%p138_p2), 4352  ;;  %vm943_vm4 = vcmask (!%p138_p2), 1045504  }
   0x8   : > { %1727 = vmatpush3.bf16.msra.mxu1 (!%p138_p2), %v1897_v1  ;;  %1708 = vmatprep.subr.bf16.mxu0 (!%p138_p2), %v1898_v2  ;;  %v1903_v7 = vld [vmem:[%s2326_s1 + $0x18] sm:$0xff] (!%p138_p2)   ;;  %v1905_v9 = vld [vmem:[%s2326_s1 + $0x20] sm:$0xff] (!%p138_p2)   ;;  %v1907_v14 = vld [vmem:[%s2326_s1 + $0x28] sm:$0xff] (!%p138_p2)   ;;  %vm1065_vm5 = vsmask.f32 (!%p138_p2), 5376 }
   0x9   : > { %1728 = vmatprep.subr.bf16.mxu1 (!%p138_p2), %v1899_v3  ;;  %v1908_v20 = vld [vmem:[%s2326_s1 + $0x70] sm:$0xff] (!%p138_p2)   ;;  %v1910_v26 = vld [vmem:[%s2326_s1 + $0x78] sm:$0xff] (!%p138_p2)   ;;  %v1915_v30 = vld [vmem:[%s2326_s1 + $0x80] sm:$0xff] (!%p138_p2)  }
   0xa   : > { %v1909_v22 = vld [vmem:[%s2326_s1 + $0x30] sm:$0xff] (!%p138_p2)   ;;  %v1911_v27 = vld [vmem:[%s2326_s1 + $0x38] sm:$0xff] (!%p138_p2)   ;;  %v1916_v31 = vld [vmem:[%s2326_s1 + $0xc0] sm:$0xff] (!%p138_p2)  }
   0xb   : > { %1709 = vmatpush3.bf16.msra.mxu0 (!%p138_p2), %v1898_v2  ;;  %v1917_v38 = vld [vmem:[%s2326_s1 + $0x88] sm:$0xff] (!%p138_p2)   ;;  %v1919_v42 = vld [vmem:[%s2326_s1 + $0x90] sm:$0xff] (!%p138_p2)   ;;  %v1921_v44 = vld [vmem:[%s2326_s1 + $0x98] sm:$0xff] (!%p138_p2)  }
   0xc   : > { %1729 = vmatpush3.bf16.msra.mxu1 (!%p138_p2), %v1899_v3  ;;  %1710 = vmatprep.subr.bf16.mxu0 (!%p138_p2), %v1900_v4  ;;  %v1918_v39 = vld [vmem:[%s2326_s1 + $0xc8] sm:$0xff] (!%p138_p2)   ;;  %v1920_v43 = vld [vmem:[%s2326_s1 + $0xd0] sm:$0xff] (!%p138_p2)   ;;  %v1922_v45 = vld [vmem:[%s2326_s1 + $0xd8] sm:$0xff] (!%p138_p2)  }
   0xd   : > { %s2330_s13 = smov (!%p161_p3, %s1389_s13), 3  ;;  %1730 = vmatprep.subr.bf16.mxu1 %v1901_v5  ;;  %v1923_v46 = vld [vmem:[%s2326_s1 + $0xa0] sm:$0xff]   ;;  %v1925_v48 = vld [vmem:[%s2326_s1 + $0xa8] sm:$0xff]   ;;  %v1927_v50 = vld [vmem:[%s2326_s1 + $0xb0] sm:$0xff]  }
   0xe   : > { %s1886_s30 = smul.u32 24, %s2330_s13  ;;  %v1924_v47 = vld [vmem:[%s2326_s1 + $0xe0] sm:$0xff]   ;;  %v1926_v49 = vld [vmem:[%s2326_s1 + $0xe8] sm:$0xff]   ;;  %v1928_v51 = vld [vmem:[%s2326_s1 + $0xf0] sm:$0xff]  }
   0xf   : > { %1711 = vmatpush3.bf16.msra.mxu0 %v1900_v4  ;;  %v1929_v53 = vld [vmem:[%s2326_s1 + $0xb8] sm:$0xff]   ;;  %v1931_v58 = vld [vmem:[%s2326_s1 + $0x100] sm:$0xff]   ;;  %v1933_v62 = vld [vmem:[%s2326_s1 + $0x108] sm:$0xff]   ;;  %s1887_s16 = smul.u32 12, %s2330_s13 }
  0x10   : > { %1731 = vmatpush3.bf16.msra.mxu1 %v1901_v5  ;;  %1712 = vmatprep.subr.bf16.mxu0 %v1902_v6  ;;  %s2046_s10 = scalar_lea.vmem %s2325_s0, %s1886_s30  ;;  %v1930_v54 = vld [vmem:[%s2326_s1 + $0xf8] sm:$0xff]   ;;  %v1932_v59 = vld [vmem:[%s2326_s1 + $0x140] sm:$0xff]   ;;  %v1934_v63 = vld [vmem:[%s2326_s1 + $0x148] sm:$0xff]  }
  0x11   : > { %1732 = vmatprep.subr.bf16.mxu1 %v1903_v7  ;;  %v172_v11 = vld [vmem:[%s2046_s10] sm:$0xf]  ;;  %v2053_v12 = vld [vmem:[%s2046_s10 + $0x4] sm:$0xf]  ;;  %v2056_v13 = vld [vmem:[%s2046_s10 + $0x8] sm:$0xf]  ;;  %s170_s19 = scalar_lea.vmem %s2328_s3, %s1887_s16 }
  0x12   : > { %v2062_v15 = vld [vmem:[%s2046_s10 + $0xc] sm:$0xf]  ;;  %v2065_v16 = vcombine.low %v172_v11, %v2053_v12  ;;  %v1422_v35 = vcombine.low %v2056_v13, %v2056_v13  ;;  %v2176_v0 = vcombine.low %v2053_v12, %v2056_v13  ;;  %v176_v2 = vld [vmem:[%s2046_s10 + $0x10] sm:$0xf]  ;;  %v1939_v11 = vld [vmem:[%s2326_s1 + $0x120] sm:$0xff]  }
  0x13   : > { %1713 = vmatpush3.bf16.msra.mxu0 %v1902_v6  ;;  %v2069_v17 = vcombine.low %v2056_v13, %v2062_v15  ;;  %v1935_v3 = vld [vmem:[%s2326_s1 + $0x110] sm:$0xff]   ;;  %v2188_v4 = vcombine.low %v2062_v15, %v176_v2  ;;  %v1940_v12 = vld [vmem:[%s2326_s1 + $0x160] sm:$0xff]   ;;  %v1941_v13 = vld [vmem:[%s2326_s1 + $0x128] sm:$0xff]  }
  0x14   : > { %1733 = vmatpush3.bf16.msra.mxu1 %v1903_v7  ;;  %1714 = vmatprep.subr.bf16.mxu0 %v1904_v8  ;;  %v222_v18 = vshrl.u32 %v2065_v16, 16  ;;  %v224_v19 = vshll.u32 %v2065_v16, 16  ;;  %v451_v33 = vrot.slane %v2065_v16, 1  ;;  %v573_v36 = vrot.slane %v2065_v16, 3  ;;  %v1936_v6 = vld [vmem:[%s2326_s1 + $0x150] sm:$0xff]  }
  0x15   : > { %1734 = vmatprep.subr.bf16.mxu1 %v1905_v9  ;;  %1742 = vmatprep.mubr.bf16.mxu1 %v2065_v16  ;;  %v229_v21 = vshll.u32 %v2069_v17, 16  ;;  %v233_v29 = vshrl.u32 %v2069_v17, 16  ;;  %v452_v34 = vrot.slane %v2069_v17, 1  ;;  %v574_v37 = vrot.slane %v2069_v17, 3  ;;  %v1943_v16 = vld [vmem:[%s2326_s1 + $0x130] sm:$0xff]  }
  0x16   : > { %v226_v23 = vrot.slane %v224_v19, 1  ;;  %v695_v55 = vrot.slane %v222_v18, 3  ;;  %v696_v56 = vrot.slane %v224_v19, 4  ;;  %v1201_v5 = vrot.slane %v2176_v0, 3  ;;  %v1944_v17 = vld [vmem:[%s2326_s1 + $0x170] sm:$0xff]  }
  0x17   : > { %1715 = vmatpush3.bf16.msra.mxu0 %v1904_v8  ;;  %v231_v24 = vrot.slane %v229_v21, 1  ;;  %v453_v40 = vsel %vm450_vm1, %v451_v33, %v452_v34  ;;  %v575_v41 = vsel %vm572_vm2, %v573_v36, %v574_v37  ;;  %v698_v52 = vrot.slane %v233_v29, 3  ;;  %v1937_v8 = vld [vmem:[%s2326_s1 + $0x118] sm:$0xff]   ;;  %v1952_v36 = vld [vmem:[%s2326_s1 + $0x1c8] sm:$0xff]  }
  0x18   : > { %1735 = vmatpush3.bf16.msra.mxu1 %v1905_v9  ;;  %1716 = vmatprep.subr.bf16.mxu0 %v1906_v10  ;;  %v227_v25 = vor.u32 %v226_v23, %v222_v18  ;;  %v699_v57 = vrot.slane %v229_v21, 4  ;;  %v697_v60 = vor.u32 %v696_v56, %v695_v55  ;;  %v1202_v7 = vrot.slane %v2188_v4, 3  ;;  %v1946_v23 = vld [vmem:[%s2326_s1 + $0x178] sm:$0xff]   ;;  %v1971_v55 = vld [vmem:[%s2326_s1 + $0x228] sm:$0xff]   ;;  %v1972_v56 = vld [vmem:[%s2326_s1 + $0x230] sm:$0xff]  }
  0x19   : > { %1736 = vmatprep.subr.bf16.mxu1 %v1907_v14  ;;  %v235_v32 = vor.u32 %v233_v29, %v231_v24  ;;  %v1067_v18 = vshrl.u32 %v2176_v0, 16  ;;  %v1070_v19 = vshll.u32 %v2176_v0, 16  ;;  %v1078_v21 = vshll.u32 %v2188_v4, 16  ;;  %v1950_v29 = vld [vmem:[%s2326_s1 + $0x1c0] sm:$0xff]  }
  0x1a   : > { %v232_v28 = vsel %vm220_vm0, %v227_v25, %v231_v24  ;;  %v2166_v61 = vor.u32 %v699_v57, %v698_v52  ;;  %v2202_v9 = vsel %vm572_vm2, %v1201_v5, %v1202_v7  ;;  %v1968_v52 = vld [vmem:[%s2326_s1 + $0x210] sm:$0xff]   ;;  %v1973_v57 = vld [vmem:[%s2326_s1 + $0x238] sm:$0xff]  }
  0x1b   : > { %1717 = vmatpush3.bf16.msra.mxu0 %v1906_v10  ;;  %1722 = vmatprep.mubr.bf16.mxu0 %v232_v28  ;;  %v1938_v10 = vld [vmem:[%s2326_s1 + $0x158] sm:$0xff]   ;;  %v1069_v24 = vrot.slane %v1067_v18, 2  ;;  %v1072_v25 = vrot.slane %v1070_v19, 3  ;;  %v1947_v28 = vld [vmem:[%s2326_s1 + $0x180] sm:$0xff]  }
  0x1c   : > { %1737 = vmatpush3.bf16.msra.mxu1 %v1907_v14  ;;  %1718 = vmatprep.subr.bf16.mxu0 %v1908_v20  ;;  %v701_v1 = vsel %vm694_vm3, %v697_v60, %v2166_v61  ;;  %v1942_v14 = vld [vmem:[%s2326_s1 + $0x168] sm:$0xff]  }
  0x1d   : > { %1738 = vmatprep.subr.bf16.mxu1 %v1909_v22  ;;  %v1073_v33 = vor.u32 %v1072_v25, %v1069_v24 }
  0x1f   : > { %1719 = vmatpush3.bf16.msra.mxu0 %v1908_v20  ;;  %v1075_v20 = vshrl.u32 %v2188_v4, 16 }
  0x20   : > { %1739 = vmatpush3.bf16.msra.mxu1 %v1909_v22  ;;  %1720 = vmatprep.subr.bf16.mxu0 %v1910_v26  ;;  %v1945_v22 = vld [vmem:[%s2326_s1 + $0x138] sm:$0xff]  }
  0x21   : > { %1740 = vmatprep.subr.bf16.mxu1 %v1911_v27 }
  0x23   : > { %1721 = vmatpush3.bf16.msra.mxu0 %v1910_v26  ;;  %v1077_v26 = vrot.slane %v1075_v20, 2 }
  0x24   : > { %1741 = vmatpush3.bf16.msra.mxu1 %v1911_v27  ;;  %1746 = vmatprep.subr.bf16.mxu0 %v1915_v30  ;;  %v1080_v27 = vrot.slane %v1078_v21, 3 }
  0x25   : > { %1766 = vmatprep.subr.bf16.mxu1 %v1916_v31 }
  0x26   : > { %1723 = vmatmul.mubr.bf16.vlgmr.msra.gmra.mrb[0].mxu0 %v235_v32  ;;  %v1520_v32 = vcombine.low %v2062_v15, %v2062_v15 }
  0x27   : > { %1743 = vmatmul.mubr.bf16.vlgmr.msra.gmra.mrb[0].mxu1 %v1422_v35  ;;  %1747 = vmatpush3.bf16.msra.mxu0 %v1915_v30  ;;  %v944_v30 = vrot.slane %v2176_v0, 2  ;;  %v1951_v35 = vld [vmem:[%s2326_s1 + $0x188] sm:$0xff]  }
  0x28   : > { %1767 = vmatpush3.bf16.msra.mxu1 %v1916_v31  ;;  %1748 = vmatprep.subr.bf16.mxu0 %v1917_v38  ;;  %v945_v31 = vrot.slane %v2188_v4, 2 }
  0x29   : > { %1768 = vmatprep.subr.bf16.mxu1 %v1918_v39  ;;  %1762 = vmatprep.mubr.bf16.mxu0 %v453_v40  ;;  %v1955_v40 = vld [vmem:[%s2326_s1 + $0x198] sm:$0xff]  }
  0x2a   : > { %1782 = vmatprep.mubr.bf16.mxu1 %v575_v41  ;;  %v1956_v41 = vld [vmem:[%s2326_s1 + $0x1d8] sm:$0xff]  }
  0x2b   : > { %1749 = vmatpush3.bf16.msra.mxu0 %v1917_v38  ;;  %v1953_v38 = vld [vmem:[%s2326_s1 + $0x190] sm:$0xff]  }
  0x2c   : > { %1769 = vmatpush3.bf16.msra.mxu1 %v1918_v39  ;;  %1750 = vmatprep.subr.bf16.mxu0 %v1919_v42  ;;  %v1954_v39 = vld [vmem:[%s2326_s1 + $0x1d0] sm:$0xff]  }
  0x2d   : > { %1770 = vmatprep.subr.bf16.mxu1 %v1920_v43 }
  0x2f   : > { %1751 = vmatpush3.bf16.msra.mxu0 %v1919_v42  ;;  %v1957_v42 = vld [vmem:[%s2326_s1 + $0x1a0] sm:$0xff]  }
  0x30   : > { %1771 = vmatpush3.bf16.msra.mxu1 %v1920_v43  ;;  %1752 = vmatprep.subr.bf16.mxu0 %v1921_v44  ;;  %v1958_v43 = vld [vmem:[%s2326_s1 + $0x1e0] sm:$0xff]  }
  0x31   : > { %1772 = vmatprep.subr.bf16.mxu1 %v1922_v45 }
  0x33   : > { %1753 = vmatpush3.bf16.msra.mxu0 %v1921_v44  ;;  %v1959_v44 = vld [vmem:[%s2326_s1 + $0x1a8] sm:$0xff]  }
  0x34   : > { %1773 = vmatpush3.bf16.msra.mxu1 %v1922_v45  ;;  %1754 = vmatprep.subr.bf16.mxu0 %v1923_v46  ;;  %v1960_v45 = vld [vmem:[%s2326_s1 + $0x1e8] sm:$0xff]  }
  0x35   : > { %1774 = vmatprep.subr.bf16.mxu1 %v1924_v47 }
  0x37   : > { %1755 = vmatpush3.bf16.msra.mxu0 %v1923_v46  ;;  %v1961_v46 = vld [vmem:[%s2326_s1 + $0x1b0] sm:$0xff]  }
  0x38   : > { %1775 = vmatpush3.bf16.msra.mxu1 %v1924_v47  ;;  %1756 = vmatprep.subr.bf16.mxu0 %v1925_v48  ;;  %v1962_v47 = vld [vmem:[%s2326_s1 + $0x1f0] sm:$0xff]  }
  0x39   : > { %1776 = vmatprep.subr.bf16.mxu1 %v1926_v49 }
  0x3b   : > { %1757 = vmatpush3.bf16.msra.mxu0 %v1925_v48  ;;  %v1963_v48 = vld [vmem:[%s2326_s1 + $0x1b8] sm:$0xff]  }
  0x3c   : > { %1777 = vmatpush3.bf16.msra.mxu1 %v1926_v49  ;;  %1758 = vmatprep.subr.bf16.mxu0 %v1927_v50  ;;  %v1964_v49 = vld [vmem:[%s2326_s1 + $0x1f8] sm:$0xff]  }
  0x3d   : > { %1778 = vmatprep.subr.bf16.mxu1 %v1928_v51 }
  0x3f   : > { %1759 = vmatpush3.bf16.msra.mxu0 %v1927_v50  ;;  %v1966_v50 = vld [vmem:[%s2326_s1 + $0x200] sm:$0xff]  }
  0x40   : > { %1779 = vmatpush3.bf16.msra.mxu1 %v1928_v51  ;;  %1760 = vmatprep.subr.bf16.mxu0 %v1929_v53  ;;  %v1967_v51 = vld [vmem:[%s2326_s1 + $0x208] sm:$0xff]  }
  0x41   : > { %1780 = vmatprep.subr.bf16.mxu1 %v1930_v54 }
  0x43   : > { %1761 = vmatpush3.bf16.msra.mxu0 %v1929_v53  ;;  %v1969_v53 = vld [vmem:[%s2326_s1 + $0x218] sm:$0xff]  }
  0x44   : > { %1781 = vmatpush3.bf16.msra.mxu1 %v1930_v54  ;;  %1786 = vmatprep.subr.bf16.mxu0 %v1931_v58  ;;  %v1970_v54 = vld [vmem:[%s2326_s1 + $0x220] sm:$0xff]  }
  0x45   : > { %1806 = vmatprep.subr.bf16.mxu1 %v1932_v59 }
  0x46   : > { %1763 = vmatmul.mubr.bf16.vlgmr.msra.gmra.mrb[4].mxu0 %v452_v34  ;;  %v1081_v34 = vor.u32 %v1080_v27, %v1077_v26 }
  0x47   : > { %1787 = vmatpush3.bf16.msra.mxu0 %v1931_v58  ;;  %1783 = vmatmul.mubr.bf16.vlgmr.msra.gmra.mrb[4].mxu1 %v574_v37  ;;  %v946_v37 = vsel %vm943_vm4, %v944_v30, %v945_v31 }
  0x48   : > { %1807 = vmatpush3.bf16.msra.mxu1 %v1932_v59  ;;  %1788 = vmatprep.subr.bf16.mxu0 %v1933_v62  ;;  %v1082_v15 = vsel %vm1065_vm5, %v1073_v33, %v1081_v34 }
  0x49   : > { %1808 = vmatprep.subr.bf16.mxu1 %v1934_v63  ;;  %1802 = vmatprep.mubr.bf16.mxu0 %v701_v1 }
  0x4a   : > { %1822 = vmatprep.mubr.bf16.mxu1 %v2176_v0 }
  0x4b   : > { %1789 = vmatpush3.bf16.msra.mxu0 %v1933_v62 }
  0x4c   : > { %1809 = vmatpush3.bf16.msra.mxu1 %v1934_v63  ;;  %1790 = vmatprep.subr.bf16.mxu0 %v1935_v3 }
  0x4d   : > { %1810 = vmatprep.subr.bf16.mxu1 %v1936_v6 }
  0x4f   : > { %1791 = vmatpush3.bf16.msra.mxu0 %v1935_v3 }
  0x50   : > { %1811 = vmatpush3.bf16.msra.mxu1 %v1936_v6  ;;  %1792 = vmatprep.subr.bf16.mxu0 %v1937_v8 }
  0x51   : > { %1812 = vmatprep.subr.bf16.mxu1 %v1938_v10 }
  0x53   : > { %1793 = vmatpush3.bf16.msra.mxu0 %v1937_v8 }
  0x54   : > { %1813 = vmatpush3.bf16.msra.mxu1 %v1938_v10  ;;  %1794 = vmatprep.subr.bf16.mxu0 %v1939_v11 }
  0x55   : > { %1814 = vmatprep.subr.bf16.mxu1 %v1940_v12 }
  0x57   : > { %1795 = vmatpush3.bf16.msra.mxu0 %v1939_v11 }
  0x58   : > { %1815 = vmatpush3.bf16.msra.mxu1 %v1940_v12  ;;  %1796 = vmatprep.subr.bf16.mxu0 %v1941_v13 }
  0x59   : > { %1816 = vmatprep.subr.bf16.mxu1 %v1942_v14 }
  0x5b   : > { %1797 = vmatpush3.bf16.msra.mxu0 %v1941_v13 }
  0x5c   : > { %1817 = vmatpush3.bf16.msra.mxu1 %v1942_v14  ;;  %1798 = vmatprep.subr.bf16.mxu0 %v1943_v16 }
  0x5d   : > { %1818 = vmatprep.subr.bf16.mxu1 %v1944_v17 }
  0x5f   : > { %1799 = vmatpush3.bf16.msra.mxu0 %v1943_v16 }
  0x60   : > { %1819 = vmatpush3.bf16.msra.mxu1 %v1944_v17  ;;  %1800 = vmatprep.subr.bf16.mxu0 %v1945_v22 }
  0x61   : > { %1820 = vmatprep.subr.bf16.mxu1 %v1946_v23 }
  0x63   : > { %1801 = vmatpush3.bf16.msra.mxu0 %v1945_v22 }
  0x64   : > { %1821 = vmatpush3.bf16.msra.mxu1 %v1946_v23  ;;  %1826 = vmatprep.subr.bf16.mxu0 %v1947_v28 }
  0x65   : > { %1846 = vmatprep.subr.bf16.mxu1 %v1950_v29 }
  0x66   : > { %1803 = vmatmul.mubr.bf16.vlgmr.msra.gmra.mrb[8].mxu0 %v2166_v61 }
  0x67   : > { %1827 = vmatpush3.bf16.msra.mxu0 %v1947_v28  ;;  %1823 = vmatmul.mubr.bf16.vlgmr.msra.gmra.mrb[8].mxu1 %v1520_v32 }
  0x68   : > { %1847 = vmatpush3.bf16.msra.mxu1 %v1950_v29  ;;  %1828 = vmatprep.subr.bf16.mxu0 %v1951_v35 }
  0x69   : > { %1848 = vmatprep.subr.bf16.mxu1 %v1952_v36  ;;  %1842 = vmatprep.mubr.bf16.mxu0 %v946_v37 }
  0x6a   : > { %1862 = vmatprep.mubr.bf16.mxu1 %v1082_v15 }
  0x6b   : > { %1829 = vmatpush3.bf16.msra.mxu0 %v1951_v35 }
  0x6c   : > { %1849 = vmatpush3.bf16.msra.mxu1 %v1952_v36  ;;  %1830 = vmatprep.subr.bf16.mxu0 %v1953_v38 }
  0x6d   : > { %1850 = vmatprep.subr.bf16.mxu1 %v1954_v39 }
  0x6f   : > { %1831 = vmatpush3.bf16.msra.mxu0 %v1953_v38 }
  0x70   : > { %1851 = vmatpush3.bf16.msra.mxu1 %v1954_v39  ;;  %1832 = vmatprep.subr.bf16.mxu0 %v1955_v40 }
  0x71   : > { %1852 = vmatprep.subr.bf16.mxu1 %v1956_v41 }
  0x73   : > { %1833 = vmatpush3.bf16.msra.mxu0 %v1955_v40 }
  0x74   : > { %1853 = vmatpush3.bf16.msra.mxu1 %v1956_v41  ;;  %1834 = vmatprep.subr.bf16.mxu0 %v1957_v42 }
  0x75   : > { %1854 = vmatprep.subr.bf16.mxu1 %v1958_v43 }
  0x77   : > { %1835 = vmatpush3.bf16.msra.mxu0 %v1957_v42 }
  0x78   : > { %1855 = vmatpush3.bf16.msra.mxu1 %v1958_v43  ;;  %1836 = vmatprep.subr.bf16.mxu0 %v1959_v44 }
  0x79   : > { %1856 = vmatprep.subr.bf16.mxu1 %v1960_v45 }
  0x7b   : > { %1837 = vmatpush3.bf16.msra.mxu0 %v1959_v44 }
  0x7c   : > { %1857 = vmatpush3.bf16.msra.mxu1 %v1960_v45  ;;  %1838 = vmatprep.subr.bf16.mxu0 %v1961_v46 }
  0x7d   : > { %1858 = vmatprep.subr.bf16.mxu1 %v1962_v47 }
  0x7f   : > { %1839 = vmatpush3.bf16.msra.mxu0 %v1961_v46 }
  0x80   : > { %1859 = vmatpush3.bf16.msra.mxu1 %v1962_v47  ;;  %1840 = vmatprep.subr.bf16.mxu0 %v1963_v48 }
  0x81   : > { %1860 = vmatprep.subr.bf16.mxu1 %v1964_v49 }
  0x83   : > { %1841 = vmatpush3.bf16.msra.mxu0 %v1963_v48  ;;  %v1602_v48 = vld [vmem:[%s2327_s2] ss:$0 sm:$0xff] }
  0x84   : > { %1861 = vmatpush3.bf16.msra.mxu1 %v1964_v49  ;;  %1866 = vmatprep.subr.bf16.mxu0 %v1966_v50 }
  0x86   : > { %1843 = vmatmul.mubr.bf16.vlgmr.msra.gmra.mrb[12].mxu0 %v945_v31 }
  0x87   : > { %1867 = vmatpush3.bf16.msra.mxu0 %v1966_v50  ;;  %1863 = vmatmul.mubr.bf16.vlgmr.msra.gmra.mrb[12].mxu1 %v1081_v34 }
  0x88   : > { %1868 = vmatprep.subr.bf16.mxu0 %v1967_v51  ;;  %1882 = vmatprep.mubr.bf16.mxu0 %v2202_v9 }
  0x8b   : > { %1869 = vmatpush3.bf16.msra.mxu0 %v1967_v51 }
  0x8c   : > { %1870 = vmatprep.subr.bf16.mxu0 %v1968_v52 }
  0x8f   : > { %1871 = vmatpush3.bf16.msra.mxu0 %v1968_v52 }
  0x90   : > { %1872 = vmatprep.subr.bf16.mxu0 %v1969_v53 }
  0x93   : > { %1873 = vmatpush3.bf16.msra.mxu0 %v1969_v53 }
  0x94   : > { %1874 = vmatprep.subr.bf16.mxu0 %v1970_v54 }
  0x97   : > { %1875 = vmatpush3.bf16.msra.mxu0 %v1970_v54 }
  0x98   : > { %1876 = vmatprep.subr.bf16.mxu0 %v1971_v55 }
  0x9b   : > { %1877 = vmatpush3.bf16.msra.mxu0 %v1971_v55 }
  0x9c   : > { %1878 = vmatprep.subr.bf16.mxu0 %v1972_v56 }
  0x9f   : > { %1879 = vmatpush3.bf16.msra.mxu0 %v1972_v56 }
  0xa0   : > { %1880 = vmatprep.subr.bf16.mxu0 %v1973_v57 }
  0xa3   : > { %1881 = vmatpush3.bf16.msra.mxu0 %v1973_v57 }
  0xa6   : > { %1883 = vmatmul.mubr.bf16.vlgmr.msra.gmra.mrb[16].mxu0 %v1202_v7 }
  0xf9   : > { %v1724_v58 = vpop.f32.mrb[0].mxu0 }
  0xfa   : > { %v1744_v59 = vpop.f32.mrb[0].mxu1  ;;  %v320_v60 = vpop.f32.mrb[1].mxu0 }
  0xfb   : > { %v428_v61 = vadd.f32 %v1744_v59, %v1724_v58  ;;  %v419_v62 = vpop.f32.mrb[1].mxu1  ;;  %v1725_v63 = vpop.f32.mrb[2].mxu0 }
  0xfc   : > { %v420_v0 = vadd.f32 %v419_v62, %v320_v60  ;;  %v1745_v1 = vpop.f32.mrb[2].mxu1  ;;  %v323_v2 = vpop.f32.mrb[3].mxu0 }
  0xfd   : > { %v422_v3 = vpop.f32.mrb[3].mxu1 }
  0xfe   : > { %v423_v5 = vadd.f32 %v422_v3, %v323_v2 }
 0x119   : > { %v1764_v6 = vpop.f32.mrb[4].mxu0 }
 0x11a   : > { %v554_v8 = vadd.f32 %v1764_v6, %v428_v61  ;;  %v538_v9 = vpop.f32.mrb[5].mxu0  ;;  %v1784_v10 = vpop.f32.mrb[4].mxu1 }
 0x11b   : > { %v552_v11 = vadd.f32 %v538_v9, %v420_v0  ;;  %v1765_v12 = vpop.f32.mrb[6].mxu0  ;;  %v660_v13 = vpop.f32.mrb[5].mxu1 }
 0x11c   : > { %v676_v4 = vadd.f32 %v1784_v10, %v554_v8  ;;  %v541_v7 = vpop.f32.mrb[7].mxu0  ;;  %v1785_v14 = vpop.f32.mrb[6].mxu1 }
 0x11d   : > { %v553_v16 = vadd.f32 %v541_v7, %v423_v5  ;;  %v674_v17 = vadd.f32 %v660_v13, %v552_v11  ;;  %v663_v18 = vpop.f32.mrb[7].mxu1 }
 0x11f   : > { %v675_v19 = vadd.f32 %v663_v18, %v553_v16 }
 0x139   : > { %v1804_v20 = vpop.f32.mrb[8].mxu0 }
 0x13a   : > { %v802_v21 = vadd.f32 %v1804_v20, %v676_v4  ;;  %v786_v22 = vpop.f32.mrb[9].mxu0  ;;  %v1824_v23 = vpop.f32.mrb[8].mxu1 }
 0x13b   : > { %v800_v24 = vadd.f32 %v786_v22, %v674_v17  ;;  %v1805_v25 = vpop.f32.mrb[10].mxu0  ;;  %v906_v26 = vpop.f32.mrb[9].mxu1 }
 0x13c   : > { %v922_v27 = vadd.f32 %v1824_v23, %v802_v21  ;;  %v789_v28 = vpop.f32.mrb[11].mxu0  ;;  %v1825_v29 = vpop.f32.mrb[10].mxu1 }
 0x13d   : > { %v801_v30 = vadd.f32 %v789_v28, %v675_v19  ;;  %v920_v31 = vadd.f32 %v906_v26, %v800_v24  ;;  %v909_v32 = vpop.f32.mrb[11].mxu1 }
 0x13f   : > { %v921_v33 = vadd.f32 %v909_v32, %v801_v30 }
 0x159   : > { %v1844_v34 = vpop.f32.mrb[12].mxu0 }
 0x15a   : > { %v1047_v35 = vadd.f32 %v1844_v34, %v922_v27  ;;  %v1031_v36 = vpop.f32.mrb[13].mxu0  ;;  %v1864_v37 = vpop.f32.mrb[12].mxu1 }
 0x15b   : > { %v1045_v15 = vadd.f32 %v1031_v36, %v920_v31  ;;  %v1845_v38 = vpop.f32.mrb[14].mxu0  ;;  %v1167_v39 = vpop.f32.mrb[13].mxu1 }
 0x15c   : > { %v1183_v40 = vadd.f32 %v1864_v37, %v1047_v35  ;;  %v1034_v41 = vpop.f32.mrb[15].mxu0  ;;  %v1865_v42 = vpop.f32.mrb[14].mxu1 }
 0x15d   : > { %v1046_v43 = vadd.f32 %v1034_v41, %v921_v33  ;;  %v1181_v44 = vadd.f32 %v1167_v39, %v1045_v15  ;;  %v1170_v45 = vpop.f32.mrb[15].mxu1 }
 0x15f   : > { %v1182_v46 = vadd.f32 %v1170_v45, %v1046_v43 }
 0x179   : > { %v1884_v47 = vpop.f32.mrb[16].mxu0 }
 0x17a   : > { %v1304_v49 = vadd.f32 %v1884_v47, %v1183_v40  ;;  %v1288_v50 = vpop.f32.mrb[17].mxu0 }
 0x17b   : > { %v1302_v51 = vadd.f32 %v1288_v50, %v1181_v44  ;;  %v1885_v52 = vpop.f32.mrb[18].mxu0 }
 0x17c   : > { %v1314_v53 = vadd.f32 %v1602_v48, %v1304_v49  ;;  %v1291_v54 = vpop.f32.mrb[19].mxu0 }
 0x17d   : > { %v1312_v55 = vadd.f32 %v1602_v48, %v1302_v51  ;;  %v1303_v56 = vadd.f32 %v1291_v54, %v1182_v46 }
 0x17e   : > { %v1317_v57 = vmax.f32 %v1314_v53, 0.0 }
 0x17f   : > { %v1313_v58 = vadd.f32 %v1602_v48, %v1303_v56  ;;  %v1315_v60 = vmax.f32 %v1312_v55, 0.0 }
 0x180   : > { %v1610_v59 = vpack.c.bf16 %v1317_v57, %v1317_v57 }
 0x181   : > { %v1316_v61 = vmax.f32 %v1313_v58, 0.0 }
 0x182   : > { %1333 = vst [vmem:[%s170_s19 + $0x8] sm:$0xf] %v1610_v59 }
 0x183   : > { %v1614_v62 = vpack.c.bf16 %v1316_v61, %v1315_v60 }
 0x185   : > { %1615 = vst [vmem:[%s170_s19] sm:$0xff] %v1614_v62  }
 0x186 PF: > { %s13_s12 = sadd.s32 1, %s1980_s12  }
 0x187   : > { %p10_p4 = scmp.ge.s32.totalorder %s13_s12, 6  }
 0x189   :  { %12 = sbr.rel (!%p10_p4) target bundleno = 1 (0x1), region = 70 }

// kernel: style_reconstruction_loss.21
= control target key start
LH: loop header
LB: loop body
LE: loop exit
PB: predicated region body
PF: predicated region fallthrough
CT: control target
= control target key end

     0   :  { %s2080_s15 = smov 0   ;;  %s2406_s0 = inlined_call_operand.vmem [shape: bf16[4,42,128], index: 0, kind: input, shape index: {}]   ;;  %s2407_s1 = inlined_call_operand.vmem [shape: bf16[9,128,128], index: 1, kind: input, shape index: {}]   ;;  %s2408_s2 = inlined_call_operand.vmem [shape: f32[1,128], index: 2, kind: input, shape index: {}]   ;;  %s2409_s3 = inlined_call_operand.vmem [shape: bf16[4,24,128], index: 3, kind: input, shape index: {}]   ;;  %s2410_s4 = inlined_call_operand.vmem [shape: bf16[4,24,128], index: 4, kind: output, shape index: {}]  }
   0x1 LB: > { %s1457_s16 = sadd.s32 4294967295, %s2053_s15   ;;  %p1461_p0 = scmp.ge.s32.totalorder %s2053_s15, 1  ;;  %s2053_s15 = sphi %s2080_s15, %s14_s15  }
   0x2   : > { %p172_p1 = scmp.lt.s32.totalorder %s2053_s15, 5 }
   0x4   : > { %p173_p2 = pnand %p1461_p0, %p172_p1 }
   0x5   : > { %v1969_v0 = vld [vmem:[%s2407_s1 + $0x40] sm:$0xff] (!%p173_p2)   ;;  %p203_p3 = scmp.lt.s32.totalorder (!%p173_p2), %s1457_s16, 3  ;;  %v1971_v2 = vld [vmem:[%s2407_s1 + $0x48] sm:$0xff] (!%p173_p2)   ;;  %v1973_v4 = vld [vmem:[%s2407_s1 + $0x50] sm:$0xff] (!%p173_p2)   ;;  %vm267_vm0 = vsmask.f32 (!%p173_p2), 7424 }
   0x6   : > { %176 = sbr.rel (%p173_p2) target bundleno = 392 (0x188), region = 36  ;;  %v1970_v1 = vld [vmem:[%s2407_s1] sm:$0xff] (!%p173_p2)   ;;  %1779 = vmatprep.subr.bf16.mxu0 (!%p173_p2), %v1969_v0  ;;  %v1972_v3 = vld [vmem:[%s2407_s1 + $0x8] sm:$0xff] (!%p173_p2)   ;;  %v1974_v5 = vld [vmem:[%s2407_s1 + $0x10] sm:$0xff] (!%p173_p2)   ;;  %vm497_vm1 = vcmask (!%p173_p2), 1046528   ;;  %vm619_vm2 = vcmask (!%p173_p2), 1044480  }
   0x7   : > { %1799 = vmatprep.subr.bf16.mxu1 (!%p173_p2), %v1970_v1  ;;  %1780 = vmatpush3.bf16.msra.mxu0 (!%p173_p2), %v1969_v0  ;;  %v1975_v6 = vld [vmem:[%s2407_s1 + $0x58] sm:$0xff] (!%p173_p2)   ;;  %v1977_v8 = vld [vmem:[%s2407_s1 + $0x60] sm:$0xff] (!%p173_p2)   ;;  %v1979_v10 = vld [vmem:[%s2407_s1 + $0x68] sm:$0xff] (!%p173_p2)   ;;  %vm741_vm3 = vsmask.f32 (!%p173_p2), 4352  ;;  %vm990_vm4 = vcmask (!%p173_p2), 1045504  }
   0x8   : > { %1800 = vmatpush3.bf16.msra.mxu1 (!%p173_p2), %v1970_v1  ;;  %1781 = vmatprep.subr.bf16.mxu0 (!%p173_p2), %v1971_v2  ;;  %v1976_v7 = vld [vmem:[%s2407_s1 + $0x18] sm:$0xff] (!%p173_p2)   ;;  %v1978_v9 = vld [vmem:[%s2407_s1 + $0x20] sm:$0xff] (!%p173_p2)   ;;  %v1980_v14 = vld [vmem:[%s2407_s1 + $0x28] sm:$0xff] (!%p173_p2)   ;;  %vm1112_vm5 = vsmask.f32 (!%p173_p2), 5376 }
   0x9   : > { %1801 = vmatprep.subr.bf16.mxu1 (!%p173_p2), %v1972_v3  ;;  %v1981_v20 = vld [vmem:[%s2407_s1 + $0x70] sm:$0xff] (!%p173_p2)   ;;  %v1983_v26 = vld [vmem:[%s2407_s1 + $0x78] sm:$0xff] (!%p173_p2)   ;;  %v1988_v30 = vld [vmem:[%s2407_s1 + $0x80] sm:$0xff] (!%p173_p2)  }
   0xa   : > { %v1982_v22 = vld [vmem:[%s2407_s1 + $0x30] sm:$0xff] (!%p173_p2)   ;;  %v1984_v27 = vld [vmem:[%s2407_s1 + $0x38] sm:$0xff] (!%p173_p2)   ;;  %v1989_v31 = vld [vmem:[%s2407_s1 + $0xc0] sm:$0xff] (!%p173_p2)  }
   0xb   : > { %1782 = vmatpush3.bf16.msra.mxu0 (!%p173_p2), %v1971_v2  ;;  %v1990_v38 = vld [vmem:[%s2407_s1 + $0x88] sm:$0xff] (!%p173_p2)   ;;  %v1992_v42 = vld [vmem:[%s2407_s1 + $0x90] sm:$0xff] (!%p173_p2)   ;;  %v1994_v44 = vld [vmem:[%s2407_s1 + $0x98] sm:$0xff] (!%p173_p2)  }
   0xc   : > { %1802 = vmatpush3.bf16.msra.mxu1 (!%p173_p2), %v1972_v3  ;;  %1783 = vmatprep.subr.bf16.mxu0 (!%p173_p2), %v1973_v4  ;;  %v1991_v39 = vld [vmem:[%s2407_s1 + $0xc8] sm:$0xff] (!%p173_p2)   ;;  %v1993_v43 = vld [vmem:[%s2407_s1 + $0xd0] sm:$0xff] (!%p173_p2)   ;;  %v1995_v45 = vld [vmem:[%s2407_s1 + $0xd8] sm:$0xff] (!%p173_p2)  }
   0xd   : > { %s2412_s16 = smov (!%p203_p3, %s1457_s16), 3  ;;  %1803 = vmatprep.subr.bf16.mxu1 %v1974_v5  ;;  %v1996_v46 = vld [vmem:[%s2407_s1 + $0xa0] sm:$0xff]   ;;  %v1998_v48 = vld [vmem:[%s2407_s1 + $0xa8] sm:$0xff]   ;;  %v2000_v50 = vld [vmem:[%s2407_s1 + $0xb0] sm:$0xff]  }
   0xe   : > { %s1959_s7 = smul.u32 24, %s2412_s16  ;;  %v1997_v47 = vld [vmem:[%s2407_s1 + $0xe0] sm:$0xff]   ;;  %v1999_v49 = vld [vmem:[%s2407_s1 + $0xe8] sm:$0xff]   ;;  %v2001_v51 = vld [vmem:[%s2407_s1 + $0xf0] sm:$0xff]  }
   0xf   : > { %1784 = vmatpush3.bf16.msra.mxu0 %v1973_v4  ;;  %v2002_v53 = vld [vmem:[%s2407_s1 + $0xb8] sm:$0xff]   ;;  %v2004_v58 = vld [vmem:[%s2407_s1 + $0x100] sm:$0xff]   ;;  %v2006_v62 = vld [vmem:[%s2407_s1 + $0x108] sm:$0xff]   ;;  %s1960_s23 = smul.u32 12, %s2412_s16 }
  0x10   : > { %1804 = vmatpush3.bf16.msra.mxu1 %v1974_v5  ;;  %1785 = vmatprep.subr.bf16.mxu0 %v1975_v6  ;;  %s2124_s14 = scalar_lea.vmem %s2406_s0, %s1959_s7  ;;  %v2003_v54 = vld [vmem:[%s2407_s1 + $0xf8] sm:$0xff]   ;;  %v2005_v59 = vld [vmem:[%s2407_s1 + $0x140] sm:$0xff]   ;;  %v2007_v63 = vld [vmem:[%s2407_s1 + $0x148] sm:$0xff]  }
  0x11   : > { %1805 = vmatprep.subr.bf16.mxu1 %v1976_v7  ;;  %v219_v11 = vld [vmem:[%s2124_s14] sm:$0xf]  ;;  %v2131_v12 = vld [vmem:[%s2124_s14 + $0x4] sm:$0xf]  ;;  %v2134_v13 = vld [vmem:[%s2124_s14 + $0x8] sm:$0xf]  ;;  %s212_s26 = scalar_lea.vmem %s2409_s3, %s1960_s23  ;;  %s217_s29 = scalar_lea.vmem %s2410_s4, %s1960_s23 }
  0x12   : > { %v2140_v15 = vld [vmem:[%s2124_s14 + $0xc] sm:$0xf]  ;;  %v2143_v16 = vcombine.low %v219_v11, %v2131_v12  ;;  %v1491_v35 = vcombine.low %v2134_v13, %v2134_v13  ;;  %v2254_v0 = vcombine.low %v2131_v12, %v2134_v13  ;;  %v223_v2 = vld [vmem:[%s2124_s14 + $0x10] sm:$0xf]  ;;  %v2012_v11 = vld [vmem:[%s2407_s1 + $0x120] sm:$0xff]  }
  0x13   : > { %1786 = vmatpush3.bf16.msra.mxu0 %v1975_v6  ;;  %v2147_v17 = vcombine.low %v2134_v13, %v2140_v15  ;;  %v2008_v3 = vld [vmem:[%s2407_s1 + $0x110] sm:$0xff]   ;;  %v2266_v4 = vcombine.low %v2140_v15, %v223_v2  ;;  %v2013_v12 = vld [vmem:[%s2407_s1 + $0x160] sm:$0xff]   ;;  %v2014_v13 = vld [vmem:[%s2407_s1 + $0x128] sm:$0xff]  }
  0x14   : > { %1806 = vmatpush3.bf16.msra.mxu1 %v1976_v7  ;;  %1787 = vmatprep.subr.bf16.mxu0 %v1977_v8  ;;  %v269_v18 = vshrl.u32 %v2143_v16, 16  ;;  %v271_v19 = vshll.u32 %v2143_v16, 16  ;;  %v498_v33 = vrot.slane %v2143_v16, 1  ;;  %v620_v36 = vrot.slane %v2143_v16, 3  ;;  %v2009_v6 = vld [vmem:[%s2407_s1 + $0x150] sm:$0xff]  }
  0x15   : > { %1807 = vmatprep.subr.bf16.mxu1 %v1978_v9  ;;  %1815 = vmatprep.mubr.bf16.mxu1 %v2143_v16  ;;  %v276_v21 = vshll.u32 %v2147_v17, 16  ;;  %v280_v29 = vshrl.u32 %v2147_v17, 16  ;;  %v499_v34 = vrot.slane %v2147_v17, 1  ;;  %v621_v37 = vrot.slane %v2147_v17, 3  ;;  %v2016_v16 = vld [vmem:[%s2407_s1 + $0x130] sm:$0xff]  }
  0x16   : > { %v273_v23 = vrot.slane %v271_v19, 1  ;;  %v742_v55 = vrot.slane %v269_v18, 3  ;;  %v743_v56 = vrot.slane %v271_v19, 4  ;;  %v1248_v5 = vrot.slane %v2254_v0, 3  ;;  %v2017_v17 = vld [vmem:[%s2407_s1 + $0x170] sm:$0xff]  }
  0x17   : > { %1788 = vmatpush3.bf16.msra.mxu0 %v1977_v8  ;;  %v278_v24 = vrot.slane %v276_v21, 1  ;;  %v500_v40 = vsel %vm497_vm1, %v498_v33, %v499_v34  ;;  %v622_v41 = vsel %vm619_vm2, %v620_v36, %v621_v37  ;;  %v745_v52 = vrot.slane %v280_v29, 3  ;;  %v2010_v8 = vld [vmem:[%s2407_s1 + $0x118] sm:$0xff]   ;;  %v2025_v36 = vld [vmem:[%s2407_s1 + $0x1c8] sm:$0xff]  }
  0x18   : > { %1808 = vmatpush3.bf16.msra.mxu1 %v1978_v9  ;;  %1789 = vmatprep.subr.bf16.mxu0 %v1979_v10  ;;  %v274_v25 = vor.u32 %v273_v23, %v269_v18  ;;  %v746_v57 = vrot.slane %v276_v21, 4  ;;  %v744_v60 = vor.u32 %v743_v56, %v742_v55  ;;  %v1249_v7 = vrot.slane %v2266_v4, 3  ;;  %v2019_v23 = vld [vmem:[%s2407_s1 + $0x178] sm:$0xff]   ;;  %v2044_v55 = vld [vmem:[%s2407_s1 + $0x228] sm:$0xff]   ;;  %v2045_v56 = vld [vmem:[%s2407_s1 + $0x230] sm:$0xff]  }
  0x19   : > { %1809 = vmatprep.subr.bf16.mxu1 %v1980_v14  ;;  %v282_v32 = vor.u32 %v280_v29, %v278_v24  ;;  %v1114_v18 = vshrl.u32 %v2254_v0, 16  ;;  %v1117_v19 = vshll.u32 %v2254_v0, 16  ;;  %v1125_v21 = vshll.u32 %v2266_v4, 16  ;;  %v2023_v29 = vld [vmem:[%s2407_s1 + $0x1c0] sm:$0xff]  }
  0x1a   : > { %v279_v28 = vsel %vm267_vm0, %v274_v25, %v278_v24  ;;  %v2244_v61 = vor.u32 %v746_v57, %v745_v52  ;;  %v2280_v9 = vsel %vm619_vm2, %v1248_v5, %v1249_v7  ;;  %v2041_v52 = vld [vmem:[%s2407_s1 + $0x210] sm:$0xff]   ;;  %v2046_v57 = vld [vmem:[%s2407_s1 + $0x238] sm:$0xff]  }
  0x1b   : > { %1790 = vmatpush3.bf16.msra.mxu0 %v1979_v10  ;;  %1795 = vmatprep.mubr.bf16.mxu0 %v279_v28  ;;  %v2011_v10 = vld [vmem:[%s2407_s1 + $0x158] sm:$0xff]   ;;  %v1116_v24 = vrot.slane %v1114_v18, 2  ;;  %v1119_v25 = vrot.slane %v1117_v19, 3  ;;  %v2020_v28 = vld [vmem:[%s2407_s1 + $0x180] sm:$0xff]  }
  0x1c   : > { %1810 = vmatpush3.bf16.msra.mxu1 %v1980_v14  ;;  %1791 = vmatprep.subr.bf16.mxu0 %v1981_v20  ;;  %v748_v1 = vsel %vm741_vm3, %v744_v60, %v2244_v61  ;;  %v2015_v14 = vld [vmem:[%s2407_s1 + $0x168] sm:$0xff]  }
  0x1d   : > { %1811 = vmatprep.subr.bf16.mxu1 %v1982_v22  ;;  %v1120_v33 = vor.u32 %v1119_v25, %v1116_v24 }
  0x1f   : > { %1792 = vmatpush3.bf16.msra.mxu0 %v1981_v20  ;;  %v1122_v20 = vshrl.u32 %v2266_v4, 16 }
  0x20   : > { %1812 = vmatpush3.bf16.msra.mxu1 %v1982_v22  ;;  %1793 = vmatprep.subr.bf16.mxu0 %v1983_v26  ;;  %v2018_v22 = vld [vmem:[%s2407_s1 + $0x138] sm:$0xff]  }
  0x21   : > { %1813 = vmatprep.subr.bf16.mxu1 %v1984_v27 }
  0x23   : > { %1794 = vmatpush3.bf16.msra.mxu0 %v1983_v26  ;;  %v1124_v26 = vrot.slane %v1122_v20, 2 }
  0x24   : > { %1814 = vmatpush3.bf16.msra.mxu1 %v1984_v27  ;;  %1819 = vmatprep.subr.bf16.mxu0 %v1988_v30  ;;  %v1127_v27 = vrot.slane %v1125_v21, 3 }
  0x25   : > { %1839 = vmatprep.subr.bf16.mxu1 %v1989_v31 }
  0x26   : > { %1796 = vmatmul.mubr.bf16.vlgmr.msra.gmra.mrb[0].mxu0 %v282_v32  ;;  %v1589_v32 = vcombine.low %v2140_v15, %v2140_v15 }
  0x27   : > { %1816 = vmatmul.mubr.bf16.vlgmr.msra.gmra.mrb[0].mxu1 %v1491_v35  ;;  %1820 = vmatpush3.bf16.msra.mxu0 %v1988_v30  ;;  %v991_v30 = vrot.slane %v2254_v0, 2  ;;  %v2024_v35 = vld [vmem:[%s2407_s1 + $0x188] sm:$0xff]  }
  0x28   : > { %1840 = vmatpush3.bf16.msra.mxu1 %v1989_v31  ;;  %1821 = vmatprep.subr.bf16.mxu0 %v1990_v38  ;;  %v992_v31 = vrot.slane %v2266_v4, 2 }
  0x29   : > { %1841 = vmatprep.subr.bf16.mxu1 %v1991_v39  ;;  %1835 = vmatprep.mubr.bf16.mxu0 %v500_v40  ;;  %v2028_v40 = vld [vmem:[%s2407_s1 + $0x198] sm:$0xff]  }
  0x2a   : > { %1855 = vmatprep.mubr.bf16.mxu1 %v622_v41  ;;  %v2029_v41 = vld [vmem:[%s2407_s1 + $0x1d8] sm:$0xff]  }
  0x2b   : > { %1822 = vmatpush3.bf16.msra.mxu0 %v1990_v38  ;;  %v2026_v38 = vld [vmem:[%s2407_s1 + $0x190] sm:$0xff]  }
  0x2c   : > { %1842 = vmatpush3.bf16.msra.mxu1 %v1991_v39  ;;  %1823 = vmatprep.subr.bf16.mxu0 %v1992_v42  ;;  %v2027_v39 = vld [vmem:[%s2407_s1 + $0x1d0] sm:$0xff]  }
  0x2d   : > { %1843 = vmatprep.subr.bf16.mxu1 %v1993_v43 }
  0x2f   : > { %1824 = vmatpush3.bf16.msra.mxu0 %v1992_v42  ;;  %v2030_v42 = vld [vmem:[%s2407_s1 + $0x1a0] sm:$0xff]  }
  0x30   : > { %1844 = vmatpush3.bf16.msra.mxu1 %v1993_v43  ;;  %1825 = vmatprep.subr.bf16.mxu0 %v1994_v44  ;;  %v2031_v43 = vld [vmem:[%s2407_s1 + $0x1e0] sm:$0xff]  }
  0x31   : > { %1845 = vmatprep.subr.bf16.mxu1 %v1995_v45 }
  0x33   : > { %1826 = vmatpush3.bf16.msra.mxu0 %v1994_v44  ;;  %v2032_v44 = vld [vmem:[%s2407_s1 + $0x1a8] sm:$0xff]  }
  0x34   : > { %1846 = vmatpush3.bf16.msra.mxu1 %v1995_v45  ;;  %1827 = vmatprep.subr.bf16.mxu0 %v1996_v46  ;;  %v2033_v45 = vld [vmem:[%s2407_s1 + $0x1e8] sm:$0xff]  }
  0x35   : > { %1847 = vmatprep.subr.bf16.mxu1 %v1997_v47 }
  0x37   : > { %1828 = vmatpush3.bf16.msra.mxu0 %v1996_v46  ;;  %v2034_v46 = vld [vmem:[%s2407_s1 + $0x1b0] sm:$0xff]  }
  0x38   : > { %1848 = vmatpush3.bf16.msra.mxu1 %v1997_v47  ;;  %1829 = vmatprep.subr.bf16.mxu0 %v1998_v48  ;;  %v2035_v47 = vld [vmem:[%s2407_s1 + $0x1f0] sm:$0xff]  }
  0x39   : > { %1849 = vmatprep.subr.bf16.mxu1 %v1999_v49 }
  0x3b   : > { %1830 = vmatpush3.bf16.msra.mxu0 %v1998_v48  ;;  %v2036_v48 = vld [vmem:[%s2407_s1 + $0x1b8] sm:$0xff]  }
  0x3c   : > { %1850 = vmatpush3.bf16.msra.mxu1 %v1999_v49  ;;  %1831 = vmatprep.subr.bf16.mxu0 %v2000_v50  ;;  %v2037_v49 = vld [vmem:[%s2407_s1 + $0x1f8] sm:$0xff]  }
  0x3d   : > { %1851 = vmatprep.subr.bf16.mxu1 %v2001_v51 }
  0x3f   : > { %1832 = vmatpush3.bf16.msra.mxu0 %v2000_v50  ;;  %v2039_v50 = vld [vmem:[%s2407_s1 + $0x200] sm:$0xff]  }
  0x40   : > { %1852 = vmatpush3.bf16.msra.mxu1 %v2001_v51  ;;  %1833 = vmatprep.subr.bf16.mxu0 %v2002_v53  ;;  %v2040_v51 = vld [vmem:[%s2407_s1 + $0x208] sm:$0xff]  }
  0x41   : > { %1853 = vmatprep.subr.bf16.mxu1 %v2003_v54 }
  0x43   : > { %1834 = vmatpush3.bf16.msra.mxu0 %v2002_v53  ;;  %v2042_v53 = vld [vmem:[%s2407_s1 + $0x218] sm:$0xff]  }
  0x44   : > { %1854 = vmatpush3.bf16.msra.mxu1 %v2003_v54  ;;  %1859 = vmatprep.subr.bf16.mxu0 %v2004_v58  ;;  %v2043_v54 = vld [vmem:[%s2407_s1 + $0x220] sm:$0xff]  }
  0x45   : > { %1879 = vmatprep.subr.bf16.mxu1 %v2005_v59 }
  0x46   : > { %1836 = vmatmul.mubr.bf16.vlgmr.msra.gmra.mrb[4].mxu0 %v499_v34  ;;  %v1128_v34 = vor.u32 %v1127_v27, %v1124_v26 }
  0x47   : > { %1860 = vmatpush3.bf16.msra.mxu0 %v2004_v58  ;;  %1856 = vmatmul.mubr.bf16.vlgmr.msra.gmra.mrb[4].mxu1 %v621_v37  ;;  %v993_v37 = vsel %vm990_vm4, %v991_v30, %v992_v31 }
  0x48   : > { %1880 = vmatpush3.bf16.msra.mxu1 %v2005_v59  ;;  %1861 = vmatprep.subr.bf16.mxu0 %v2006_v62  ;;  %v1129_v15 = vsel %vm1112_vm5, %v1120_v33, %v1128_v34 }
  0x49   : > { %1881 = vmatprep.subr.bf16.mxu1 %v2007_v63  ;;  %1875 = vmatprep.mubr.bf16.mxu0 %v748_v1 }
  0x4a   : > { %1895 = vmatprep.mubr.bf16.mxu1 %v2254_v0 }
  0x4b   : > { %1862 = vmatpush3.bf16.msra.mxu0 %v2006_v62 }
  0x4c   : > { %1882 = vmatpush3.bf16.msra.mxu1 %v2007_v63  ;;  %1863 = vmatprep.subr.bf16.mxu0 %v2008_v3 }
  0x4d   : > { %1883 = vmatprep.subr.bf16.mxu1 %v2009_v6 }
  0x4f   : > { %1864 = vmatpush3.bf16.msra.mxu0 %v2008_v3 }
  0x50   : > { %1884 = vmatpush3.bf16.msra.mxu1 %v2009_v6  ;;  %1865 = vmatprep.subr.bf16.mxu0 %v2010_v8 }
  0x51   : > { %1885 = vmatprep.subr.bf16.mxu1 %v2011_v10 }
  0x53   : > { %1866 = vmatpush3.bf16.msra.mxu0 %v2010_v8 }
  0x54   : > { %1886 = vmatpush3.bf16.msra.mxu1 %v2011_v10  ;;  %1867 = vmatprep.subr.bf16.mxu0 %v2012_v11 }
  0x55   : > { %1887 = vmatprep.subr.bf16.mxu1 %v2013_v12 }
  0x57   : > { %1868 = vmatpush3.bf16.msra.mxu0 %v2012_v11 }
  0x58   : > { %1888 = vmatpush3.bf16.msra.mxu1 %v2013_v12  ;;  %1869 = vmatprep.subr.bf16.mxu0 %v2014_v13 }
  0x59   : > { %1889 = vmatprep.subr.bf16.mxu1 %v2015_v14 }
  0x5b   : > { %1870 = vmatpush3.bf16.msra.mxu0 %v2014_v13 }
  0x5c   : > { %1890 = vmatpush3.bf16.msra.mxu1 %v2015_v14  ;;  %1871 = vmatprep.subr.bf16.mxu0 %v2016_v16 }
  0x5d   : > { %1891 = vmatprep.subr.bf16.mxu1 %v2017_v17 }
  0x5f   : > { %1872 = vmatpush3.bf16.msra.mxu0 %v2016_v16 }
  0x60   : > { %1892 = vmatpush3.bf16.msra.mxu1 %v2017_v17  ;;  %1873 = vmatprep.subr.bf16.mxu0 %v2018_v22 }
  0x61   : > { %1893 = vmatprep.subr.bf16.mxu1 %v2019_v23 }
  0x63   : > { %1874 = vmatpush3.bf16.msra.mxu0 %v2018_v22 }
  0x64   : > { %1894 = vmatpush3.bf16.msra.mxu1 %v2019_v23  ;;  %1899 = vmatprep.subr.bf16.mxu0 %v2020_v28 }
  0x65   : > { %1919 = vmatprep.subr.bf16.mxu1 %v2023_v29 }
  0x66   : > { %1876 = vmatmul.mubr.bf16.vlgmr.msra.gmra.mrb[8].mxu0 %v2244_v61 }
  0x67   : > { %1900 = vmatpush3.bf16.msra.mxu0 %v2020_v28  ;;  %1896 = vmatmul.mubr.bf16.vlgmr.msra.gmra.mrb[8].mxu1 %v1589_v32 }
  0x68   : > { %1920 = vmatpush3.bf16.msra.mxu1 %v2023_v29  ;;  %1901 = vmatprep.subr.bf16.mxu0 %v2024_v35 }
  0x69   : > { %1921 = vmatprep.subr.bf16.mxu1 %v2025_v36  ;;  %1915 = vmatprep.mubr.bf16.mxu0 %v993_v37 }
  0x6a   : > { %1935 = vmatprep.mubr.bf16.mxu1 %v1129_v15 }
  0x6b   : > { %1902 = vmatpush3.bf16.msra.mxu0 %v2024_v35 }
  0x6c   : > { %1922 = vmatpush3.bf16.msra.mxu1 %v2025_v36  ;;  %1903 = vmatprep.subr.bf16.mxu0 %v2026_v38 }
  0x6d   : > { %1923 = vmatprep.subr.bf16.mxu1 %v2027_v39 }
  0x6f   : > { %1904 = vmatpush3.bf16.msra.mxu0 %v2026_v38 }
  0x70   : > { %1924 = vmatpush3.bf16.msra.mxu1 %v2027_v39  ;;  %1905 = vmatprep.subr.bf16.mxu0 %v2028_v40 }
  0x71   : > { %1925 = vmatprep.subr.bf16.mxu1 %v2029_v41 }
  0x73   : > { %1906 = vmatpush3.bf16.msra.mxu0 %v2028_v40 }
  0x74   : > { %1926 = vmatpush3.bf16.msra.mxu1 %v2029_v41  ;;  %1907 = vmatprep.subr.bf16.mxu0 %v2030_v42 }
  0x75   : > { %1927 = vmatprep.subr.bf16.mxu1 %v2031_v43 }
  0x77   : > { %1908 = vmatpush3.bf16.msra.mxu0 %v2030_v42 }
  0x78   : > { %1928 = vmatpush3.bf16.msra.mxu1 %v2031_v43  ;;  %1909 = vmatprep.subr.bf16.mxu0 %v2032_v44 }
  0x79   : > { %1929 = vmatprep.subr.bf16.mxu1 %v2033_v45 }
  0x7b   : > { %1910 = vmatpush3.bf16.msra.mxu0 %v2032_v44 }
  0x7c   : > { %1930 = vmatpush3.bf16.msra.mxu1 %v2033_v45  ;;  %1911 = vmatprep.subr.bf16.mxu0 %v2034_v46 }
  0x7d   : > { %1931 = vmatprep.subr.bf16.mxu1 %v2035_v47 }
  0x7f   : > { %1912 = vmatpush3.bf16.msra.mxu0 %v2034_v46 }
  0x80   : > { %1932 = vmatpush3.bf16.msra.mxu1 %v2035_v47  ;;  %1913 = vmatprep.subr.bf16.mxu0 %v2036_v48  ;;  %v1364_v47 = vld [vmem:[%s212_s26 + $0x8] sm:$0xf] }
  0x81   : > { %1933 = vmatprep.subr.bf16.mxu1 %v2037_v49 }
  0x83   : > { %1914 = vmatpush3.bf16.msra.mxu0 %v2036_v48  ;;  %v1681_v48 = vld [vmem:[%s212_s26] sm:$0xff]  }
  0x84   : > { %1934 = vmatpush3.bf16.msra.mxu1 %v2037_v49  ;;  %1939 = vmatprep.subr.bf16.mxu0 %v2039_v50 }
  0x86   : > { %1916 = vmatmul.mubr.bf16.vlgmr.msra.gmra.mrb[12].mxu0 %v992_v31 }
  0x87   : > { %1940 = vmatpush3.bf16.msra.mxu0 %v2039_v50  ;;  %1936 = vmatmul.mubr.bf16.vlgmr.msra.gmra.mrb[12].mxu1 %v1128_v34  ;;  %v1671_v50 = vld [vmem:[%s2408_s2] ss:$0 sm:$0xff] }
  0x88   : > { %1941 = vmatprep.subr.bf16.mxu0 %v2040_v51  ;;  %1955 = vmatprep.mubr.bf16.mxu0 %v2280_v9 }
  0x8b   : > { %1942 = vmatpush3.bf16.msra.mxu0 %v2040_v51 }
  0x8c   : > { %1943 = vmatprep.subr.bf16.mxu0 %v2041_v52 }
  0x8f   : > { %1944 = vmatpush3.bf16.msra.mxu0 %v2041_v52  ;;  %v1367_v52 = vunpack.c.l.bf16 %v1364_v47 }
  0x90   : > { %1945 = vmatprep.subr.bf16.mxu0 %v2042_v53 }
  0x93   : > { %1946 = vmatpush3.bf16.msra.mxu0 %v2042_v53 }
  0x94   : > { %1947 = vmatprep.subr.bf16.mxu0 %v2043_v54 }
  0x97   : > { %1948 = vmatpush3.bf16.msra.mxu0 %v2043_v54 }
  0x98   : > { %1949 = vmatprep.subr.bf16.mxu0 %v2044_v55 }
  0x9b   : > { %1950 = vmatpush3.bf16.msra.mxu0 %v2044_v55  ;;  %v1682_v55 = vunpack.c.l.bf16 %v1681_v48 }
  0x9c   : > { %1951 = vmatprep.subr.bf16.mxu0 %v2045_v56 }
  0x9f   : > { %1952 = vmatpush3.bf16.msra.mxu0 %v2045_v56 }
  0xa0   : > { %1953 = vmatprep.subr.bf16.mxu0 %v2046_v57 }
  0xa3   : > { %1954 = vmatpush3.bf16.msra.mxu0 %v2046_v57 }
  0xa6   : > { %1956 = vmatmul.mubr.bf16.vlgmr.msra.gmra.mrb[16].mxu0 %v1249_v7 }
  0xf9   : > { %v1797_v58 = vpop.f32.mrb[0].mxu0 }
  0xfa   : > { %v1817_v59 = vpop.f32.mrb[0].mxu1  ;;  %v367_v60 = vpop.f32.mrb[1].mxu0 }
  0xfb   : > { %v475_v61 = vadd.f32 %v1817_v59, %v1797_v58  ;;  %v466_v62 = vpop.f32.mrb[1].mxu1  ;;  %v1798_v63 = vpop.f32.mrb[2].mxu0 }
  0xfc   : > { %v467_v0 = vadd.f32 %v466_v62, %v367_v60  ;;  %v1818_v1 = vpop.f32.mrb[2].mxu1  ;;  %v370_v2 = vpop.f32.mrb[3].mxu0 }
  0xfd   : > { %v469_v3 = vpop.f32.mrb[3].mxu1 }
  0xfe   : > { %v470_v5 = vadd.f32 %v469_v3, %v370_v2 }
 0x119   : > { %v1837_v6 = vpop.f32.mrb[4].mxu0 }
 0x11a   : > { %v601_v8 = vadd.f32 %v1837_v6, %v475_v61  ;;  %v585_v9 = vpop.f32.mrb[5].mxu0  ;;  %v1857_v10 = vpop.f32.mrb[4].mxu1  ;;  %v1683_v61 = vunpack.c.h.bf16 %v1681_v48 }
 0x11b   : > { %v599_v11 = vadd.f32 %v585_v9, %v467_v0  ;;  %v1838_v12 = vpop.f32.mrb[6].mxu0  ;;  %v707_v13 = vpop.f32.mrb[5].mxu1 }
 0x11c   : > { %v723_v4 = vadd.f32 %v1857_v10, %v601_v8  ;;  %v588_v7 = vpop.f32.mrb[7].mxu0  ;;  %v1858_v14 = vpop.f32.mrb[6].mxu1 }
 0x11d   : > { %v600_v16 = vadd.f32 %v588_v7, %v470_v5  ;;  %v721_v17 = vadd.f32 %v707_v13, %v599_v11  ;;  %v710_v18 = vpop.f32.mrb[7].mxu1 }
 0x11f   : > { %v722_v19 = vadd.f32 %v710_v18, %v600_v16 }
 0x139   : > { %v1877_v20 = vpop.f32.mrb[8].mxu0 }
 0x13a   : > { %v849_v21 = vadd.f32 %v1877_v20, %v723_v4  ;;  %v833_v22 = vpop.f32.mrb[9].mxu0  ;;  %v1897_v23 = vpop.f32.mrb[8].mxu1 }
 0x13b   : > { %v847_v24 = vadd.f32 %v833_v22, %v721_v17  ;;  %v1878_v25 = vpop.f32.mrb[10].mxu0  ;;  %v953_v26 = vpop.f32.mrb[9].mxu1 }
 0x13c   : > { %v969_v27 = vadd.f32 %v1897_v23, %v849_v21  ;;  %v836_v28 = vpop.f32.mrb[11].mxu0  ;;  %v1898_v29 = vpop.f32.mrb[10].mxu1 }
 0x13d   : > { %v848_v30 = vadd.f32 %v836_v28, %v722_v19  ;;  %v967_v31 = vadd.f32 %v953_v26, %v847_v24  ;;  %v956_v32 = vpop.f32.mrb[11].mxu1 }
 0x13f   : > { %v968_v33 = vadd.f32 %v956_v32, %v848_v30 }
 0x159   : > { %v1917_v34 = vpop.f32.mrb[12].mxu0 }
 0x15a   : > { %v1094_v35 = vadd.f32 %v1917_v34, %v969_v27  ;;  %v1078_v36 = vpop.f32.mrb[13].mxu0  ;;  %v1937_v37 = vpop.f32.mrb[12].mxu1 }
 0x15b   : > { %v1092_v15 = vadd.f32 %v1078_v36, %v967_v31  ;;  %v1918_v38 = vpop.f32.mrb[14].mxu0  ;;  %v1214_v39 = vpop.f32.mrb[13].mxu1 }
 0x15c   : > { %v1230_v40 = vadd.f32 %v1937_v37, %v1094_v35  ;;  %v1081_v41 = vpop.f32.mrb[15].mxu0  ;;  %v1938_v42 = vpop.f32.mrb[14].mxu1 }
 0x15d   : > { %v1093_v43 = vadd.f32 %v1081_v41, %v968_v33  ;;  %v1228_v44 = vadd.f32 %v1214_v39, %v1092_v15  ;;  %v1217_v45 = vpop.f32.mrb[15].mxu1 }
 0x15f   : > { %v1229_v46 = vadd.f32 %v1217_v45, %v1093_v43 }
 0x179   : > { %v1957_v49 = vpop.f32.mrb[16].mxu0 }
 0x17a   : > { %v1351_v51 = vadd.f32 %v1957_v49, %v1230_v40  ;;  %v1335_v53 = vpop.f32.mrb[17].mxu0 }
 0x17b   : > { %v1349_v54 = vadd.f32 %v1335_v53, %v1228_v44  ;;  %v1958_v56 = vpop.f32.mrb[18].mxu0 }
 0x17c   : > { %v1361_v57 = vadd.f32 %v1671_v50, %v1351_v51  ;;  %v1338_v58 = vpop.f32.mrb[19].mxu0 }
 0x17d   : > { %v1359_v59 = vadd.f32 %v1671_v50, %v1349_v54  ;;  %v1350_v60 = vadd.f32 %v1338_v58, %v1229_v46 }
 0x17e   : > { %v1370_v62 = vadd.f32 %v1367_v52, %v1361_v57 }
 0x17f   : > { %v1368_v63 = vadd.f32 %v1682_v55, %v1359_v59  ;;  %v1360_v0 = vadd.f32 %v1671_v50, %v1350_v60 }
 0x180   : > { %v1373_v1 = vmax.f32 %v1370_v62, 0.0 }
 0x181   : > { %v1369_v2 = vadd.f32 %v1683_v61, %v1360_v0  ;;  %v1371_v5 = vmax.f32 %v1368_v63, 0.0 }
 0x182   : > { %v1679_v3 = vpack.c.bf16 %v1373_v1, %v1373_v1 }
 0x183   : > { %v1372_v6 = vmax.f32 %v1369_v2, 0.0 }
 0x184   : > { %1389 = vst [vmem:[%s217_s29 + $0x8] sm:$0xf] %v1679_v3 }
 0x185   : > { %v1687_v8 = vpack.c.bf16 %v1372_v6, %v1371_v5 }
 0x187   : > { %1688 = vst [vmem:[%s217_s29] sm:$0xff] %v1687_v8  }
 0x188 PF: > { %s14_s15 = sadd.s32 1, %s2053_s15  }
 0x189   : > { %p11_p4 = scmp.ge.s32.totalorder %s14_s15, 6  }
 0x18b   :  { %13 = sbr.rel (!%p11_p4) target bundleno = 1 (0x1), region = 77 }

</bundles_post_ra>
